<compile_context>
chip_gen: v7x
topology: tpu7x:2x2x1
jax: 0.10.0
libtpu: 0.0.40
codegen_flags: <defaults>
</compile_context>

<pallas_src>
import functools

import jax
import jax.numpy as jnp
from jax.experimental import pallas as pl
from jax.experimental.pallas import tpu as pltpu

EPS = 1e-5
DROP_P = 0.5           # Dropout(0.5), F.dropout2d(..., training=True)
DOWNPLAY_FACTOR = 5.0  # downplay(z_hat, 5)


# --------------------------- in-kernel helpers ------------------------------

def _conv3x3_taps(x, w_taps, H, W):
    """3x3 'same' conv in lane-dense (N, C, S=H*W) layout.

    x      : (N, Cin, S) value
    w_taps : (9, Cout, Cin) value; tap t = ky*3+kx holds weight[:, :, ky, kx]
    returns: (N, Cout, S)

    Each tap is a cyclic lane roll of the input plus a validity mask built
    from a lane iota (so the 9x im2col patch tensor never exists), followed by
    a (Cout,Cin)x(Cin,S) MXU dot with a 256-wide lane dimension.
    """
    N, Cin, S = x.shape
    Cout = w_taps.shape[1]
    # lane index -> column; hoisted out of the tap loop (no per-iter iota)
    s_idx = jax.lax.broadcasted_iota(jnp.int32, (1, 1, S), 2)
    if W & (W - 1) == 0:
        col = jnp.bitwise_and(s_idx, W - 1)
    else:
        col = jax.lax.rem(s_idx, W)

    acc = [jnp.zeros((Cout, S), jnp.float32) for _ in range(N)]
    for ky in range(3):
        for kx in range(3):
            dy, dx = ky - 1, kx - 1
            d = dy * W + dx
            if d == 0:
                xt = x
            else:
                shifted = pltpu.roll(x, (-d) % S, axis=2)
                conds = []
                if dy < 0:                      # need row >= |dy|
                    conds.append(s_idx >= (-dy) * W)
                if dy > 0:                      # need row < H - dy
                    conds.append(s_idx < (H - dy) * W)
                if dx < 0:                      # need col >= |dx|
                    conds.append(col >= -dx)
                if dx > 0:                      # need col < W - dx
                    conds.append(col < W - dx)
                valid = conds[0]
                for c in conds[1:]:
                    valid = jnp.logical_and(valid, c)
                xt = jnp.where(valid, shifted, 0.0)
            wt = w_taps[ky * 3 + kx]            # (Cout, Cin)
            for n in range(N):                  # N is small & static
                acc[n] = acc[n] + jnp.dot(wt, xt[n],
                                          preferred_element_type=jnp.float32)
    return jnp.stack(acc, axis=0)               # (N, Cout, S)


def _bn2d_train(x):
    """BatchNorm2d(affine=False), training mode: per-channel biased batch
    stats over (N, S).  x: (N, C, S) -> normalized (N, C, S)."""
    N, C, S = x.shape
    tot = jnp.sum(x[0], axis=-1, keepdims=True)               # (C, 1)
    for n in range(1, N):
        tot = tot + jnp.sum(x[n], axis=-1, keepdims=True)
    mu = tot * (1.0 / (N * S))                                 # (C, 1)
    d = x - mu[None]                                           # (N, C, S)
    tot2 = jnp.sum(d[0] * d[0], axis=-1, keepdims=True)
    for n in range(1, N):
        tot2 = tot2 + jnp.sum(d[n] * d[n], axis=-1, keepdims=True)
    var = tot2 * (1.0 / (N * S))                               # (C, 1)
    return d * jax.lax.rsqrt(var + EPS)[None]


def _get_batch_params(x):
    """get_batch_params: mean / sqrt(biased_var + 1e-5) over the batch dim.
    x: (N, C, S) -> mean (C, S), std (C, S)."""
    N = x.shape[0]
    m = x[0]
    for n in range(1, N):
        m = m + x[n]
    m = m * (1.0 / N)
    v = (x[0] - m) * (x[0] - m)
    for n in range(1, N):
        v = v + (x[n] - m) * (x[n] - m)
    v = v * (1.0 / N)
    return m, jnp.sqrt(v + EPS)


def _param_sigmoid_combine(ps_ref, u, z_tilda, lat_mask, mean, std, gamma, beta):
    """ParamSigmoid x2 + lateral combine + z_hat_bn.

    u, z_tilda: (N, C, S); lat_mask: (N, C, 1); mean/std: (1, C, S);
    gamma/beta: (1, C, 1); ps_ref: (10,) SMEM scalars."""
    a1, a2, a3, a4, a5 = (ps_ref[0], ps_ref[1], ps_ref[2], ps_ref[3], ps_ref[4])
    c1, c2, c3, c4, c5 = (ps_ref[5], ps_ref[6], ps_ref[7], ps_ref[8], ps_ref[9])
    # exp + approx reciprocal both go to the EUP slot (off the VALU)
    sig1 = pl.reciprocal(1.0 + jnp.exp(-(a2 * u + a3)), approx=True)
    sig2 = pl.reciprocal(1.0 + jnp.exp(-(c2 * u + c3)), approx=True)
    psig1 = a1 * sig1 + a4 * u + a5
    psig2 = c1 * sig2 + c4 * u + c5
    z_hat = (lat_mask * z_tilda - psig1) * psig2 + psig1
    z_hat_bn = gamma * ((z_hat - mean) / std) + beta
    return z_hat, z_hat_bn


# ------------------------------ Pallas kernels ------------------------------

def _encoder_first_kernel(x_ref, noise_ref, mean_ref, std_ref, z_ref, zt_ref):
    # first layer: z_pre == x for both clean and noisy paths
    x = x_ref[...]
    m, s = _get_batch_params(x)
    mean_ref[...] = m
    std_ref[...] = s
    z = _bn2d_train(x)
    z_ref[...] = z
    # en_bn_noisy(training) on the same input gives the same normalization
    zt_ref[...] = z + noise_ref[...]


def _make_encoder_layer_kernel(H, W):
    def kernel(hp_ref, htp_ref, w_ref, g_ref, b_ref, noise_ref,
               mean_ref, std_ref, z_ref, h_ref, zt_ref, ht_ref):
        w_taps = w_ref[...]
        gamma = g_ref[...][None]                  # (1, Cout, 1)
        beta = b_ref[...][None]
        # ---- clean path: conv -> stats -> BN -> affine+ReLU ----
        z_pre = _conv3x3_taps(hp_ref[...], w_taps, H, W)
        m, s = _get_batch_params(z_pre)
        mean_ref[...] = m
        std_ref[...] = s
        z = _bn2d_train(z_pre)
        z_ref[...] = z
        h_ref[...] = jnp.maximum(gamma * z + beta, 0.0)
        # ---- noisy path: conv -> BN -> +noise -> affine+ReLU ----
        z_pre_t = _conv3x3_taps(htp_ref[...], w_taps, H, W)
        z_t = _bn2d_train(z_pre_t) + noise_ref[...]
        zt_ref[...] = z_t
        ht_ref[...] = jnp.maximum(gamma * z_t + beta, 0.0)
    return kernel


def _decoder_top_kernel(ps_ref, ht_ref, zt_ref, lat_ref, mean_ref, std_ref,
                        g_ref, b_ref, zhat_ref, zhatbn_ref):
    # last layer: u = de_bn(h_tilda), no vertical dropout
    u = _bn2d_train(ht_ref[...])
    z_hat, z_hat_bn = _param_sigmoid_combine(
        ps_ref, u, zt_ref[...], lat_ref[...],
        mean_ref[...][None], std_ref[...][None],
        g_ref[...][None], b_ref[...][None])
    zhat_ref[...] = z_hat
    zhatbn_ref[...] = z_hat_bn


def _make_decoder_mid_kernel(H, W):
    def kernel(ps_ref, zh_next_ref, w_ref, zt_ref, ver_ref, lat_ref,
               mean_ref, std_ref, g_ref, b_ref, zhat_ref, zhatbn_ref):
        # de_conv (ConvTranspose expressed as an equivalent conv, weights
        # pre-flipped at init) -> de_bn -> vertical dropout
        de = _conv3x3_taps(zh_next_ref[...], w_ref[...], H, W)
        u = _bn2d_train(de) * ver_ref[...]
        z_hat, z_hat_bn = _param_sigmoid_combine(
            ps_ref, u, zt_ref[...], lat_ref[...],
            mean_ref[...][None], std_ref[...][None],
            g_ref[...][None], b_ref[...][None])
        zhat_ref[...] = z_hat
        zhatbn_ref[...] = z_hat_bn
    return kernel


def _downplay_kernel(x_ref, o_ref):
    # downplay(x, 5): where the channel-sum is exactly 0, divide by 5
    x = x_ref[...]                                   # (N, C, S)
    csum = jnp.sum(x, axis=1, keepdims=True)         # (N, 1, S)
    o_ref[...] = jnp.where(csum == 0.0, x / DOWNPLAY_FACTOR, x)


# ------------------------------ Pallas wrappers -----------------------------

_F32 = jnp.float32


def _vmem():
    return pl.BlockSpec(memory_space=pltpu.MemorySpace.VMEM)


def _smem():
    return pl.BlockSpec(memory_space=pltpu.MemorySpace.SMEM)


def encoder_first(x3, noise):
    N, C, S = x3.shape
    return pl.pallas_call(
        _encoder_first_kernel,
        out_shape=(jax.ShapeDtypeStruct((C, S), _F32),      # mean
                   jax.ShapeDtypeStruct((C, S), _F32),      # std
                   jax.ShapeDtypeStruct((N, C, S), _F32),   # z
                   jax.ShapeDtypeStruct((N, C, S), _F32)),  # z_tilda
    )(x3, noise)


def encoder_layer(h_prev, ht_prev, w_taps, gamma, beta, noise, H, W):
    N, _, S = h_prev.shape
    Cout = w_taps.shape[1]
    return pl.pallas_call(
        _make_encoder_layer_kernel(H, W),
        out_shape=(jax.ShapeDtypeStruct((Cout, S), _F32),      # mean
                   jax.ShapeDtypeStruct((Cout, S), _F32),      # std
                   jax.ShapeDtypeStruct((N, Cout, S), _F32),   # z
                   jax.ShapeDtypeStruct((N, Cout, S), _F32),   # h
                   jax.ShapeDtypeStruct((N, Cout, S), _F32),   # z_tilda
                   jax.ShapeDtypeStruct((N, Cout, S), _F32)),  # h_tilda
    )(h_prev, ht_prev, w_taps, gamma, beta, noise)


def decoder_top(parsig, h_tilda, z_tilda, lat_mask, mean, std, gamma, beta):
    N, C, S = z_tilda.shape
    return pl.pallas_call(
        _decoder_top_kernel,
        out_shape=(jax.ShapeDtypeStruct((N, C, S), _F32),
                   jax.ShapeDtypeStruct((N, C, S), _F32)),
        in_specs=[_smem()] + [_vmem()] * 7,
        out_specs=(_vmem(), _vmem()),
    )(parsig, h_tilda, z_tilda, lat_mask, mean, std, gamma, beta)


def decoder_mid(parsig, z_hat_next, w_taps, z_tilda, ver_mask, lat_mask,
                mean, std, gamma, beta, H, W):
    N, C, S = z_tilda.shape
    return pl.pallas_call(
        _make_decoder_mid_kernel(H, W),
        out_shape=(jax.ShapeDtypeStruct((N, C, S), _F32),
                   jax.ShapeDtypeStruct((N, C, S), _F32)),
        in_specs=[_smem()] + [_vmem()] * 9,
        out_specs=(_vmem(), _vmem()),
    )(parsig, z_hat_next, w_taps, z_tilda, ver_mask, lat_mask,
      mean, std, gamma, beta)


def downplay(z_hat3):
    return pl.pallas_call(
        _downplay_kernel,
        out_shape=jax.ShapeDtypeStruct(z_hat3.shape, _F32),
    )(z_hat3)


# ------------------------------ LadderNetwork -------------------------------

def init_params(key, layer_dims):
    """Deterministic parameter init; shapes mirror the PyTorch __init__.

    Conv weights are stored in per-tap form (9, Cout, Cin); the ConvTranspose
    weights are flipped/transposed into an equivalent forward-conv weight once
    here (not per call)."""
    L = len(layer_dims)
    layers = []
    for i in range(L):
        key, *ks = jax.random.split(key, 8)
        c = layer_dims[i]
        lp = {}
        if i > 0:  # en_conv: Conv2d(dims[i-1] -> dims[i], 3x3, bias=False)
            cin = layer_dims[i - 1]
            w = (jax.random.uniform(ks[0], (c, cin, 3, 3), _F32, -1.0, 1.0)
                 / jnp.sqrt(cin * 9.0))
            lp['en_w_taps'] = w.transpose(2, 3, 0, 1).reshape(9, c, cin)
        lp['en_gamma'] = jax.random.uniform(ks[1], (c, 1), _F32)
        lp['en_beta'] = jax.random.uniform(ks[2], (c, 1), _F32)
        if i < L - 1:  # de_conv: ConvTranspose2d(dims[i+1] -> dims[i])
            cnext = layer_dims[i + 1]
            w_ct = (jax.random.uniform(ks[3], (cnext, c, 3, 3), _F32, -1.0, 1.0)
                    / jnp.sqrt(cnext * 9.0))
            # ConvTranspose(k=3, s=1, p=1, op=0) == conv3x3(pad=1) with
            # in/out swapped and spatially flipped weights.
            w_eq = jnp.flip(w_ct, axis=(2, 3)).transpose(1, 0, 2, 3)
            lp['de_w_taps'] = w_eq.transpose(2, 3, 0, 1).reshape(9, c, cnext)
        lp['de_gamma'] = jax.random.uniform(ks[4], (c, 1), _F32)
        lp['de_beta'] = jax.random.uniform(ks[5], (c, 1), _F32)
        # ParamSigmoid x2 -> 10 scalars (torch.randn(1) each)
        lp['parsig'] = jax.random.normal(ks[6], (10,), _F32)
        layers.append(lp)
    return layers


def ladder_forward(params, x, key, *, noise_std):
    """Training-mode forward: clean encoder, noisy encoder, decoder, output."""
    L = len(params)
    N, C0, H, W = x.shape
    S = H * W
    x3 = x.reshape(N, C0, S)          # pure reshape, no transpose

    keys = list(jax.random.split(key, 3 * L))
    kidx = 0
    scale = 1.0 / (1.0 - DROP_P)

    mean = [None] * L
    std = [None] * L
    z = [None] * L
    h = [None] * L
    zt = [None] * L
    ht = [None] * L

    # ---- encoder (clean + noisy paths fused per layer) ----
    for i in range(L):
        lp = params[i]
        C = lp['en_gamma'].shape[0]
        noise = noise_std * jax.random.normal(keys[kidx], (N, C, S), _F32)
        kidx += 1
        if i == 0:
            mean[i], std[i], z[i], zt[i] = encoder_first(x3, noise)
            h[i], ht[i] = z[i], zt[i]
        else:
            (mean[i], std[i], z[i], h[i], zt[i], ht[i]) = encoder_layer(
                h[i - 1], ht[i - 1], lp['en_w_taps'],
                lp['en_gamma'], lp['en_beta'], noise, H, W)

    # ---- decoder ----
    z_hat = [None] * L
    z_hat_bn = [None] * L
    for i in reversed(range(L)):
        lp = params[i]
        C = lp['en_gamma'].shape[0]
        lat = (jax.random.bernoulli(keys[kidx], 1.0 - DROP_P, (N, C, 1))
               .astype(_F32) * scale)
        kidx += 1
        if i == L - 1:
            z_hat[i], z_hat_bn[i] = decoder_top(
                lp['parsig'], ht[i], zt[i], lat, mean[i], std[i],
                lp['de_gamma'], lp['de_beta'])
        else:
            ver = (jax.random.bernoulli(keys[kidx], 1.0 - DROP_P, (N, C, 1))
                   .astype(_F32) * scale)
            kidx += 1
            z_hat[i], z_hat_bn[i] = decoder_mid(
                lp['parsig'], z_hat[i + 1], lp['de_w_taps'], zt[i], ver, lat,
                mean[i], std[i], lp['de_gamma'], lp['de_beta'], H, W)

    # ---- make_output ----
    def to_nchw(a):
        return a.reshape(N, -1, H, W)

    clean = [to_nchw(z[i]) for i in range(L)]
    recon = ([to_nchw(downplay(z_hat[0]))]
             + [to_nchw(z_hat_bn[i]) for i in range(1, L)])
    return {'clean': clean, 'recon': recon, 'x': x}


# ---------------------------------- main ------------------------------------

if __name__ == "__main__":
    key = jax.random.PRNGKey(0)
    k_param, k_x, k_fwd = jax.random.split(key, 3)

    # LadderNetwork(layer_dims=[4, 8, 16], noise_std=0.1,
    #               kernel_size=3, stride=1, padding=1, dilation=1)
    layer_dims = [4, 8, 16]
    params = init_params(k_param, layer_dims)
    x = jax.random.normal(k_x, (2, 4, 16, 16), _F32)   # NCHW

    fwd = jax.jit(functools.partial(ladder_forward, noise_std=0.1))
    out = fwd(params, x, k_fwd)
    jax.block_until_ready(out)

    # TODO(synk): torch.save/load and BatchNorm running-stat updates are
    # stateful side effects with no effect on training-mode outputs; omitted.
    print("KERNEL_OK")
</pallas_src>

<mosaic_0001>
module attributes {stable_mosaic.version = 11 : i64} {
  func.func @kernel(%arg0: memref<2x4x256xf32, #tpu.memory_space<vmem>>, %arg1: memref<2x4x256xf32, #tpu.memory_space<vmem>>, %arg2: memref<9x8x4xf32, #tpu.memory_space<vmem>>, %arg3: memref<8x1xf32, #tpu.memory_space<vmem>>, %arg4: memref<8x1xf32, #tpu.memory_space<vmem>>, %arg5: memref<2x8x256xf32, #tpu.memory_space<vmem>>, %arg6: memref<8x256xf32, #tpu.memory_space<vmem>>, %arg7: memref<8x256xf32, #tpu.memory_space<vmem>>, %arg8: memref<2x8x256xf32, #tpu.memory_space<vmem>>, %arg9: memref<2x8x256xf32, #tpu.memory_space<vmem>>, %arg10: memref<2x8x256xf32, #tpu.memory_space<vmem>>, %arg11: memref<2x8x256xf32, #tpu.memory_space<vmem>>) attributes {dimension_semantics = [], scalar_prefetch = 0 : i64, scratch_operands = 0 : i64, tpu.core_type = #tpu.core_type<tc>} {
    %c0 = arith.constant 0 : index
    %c0_0 = arith.constant 0 : index
    %c0_1 = arith.constant 0 : index
    %0 = vector.load %arg2[%c0, %c0_0, %c0_1] : memref<9x8x4xf32, #tpu.memory_space<vmem>>, vector<9x8x4xf32>
    %c0_2 = arith.constant 0 : index
    %c0_3 = arith.constant 0 : index
    %1 = vector.load %arg3[%c0_2, %c0_3] : memref<8x1xf32, #tpu.memory_space<vmem>>, vector<8x1xf32>
    %2 = vector.shape_cast %1 : vector<8x1xf32> to vector<1x8x1xf32>
    %c0_4 = arith.constant 0 : index
    %c0_5 = arith.constant 0 : index
    %3 = vector.load %arg4[%c0_4, %c0_5] : memref<8x1xf32, #tpu.memory_space<vmem>>, vector<8x1xf32>
    %4 = vector.shape_cast %3 : vector<8x1xf32> to vector<1x8x1xf32>
    %c0_6 = arith.constant 0 : index
    %c0_7 = arith.constant 0 : index
    %c0_8 = arith.constant 0 : index
    %5 = vector.load %arg0[%c0_6, %c0_7, %c0_8] : memref<2x4x256xf32, #tpu.memory_space<vmem>>, vector<2x4x256xf32>
    %6 = tpu.iota {dimensions = array<i32: 2>} : vector<1x1x256xi32>
    %c15_i32 = arith.constant 15 : i32
    %7 = vector.broadcast %c15_i32 : i32 to vector<1x1x256xi32>
    %8 = arith.andi %6, %7 : vector<1x1x256xi32>
    %cst = arith.constant 0.000000e+00 : f32
    %9 = vector.broadcast %cst : f32 to vector<8x256xf32>
    %cst_9 = arith.constant 0.000000e+00 : f32
    %10 = vector.broadcast %cst_9 : f32 to vector<8x256xf32>
    %c17_i32 = arith.constant 17 : i32
    %11 = tpu.dynamic_rotate %5 by %c17_i32 dim 2 : vector<2x4x256xf32>, i32 -> vector<2x4x256xf32>
    %c16_i32 = arith.constant 16 : i32
    %12 = vector.broadcast %c16_i32 : i32 to vector<1x1x256xi32>
    %13 = arith.cmpi sge, %6, %12 : vector<1x1x256xi32>
    %c1_i32 = arith.constant 1 : i32
    %14 = vector.broadcast %c1_i32 : i32 to vector<1x1x256xi32>
    %15 = arith.cmpi sge, %8, %14 : vector<1x1x256xi32>
    %16 = arith.andi %13, %15 : vector<1x1x256xi1>
    %cst_10 = arith.constant 0.000000e+00 : f32
    %17 = vector.shape_cast %16 : vector<1x1x256xi1> to vector<1x1x256xi1>
    %18 = vector.broadcast %17 : vector<1x1x256xi1> to vector<2x4x256xi1>
    %19 = vector.broadcast %cst_10 : f32 to vector<2x4x256xf32>
    %20 = arith.select %18, %11, %19 : vector<2x4x256xi1>, vector<2x4x256xf32>
    %21 = vector.extract_strided_slice %0 {offsets = [0, 0, 0], sizes = [1, 8, 4], strides = [1, 1, 1]} : vector<9x8x4xf32> to vector<1x8x4xf32>
    %22 = vector.shape_cast %21 : vector<1x8x4xf32> to vector<8x4xf32>
    %23 = vector.extract_strided_slice %20 {offsets = [0, 0, 0], sizes = [1, 4, 256], strides = [1, 1, 1]} : vector<2x4x256xf32> to vector<1x4x256xf32>
    %24 = vector.shape_cast %23 : vector<1x4x256xf32> to vector<4x256xf32>
    %cst_11 = arith.constant dense<0.000000e+00> : vector<8x256xf32>
    %25 = tpu.matmul %22, %24, %cst_11 {dimension_numbers = #tpu.dot_dimension_numbers<[1], [0], [0], [1], [0, 0, 1, 1], [], []>} : vector<8x4xf32>, vector<4x256xf32>, vector<8x256xf32> -> vector<8x256xf32>
    %26 = arith.addf %9, %25 : vector<8x256xf32>
    %27 = vector.extract_strided_slice %20 {offsets = [1, 0, 0], sizes = [1, 4, 256], strides = [1, 1, 1]} : vector<2x4x256xf32> to vector<1x4x256xf32>
    %28 = vector.shape_cast %27 : vector<1x4x256xf32> to vector<4x256xf32>
    %cst_12 = arith.constant dense<0.000000e+00> : vector<8x256xf32>
    %29 = tpu.matmul %22, %28, %cst_12 {dimension_numbers = #tpu.dot_dimension_numbers<[1], [0], [0], [1], [0, 0, 1, 1], [], []>} : vector<8x4xf32>, vector<4x256xf32>, vector<8x256xf32> -> vector<8x256xf32>
    %30 = arith.addf %10, %29 : vector<8x256xf32>
    %c16_i32_13 = arith.constant 16 : i32
    %31 = tpu.dynamic_rotate %5 by %c16_i32_13 dim 2 : vector<2x4x256xf32>, i32 -> vector<2x4x256xf32>
    %c16_i32_14 = arith.constant 16 : i32
    %32 = vector.broadcast %c16_i32_14 : i32 to vector<1x1x256xi32>
    %33 = arith.cmpi sge, %6, %32 : vector<1x1x256xi32>
    %cst_15 = arith.constant 0.000000e+00 : f32
    %34 = vector.shape_cast %33 : vector<1x1x256xi1> to vector<1x1x256xi1>
    %35 = vector.broadcast %34 : vector<1x1x256xi1> to vector<2x4x256xi1>
    %36 = vector.broadcast %cst_15 : f32 to vector<2x4x256xf32>
    %37 = arith.select %35, %31, %36 : vector<2x4x256xi1>, vector<2x4x256xf32>
    %38 = vector.extract_strided_slice %0 {offsets = [1, 0, 0], sizes = [1, 8, 4], strides = [1, 1, 1]} : vector<9x8x4xf32> to vector<1x8x4xf32>
    %39 = vector.shape_cast %38 : vector<1x8x4xf32> to vector<8x4xf32>
    %40 = vector.extract_strided_slice %37 {offsets = [0, 0, 0], sizes = [1, 4, 256], strides = [1, 1, 1]} : vector<2x4x256xf32> to vector<1x4x256xf32>
    %41 = vector.shape_cast %40 : vector<1x4x256xf32> to vector<4x256xf32>
    %cst_16 = arith.constant dense<0.000000e+00> : vector<8x256xf32>
    %42 = tpu.matmul %39, %41, %cst_16 {dimension_numbers = #tpu.dot_dimension_numbers<[1], [0], [0], [1], [0, 0, 1, 1], [], []>} : vector<8x4xf32>, vector<4x256xf32>, vector<8x256xf32> -> vector<8x256xf32>
    %43 = arith.addf %26, %42 : vector<8x256xf32>
    %44 = vector.extract_strided_slice %37 {offsets = [1, 0, 0], sizes = [1, 4, 256], strides = [1, 1, 1]} : vector<2x4x256xf32> to vector<1x4x256xf32>
    %45 = vector.shape_cast %44 : vector<1x4x256xf32> to vector<4x256xf32>
    %cst_17 = arith.constant dense<0.000000e+00> : vector<8x256xf32>
    %46 = tpu.matmul %39, %45, %cst_17 {dimension_numbers = #tpu.dot_dimension_numbers<[1], [0], [0], [1], [0, 0, 1, 1], [], []>} : vector<8x4xf32>, vector<4x256xf32>, vector<8x256xf32> -> vector<8x256xf32>
    %47 = arith.addf %30, %46 : vector<8x256xf32>
    %c15_i32_18 = arith.constant 15 : i32
    %48 = tpu.dynamic_rotate %5 by %c15_i32_18 dim 2 : vector<2x4x256xf32>, i32 -> vector<2x4x256xf32>
    %c16_i32_19 = arith.constant 16 : i32
    %49 = vector.broadcast %c16_i32_19 : i32 to vector<1x1x256xi32>
    %50 = arith.cmpi sge, %6, %49 : vector<1x1x256xi32>
    %c15_i32_20 = arith.constant 15 : i32
    %51 = vector.broadcast %c15_i32_20 : i32 to vector<1x1x256xi32>
    %52 = arith.cmpi slt, %8, %51 : vector<1x1x256xi32>
    %53 = arith.andi %50, %52 : vector<1x1x256xi1>
    %cst_21 = arith.constant 0.000000e+00 : f32
    %54 = vector.shape_cast %53 : vector<1x1x256xi1> to vector<1x1x256xi1>
    %55 = vector.broadcast %54 : vector<1x1x256xi1> to vector<2x4x256xi1>
    %56 = vector.broadcast %cst_21 : f32 to vector<2x4x256xf32>
    %57 = arith.select %55, %48, %56 : vector<2x4x256xi1>, vector<2x4x256xf32>
    %58 = vector.extract_strided_slice %0 {offsets = [2, 0, 0], sizes = [1, 8, 4], strides = [1, 1, 1]} : vector<9x8x4xf32> to vector<1x8x4xf32>
    %59 = vector.shape_cast %58 : vector<1x8x4xf32> to vector<8x4xf32>
    %60 = vector.extract_strided_slice %57 {offsets = [0, 0, 0], sizes = [1, 4, 256], strides = [1, 1, 1]} : vector<2x4x256xf32> to vector<1x4x256xf32>
    %61 = vector.shape_cast %60 : vector<1x4x256xf32> to vector<4x256xf32>
    %cst_22 = arith.constant dense<0.000000e+00> : vector<8x256xf32>
    %62 = tpu.matmul %59, %61, %cst_22 {dimension_numbers = #tpu.dot_dimension_numbers<[1], [0], [0], [1], [0, 0, 1, 1], [], []>} : vector<8x4xf32>, vector<4x256xf32>, vector<8x256xf32> -> vector<8x256xf32>
    %63 = arith.addf %43, %62 : vector<8x256xf32>
    %64 = vector.extract_strided_slice %57 {offsets = [1, 0, 0], sizes = [1, 4, 256], strides = [1, 1, 1]} : vector<2x4x256xf32> to vector<1x4x256xf32>
    %65 = vector.shape_cast %64 : vector<1x4x256xf32> to vector<4x256xf32>
    %cst_23 = arith.constant dense<0.000000e+00> : vector<8x256xf32>
    %66 = tpu.matmul %59, %65, %cst_23 {dimension_numbers = #tpu.dot_dimension_numbers<[1], [0], [0], [1], [0, 0, 1, 1], [], []>} : vector<8x4xf32>, vector<4x256xf32>, vector<8x256xf32> -> vector<8x256xf32>
    %67 = arith.addf %47, %66 : vector<8x256xf32>
    %c1_i32_24 = arith.constant 1 : i32
    %68 = tpu.dynamic_rotate %5 by %c1_i32_24 dim 2 : vector<2x4x256xf32>, i32 -> vector<2x4x256xf32>
    %c1_i32_25 = arith.constant 1 : i32
    %69 = vector.broadcast %c1_i32_25 : i32 to vector<1x1x256xi32>
    %70 = arith.cmpi sge, %8, %69 : vector<1x1x256xi32>
    %cst_26 = arith.constant 0.000000e+00 : f32
    %71 = vector.shape_cast %70 : vector<1x1x256xi1> to vector<1x1x256xi1>
    %72 = vector.broadcast %71 : vector<1x1x256xi1> to vector<2x4x256xi1>
    %73 = vector.broadcast %cst_26 : f32 to vector<2x4x256xf32>
    %74 = arith.select %72, %68, %73 : vector<2x4x256xi1>, vector<2x4x256xf32>
    %75 = vector.extract_strided_slice %0 {offsets = [3, 0, 0], sizes = [1, 8, 4], strides = [1, 1, 1]} : vector<9x8x4xf32> to vector<1x8x4xf32>
    %76 = vector.shape_cast %75 : vector<1x8x4xf32> to vector<8x4xf32>
    %77 = vector.extract_strided_slice %74 {offsets = [0, 0, 0], sizes = [1, 4, 256], strides = [1, 1, 1]} : vector<2x4x256xf32> to vector<1x4x256xf32>
    %78 = vector.shape_cast %77 : vector<1x4x256xf32> to vector<4x256xf32>
    %cst_27 = arith.constant dense<0.000000e+00> : vector<8x256xf32>
    %79 = tpu.matmul %76, %78, %cst_27 {dimension_numbers = #tpu.dot_dimension_numbers<[1], [0], [0], [1], [0, 0, 1, 1], [], []>} : vector<8x4xf32>, vector<4x256xf32>, vector<8x256xf32> -> vector<8x256xf32>
    %80 = arith.addf %63, %79 : vector<8x256xf32>
    %81 = vector.extract_strided_slice %74 {offsets = [1, 0, 0], sizes = [1, 4, 256], strides = [1, 1, 1]} : vector<2x4x256xf32> to vector<1x4x256xf32>
    %82 = vector.shape_cast %81 : vector<1x4x256xf32> to vector<4x256xf32>
    %cst_28 = arith.constant dense<0.000000e+00> : vector<8x256xf32>
    %83 = tpu.matmul %76, %82, %cst_28 {dimension_numbers = #tpu.dot_dimension_numbers<[1], [0], [0], [1], [0, 0, 1, 1], [], []>} : vector<8x4xf32>, vector<4x256xf32>, vector<8x256xf32> -> vector<8x256xf32>
    %84 = arith.addf %67, %83 : vector<8x256xf32>
    %85 = vector.extract_strided_slice %0 {offsets = [4, 0, 0], sizes = [1, 8, 4], strides = [1, 1, 1]} : vector<9x8x4xf32> to vector<1x8x4xf32>
    %86 = vector.shape_cast %85 : vector<1x8x4xf32> to vector<8x4xf32>
    %87 = vector.extract_strided_slice %5 {offsets = [0, 0, 0], sizes = [1, 4, 256], strides = [1, 1, 1]} : vector<2x4x256xf32> to vector<1x4x256xf32>
    %88 = vector.shape_cast %87 : vector<1x4x256xf32> to vector<4x256xf32>
    %cst_29 = arith.constant dense<0.000000e+00> : vector<8x256xf32>
    %89 = tpu.matmul %86, %88, %cst_29 {dimension_numbers = #tpu.dot_dimension_numbers<[1], [0], [0], [1], [0, 0, 1, 1], [], []>} : vector<8x4xf32>, vector<4x256xf32>, vector<8x256xf32> -> vector<8x256xf32>
    %90 = arith.addf %80, %89 : vector<8x256xf32>
    %91 = vector.extract_strided_slice %5 {offsets = [1, 0, 0], sizes = [1, 4, 256], strides = [1, 1, 1]} : vector<2x4x256xf32> to vector<1x4x256xf32>
    %92 = vector.shape_cast %91 : vector<1x4x256xf32> to vector<4x256xf32>
    %cst_30 = arith.constant dense<0.000000e+00> : vector<8x256xf32>
    %93 = tpu.matmul %86, %92, %cst_30 {dimension_numbers = #tpu.dot_dimension_numbers<[1], [0], [0], [1], [0, 0, 1, 1], [], []>} : vector<8x4xf32>, vector<4x256xf32>, vector<8x256xf32> -> vector<8x256xf32>
    %94 = arith.addf %84, %93 : vector<8x256xf32>
    %c255_i32 = arith.constant 255 : i32
    %95 = tpu.dynamic_rotate %5 by %c255_i32 dim 2 : vector<2x4x256xf32>, i32 -> vector<2x4x256xf32>
    %c15_i32_31 = arith.constant 15 : i32
    %96 = vector.broadcast %c15_i32_31 : i32 to vector<1x1x256xi32>
    %97 = arith.cmpi slt, %8, %96 : vector<1x1x256xi32>
    %cst_32 = arith.constant 0.000000e+00 : f32
    %98 = vector.shape_cast %97 : vector<1x1x256xi1> to vector<1x1x256xi1>
    %99 = vector.broadcast %98 : vector<1x1x256xi1> to vector<2x4x256xi1>
    %100 = vector.broadcast %cst_32 : f32 to vector<2x4x256xf32>
    %101 = arith.select %99, %95, %100 : vector<2x4x256xi1>, vector<2x4x256xf32>
    %102 = vector.extract_strided_slice %0 {offsets = [5, 0, 0], sizes = [1, 8, 4], strides = [1, 1, 1]} : vector<9x8x4xf32> to vector<1x8x4xf32>
    %103 = vector.shape_cast %102 : vector<1x8x4xf32> to vector<8x4xf32>
    %104 = vector.extract_strided_slice %101 {offsets = [0, 0, 0], sizes = [1, 4, 256], strides = [1, 1, 1]} : vector<2x4x256xf32> to vector<1x4x256xf32>
    %105 = vector.shape_cast %104 : vector<1x4x256xf32> to vector<4x256xf32>
    %cst_33 = arith.constant dense<0.000000e+00> : vector<8x256xf32>
    %106 = tpu.matmul %103, %105, %cst_33 {dimension_numbers = #tpu.dot_dimension_numbers<[1], [0], [0], [1], [0, 0, 1, 1], [], []>} : vector<8x4xf32>, vector<4x256xf32>, vector<8x256xf32> -> vector<8x256xf32>
    %107 = arith.addf %90, %106 : vector<8x256xf32>
    %108 = vector.extract_strided_slice %101 {offsets = [1, 0, 0], sizes = [1, 4, 256], strides = [1, 1, 1]} : vector<2x4x256xf32> to vector<1x4x256xf32>
    %109 = vector.shape_cast %108 : vector<1x4x256xf32> to vector<4x256xf32>
    %cst_34 = arith.constant dense<0.000000e+00> : vector<8x256xf32>
    %110 = tpu.matmul %103, %109, %cst_34 {dimension_numbers = #tpu.dot_dimension_numbers<[1], [0], [0], [1], [0, 0, 1, 1], [], []>} : vector<8x4xf32>, vector<4x256xf32>, vector<8x256xf32> -> vector<8x256xf32>
    %111 = arith.addf %94, %110 : vector<8x256xf32>
    %c241_i32 = arith.constant 241 : i32
    %112 = tpu.dynamic_rotate %5 by %c241_i32 dim 2 : vector<2x4x256xf32>, i32 -> vector<2x4x256xf32>
    %c240_i32 = arith.constant 240 : i32
    %113 = vector.broadcast %c240_i32 : i32 to vector<1x1x256xi32>
    %114 = arith.cmpi slt, %6, %113 : vector<1x1x256xi32>
    %c1_i32_35 = arith.constant 1 : i32
    %115 = vector.broadcast %c1_i32_35 : i32 to vector<1x1x256xi32>
    %116 = arith.cmpi sge, %8, %115 : vector<1x1x256xi32>
    %117 = arith.andi %114, %116 : vector<1x1x256xi1>
    %cst_36 = arith.constant 0.000000e+00 : f32
    %118 = vector.shape_cast %117 : vector<1x1x256xi1> to vector<1x1x256xi1>
    %119 = vector.broadcast %118 : vector<1x1x256xi1> to vector<2x4x256xi1>
    %120 = vector.broadcast %cst_36 : f32 to vector<2x4x256xf32>
    %121 = arith.select %119, %112, %120 : vector<2x4x256xi1>, vector<2x4x256xf32>
    %122 = vector.extract_strided_slice %0 {offsets = [6, 0, 0], sizes = [1, 8, 4], strides = [1, 1, 1]} : vector<9x8x4xf32> to vector<1x8x4xf32>
    %123 = vector.shape_cast %122 : vector<1x8x4xf32> to vector<8x4xf32>
    %124 = vector.extract_strided_slice %121 {offsets = [0, 0, 0], sizes = [1, 4, 256], strides = [1, 1, 1]} : vector<2x4x256xf32> to vector<1x4x256xf32>
    %125 = vector.shape_cast %124 : vector<1x4x256xf32> to vector<4x256xf32>
    %cst_37 = arith.constant dense<0.000000e+00> : vector<8x256xf32>
    %126 = tpu.matmul %123, %125, %cst_37 {dimension_numbers = #tpu.dot_dimension_numbers<[1], [0], [0], [1], [0, 0, 1, 1], [], []>} : vector<8x4xf32>, vector<4x256xf32>, vector<8x256xf32> -> vector<8x256xf32>
    %127 = arith.addf %107, %126 : vector<8x256xf32>
    %128 = vector.extract_strided_slice %121 {offsets = [1, 0, 0], sizes = [1, 4, 256], strides = [1, 1, 1]} : vector<2x4x256xf32> to vector<1x4x256xf32>
    %129 = vector.shape_cast %128 : vector<1x4x256xf32> to vector<4x256xf32>
    %cst_38 = arith.constant dense<0.000000e+00> : vector<8x256xf32>
    %130 = tpu.matmul %123, %129, %cst_38 {dimension_numbers = #tpu.dot_dimension_numbers<[1], [0], [0], [1], [0, 0, 1, 1], [], []>} : vector<8x4xf32>, vector<4x256xf32>, vector<8x256xf32> -> vector<8x256xf32>
    %131 = arith.addf %111, %130 : vector<8x256xf32>
    %c240_i32_39 = arith.constant 240 : i32
    %132 = tpu.dynamic_rotate %5 by %c240_i32_39 dim 2 : vector<2x4x256xf32>, i32 -> vector<2x4x256xf32>
    %c240_i32_40 = arith.constant 240 : i32
    %133 = vector.broadcast %c240_i32_40 : i32 to vector<1x1x256xi32>
    %134 = arith.cmpi slt, %6, %133 : vector<1x1x256xi32>
    %cst_41 = arith.constant 0.000000e+00 : f32
    %135 = vector.shape_cast %134 : vector<1x1x256xi1> to vector<1x1x256xi1>
    %136 = vector.broadcast %135 : vector<1x1x256xi1> to vector<2x4x256xi1>
    %137 = vector.broadcast %cst_41 : f32 to vector<2x4x256xf32>
    %138 = arith.select %136, %132, %137 : vector<2x4x256xi1>, vector<2x4x256xf32>
    %139 = vector.extract_strided_slice %0 {offsets = [7, 0, 0], sizes = [1, 8, 4], strides = [1, 1, 1]} : vector<9x8x4xf32> to vector<1x8x4xf32>
    %140 = vector.shape_cast %139 : vector<1x8x4xf32> to vector<8x4xf32>
    %141 = vector.extract_strided_slice %138 {offsets = [0, 0, 0], sizes = [1, 4, 256], strides = [1, 1, 1]} : vector<2x4x256xf32> to vector<1x4x256xf32>
    %142 = vector.shape_cast %141 : vector<1x4x256xf32> to vector<4x256xf32>
    %cst_42 = arith.constant dense<0.000000e+00> : vector<8x256xf32>
    %143 = tpu.matmul %140, %142, %cst_42 {dimension_numbers = #tpu.dot_dimension_numbers<[1], [0], [0], [1], [0, 0, 1, 1], [], []>} : vector<8x4xf32>, vector<4x256xf32>, vector<8x256xf32> -> vector<8x256xf32>
    %144 = arith.addf %127, %143 : vector<8x256xf32>
    %145 = vector.extract_strided_slice %138 {offsets = [1, 0, 0], sizes = [1, 4, 256], strides = [1, 1, 1]} : vector<2x4x256xf32> to vector<1x4x256xf32>
    %146 = vector.shape_cast %145 : vector<1x4x256xf32> to vector<4x256xf32>
    %cst_43 = arith.constant dense<0.000000e+00> : vector<8x256xf32>
    %147 = tpu.matmul %140, %146, %cst_43 {dimension_numbers = #tpu.dot_dimension_numbers<[1], [0], [0], [1], [0, 0, 1, 1], [], []>} : vector<8x4xf32>, vector<4x256xf32>, vector<8x256xf32> -> vector<8x256xf32>
    %148 = arith.addf %131, %147 : vector<8x256xf32>
    %c239_i32 = arith.constant 239 : i32
    %149 = tpu.dynamic_rotate %5 by %c239_i32 dim 2 : vector<2x4x256xf32>, i32 -> vector<2x4x256xf32>
    %c240_i32_44 = arith.constant 240 : i32
    %150 = vector.broadcast %c240_i32_44 : i32 to vector<1x1x256xi32>
    %151 = arith.cmpi slt, %6, %150 : vector<1x1x256xi32>
    %c15_i32_45 = arith.constant 15 : i32
    %152 = vector.broadcast %c15_i32_45 : i32 to vector<1x1x256xi32>
    %153 = arith.cmpi slt, %8, %152 : vector<1x1x256xi32>
    %154 = arith.andi %151, %153 : vector<1x1x256xi1>
    %cst_46 = arith.constant 0.000000e+00 : f32
    %155 = vector.shape_cast %154 : vector<1x1x256xi1> to vector<1x1x256xi1>
    %156 = vector.broadcast %155 : vector<1x1x256xi1> to vector<2x4x256xi1>
    %157 = vector.broadcast %cst_46 : f32 to vector<2x4x256xf32>
    %158 = arith.select %156, %149, %157 : vector<2x4x256xi1>, vector<2x4x256xf32>
    %159 = vector.extract_strided_slice %0 {offsets = [8, 0, 0], sizes = [1, 8, 4], strides = [1, 1, 1]} : vector<9x8x4xf32> to vector<1x8x4xf32>
    %160 = vector.shape_cast %159 : vector<1x8x4xf32> to vector<8x4xf32>
    %161 = vector.extract_strided_slice %158 {offsets = [0, 0, 0], sizes = [1, 4, 256], strides = [1, 1, 1]} : vector<2x4x256xf32> to vector<1x4x256xf32>
    %162 = vector.shape_cast %161 : vector<1x4x256xf32> to vector<4x256xf32>
    %cst_47 = arith.constant dense<0.000000e+00> : vector<8x256xf32>
    %163 = tpu.matmul %160, %162, %cst_47 {dimension_numbers = #tpu.dot_dimension_numbers<[1], [0], [0], [1], [0, 0, 1, 1], [], []>} : vector<8x4xf32>, vector<4x256xf32>, vector<8x256xf32> -> vector<8x256xf32>
    %164 = arith.addf %144, %163 : vector<8x256xf32>
    %165 = vector.extract_strided_slice %158 {offsets = [1, 0, 0], sizes = [1, 4, 256], strides = [1, 1, 1]} : vector<2x4x256xf32> to vector<1x4x256xf32>
    %166 = vector.shape_cast %165 : vector<1x4x256xf32> to vector<4x256xf32>
    %cst_48 = arith.constant dense<0.000000e+00> : vector<8x256xf32>
    %167 = tpu.matmul %160, %166, %cst_48 {dimension_numbers = #tpu.dot_dimension_numbers<[1], [0], [0], [1], [0, 0, 1, 1], [], []>} : vector<8x4xf32>, vector<4x256xf32>, vector<8x256xf32> -> vector<8x256xf32>
    %168 = arith.addf %148, %167 : vector<8x256xf32>
    %169 = vector.shape_cast %164 : vector<8x256xf32> to vector<1x8x256xf32>
    %170 = vector.shape_cast %168 : vector<8x256xf32> to vector<1x8x256xf32>
    %171 = tpu.concatenate %169, %170 in 0 : vector<1x8x256xf32>, vector<1x8x256xf32> -> vector<2x8x256xf32>
    %172 = vector.extract_strided_slice %171 {offsets = [0, 0, 0], sizes = [1, 8, 256], strides = [1, 1, 1]} : vector<2x8x256xf32> to vector<1x8x256xf32>
    %173 = vector.shape_cast %172 : vector<1x8x256xf32> to vector<8x256xf32>
    %174 = vector.extract_strided_slice %171 {offsets = [1, 0, 0], sizes = [1, 8, 256], strides = [1, 1, 1]} : vector<2x8x256xf32> to vector<1x8x256xf32>
    %175 = vector.shape_cast %174 : vector<1x8x256xf32> to vector<8x256xf32>
    %176 = arith.addf %173, %175 : vector<8x256xf32>
    %cst_49 = arith.constant 5.000000e-01 : f32
    %177 = vector.broadcast %cst_49 : f32 to vector<8x256xf32>
    %178 = arith.mulf %176, %177 : vector<8x256xf32>
    %179 = vector.extract_strided_slice %171 {offsets = [0, 0, 0], sizes = [1, 8, 256], strides = [1, 1, 1]} : vector<2x8x256xf32> to vector<1x8x256xf32>
    %180 = vector.shape_cast %179 : vector<1x8x256xf32> to vector<8x256xf32>
    %181 = arith.subf %180, %178 : vector<8x256xf32>
    %182 = vector.extract_strided_slice %171 {offsets = [0, 0, 0], sizes = [1, 8, 256], strides = [1, 1, 1]} : vector<2x8x256xf32> to vector<1x8x256xf32>
    %183 = vector.shape_cast %182 : vector<1x8x256xf32> to vector<8x256xf32>
    %184 = arith.subf %183, %178 : vector<8x256xf32>
    %185 = arith.mulf %181, %184 : vector<8x256xf32>
    %186 = vector.extract_strided_slice %171 {offsets = [1, 0, 0], sizes = [1, 8, 256], strides = [1, 1, 1]} : vector<2x8x256xf32> to vector<1x8x256xf32>
    %187 = vector.shape_cast %186 : vector<1x8x256xf32> to vector<8x256xf32>
    %188 = arith.subf %187, %178 : vector<8x256xf32>
    %189 = vector.extract_strided_slice %171 {offsets = [1, 0, 0], sizes = [1, 8, 256], strides = [1, 1, 1]} : vector<2x8x256xf32> to vector<1x8x256xf32>
    %190 = vector.shape_cast %189 : vector<1x8x256xf32> to vector<8x256xf32>
    %191 = arith.subf %190, %178 : vector<8x256xf32>
    %192 = arith.mulf %188, %191 : vector<8x256xf32>
    %193 = arith.addf %185, %192 : vector<8x256xf32>
    %cst_50 = arith.constant 5.000000e-01 : f32
    %194 = vector.broadcast %cst_50 : f32 to vector<8x256xf32>
    %195 = arith.mulf %193, %194 : vector<8x256xf32>
    %cst_51 = arith.constant 9.99999974E-6 : f32
    %196 = vector.broadcast %cst_51 : f32 to vector<8x256xf32>
    %197 = arith.addf %195, %196 : vector<8x256xf32>
    %198 = math.sqrt %197 : vector<8x256xf32>
    %c0_52 = arith.constant 0 : index
    %c0_53 = arith.constant 0 : index
    %199 = vector.load %arg6[%c0_52, %c0_53] : memref<8x256xf32, #tpu.memory_space<vmem>>, vector<8x256xf32>
    tpu.vector_store %arg6[%c0_52, %c0_53], %178 {strides = array<i32>} : memref<8x256xf32, #tpu.memory_space<vmem>>, vector<8x256xf32>,
    %c0_54 = arith.constant 0 : index
    %c0_55 = arith.constant 0 : index
    %200 = vector.load %arg7[%c0_54, %c0_55] : memref<8x256xf32, #tpu.memory_space<vmem>>, vector<8x256xf32>
    tpu.vector_store %arg7[%c0_54, %c0_55], %198 {strides = array<i32>} : memref<8x256xf32, #tpu.memory_space<vmem>>, vector<8x256xf32>,
    %201 = vector.extract_strided_slice %171 {offsets = [0, 0, 0], sizes = [1, 8, 256], strides = [1, 1, 1]} : vector<2x8x256xf32> to vector<1x8x256xf32>
    %202 = vector.shape_cast %201 : vector<1x8x256xf32> to vector<8x256xf32>
    %cst_56 = arith.constant dense<0.000000e+00> : vector<8xf32>
    %203 = vector.multi_reduction <add>, %202, %cst_56 [1] : vector<8x256xf32> to vector<8xf32>
    %204 = vector.shape_cast %203 : vector<8xf32> to vector<8x1xf32>
    %205 = vector.extract_strided_slice %171 {offsets = [1, 0, 0], sizes = [1, 8, 256], strides = [1, 1, 1]} : vector<2x8x256xf32> to vector<1x8x256xf32>
    %206 = vector.shape_cast %205 : vector<1x8x256xf32> to vector<8x256xf32>
    %cst_57 = arith.constant dense<0.000000e+00> : vector<8xf32>
    %207 = vector.multi_reduction <add>, %206, %cst_57 [1] : vector<8x256xf32> to vector<8xf32>
    %208 = vector.shape_cast %207 : vector<8xf32> to vector<8x1xf32>
    %209 = arith.addf %204, %208 : vector<8x1xf32>
    %cst_58 = arith.constant 0.001953125 : f32
    %210 = vector.broadcast %cst_58 : f32 to vector<8x1xf32>
    %211 = arith.mulf %209, %210 : vector<8x1xf32>
    %212 = vector.shape_cast %211 : vector<8x1xf32> to vector<1x8x1xf32>
    %213 = vector.broadcast %212 : vector<1x8x1xf32> to vector<2x8x256xf32>
    %214 = arith.subf %171, %213 : vector<2x8x256xf32>
    %215 = vector.extract_strided_slice %214 {offsets = [0, 0, 0], sizes = [1, 8, 256], strides = [1, 1, 1]} : vector<2x8x256xf32> to vector<1x8x256xf32>
    %216 = vector.shape_cast %215 : vector<1x8x256xf32> to vector<8x256xf32>
    %217 = vector.extract_strided_slice %214 {offsets = [0, 0, 0], sizes = [1, 8, 256], strides = [1, 1, 1]} : vector<2x8x256xf32> to vector<1x8x256xf32>
    %218 = vector.shape_cast %217 : vector<1x8x256xf32> to vector<8x256xf32>
    %219 = arith.mulf %216, %218 : vector<8x256xf32>
    %cst_59 = arith.constant dense<0.000000e+00> : vector<8xf32>
    %220 = vector.multi_reduction <add>, %219, %cst_59 [1] : vector<8x256xf32> to vector<8xf32>
    %221 = vector.shape_cast %220 : vector<8xf32> to vector<8x1xf32>
    %222 = vector.extract_strided_slice %214 {offsets = [1, 0, 0], sizes = [1, 8, 256], strides = [1, 1, 1]} : vector<2x8x256xf32> to vector<1x8x256xf32>
    %223 = vector.shape_cast %222 : vector<1x8x256xf32> to vector<8x256xf32>
    %224 = vector.extract_strided_slice %214 {offsets = [1, 0, 0], sizes = [1, 8, 256], strides = [1, 1, 1]} : vector<2x8x256xf32> to vector<1x8x256xf32>
    %225 = vector.shape_cast %224 : vector<1x8x256xf32> to vector<8x256xf32>
    %226 = arith.mulf %223, %225 : vector<8x256xf32>
    %cst_60 = arith.constant dense<0.000000e+00> : vector<8xf32>
    %227 = vector.multi_reduction <add>, %226, %cst_60 [1] : vector<8x256xf32> to vector<8xf32>
    %228 = vector.shape_cast %227 : vector<8xf32> to vector<8x1xf32>
    %229 = arith.addf %221, %228 : vector<8x1xf32>
    %cst_61 = arith.constant 0.001953125 : f32
    %230 = vector.broadcast %cst_61 : f32 to vector<8x1xf32>
    %231 = arith.mulf %229, %230 : vector<8x1xf32>
    %cst_62 = arith.constant 9.99999974E-6 : f32
    %232 = vector.broadcast %cst_62 : f32 to vector<8x1xf32>
    %233 = arith.addf %231, %232 : vector<8x1xf32>
    %234 = math.rsqrt %233 : vector<8x1xf32>
    %235 = vector.shape_cast %234 : vector<8x1xf32> to vector<1x8x1xf32>
    %236 = vector.broadcast %235 : vector<1x8x1xf32> to vector<2x8x256xf32>
    %237 = arith.mulf %214, %236 : vector<2x8x256xf32>
    %c0_63 = arith.constant 0 : index
    %c0_64 = arith.constant 0 : index
    %c0_65 = arith.constant 0 : index
    %238 = vector.load %arg8[%c0_63, %c0_64, %c0_65] : memref<2x8x256xf32, #tpu.memory_space<vmem>>, vector<2x8x256xf32>
    tpu.vector_store %arg8[%c0_63, %c0_64, %c0_65], %237 {strides = array<i32>} : memref<2x8x256xf32, #tpu.memory_space<vmem>>, vector<2x8x256xf32>,
    %239 = vector.broadcast %2 : vector<1x8x1xf32> to vector<2x8x256xf32>
    %240 = arith.mulf %239, %237 : vector<2x8x256xf32>
    %241 = vector.broadcast %4 : vector<1x8x1xf32> to vector<2x8x256xf32>
    %242 = arith.addf %240, %241 : vector<2x8x256xf32>
    %cst_66 = arith.constant 0.000000e+00 : f32
    %243 = vector.broadcast %cst_66 : f32 to vector<2x8x256xf32>
    %244 = arith.maximumf %242, %243 : vector<2x8x256xf32>
    %c0_67 = arith.constant 0 : index
    %c0_68 = arith.constant 0 : index
    %c0_69 = arith.constant 0 : index
    %245 = vector.load %arg9[%c0_67, %c0_68, %c0_69] : memref<2x8x256xf32, #tpu.memory_space<vmem>>, vector<2x8x256xf32>
    tpu.vector_store %arg9[%c0_67, %c0_68, %c0_69], %244 {strides = array<i32>} : memref<2x8x256xf32, #tpu.memory_space<vmem>>, vector<2x8x256xf32>,
    %c0_70 = arith.constant 0 : index
    %c0_71 = arith.constant 0 : index
    %c0_72 = arith.constant 0 : index
    %246 = vector.load %arg1[%c0_70, %c0_71, %c0_72] : memref<2x4x256xf32, #tpu.memory_space<vmem>>, vector<2x4x256xf32>
    %247 = tpu.iota {dimensions = array<i32: 2>} : vector<1x1x256xi32>
    %c15_i32_73 = arith.constant 15 : i32
    %248 = vector.broadcast %c15_i32_73 : i32 to vector<1x1x256xi32>
    %249 = arith.andi %247, %248 : vector<1x1x256xi32>
    %cst_74 = arith.constant 0.000000e+00 : f32
    %250 = vector.broadcast %cst_74 : f32 to vector<8x256xf32>
    %cst_75 = arith.constant 0.000000e+00 : f32
    %251 = vector.broadcast %cst_75 : f32 to vector<8x256xf32>
    %c17_i32_76 = arith.constant 17 : i32
    %252 = tpu.dynamic_rotate %246 by %c17_i32_76 dim 2 : vector<2x4x256xf32>, i32 -> vector<2x4x256xf32>
    %c16_i32_77 = arith.constant 16 : i32
    %253 = vector.broadcast %c16_i32_77 : i32 to vector<1x1x256xi32>
    %254 = arith.cmpi sge, %247, %253 : vector<1x1x256xi32>
    %c1_i32_78 = arith.constant 1 : i32
    %255 = vector.broadcast %c1_i32_78 : i32 to vector<1x1x256xi32>
    %256 = arith.cmpi sge, %249, %255 : vector<1x1x256xi32>
    %257 = arith.andi %254, %256 : vector<1x1x256xi1>
    %cst_79 = arith.constant 0.000000e+00 : f32
    %258 = vector.shape_cast %257 : vector<1x1x256xi1> to vector<1x1x256xi1>
    %259 = vector.broadcast %258 : vector<1x1x256xi1> to vector<2x4x256xi1>
    %260 = vector.broadcast %cst_79 : f32 to vector<2x4x256xf32>
    %261 = arith.select %259, %252, %260 : vector<2x4x256xi1>, vector<2x4x256xf32>
    %262 = vector.extract_strided_slice %0 {offsets = [0, 0, 0], sizes = [1, 8, 4], strides = [1, 1, 1]} : vector<9x8x4xf32> to vector<1x8x4xf32>
    %263 = vector.shape_cast %262 : vector<1x8x4xf32> to vector<8x4xf32>
    %264 = vector.extract_strided_slice %261 {offsets = [0, 0, 0], sizes = [1, 4, 256], strides = [1, 1, 1]} : vector<2x4x256xf32> to vector<1x4x256xf32>
    %265 = vector.shape_cast %264 : vector<1x4x256xf32> to vector<4x256xf32>
    %cst_80 = arith.constant dense<0.000000e+00> : vector<8x256xf32>
    %266 = tpu.matmul %263, %265, %cst_80 {dimension_numbers = #tpu.dot_dimension_numbers<[1], [0], [0], [1], [0, 0, 1, 1], [], []>} : vector<8x4xf32>, vector<4x256xf32>, vector<8x256xf32> -> vector<8x256xf32>
    %267 = arith.addf %250, %266 : vector<8x256xf32>
    %268 = vector.extract_strided_slice %261 {offsets = [1, 0, 0], sizes = [1, 4, 256], strides = [1, 1, 1]} : vector<2x4x256xf32> to vector<1x4x256xf32>
    %269 = vector.shape_cast %268 : vector<1x4x256xf32> to vector<4x256xf32>
    %cst_81 = arith.constant dense<0.000000e+00> : vector<8x256xf32>
    %270 = tpu.matmul %263, %269, %cst_81 {dimension_numbers = #tpu.dot_dimension_numbers<[1], [0], [0], [1], [0, 0, 1, 1], [], []>} : vector<8x4xf32>, vector<4x256xf32>, vector<8x256xf32> -> vector<8x256xf32>
    %271 = arith.addf %251, %270 : vector<8x256xf32>
    %c16_i32_82 = arith.constant 16 : i32
    %272 = tpu.dynamic_rotate %246 by %c16_i32_82 dim 2 : vector<2x4x256xf32>, i32 -> vector<2x4x256xf32>
    %c16_i32_83 = arith.constant 16 : i32
    %273 = vector.broadcast %c16_i32_83 : i32 to vector<1x1x256xi32>
    %274 = arith.cmpi sge, %247, %273 : vector<1x1x256xi32>
    %cst_84 = arith.constant 0.000000e+00 : f32
    %275 = vector.shape_cast %274 : vector<1x1x256xi1> to vector<1x1x256xi1>
    %276 = vector.broadcast %275 : vector<1x1x256xi1> to vector<2x4x256xi1>
    %277 = vector.broadcast %cst_84 : f32 to vector<2x4x256xf32>
    %278 = arith.select %276, %272, %277 : vector<2x4x256xi1>, vector<2x4x256xf32>
    %279 = vector.extract_strided_slice %0 {offsets = [1, 0, 0], sizes = [1, 8, 4], strides = [1, 1, 1]} : vector<9x8x4xf32> to vector<1x8x4xf32>
    %280 = vector.shape_cast %279 : vector<1x8x4xf32> to vector<8x4xf32>
    %281 = vector.extract_strided_slice %278 {offsets = [0, 0, 0], sizes = [1, 4, 256], strides = [1, 1, 1]} : vector<2x4x256xf32> to vector<1x4x256xf32>
    %282 = vector.shape_cast %281 : vector<1x4x256xf32> to vector<4x256xf32>
    %cst_85 = arith.constant dense<0.000000e+00> : vector<8x256xf32>
    %283 = tpu.matmul %280, %282, %cst_85 {dimension_numbers = #tpu.dot_dimension_numbers<[1], [0], [0], [1], [0, 0, 1, 1], [], []>} : vector<8x4xf32>, vector<4x256xf32>, vector<8x256xf32> -> vector<8x256xf32>
    %284 = arith.addf %267, %283 : vector<8x256xf32>
    %285 = vector.extract_strided_slice %278 {offsets = [1, 0, 0], sizes = [1, 4, 256], strides = [1, 1, 1]} : vector<2x4x256xf32> to vector<1x4x256xf32>
    %286 = vector.shape_cast %285 : vector<1x4x256xf32> to vector<4x256xf32>
    %cst_86 = arith.constant dense<0.000000e+00> : vector<8x256xf32>
    %287 = tpu.matmul %280, %286, %cst_86 {dimension_numbers = #tpu.dot_dimension_numbers<[1], [0], [0], [1], [0, 0, 1, 1], [], []>} : vector<8x4xf32>, vector<4x256xf32>, vector<8x256xf32> -> vector<8x256xf32>
    %288 = arith.addf %271, %287 : vector<8x256xf32>
    %c15_i32_87 = arith.constant 15 : i32
    %289 = tpu.dynamic_rotate %246 by %c15_i32_87 dim 2 : vector<2x4x256xf32>, i32 -> vector<2x4x256xf32>
    %c16_i32_88 = arith.constant 16 : i32
    %290 = vector.broadcast %c16_i32_88 : i32 to vector<1x1x256xi32>
    %291 = arith.cmpi sge, %247, %290 : vector<1x1x256xi32>
    %c15_i32_89 = arith.constant 15 : i32
    %292 = vector.broadcast %c15_i32_89 : i32 to vector<1x1x256xi32>
    %293 = arith.cmpi slt, %249, %292 : vector<1x1x256xi32>
    %294 = arith.andi %291, %293 : vector<1x1x256xi1>
    %cst_90 = arith.constant 0.000000e+00 : f32
    %295 = vector.shape_cast %294 : vector<1x1x256xi1> to vector<1x1x256xi1>
    %296 = vector.broadcast %295 : vector<1x1x256xi1> to vector<2x4x256xi1>
    %297 = vector.broadcast %cst_90 : f32 to vector<2x4x256xf32>
    %298 = arith.select %296, %289, %297 : vector<2x4x256xi1>, vector<2x4x256xf32>
    %299 = vector.extract_strided_slice %0 {offsets = [2, 0, 0], sizes = [1, 8, 4], strides = [1, 1, 1]} : vector<9x8x4xf32> to vector<1x8x4xf32>
    %300 = vector.shape_cast %299 : vector<1x8x4xf32> to vector<8x4xf32>
    %301 = vector.extract_strided_slice %298 {offsets = [0, 0, 0], sizes = [1, 4, 256], strides = [1, 1, 1]} : vector<2x4x256xf32> to vector<1x4x256xf32>
    %302 = vector.shape_cast %301 : vector<1x4x256xf32> to vector<4x256xf32>
    %cst_91 = arith.constant dense<0.000000e+00> : vector<8x256xf32>
    %303 = tpu.matmul %300, %302, %cst_91 {dimension_numbers = #tpu.dot_dimension_numbers<[1], [0], [0], [1], [0, 0, 1, 1], [], []>} : vector<8x4xf32>, vector<4x256xf32>, vector<8x256xf32> -> vector<8x256xf32>
    %304 = arith.addf %284, %303 : vector<8x256xf32>
    %305 = vector.extract_strided_slice %298 {offsets = [1, 0, 0], sizes = [1, 4, 256], strides = [1, 1, 1]} : vector<2x4x256xf32> to vector<1x4x256xf32>
    %306 = vector.shape_cast %305 : vector<1x4x256xf32> to vector<4x256xf32>
    %cst_92 = arith.constant dense<0.000000e+00> : vector<8x256xf32>
    %307 = tpu.matmul %300, %306, %cst_92 {dimension_numbers = #tpu.dot_dimension_numbers<[1], [0], [0], [1], [0, 0, 1, 1], [], []>} : vector<8x4xf32>, vector<4x256xf32>, vector<8x256xf32> -> vector<8x256xf32>
    %308 = arith.addf %288, %307 : vector<8x256xf32>
    %c1_i32_93 = arith.constant 1 : i32
    %309 = tpu.dynamic_rotate %246 by %c1_i32_93 dim 2 : vector<2x4x256xf32>, i32 -> vector<2x4x256xf32>
    %c1_i32_94 = arith.constant 1 : i32
    %310 = vector.broadcast %c1_i32_94 : i32 to vector<1x1x256xi32>
    %311 = arith.cmpi sge, %249, %310 : vector<1x1x256xi32>
    %cst_95 = arith.constant 0.000000e+00 : f32
    %312 = vector.shape_cast %311 : vector<1x1x256xi1> to vector<1x1x256xi1>
    %313 = vector.broadcast %312 : vector<1x1x256xi1> to vector<2x4x256xi1>
    %314 = vector.broadcast %cst_95 : f32 to vector<2x4x256xf32>
    %315 = arith.select %313, %309, %314 : vector<2x4x256xi1>, vector<2x4x256xf32>
    %316 = vector.extract_strided_slice %0 {offsets = [3, 0, 0], sizes = [1, 8, 4], strides = [1, 1, 1]} : vector<9x8x4xf32> to vector<1x8x4xf32>
    %317 = vector.shape_cast %316 : vector<1x8x4xf32> to vector<8x4xf32>
    %318 = vector.extract_strided_slice %315 {offsets = [0, 0, 0], sizes = [1, 4, 256], strides = [1, 1, 1]} : vector<2x4x256xf32> to vector<1x4x256xf32>
    %319 = vector.shape_cast %318 : vector<1x4x256xf32> to vector<4x256xf32>
    %cst_96 = arith.constant dense<0.000000e+00> : vector<8x256xf32>
    %320 = tpu.matmul %317, %319, %cst_96 {dimension_numbers = #tpu.dot_dimension_numbers<[1], [0], [0], [1], [0, 0, 1, 1], [], []>} : vector<8x4xf32>, vector<4x256xf32>, vector<8x256xf32> -> vector<8x256xf32>
    %321 = arith.addf %304, %320 : vector<8x256xf32>
    %322 = vector.extract_strided_slice %315 {offsets = [1, 0, 0], sizes = [1, 4, 256], strides = [1, 1, 1]} : vector<2x4x256xf32> to vector<1x4x256xf32>
    %323 = vector.shape_cast %322 : vector<1x4x256xf32> to vector<4x256xf32>
    %cst_97 = arith.constant dense<0.000000e+00> : vector<8x256xf32>
    %324 = tpu.matmul %317, %323, %cst_97 {dimension_numbers = #tpu.dot_dimension_numbers<[1], [0], [0], [1], [0, 0, 1, 1], [], []>} : vector<8x4xf32>, vector<4x256xf32>, vector<8x256xf32> -> vector<8x256xf32>
    %325 = arith.addf %308, %324 : vector<8x256xf32>
    %326 = vector.extract_strided_slice %0 {offsets = [4, 0, 0], sizes = [1, 8, 4], strides = [1, 1, 1]} : vector<9x8x4xf32> to vector<1x8x4xf32>
    %327 = vector.shape_cast %326 : vector<1x8x4xf32> to vector<8x4xf32>
    %328 = vector.extract_strided_slice %246 {offsets = [0, 0, 0], sizes = [1, 4, 256], strides = [1, 1, 1]} : vector<2x4x256xf32> to vector<1x4x256xf32>
    %329 = vector.shape_cast %328 : vector<1x4x256xf32> to vector<4x256xf32>
    %cst_98 = arith.constant dense<0.000000e+00> : vector<8x256xf32>
    %330 = tpu.matmul %327, %329, %cst_98 {dimension_numbers = #tpu.dot_dimension_numbers<[1], [0], [0], [1], [0, 0, 1, 1], [], []>} : vector<8x4xf32>, vector<4x256xf32>, vector<8x256xf32> -> vector<8x256xf32>
    %331 = arith.addf %321, %330 : vector<8x256xf32>
    %332 = vector.extract_strided_slice %246 {offsets = [1, 0, 0], sizes = [1, 4, 256], strides = [1, 1, 1]} : vector<2x4x256xf32> to vector<1x4x256xf32>
    %333 = vector.shape_cast %332 : vector<1x4x256xf32> to vector<4x256xf32>
    %cst_99 = arith.constant dense<0.000000e+00> : vector<8x256xf32>
    %334 = tpu.matmul %327, %333, %cst_99 {dimension_numbers = #tpu.dot_dimension_numbers<[1], [0], [0], [1], [0, 0, 1, 1], [], []>} : vector<8x4xf32>, vector<4x256xf32>, vector<8x256xf32> -> vector<8x256xf32>
    %335 = arith.addf %325, %334 : vector<8x256xf32>
    %c255_i32_100 = arith.constant 255 : i32
    %336 = tpu.dynamic_rotate %246 by %c255_i32_100 dim 2 : vector<2x4x256xf32>, i32 -> vector<2x4x256xf32>
    %c15_i32_101 = arith.constant 15 : i32
    %337 = vector.broadcast %c15_i32_101 : i32 to vector<1x1x256xi32>
    %338 = arith.cmpi slt, %249, %337 : vector<1x1x256xi32>
    %cst_102 = arith.constant 0.000000e+00 : f32
    %339 = vector.shape_cast %338 : vector<1x1x256xi1> to vector<1x1x256xi1>
    %340 = vector.broadcast %339 : vector<1x1x256xi1> to vector<2x4x256xi1>
    %341 = vector.broadcast %cst_102 : f32 to vector<2x4x256xf32>
    %342 = arith.select %340, %336, %341 : vector<2x4x256xi1>, vector<2x4x256xf32>
    %343 = vector.extract_strided_slice %0 {offsets = [5, 0, 0], sizes = [1, 8, 4], strides = [1, 1, 1]} : vector<9x8x4xf32> to vector<1x8x4xf32>
    %344 = vector.shape_cast %343 : vector<1x8x4xf32> to vector<8x4xf32>
    %345 = vector.extract_strided_slice %342 {offsets = [0, 0, 0], sizes = [1, 4, 256], strides = [1, 1, 1]} : vector<2x4x256xf32> to vector<1x4x256xf32>
    %346 = vector.shape_cast %345 : vector<1x4x256xf32> to vector<4x256xf32>
    %cst_103 = arith.constant dense<0.000000e+00> : vector<8x256xf32>
    %347 = tpu.matmul %344, %346, %cst_103 {dimension_numbers = #tpu.dot_dimension_numbers<[1], [0], [0], [1], [0, 0, 1, 1], [], []>} : vector<8x4xf32>, vector<4x256xf32>, vector<8x256xf32> -> vector<8x256xf32>
    %348 = arith.addf %331, %347 : vector<8x256xf32>
    %349 = vector.extract_strided_slice %342 {offsets = [1, 0, 0], sizes = [1, 4, 256], strides = [1, 1, 1]} : vector<2x4x256xf32> to vector<1x4x256xf32>
    %350 = vector.shape_cast %349 : vector<1x4x256xf32> to vector<4x256xf32>
    %cst_104 = arith.constant dense<0.000000e+00> : vector<8x256xf32>
    %351 = tpu.matmul %344, %350, %cst_104 {dimension_numbers = #tpu.dot_dimension_numbers<[1], [0], [0], [1], [0, 0, 1, 1], [], []>} : vector<8x4xf32>, vector<4x256xf32>, vector<8x256xf32> -> vector<8x256xf32>
    %352 = arith.addf %335, %351 : vector<8x256xf32>
    %c241_i32_105 = arith.constant 241 : i32
    %353 = tpu.dynamic_rotate %246 by %c241_i32_105 dim 2 : vector<2x4x256xf32>, i32 -> vector<2x4x256xf32>
    %c240_i32_106 = arith.constant 240 : i32
    %354 = vector.broadcast %c240_i32_106 : i32 to vector<1x1x256xi32>
    %355 = arith.cmpi slt, %247, %354 : vector<1x1x256xi32>
    %c1_i32_107 = arith.constant 1 : i32
    %356 = vector.broadcast %c1_i32_107 : i32 to vector<1x1x256xi32>
    %357 = arith.cmpi sge, %249, %356 : vector<1x1x256xi32>
    %358 = arith.andi %355, %357 : vector<1x1x256xi1>
    %cst_108 = arith.constant 0.000000e+00 : f32
    %359 = vector.shape_cast %358 : vector<1x1x256xi1> to vector<1x1x256xi1>
    %360 = vector.broadcast %359 : vector<1x1x256xi1> to vector<2x4x256xi1>
    %361 = vector.broadcast %cst_108 : f32 to vector<2x4x256xf32>
    %362 = arith.select %360, %353, %361 : vector<2x4x256xi1>, vector<2x4x256xf32>
    %363 = vector.extract_strided_slice %0 {offsets = [6, 0, 0], sizes = [1, 8, 4], strides = [1, 1, 1]} : vector<9x8x4xf32> to vector<1x8x4xf32>
    %364 = vector.shape_cast %363 : vector<1x8x4xf32> to vector<8x4xf32>
    %365 = vector.extract_strided_slice %362 {offsets = [0, 0, 0], sizes = [1, 4, 256], strides = [1, 1, 1]} : vector<2x4x256xf32> to vector<1x4x256xf32>
    %366 = vector.shape_cast %365 : vector<1x4x256xf32> to vector<4x256xf32>
    %cst_109 = arith.constant dense<0.000000e+00> : vector<8x256xf32>
    %367 = tpu.matmul %364, %366, %cst_109 {dimension_numbers = #tpu.dot_dimension_numbers<[1], [0], [0], [1], [0, 0, 1, 1], [], []>} : vector<8x4xf32>, vector<4x256xf32>, vector<8x256xf32> -> vector<8x256xf32>
    %368 = arith.addf %348, %367 : vector<8x256xf32>
    %369 = vector.extract_strided_slice %362 {offsets = [1, 0, 0], sizes = [1, 4, 256], strides = [1, 1, 1]} : vector<2x4x256xf32> to vector<1x4x256xf32>
    %370 = vector.shape_cast %369 : vector<1x4x256xf32> to vector<4x256xf32>
    %cst_110 = arith.constant dense<0.000000e+00> : vector<8x256xf32>
    %371 = tpu.matmul %364, %370, %cst_110 {dimension_numbers = #tpu.dot_dimension_numbers<[1], [0], [0], [1], [0, 0, 1, 1], [], []>} : vector<8x4xf32>, vector<4x256xf32>, vector<8x256xf32> -> vector<8x256xf32>
    %372 = arith.addf %352, %371 : vector<8x256xf32>
    %c240_i32_111 = arith.constant 240 : i32
    %373 = tpu.dynamic_rotate %246 by %c240_i32_111 dim 2 : vector<2x4x256xf32>, i32 -> vector<2x4x256xf32>
    %c240_i32_112 = arith.constant 240 : i32
    %374 = vector.broadcast %c240_i32_112 : i32 to vector<1x1x256xi32>
    %375 = arith.cmpi slt, %247, %374 : vector<1x1x256xi32>
    %cst_113 = arith.constant 0.000000e+00 : f32
    %376 = vector.shape_cast %375 : vector<1x1x256xi1> to vector<1x1x256xi1>
    %377 = vector.broadcast %376 : vector<1x1x256xi1> to vector<2x4x256xi1>
    %378 = vector.broadcast %cst_113 : f32 to vector<2x4x256xf32>
    %379 = arith.select %377, %373, %378 : vector<2x4x256xi1>, vector<2x4x256xf32>
    %380 = vector.extract_strided_slice %0 {offsets = [7, 0, 0], sizes = [1, 8, 4], strides = [1, 1, 1]} : vector<9x8x4xf32> to vector<1x8x4xf32>
    %381 = vector.shape_cast %380 : vector<1x8x4xf32> to vector<8x4xf32>
    %382 = vector.extract_strided_slice %379 {offsets = [0, 0, 0], sizes = [1, 4, 256], strides = [1, 1, 1]} : vector<2x4x256xf32> to vector<1x4x256xf32>
    %383 = vector.shape_cast %382 : vector<1x4x256xf32> to vector<4x256xf32>
    %cst_114 = arith.constant dense<0.000000e+00> : vector<8x256xf32>
    %384 = tpu.matmul %381, %383, %cst_114 {dimension_numbers = #tpu.dot_dimension_numbers<[1], [0], [0], [1], [0, 0, 1, 1], [], []>} : vector<8x4xf32>, vector<4x256xf32>, vector<8x256xf32> -> vector<8x256xf32>
    %385 = arith.addf %368, %384 : vector<8x256xf32>
    %386 = vector.extract_strided_slice %379 {offsets = [1, 0, 0], sizes = [1, 4, 256], strides = [1, 1, 1]} : vector<2x4x256xf32> to vector<1x4x256xf32>
    %387 = vector.shape_cast %386 : vector<1x4x256xf32> to vector<4x256xf32>
    %cst_115 = arith.constant dense<0.000000e+00> : vector<8x256xf32>
    %388 = tpu.matmul %381, %387, %cst_115 {dimension_numbers = #tpu.dot_dimension_numbers<[1], [0], [0], [1], [0, 0, 1, 1], [], []>} : vector<8x4xf32>, vector<4x256xf32>, vector<8x256xf32> -> vector<8x256xf32>
    %389 = arith.addf %372, %388 : vector<8x256xf32>
    %c239_i32_116 = arith.constant 239 : i32
    %390 = tpu.dynamic_rotate %246 by %c239_i32_116 dim 2 : vector<2x4x256xf32>, i32 -> vector<2x4x256xf32>
    %c240_i32_117 = arith.constant 240 : i32
    %391 = vector.broadcast %c240_i32_117 : i32 to vector<1x1x256xi32>
    %392 = arith.cmpi slt, %247, %391 : vector<1x1x256xi32>
    %c15_i32_118 = arith.constant 15 : i32
    %393 = vector.broadcast %c15_i32_118 : i32 to vector<1x1x256xi32>
    %394 = arith.cmpi slt, %249, %393 : vector<1x1x256xi32>
    %395 = arith.andi %392, %394 : vector<1x1x256xi1>
    %cst_119 = arith.constant 0.000000e+00 : f32
    %396 = vector.shape_cast %395 : vector<1x1x256xi1> to vector<1x1x256xi1>
    %397 = vector.broadcast %396 : vector<1x1x256xi1> to vector<2x4x256xi1>
    %398 = vector.broadcast %cst_119 : f32 to vector<2x4x256xf32>
    %399 = arith.select %397, %390, %398 : vector<2x4x256xi1>, vector<2x4x256xf32>
    %400 = vector.extract_strided_slice %0 {offsets = [8, 0, 0], sizes = [1, 8, 4], strides = [1, 1, 1]} : vector<9x8x4xf32> to vector<1x8x4xf32>
    %401 = vector.shape_cast %400 : vector<1x8x4xf32> to vector<8x4xf32>
    %402 = vector.extract_strided_slice %399 {offsets = [0, 0, 0], sizes = [1, 4, 256], strides = [1, 1, 1]} : vector<2x4x256xf32> to vector<1x4x256xf32>
    %403 = vector.shape_cast %402 : vector<1x4x256xf32> to vector<4x256xf32>
    %cst_120 = arith.constant dense<0.000000e+00> : vector<8x256xf32>
    %404 = tpu.matmul %401, %403, %cst_120 {dimension_numbers = #tpu.dot_dimension_numbers<[1], [0], [0], [1], [0, 0, 1, 1], [], []>} : vector<8x4xf32>, vector<4x256xf32>, vector<8x256xf32> -> vector<8x256xf32>
    %405 = arith.addf %385, %404 : vector<8x256xf32>
    %406 = vector.extract_strided_slice %399 {offsets = [1, 0, 0], sizes = [1, 4, 256], strides = [1, 1, 1]} : vector<2x4x256xf32> to vector<1x4x256xf32>
    %407 = vector.shape_cast %406 : vector<1x4x256xf32> to vector<4x256xf32>
    %cst_121 = arith.constant dense<0.000000e+00> : vector<8x256xf32>
    %408 = tpu.matmul %401, %407, %cst_121 {dimension_numbers = #tpu.dot_dimension_numbers<[1], [0], [0], [1], [0, 0, 1, 1], [], []>} : vector<8x4xf32>, vector<4x256xf32>, vector<8x256xf32> -> vector<8x256xf32>
    %409 = arith.addf %389, %408 : vector<8x256xf32>
    %410 = vector.shape_cast %405 : vector<8x256xf32> to vector<1x8x256xf32>
    %411 = vector.shape_cast %409 : vector<8x256xf32> to vector<1x8x256xf32>
    %412 = tpu.concatenate %410, %411 in 0 : vector<1x8x256xf32>, vector<1x8x256xf32> -> vector<2x8x256xf32>
    %413 = vector.extract_strided_slice %412 {offsets = [0, 0, 0], sizes = [1, 8, 256], strides = [1, 1, 1]} : vector<2x8x256xf32> to vector<1x8x256xf32>
    %414 = vector.shape_cast %413 : vector<1x8x256xf32> to vector<8x256xf32>
    %cst_122 = arith.constant dense<0.000000e+00> : vector<8xf32>
    %415 = vector.multi_reduction <add>, %414, %cst_122 [1] : vector<8x256xf32> to vector<8xf32>
    %416 = vector.shape_cast %415 : vector<8xf32> to vector<8x1xf32>
    %417 = vector.extract_strided_slice %412 {offsets = [1, 0, 0], sizes = [1, 8, 256], strides = [1, 1, 1]} : vector<2x8x256xf32> to vector<1x8x256xf32>
    %418 = vector.shape_cast %417 : vector<1x8x256xf32> to vector<8x256xf32>
    %cst_123 = arith.constant dense<0.000000e+00> : vector<8xf32>
    %419 = vector.multi_reduction <add>, %418, %cst_123 [1] : vector<8x256xf32> to vector<8xf32>
    %420 = vector.shape_cast %419 : vector<8xf32> to vector<8x1xf32>
    %421 = arith.addf %416, %420 : vector<8x1xf32>
    %cst_124 = arith.constant 0.001953125 : f32
    %422 = vector.broadcast %cst_124 : f32 to vector<8x1xf32>
    %423 = arith.mulf %421, %422 : vector<8x1xf32>
    %424 = vector.shape_cast %423 : vector<8x1xf32> to vector<1x8x1xf32>
    %425 = vector.broadcast %424 : vector<1x8x1xf32> to vector<2x8x256xf32>
    %426 = arith.subf %412, %425 : vector<2x8x256xf32>
    %427 = vector.extract_strided_slice %426 {offsets = [0, 0, 0], sizes = [1, 8, 256], strides = [1, 1, 1]} : vector<2x8x256xf32> to vector<1x8x256xf32>
    %428 = vector.shape_cast %427 : vector<1x8x256xf32> to vector<8x256xf32>
    %429 = vector.extract_strided_slice %426 {offsets = [0, 0, 0], sizes = [1, 8, 256], strides = [1, 1, 1]} : vector<2x8x256xf32> to vector<1x8x256xf32>
    %430 = vector.shape_cast %429 : vector<1x8x256xf32> to vector<8x256xf32>
    %431 = arith.mulf %428, %430 : vector<8x256xf32>
    %cst_125 = arith.constant dense<0.000000e+00> : vector<8xf32>
    %432 = vector.multi_reduction <add>, %431, %cst_125 [1] : vector<8x256xf32> to vector<8xf32>
    %433 = vector.shape_cast %432 : vector<8xf32> to vector<8x1xf32>
    %434 = vector.extract_strided_slice %426 {offsets = [1, 0, 0], sizes = [1, 8, 256], strides = [1, 1, 1]} : vector<2x8x256xf32> to vector<1x8x256xf32>
    %435 = vector.shape_cast %434 : vector<1x8x256xf32> to vector<8x256xf32>
    %436 = vector.extract_strided_slice %426 {offsets = [1, 0, 0], sizes = [1, 8, 256], strides = [1, 1, 1]} : vector<2x8x256xf32> to vector<1x8x256xf32>
    %437 = vector.shape_cast %436 : vector<1x8x256xf32> to vector<8x256xf32>
    %438 = arith.mulf %435, %437 : vector<8x256xf32>
    %cst_126 = arith.constant dense<0.000000e+00> : vector<8xf32>
    %439 = vector.multi_reduction <add>, %438, %cst_126 [1] : vector<8x256xf32> to vector<8xf32>
    %440 = vector.shape_cast %439 : vector<8xf32> to vector<8x1xf32>
    %441 = arith.addf %433, %440 : vector<8x1xf32>
    %cst_127 = arith.constant 0.001953125 : f32
    %442 = vector.broadcast %cst_127 : f32 to vector<8x1xf32>
    %443 = arith.mulf %441, %442 : vector<8x1xf32>
    %cst_128 = arith.constant 9.99999974E-6 : f32
    %444 = vector.broadcast %cst_128 : f32 to vector<8x1xf32>
    %445 = arith.addf %443, %444 : vector<8x1xf32>
    %446 = math.rsqrt %445 : vector<8x1xf32>
    %447 = vector.shape_cast %446 : vector<8x1xf32> to vector<1x8x1xf32>
    %448 = vector.broadcast %447 : vector<1x8x1xf32> to vector<2x8x256xf32>
    %449 = arith.mulf %426, %448 : vector<2x8x256xf32>
    %c0_129 = arith.constant 0 : index
    %c0_130 = arith.constant 0 : index
    %c0_131 = arith.constant 0 : index
    %450 = vector.load %arg5[%c0_129, %c0_130, %c0_131] : memref<2x8x256xf32, #tpu.memory_space<vmem>>, vector<2x8x256xf32>
    %451 = arith.addf %449, %450 : vector<2x8x256xf32>
    %c0_132 = arith.constant 0 : index
    %c0_133 = arith.constant 0 : index
    %c0_134 = arith.constant 0 : index
    %452 = vector.load %arg10[%c0_132, %c0_133, %c0_134] : memref<2x8x256xf32, #tpu.memory_space<vmem>>, vector<2x8x256xf32>
    tpu.vector_store %arg10[%c0_132, %c0_133, %c0_134], %451 {strides = array<i32>} : memref<2x8x256xf32, #tpu.memory_space<vmem>>, vector<2x8x256xf32>,
    %453 = vector.broadcast %2 : vector<1x8x1xf32> to vector<2x8x256xf32>
    %454 = arith.mulf %453, %451 : vector<2x8x256xf32>
    %455 = vector.broadcast %4 : vector<1x8x1xf32> to vector<2x8x256xf32>
    %456 = arith.addf %454, %455 : vector<2x8x256xf32>
    %cst_135 = arith.constant 0.000000e+00 : f32
    %457 = vector.broadcast %cst_135 : f32 to vector<2x8x256xf32>
    %458 = arith.maximumf %456, %457 : vector<2x8x256xf32>
    %c0_136 = arith.constant 0 : index
    %c0_137 = arith.constant 0 : index
    %c0_138 = arith.constant 0 : index
    %459 = vector.load %arg11[%c0_136, %c0_137, %c0_138] : memref<2x8x256xf32, #tpu.memory_space<vmem>>, vector<2x8x256xf32>
    tpu.vector_store %arg11[%c0_136, %c0_137, %c0_138], %458 {strides = array<i32>} : memref<2x8x256xf32, #tpu.memory_space<vmem>>, vector<2x8x256xf32>,
    return
  }
}

module attributes {stable_mosaic.version = 11 : i64} {
  func.func @_encoder_first_kernel(%arg0: memref<2x4x256xf32, #tpu.memory_space<vmem>>, %arg1: memref<2x4x256xf32, #tpu.memory_space<vmem>>, %arg2: memref<4x256xf32, #tpu.memory_space<vmem>>, %arg3: memref<4x256xf32, #tpu.memory_space<vmem>>, %arg4: memref<2x4x256xf32, #tpu.memory_space<vmem>>, %arg5: memref<2x4x256xf32, #tpu.memory_space<vmem>>) attributes {dimension_semantics = [], scalar_prefetch = 0 : i64, scratch_operands = 0 : i64, tpu.core_type = #tpu.core_type<tc>} {
    %c0 = arith.constant 0 : index
    %c0_0 = arith.constant 0 : index
    %c0_1 = arith.constant 0 : index
    %0 = vector.load %arg0[%c0, %c0_0, %c0_1] : memref<2x4x256xf32, #tpu.memory_space<vmem>>, vector<2x4x256xf32>
    %1 = vector.extract_strided_slice %0 {offsets = [0, 0, 0], sizes = [1, 4, 256], strides = [1, 1, 1]} : vector<2x4x256xf32> to vector<1x4x256xf32>
    %2 = vector.shape_cast %1 : vector<1x4x256xf32> to vector<4x256xf32>
    %3 = vector.extract_strided_slice %0 {offsets = [1, 0, 0], sizes = [1, 4, 256], strides = [1, 1, 1]} : vector<2x4x256xf32> to vector<1x4x256xf32>
    %4 = vector.shape_cast %3 : vector<1x4x256xf32> to vector<4x256xf32>
    %5 = arith.addf %2, %4 : vector<4x256xf32>
    %cst = arith.constant 5.000000e-01 : f32
    %6 = vector.broadcast %cst : f32 to vector<4x256xf32>
    %7 = arith.mulf %5, %6 : vector<4x256xf32>
    %8 = vector.extract_strided_slice %0 {offsets = [0, 0, 0], sizes = [1, 4, 256], strides = [1, 1, 1]} : vector<2x4x256xf32> to vector<1x4x256xf32>
    %9 = vector.shape_cast %8 : vector<1x4x256xf32> to vector<4x256xf32>
    %10 = arith.subf %9, %7 : vector<4x256xf32>
    %11 = vector.extract_strided_slice %0 {offsets = [0, 0, 0], sizes = [1, 4, 256], strides = [1, 1, 1]} : vector<2x4x256xf32> to vector<1x4x256xf32>
    %12 = vector.shape_cast %11 : vector<1x4x256xf32> to vector<4x256xf32>
    %13 = arith.subf %12, %7 : vector<4x256xf32>
    %14 = arith.mulf %10, %13 : vector<4x256xf32>
    %15 = vector.extract_strided_slice %0 {offsets = [1, 0, 0], sizes = [1, 4, 256], strides = [1, 1, 1]} : vector<2x4x256xf32> to vector<1x4x256xf32>
    %16 = vector.shape_cast %15 : vector<1x4x256xf32> to vector<4x256xf32>
    %17 = arith.subf %16, %7 : vector<4x256xf32>
    %18 = vector.extract_strided_slice %0 {offsets = [1, 0, 0], sizes = [1, 4, 256], strides = [1, 1, 1]} : vector<2x4x256xf32> to vector<1x4x256xf32>
    %19 = vector.shape_cast %18 : vector<1x4x256xf32> to vector<4x256xf32>
    %20 = arith.subf %19, %7 : vector<4x256xf32>
    %21 = arith.mulf %17, %20 : vector<4x256xf32>
    %22 = arith.addf %14, %21 : vector<4x256xf32>
    %cst_2 = arith.constant 5.000000e-01 : f32
    %23 = vector.broadcast %cst_2 : f32 to vector<4x256xf32>
    %24 = arith.mulf %22, %23 : vector<4x256xf32>
    %cst_3 = arith.constant 9.99999974E-6 : f32
    %25 = vector.broadcast %cst_3 : f32 to vector<4x256xf32>
    %26 = arith.addf %24, %25 : vector<4x256xf32>
    %27 = math.sqrt %26 : vector<4x256xf32>
    %c0_4 = arith.constant 0 : index
    %c0_5 = arith.constant 0 : index
    %28 = vector.load %arg2[%c0_4, %c0_5] : memref<4x256xf32, #tpu.memory_space<vmem>>, vector<4x256xf32>
    tpu.vector_store %arg2[%c0_4, %c0_5], %7 {strides = array<i32>} : memref<4x256xf32, #tpu.memory_space<vmem>>, vector<4x256xf32>,
    %c0_6 = arith.constant 0 : index
    %c0_7 = arith.constant 0 : index
    %29 = vector.load %arg3[%c0_6, %c0_7] : memref<4x256xf32, #tpu.memory_space<vmem>>, vector<4x256xf32>
    tpu.vector_store %arg3[%c0_6, %c0_7], %27 {strides = array<i32>} : memref<4x256xf32, #tpu.memory_space<vmem>>, vector<4x256xf32>,
    %30 = vector.extract_strided_slice %0 {offsets = [0, 0, 0], sizes = [1, 4, 256], strides = [1, 1, 1]} : vector<2x4x256xf32> to vector<1x4x256xf32>
    %31 = vector.shape_cast %30 : vector<1x4x256xf32> to vector<4x256xf32>
    %cst_8 = arith.constant dense<0.000000e+00> : vector<4xf32>
    %32 = vector.multi_reduction <add>, %31, %cst_8 [1] : vector<4x256xf32> to vector<4xf32>
    %33 = vector.shape_cast %32 : vector<4xf32> to vector<4x1xf32>
    %34 = vector.extract_strided_slice %0 {offsets = [1, 0, 0], sizes = [1, 4, 256], strides = [1, 1, 1]} : vector<2x4x256xf32> to vector<1x4x256xf32>
    %35 = vector.shape_cast %34 : vector<1x4x256xf32> to vector<4x256xf32>
    %cst_9 = arith.constant dense<0.000000e+00> : vector<4xf32>
    %36 = vector.multi_reduction <add>, %35, %cst_9 [1] : vector<4x256xf32> to vector<4xf32>
    %37 = vector.shape_cast %36 : vector<4xf32> to vector<4x1xf32>
    %38 = arith.addf %33, %37 : vector<4x1xf32>
    %cst_10 = arith.constant 0.001953125 : f32
    %39 = vector.broadcast %cst_10 : f32 to vector<4x1xf32>
    %40 = arith.mulf %38, %39 : vector<4x1xf32>
    %41 = vector.shape_cast %40 : vector<4x1xf32> to vector<1x4x1xf32>
    %42 = vector.broadcast %41 : vector<1x4x1xf32> to vector<2x4x256xf32>
    %43 = arith.subf %0, %42 : vector<2x4x256xf32>
    %44 = vector.extract_strided_slice %43 {offsets = [0, 0, 0], sizes = [1, 4, 256], strides = [1, 1, 1]} : vector<2x4x256xf32> to vector<1x4x256xf32>
    %45 = vector.shape_cast %44 : vector<1x4x256xf32> to vector<4x256xf32>
    %46 = vector.extract_strided_slice %43 {offsets = [0, 0, 0], sizes = [1, 4, 256], strides = [1, 1, 1]} : vector<2x4x256xf32> to vector<1x4x256xf32>
    %47 = vector.shape_cast %46 : vector<1x4x256xf32> to vector<4x256xf32>
    %48 = arith.mulf %45, %47 : vector<4x256xf32>
    %cst_11 = arith.constant dense<0.000000e+00> : vector<4xf32>
    %49 = vector.multi_reduction <add>, %48, %cst_11 [1] : vector<4x256xf32> to vector<4xf32>
    %50 = vector.shape_cast %49 : vector<4xf32> to vector<4x1xf32>
    %51 = vector.extract_strided_slice %43 {offsets = [1, 0, 0], sizes = [1, 4, 256], strides = [1, 1, 1]} : vector<2x4x256xf32> to vector<1x4x256xf32>
    %52 = vector.shape_cast %51 : vector<1x4x256xf32> to vector<4x256xf32>
    %53 = vector.extract_strided_slice %43 {offsets = [1, 0, 0], sizes = [1, 4, 256], strides = [1, 1, 1]} : vector<2x4x256xf32> to vector<1x4x256xf32>
    %54 = vector.shape_cast %53 : vector<1x4x256xf32> to vector<4x256xf32>
    %55 = arith.mulf %52, %54 : vector<4x256xf32>
    %cst_12 = arith.constant dense<0.000000e+00> : vector<4xf32>
    %56 = vector.multi_reduction <add>, %55, %cst_12 [1] : vector<4x256xf32> to vector<4xf32>
    %57 = vector.shape_cast %56 : vector<4xf32> to vector<4x1xf32>
    %58 = arith.addf %50, %57 : vector<4x1xf32>
    %cst_13 = arith.constant 0.001953125 : f32
    %59 = vector.broadcast %cst_13 : f32 to vector<4x1xf32>
    %60 = arith.mulf %58, %59 : vector<4x1xf32>
    %cst_14 = arith.constant 9.99999974E-6 : f32
    %61 = vector.broadcast %cst_14 : f32 to vector<4x1xf32>
    %62 = arith.addf %60, %61 : vector<4x1xf32>
    %63 = math.rsqrt %62 : vector<4x1xf32>
    %64 = vector.shape_cast %63 : vector<4x1xf32> to vector<1x4x1xf32>
    %65 = vector.broadcast %64 : vector<1x4x1xf32> to vector<2x4x256xf32>
    %66 = arith.mulf %43, %65 : vector<2x4x256xf32>
    %c0_15 = arith.constant 0 : index
    %c0_16 = arith.constant 0 : index
    %c0_17 = arith.constant 0 : index
    %67 = vector.load %arg4[%c0_15, %c0_16, %c0_17] : memref<2x4x256xf32, #tpu.memory_space<vmem>>, vector<2x4x256xf32>
    tpu.vector_store %arg4[%c0_15, %c0_16, %c0_17], %66 {strides = array<i32>} : memref<2x4x256xf32, #tpu.memory_space<vmem>>, vector<2x4x256xf32>,
    %c0_18 = arith.constant 0 : index
    %c0_19 = arith.constant 0 : index
    %c0_20 = arith.constant 0 : index
    %68 = vector.load %arg1[%c0_18, %c0_19, %c0_20] : memref<2x4x256xf32, #tpu.memory_space<vmem>>, vector<2x4x256xf32>
    %69 = arith.addf %66, %68 : vector<2x4x256xf32>
    %c0_21 = arith.constant 0 : index
    %c0_22 = arith.constant 0 : index
    %c0_23 = arith.constant 0 : index
    %70 = vector.load %arg5[%c0_21, %c0_22, %c0_23] : memref<2x4x256xf32, #tpu.memory_space<vmem>>, vector<2x4x256xf32>
    tpu.vector_store %arg5[%c0_21, %c0_22, %c0_23], %69 {strides = array<i32>} : memref<2x4x256xf32, #tpu.memory_space<vmem>>, vector<2x4x256xf32>,
    return
  }
}

module attributes {stable_mosaic.version = 11 : i64} {
  func.func @kernel(%arg0: memref<2x8x256xf32, #tpu.memory_space<vmem>>, %arg1: memref<2x8x256xf32, #tpu.memory_space<vmem>>, %arg2: memref<9x16x8xf32, #tpu.memory_space<vmem>>, %arg3: memref<16x1xf32, #tpu.memory_space<vmem>>, %arg4: memref<16x1xf32, #tpu.memory_space<vmem>>, %arg5: memref<2x16x256xf32, #tpu.memory_space<vmem>>, %arg6: memref<16x256xf32, #tpu.memory_space<vmem>>, %arg7: memref<16x256xf32, #tpu.memory_space<vmem>>, %arg8: memref<2x16x256xf32, #tpu.memory_space<vmem>>, %arg9: memref<2x16x256xf32, #tpu.memory_space<vmem>>, %arg10: memref<2x16x256xf32, #tpu.memory_space<vmem>>, %arg11: memref<2x16x256xf32, #tpu.memory_space<vmem>>) attributes {dimension_semantics = [], scalar_prefetch = 0 : i64, scratch_operands = 0 : i64, tpu.core_type = #tpu.core_type<tc>} {
    %c0 = arith.constant 0 : index
    %c0_0 = arith.constant 0 : index
    %c0_1 = arith.constant 0 : index
    %0 = vector.load %arg2[%c0, %c0_0, %c0_1] : memref<9x16x8xf32, #tpu.memory_space<vmem>>, vector<9x16x8xf32>
    %c0_2 = arith.constant 0 : index
    %c0_3 = arith.constant 0 : index
    %1 = vector.load %arg3[%c0_2, %c0_3] : memref<16x1xf32, #tpu.memory_space<vmem>>, vector<16x1xf32>
    %2 = vector.shape_cast %1 : vector<16x1xf32> to vector<1x16x1xf32>
    %c0_4 = arith.constant 0 : index
    %c0_5 = arith.constant 0 : index
    %3 = vector.load %arg4[%c0_4, %c0_5] : memref<16x1xf32, #tpu.memory_space<vmem>>, vector<16x1xf32>
    %4 = vector.shape_cast %3 : vector<16x1xf32> to vector<1x16x1xf32>
    %c0_6 = arith.constant 0 : index
    %c0_7 = arith.constant 0 : index
    %c0_8 = arith.constant 0 : index
    %5 = vector.load %arg0[%c0_6, %c0_7, %c0_8] : memref<2x8x256xf32, #tpu.memory_space<vmem>>, vector<2x8x256xf32>
    %6 = tpu.iota {dimensions = array<i32: 2>} : vector<1x1x256xi32>
    %c15_i32 = arith.constant 15 : i32
    %7 = vector.broadcast %c15_i32 : i32 to vector<1x1x256xi32>
    %8 = arith.andi %6, %7 : vector<1x1x256xi32>
    %cst = arith.constant 0.000000e+00 : f32
    %9 = vector.broadcast %cst : f32 to vector<16x256xf32>
    %cst_9 = arith.constant 0.000000e+00 : f32
    %10 = vector.broadcast %cst_9 : f32 to vector<16x256xf32>
    %c17_i32 = arith.constant 17 : i32
    %11 = tpu.dynamic_rotate %5 by %c17_i32 dim 2 : vector<2x8x256xf32>, i32 -> vector<2x8x256xf32>
    %c16_i32 = arith.constant 16 : i32
    %12 = vector.broadcast %c16_i32 : i32 to vector<1x1x256xi32>
    %13 = arith.cmpi sge, %6, %12 : vector<1x1x256xi32>
    %c1_i32 = arith.constant 1 : i32
    %14 = vector.broadcast %c1_i32 : i32 to vector<1x1x256xi32>
    %15 = arith.cmpi sge, %8, %14 : vector<1x1x256xi32>
    %16 = arith.andi %13, %15 : vector<1x1x256xi1>
    %cst_10 = arith.constant 0.000000e+00 : f32
    %17 = vector.shape_cast %16 : vector<1x1x256xi1> to vector<1x1x256xi1>
    %18 = vector.broadcast %17 : vector<1x1x256xi1> to vector<2x8x256xi1>
    %19 = vector.broadcast %cst_10 : f32 to vector<2x8x256xf32>
    %20 = arith.select %18, %11, %19 : vector<2x8x256xi1>, vector<2x8x256xf32>
    %21 = vector.extract_strided_slice %0 {offsets = [0, 0, 0], sizes = [1, 16, 8], strides = [1, 1, 1]} : vector<9x16x8xf32> to vector<1x16x8xf32>
    %22 = vector.shape_cast %21 : vector<1x16x8xf32> to vector<16x8xf32>
    %23 = vector.extract_strided_slice %20 {offsets = [0, 0, 0], sizes = [1, 8, 256], strides = [1, 1, 1]} : vector<2x8x256xf32> to vector<1x8x256xf32>
    %24 = vector.shape_cast %23 : vector<1x8x256xf32> to vector<8x256xf32>
    %cst_11 = arith.constant dense<0.000000e+00> : vector<16x256xf32>
    %25 = tpu.matmul %22, %24, %cst_11 {dimension_numbers = #tpu.dot_dimension_numbers<[1], [0], [0], [1], [0, 0, 1, 1], [], []>} : vector<16x8xf32>, vector<8x256xf32>, vector<16x256xf32> -> vector<16x256xf32>
    %26 = arith.addf %9, %25 : vector<16x256xf32>
    %27 = vector.extract_strided_slice %20 {offsets = [1, 0, 0], sizes = [1, 8, 256], strides = [1, 1, 1]} : vector<2x8x256xf32> to vector<1x8x256xf32>
    %28 = vector.shape_cast %27 : vector<1x8x256xf32> to vector<8x256xf32>
    %cst_12 = arith.constant dense<0.000000e+00> : vector<16x256xf32>
    %29 = tpu.matmul %22, %28, %cst_12 {dimension_numbers = #tpu.dot_dimension_numbers<[1], [0], [0], [1], [0, 0, 1, 1], [], []>} : vector<16x8xf32>, vector<8x256xf32>, vector<16x256xf32> -> vector<16x256xf32>
    %30 = arith.addf %10, %29 : vector<16x256xf32>
    %c16_i32_13 = arith.constant 16 : i32
    %31 = tpu.dynamic_rotate %5 by %c16_i32_13 dim 2 : vector<2x8x256xf32>, i32 -> vector<2x8x256xf32>
    %c16_i32_14 = arith.constant 16 : i32
    %32 = vector.broadcast %c16_i32_14 : i32 to vector<1x1x256xi32>
    %33 = arith.cmpi sge, %6, %32 : vector<1x1x256xi32>
    %cst_15 = arith.constant 0.000000e+00 : f32
    %34 = vector.shape_cast %33 : vector<1x1x256xi1> to vector<1x1x256xi1>
    %35 = vector.broadcast %34 : vector<1x1x256xi1> to vector<2x8x256xi1>
    %36 = vector.broadcast %cst_15 : f32 to vector<2x8x256xf32>
    %37 = arith.select %35, %31, %36 : vector<2x8x256xi1>, vector<2x8x256xf32>
    %38 = vector.extract_strided_slice %0 {offsets = [1, 0, 0], sizes = [1, 16, 8], strides = [1, 1, 1]} : vector<9x16x8xf32> to vector<1x16x8xf32>
    %39 = vector.shape_cast %38 : vector<1x16x8xf32> to vector<16x8xf32>
    %40 = vector.extract_strided_slice %37 {offsets = [0, 0, 0], sizes = [1, 8, 256], strides = [1, 1, 1]} : vector<2x8x256xf32> to vector<1x8x256xf32>
    %41 = vector.shape_cast %40 : vector<1x8x256xf32> to vector<8x256xf32>
    %cst_16 = arith.constant dense<0.000000e+00> : vector<16x256xf32>
    %42 = tpu.matmul %39, %41, %cst_16 {dimension_numbers = #tpu.dot_dimension_numbers<[1], [0], [0], [1], [0, 0, 1, 1], [], []>} : vector<16x8xf32>, vector<8x256xf32>, vector<16x256xf32> -> vector<16x256xf32>
    %43 = arith.addf %26, %42 : vector<16x256xf32>
    %44 = vector.extract_strided_slice %37 {offsets = [1, 0, 0], sizes = [1, 8, 256], strides = [1, 1, 1]} : vector<2x8x256xf32> to vector<1x8x256xf32>
    %45 = vector.shape_cast %44 : vector<1x8x256xf32> to vector<8x256xf32>
    %cst_17 = arith.constant dense<0.000000e+00> : vector<16x256xf32>
    %46 = tpu.matmul %39, %45, %cst_17 {dimension_numbers = #tpu.dot_dimension_numbers<[1], [0], [0], [1], [0, 0, 1, 1], [], []>} : vector<16x8xf32>, vector<8x256xf32>, vector<16x256xf32> -> vector<16x256xf32>
    %47 = arith.addf %30, %46 : vector<16x256xf32>
    %c15_i32_18 = arith.constant 15 : i32
    %48 = tpu.dynamic_rotate %5 by %c15_i32_18 dim 2 : vector<2x8x256xf32>, i32 -> vector<2x8x256xf32>
    %c16_i32_19 = arith.constant 16 : i32
    %49 = vector.broadcast %c16_i32_19 : i32 to vector<1x1x256xi32>
    %50 = arith.cmpi sge, %6, %49 : vector<1x1x256xi32>
    %c15_i32_20 = arith.constant 15 : i32
    %51 = vector.broadcast %c15_i32_20 : i32 to vector<1x1x256xi32>
    %52 = arith.cmpi slt, %8, %51 : vector<1x1x256xi32>
    %53 = arith.andi %50, %52 : vector<1x1x256xi1>
    %cst_21 = arith.constant 0.000000e+00 : f32
    %54 = vector.shape_cast %53 : vector<1x1x256xi1> to vector<1x1x256xi1>
    %55 = vector.broadcast %54 : vector<1x1x256xi1> to vector<2x8x256xi1>
    %56 = vector.broadcast %cst_21 : f32 to vector<2x8x256xf32>
    %57 = arith.select %55, %48, %56 : vector<2x8x256xi1>, vector<2x8x256xf32>
    %58 = vector.extract_strided_slice %0 {offsets = [2, 0, 0], sizes = [1, 16, 8], strides = [1, 1, 1]} : vector<9x16x8xf32> to vector<1x16x8xf32>
    %59 = vector.shape_cast %58 : vector<1x16x8xf32> to vector<16x8xf32>
    %60 = vector.extract_strided_slice %57 {offsets = [0, 0, 0], sizes = [1, 8, 256], strides = [1, 1, 1]} : vector<2x8x256xf32> to vector<1x8x256xf32>
    %61 = vector.shape_cast %60 : vector<1x8x256xf32> to vector<8x256xf32>
    %cst_22 = arith.constant dense<0.000000e+00> : vector<16x256xf32>
    %62 = tpu.matmul %59, %61, %cst_22 {dimension_numbers = #tpu.dot_dimension_numbers<[1], [0], [0], [1], [0, 0, 1, 1], [], []>} : vector<16x8xf32>, vector<8x256xf32>, vector<16x256xf32> -> vector<16x256xf32>
    %63 = arith.addf %43, %62 : vector<16x256xf32>
    %64 = vector.extract_strided_slice %57 {offsets = [1, 0, 0], sizes = [1, 8, 256], strides = [1, 1, 1]} : vector<2x8x256xf32> to vector<1x8x256xf32>
    %65 = vector.shape_cast %64 : vector<1x8x256xf32> to vector<8x256xf32>
    %cst_23 = arith.constant dense<0.000000e+00> : vector<16x256xf32>
    %66 = tpu.matmul %59, %65, %cst_23 {dimension_numbers = #tpu.dot_dimension_numbers<[1], [0], [0], [1], [0, 0, 1, 1], [], []>} : vector<16x8xf32>, vector<8x256xf32>, vector<16x256xf32> -> vector<16x256xf32>
    %67 = arith.addf %47, %66 : vector<16x256xf32>
    %c1_i32_24 = arith.constant 1 : i32
    %68 = tpu.dynamic_rotate %5 by %c1_i32_24 dim 2 : vector<2x8x256xf32>, i32 -> vector<2x8x256xf32>
    %c1_i32_25 = arith.constant 1 : i32
    %69 = vector.broadcast %c1_i32_25 : i32 to vector<1x1x256xi32>
    %70 = arith.cmpi sge, %8, %69 : vector<1x1x256xi32>
    %cst_26 = arith.constant 0.000000e+00 : f32
    %71 = vector.shape_cast %70 : vector<1x1x256xi1> to vector<1x1x256xi1>
    %72 = vector.broadcast %71 : vector<1x1x256xi1> to vector<2x8x256xi1>
    %73 = vector.broadcast %cst_26 : f32 to vector<2x8x256xf32>
    %74 = arith.select %72, %68, %73 : vector<2x8x256xi1>, vector<2x8x256xf32>
    %75 = vector.extract_strided_slice %0 {offsets = [3, 0, 0], sizes = [1, 16, 8], strides = [1, 1, 1]} : vector<9x16x8xf32> to vector<1x16x8xf32>
    %76 = vector.shape_cast %75 : vector<1x16x8xf32> to vector<16x8xf32>
    %77 = vector.extract_strided_slice %74 {offsets = [0, 0, 0], sizes = [1, 8, 256], strides = [1, 1, 1]} : vector<2x8x256xf32> to vector<1x8x256xf32>
    %78 = vector.shape_cast %77 : vector<1x8x256xf32> to vector<8x256xf32>
    %cst_27 = arith.constant dense<0.000000e+00> : vector<16x256xf32>
    %79 = tpu.matmul %76, %78, %cst_27 {dimension_numbers = #tpu.dot_dimension_numbers<[1], [0], [0], [1], [0, 0, 1, 1], [], []>} : vector<16x8xf32>, vector<8x256xf32>, vector<16x256xf32> -> vector<16x256xf32>
    %80 = arith.addf %63, %79 : vector<16x256xf32>
    %81 = vector.extract_strided_slice %74 {offsets = [1, 0, 0], sizes = [1, 8, 256], strides = [1, 1, 1]} : vector<2x8x256xf32> to vector<1x8x256xf32>
    %82 = vector.shape_cast %81 : vector<1x8x256xf32> to vector<8x256xf32>
    %cst_28 = arith.constant dense<0.000000e+00> : vector<16x256xf32>
    %83 = tpu.matmul %76, %82, %cst_28 {dimension_numbers = #tpu.dot_dimension_numbers<[1], [0], [0], [1], [0, 0, 1, 1], [], []>} : vector<16x8xf32>, vector<8x256xf32>, vector<16x256xf32> -> vector<16x256xf32>
    %84 = arith.addf %67, %83 : vector<16x256xf32>
    %85 = vector.extract_strided_slice %0 {offsets = [4, 0, 0], sizes = [1, 16, 8], strides = [1, 1, 1]} : vector<9x16x8xf32> to vector<1x16x8xf32>
    %86 = vector.shape_cast %85 : vector<1x16x8xf32> to vector<16x8xf32>
    %87 = vector.extract_strided_slice %5 {offsets = [0, 0, 0], sizes = [1, 8, 256], strides = [1, 1, 1]} : vector<2x8x256xf32> to vector<1x8x256xf32>
    %88 = vector.shape_cast %87 : vector<1x8x256xf32> to vector<8x256xf32>
    %cst_29 = arith.constant dense<0.000000e+00> : vector<16x256xf32>
    %89 = tpu.matmul %86, %88, %cst_29 {dimension_numbers = #tpu.dot_dimension_numbers<[1], [0], [0], [1], [0, 0, 1, 1], [], []>} : vector<16x8xf32>, vector<8x256xf32>, vector<16x256xf32> -> vector<16x256xf32>
    %90 = arith.addf %80, %89 : vector<16x256xf32>
    %91 = vector.extract_strided_slice %5 {offsets = [1, 0, 0], sizes = [1, 8, 256], strides = [1, 1, 1]} : vector<2x8x256xf32> to vector<1x8x256xf32>
    %92 = vector.shape_cast %91 : vector<1x8x256xf32> to vector<8x256xf32>
    %cst_30 = arith.constant dense<0.000000e+00> : vector<16x256xf32>
    %93 = tpu.matmul %86, %92, %cst_30 {dimension_numbers = #tpu.dot_dimension_numbers<[1], [0], [0], [1], [0, 0, 1, 1], [], []>} : vector<16x8xf32>, vector<8x256xf32>, vector<16x256xf32> -> vector<16x256xf32>
    %94 = arith.addf %84, %93 : vector<16x256xf32>
    %c255_i32 = arith.constant 255 : i32
    %95 = tpu.dynamic_rotate %5 by %c255_i32 dim 2 : vector<2x8x256xf32>, i32 -> vector<2x8x256xf32>
    %c15_i32_31 = arith.constant 15 : i32
    %96 = vector.broadcast %c15_i32_31 : i32 to vector<1x1x256xi32>
    %97 = arith.cmpi slt, %8, %96 : vector<1x1x256xi32>
    %cst_32 = arith.constant 0.000000e+00 : f32
    %98 = vector.shape_cast %97 : vector<1x1x256xi1> to vector<1x1x256xi1>
    %99 = vector.broadcast %98 : vector<1x1x256xi1> to vector<2x8x256xi1>
    %100 = vector.broadcast %cst_32 : f32 to vector<2x8x256xf32>
    %101 = arith.select %99, %95, %100 : vector<2x8x256xi1>, vector<2x8x256xf32>
    %102 = vector.extract_strided_slice %0 {offsets = [5, 0, 0], sizes = [1, 16, 8], strides = [1, 1, 1]} : vector<9x16x8xf32> to vector<1x16x8xf32>
    %103 = vector.shape_cast %102 : vector<1x16x8xf32> to vector<16x8xf32>
    %104 = vector.extract_strided_slice %101 {offsets = [0, 0, 0], sizes = [1, 8, 256], strides = [1, 1, 1]} : vector<2x8x256xf32> to vector<1x8x256xf32>
    %105 = vector.shape_cast %104 : vector<1x8x256xf32> to vector<8x256xf32>
    %cst_33 = arith.constant dense<0.000000e+00> : vector<16x256xf32>
    %106 = tpu.matmul %103, %105, %cst_33 {dimension_numbers = #tpu.dot_dimension_numbers<[1], [0], [0], [1], [0, 0, 1, 1], [], []>} : vector<16x8xf32>, vector<8x256xf32>, vector<16x256xf32> -> vector<16x256xf32>
    %107 = arith.addf %90, %106 : vector<16x256xf32>
    %108 = vector.extract_strided_slice %101 {offsets = [1, 0, 0], sizes = [1, 8, 256], strides = [1, 1, 1]} : vector<2x8x256xf32> to vector<1x8x256xf32>
    %109 = vector.shape_cast %108 : vector<1x8x256xf32> to vector<8x256xf32>
    %cst_34 = arith.constant dense<0.000000e+00> : vector<16x256xf32>
    %110 = tpu.matmul %103, %109, %cst_34 {dimension_numbers = #tpu.dot_dimension_numbers<[1], [0], [0], [1], [0, 0, 1, 1], [], []>} : vector<16x8xf32>, vector<8x256xf32>, vector<16x256xf32> -> vector<16x256xf32>
    %111 = arith.addf %94, %110 : vector<16x256xf32>
    %c241_i32 = arith.constant 241 : i32
    %112 = tpu.dynamic_rotate %5 by %c241_i32 dim 2 : vector<2x8x256xf32>, i32 -> vector<2x8x256xf32>
    %c240_i32 = arith.constant 240 : i32
    %113 = vector.broadcast %c240_i32 : i32 to vector<1x1x256xi32>
    %114 = arith.cmpi slt, %6, %113 : vector<1x1x256xi32>
    %c1_i32_35 = arith.constant 1 : i32
    %115 = vector.broadcast %c1_i32_35 : i32 to vector<1x1x256xi32>
    %116 = arith.cmpi sge, %8, %115 : vector<1x1x256xi32>
    %117 = arith.andi %114, %116 : vector<1x1x256xi1>
    %cst_36 = arith.constant 0.000000e+00 : f32
    %118 = vector.shape_cast %117 : vector<1x1x256xi1> to vector<1x1x256xi1>
    %119 = vector.broadcast %118 : vector<1x1x256xi1> to vector<2x8x256xi1>
    %120 = vector.broadcast %cst_36 : f32 to vector<2x8x256xf32>
    %121 = arith.select %119, %112, %120 : vector<2x8x256xi1>, vector<2x8x256xf32>
    %122 = vector.extract_strided_slice %0 {offsets = [6, 0, 0], sizes = [1, 16, 8], strides = [1, 1, 1]} : vector<9x16x8xf32> to vector<1x16x8xf32>
    %123 = vector.shape_cast %122 : vector<1x16x8xf32> to vector<16x8xf32>
    %124 = vector.extract_strided_slice %121 {offsets = [0, 0, 0], sizes = [1, 8, 256], strides = [1, 1, 1]} : vector<2x8x256xf32> to vector<1x8x256xf32>
    %125 = vector.shape_cast %124 : vector<1x8x256xf32> to vector<8x256xf32>
    %cst_37 = arith.constant dense<0.000000e+00> : vector<16x256xf32>
    %126 = tpu.matmul %123, %125, %cst_37 {dimension_numbers = #tpu.dot_dimension_numbers<[1], [0], [0], [1], [0, 0, 1, 1], [], []>} : vector<16x8xf32>, vector<8x256xf32>, vector<16x256xf32> -> vector<16x256xf32>
    %127 = arith.addf %107, %126 : vector<16x256xf32>
    %128 = vector.extract_strided_slice %121 {offsets = [1, 0, 0], sizes = [1, 8, 256], strides = [1, 1, 1]} : vector<2x8x256xf32> to vector<1x8x256xf32>
    %129 = vector.shape_cast %128 : vector<1x8x256xf32> to vector<8x256xf32>
    %cst_38 = arith.constant dense<0.000000e+00> : vector<16x256xf32>
    %130 = tpu.matmul %123, %129, %cst_38 {dimension_numbers = #tpu.dot_dimension_numbers<[1], [0], [0], [1], [0, 0, 1, 1], [], []>} : vector<16x8xf32>, vector<8x256xf32>, vector<16x256xf32> -> vector<16x256xf32>
    %131 = arith.addf %111, %130 : vector<16x256xf32>
    %c240_i32_39 = arith.constant 240 : i32
    %132 = tpu.dynamic_rotate %5 by %c240_i32_39 dim 2 : vector<2x8x256xf32>, i32 -> vector<2x8x256xf32>
    %c240_i32_40 = arith.constant 240 : i32
    %133 = vector.broadcast %c240_i32_40 : i32 to vector<1x1x256xi32>
    %134 = arith.cmpi slt, %6, %133 : vector<1x1x256xi32>
    %cst_41 = arith.constant 0.000000e+00 : f32
    %135 = vector.shape_cast %134 : vector<1x1x256xi1> to vector<1x1x256xi1>
    %136 = vector.broadcast %135 : vector<1x1x256xi1> to vector<2x8x256xi1>
    %137 = vector.broadcast %cst_41 : f32 to vector<2x8x256xf32>
    %138 = arith.select %136, %132, %137 : vector<2x8x256xi1>, vector<2x8x256xf32>
    %139 = vector.extract_strided_slice %0 {offsets = [7, 0, 0], sizes = [1, 16, 8], strides = [1, 1, 1]} : vector<9x16x8xf32> to vector<1x16x8xf32>
    %140 = vector.shape_cast %139 : vector<1x16x8xf32> to vector<16x8xf32>
    %141 = vector.extract_strided_slice %138 {offsets = [0, 0, 0], sizes = [1, 8, 256], strides = [1, 1, 1]} : vector<2x8x256xf32> to vector<1x8x256xf32>
    %142 = vector.shape_cast %141 : vector<1x8x256xf32> to vector<8x256xf32>
    %cst_42 = arith.constant dense<0.000000e+00> : vector<16x256xf32>
    %143 = tpu.matmul %140, %142, %cst_42 {dimension_numbers = #tpu.dot_dimension_numbers<[1], [0], [0], [1], [0, 0, 1, 1], [], []>} : vector<16x8xf32>, vector<8x256xf32>, vector<16x256xf32> -> vector<16x256xf32>
    %144 = arith.addf %127, %143 : vector<16x256xf32>
    %145 = vector.extract_strided_slice %138 {offsets = [1, 0, 0], sizes = [1, 8, 256], strides = [1, 1, 1]} : vector<2x8x256xf32> to vector<1x8x256xf32>
    %146 = vector.shape_cast %145 : vector<1x8x256xf32> to vector<8x256xf32>
    %cst_43 = arith.constant dense<0.000000e+00> : vector<16x256xf32>
    %147 = tpu.matmul %140, %146, %cst_43 {dimension_numbers = #tpu.dot_dimension_numbers<[1], [0], [0], [1], [0, 0, 1, 1], [], []>} : vector<16x8xf32>, vector<8x256xf32>, vector<16x256xf32> -> vector<16x256xf32>
    %148 = arith.addf %131, %147 : vector<16x256xf32>
    %c239_i32 = arith.constant 239 : i32
    %149 = tpu.dynamic_rotate %5 by %c239_i32 dim 2 : vector<2x8x256xf32>, i32 -> vector<2x8x256xf32>
    %c240_i32_44 = arith.constant 240 : i32
    %150 = vector.broadcast %c240_i32_44 : i32 to vector<1x1x256xi32>
    %151 = arith.cmpi slt, %6, %150 : vector<1x1x256xi32>
    %c15_i32_45 = arith.constant 15 : i32
    %152 = vector.broadcast %c15_i32_45 : i32 to vector<1x1x256xi32>
    %153 = arith.cmpi slt, %8, %152 : vector<1x1x256xi32>
    %154 = arith.andi %151, %153 : vector<1x1x256xi1>
    %cst_46 = arith.constant 0.000000e+00 : f32
    %155 = vector.shape_cast %154 : vector<1x1x256xi1> to vector<1x1x256xi1>
    %156 = vector.broadcast %155 : vector<1x1x256xi1> to vector<2x8x256xi1>
    %157 = vector.broadcast %cst_46 : f32 to vector<2x8x256xf32>
    %158 = arith.select %156, %149, %157 : vector<2x8x256xi1>, vector<2x8x256xf32>
    %159 = vector.extract_strided_slice %0 {offsets = [8, 0, 0], sizes = [1, 16, 8], strides = [1, 1, 1]} : vector<9x16x8xf32> to vector<1x16x8xf32>
    %160 = vector.shape_cast %159 : vector<1x16x8xf32> to vector<16x8xf32>
    %161 = vector.extract_strided_slice %158 {offsets = [0, 0, 0], sizes = [1, 8, 256], strides = [1, 1, 1]} : vector<2x8x256xf32> to vector<1x8x256xf32>
    %162 = vector.shape_cast %161 : vector<1x8x256xf32> to vector<8x256xf32>
    %cst_47 = arith.constant dense<0.000000e+00> : vector<16x256xf32>
    %163 = tpu.matmul %160, %162, %cst_47 {dimension_numbers = #tpu.dot_dimension_numbers<[1], [0], [0], [1], [0, 0, 1, 1], [], []>} : vector<16x8xf32>, vector<8x256xf32>, vector<16x256xf32> -> vector<16x256xf32>
    %164 = arith.addf %144, %163 : vector<16x256xf32>
    %165 = vector.extract_strided_slice %158 {offsets = [1, 0, 0], sizes = [1, 8, 256], strides = [1, 1, 1]} : vector<2x8x256xf32> to vector<1x8x256xf32>
    %166 = vector.shape_cast %165 : vector<1x8x256xf32> to vector<8x256xf32>
    %cst_48 = arith.constant dense<0.000000e+00> : vector<16x256xf32>
    %167 = tpu.matmul %160, %166, %cst_48 {dimension_numbers = #tpu.dot_dimension_numbers<[1], [0], [0], [1], [0, 0, 1, 1], [], []>} : vector<16x8xf32>, vector<8x256xf32>, vector<16x256xf32> -> vector<16x256xf32>
    %168 = arith.addf %148, %167 : vector<16x256xf32>
    %169 = vector.shape_cast %164 : vector<16x256xf32> to vector<1x16x256xf32>
    %170 = vector.shape_cast %168 : vector<16x256xf32> to vector<1x16x256xf32>
    %171 = tpu.concatenate %169, %170 in 0 : vector<1x16x256xf32>, vector<1x16x256xf32> -> vector<2x16x256xf32>
    %172 = vector.extract_strided_slice %171 {offsets = [0, 0, 0], sizes = [1, 16, 256], strides = [1, 1, 1]} : vector<2x16x256xf32> to vector<1x16x256xf32>
    %173 = vector.shape_cast %172 : vector<1x16x256xf32> to vector<16x256xf32>
    %174 = vector.extract_strided_slice %171 {offsets = [1, 0, 0], sizes = [1, 16, 256], strides = [1, 1, 1]} : vector<2x16x256xf32> to vector<1x16x256xf32>
    %175 = vector.shape_cast %174 : vector<1x16x256xf32> to vector<16x256xf32>
    %176 = arith.addf %173, %175 : vector<16x256xf32>
    %cst_49 = arith.constant 5.000000e-01 : f32
    %177 = vector.broadcast %cst_49 : f32 to vector<16x256xf32>
    %178 = arith.mulf %176, %177 : vector<16x256xf32>
    %179 = vector.extract_strided_slice %171 {offsets = [0, 0, 0], sizes = [1, 16, 256], strides = [1, 1, 1]} : vector<2x16x256xf32> to vector<1x16x256xf32>
    %180 = vector.shape_cast %179 : vector<1x16x256xf32> to vector<16x256xf32>
    %181 = arith.subf %180, %178 : vector<16x256xf32>
    %182 = vector.extract_strided_slice %171 {offsets = [0, 0, 0], sizes = [1, 16, 256], strides = [1, 1, 1]} : vector<2x16x256xf32> to vector<1x16x256xf32>
    %183 = vector.shape_cast %182 : vector<1x16x256xf32> to vector<16x256xf32>
    %184 = arith.subf %183, %178 : vector<16x256xf32>
    %185 = arith.mulf %181, %184 : vector<16x256xf32>
    %186 = vector.extract_strided_slice %171 {offsets = [1, 0, 0], sizes = [1, 16, 256], strides = [1, 1, 1]} : vector<2x16x256xf32> to vector<1x16x256xf32>
    %187 = vector.shape_cast %186 : vector<1x16x256xf32> to vector<16x256xf32>
    %188 = arith.subf %187, %178 : vector<16x256xf32>
    %189 = vector.extract_strided_slice %171 {offsets = [1, 0, 0], sizes = [1, 16, 256], strides = [1, 1, 1]} : vector<2x16x256xf32> to vector<1x16x256xf32>
    %190 = vector.shape_cast %189 : vector<1x16x256xf32> to vector<16x256xf32>
    %191 = arith.subf %190, %178 : vector<16x256xf32>
    %192 = arith.mulf %188, %191 : vector<16x256xf32>
    %193 = arith.addf %185, %192 : vector<16x256xf32>
    %cst_50 = arith.constant 5.000000e-01 : f32
    %194 = vector.broadcast %cst_50 : f32 to vector<16x256xf32>
    %195 = arith.mulf %193, %194 : vector<16x256xf32>
    %cst_51 = arith.constant 9.99999974E-6 : f32
    %196 = vector.broadcast %cst_51 : f32 to vector<16x256xf32>
    %197 = arith.addf %195, %196 : vector<16x256xf32>
    %198 = math.sqrt %197 : vector<16x256xf32>
    %c0_52 = arith.constant 0 : index
    %c0_53 = arith.constant 0 : index
    %199 = vector.load %arg6[%c0_52, %c0_53] : memref<16x256xf32, #tpu.memory_space<vmem>>, vector<16x256xf32>
    tpu.vector_store %arg6[%c0_52, %c0_53], %178 {strides = array<i32>} : memref<16x256xf32, #tpu.memory_space<vmem>>, vector<16x256xf32>,
    %c0_54 = arith.constant 0 : index
    %c0_55 = arith.constant 0 : index
    %200 = vector.load %arg7[%c0_54, %c0_55] : memref<16x256xf32, #tpu.memory_space<vmem>>, vector<16x256xf32>
    tpu.vector_store %arg7[%c0_54, %c0_55], %198 {strides = array<i32>} : memref<16x256xf32, #tpu.memory_space<vmem>>, vector<16x256xf32>,
    %201 = vector.extract_strided_slice %171 {offsets = [0, 0, 0], sizes = [1, 16, 256], strides = [1, 1, 1]} : vector<2x16x256xf32> to vector<1x16x256xf32>
    %202 = vector.shape_cast %201 : vector<1x16x256xf32> to vector<16x256xf32>
    %cst_56 = arith.constant dense<0.000000e+00> : vector<16xf32>
    %203 = vector.multi_reduction <add>, %202, %cst_56 [1] : vector<16x256xf32> to vector<16xf32>
    %204 = vector.shape_cast %203 : vector<16xf32> to vector<16x1xf32>
    %205 = vector.extract_strided_slice %171 {offsets = [1, 0, 0], sizes = [1, 16, 256], strides = [1, 1, 1]} : vector<2x16x256xf32> to vector<1x16x256xf32>
    %206 = vector.shape_cast %205 : vector<1x16x256xf32> to vector<16x256xf32>
    %cst_57 = arith.constant dense<0.000000e+00> : vector<16xf32>
    %207 = vector.multi_reduction <add>, %206, %cst_57 [1] : vector<16x256xf32> to vector<16xf32>
    %208 = vector.shape_cast %207 : vector<16xf32> to vector<16x1xf32>
    %209 = arith.addf %204, %208 : vector<16x1xf32>
    %cst_58 = arith.constant 0.001953125 : f32
    %210 = vector.broadcast %cst_58 : f32 to vector<16x1xf32>
    %211 = arith.mulf %209, %210 : vector<16x1xf32>
    %212 = vector.shape_cast %211 : vector<16x1xf32> to vector<1x16x1xf32>
    %213 = vector.broadcast %212 : vector<1x16x1xf32> to vector<2x16x256xf32>
    %214 = arith.subf %171, %213 : vector<2x16x256xf32>
    %215 = vector.extract_strided_slice %214 {offsets = [0, 0, 0], sizes = [1, 16, 256], strides = [1, 1, 1]} : vector<2x16x256xf32> to vector<1x16x256xf32>
    %216 = vector.shape_cast %215 : vector<1x16x256xf32> to vector<16x256xf32>
    %217 = vector.extract_strided_slice %214 {offsets = [0, 0, 0], sizes = [1, 16, 256], strides = [1, 1, 1]} : vector<2x16x256xf32> to vector<1x16x256xf32>
    %218 = vector.shape_cast %217 : vector<1x16x256xf32> to vector<16x256xf32>
    %219 = arith.mulf %216, %218 : vector<16x256xf32>
    %cst_59 = arith.constant dense<0.000000e+00> : vector<16xf32>
    %220 = vector.multi_reduction <add>, %219, %cst_59 [1] : vector<16x256xf32> to vector<16xf32>
    %221 = vector.shape_cast %220 : vector<16xf32> to vector<16x1xf32>
    %222 = vector.extract_strided_slice %214 {offsets = [1, 0, 0], sizes = [1, 16, 256], strides = [1, 1, 1]} : vector<2x16x256xf32> to vector<1x16x256xf32>
    %223 = vector.shape_cast %222 : vector<1x16x256xf32> to vector<16x256xf32>
    %224 = vector.extract_strided_slice %214 {offsets = [1, 0, 0], sizes = [1, 16, 256], strides = [1, 1, 1]} : vector<2x16x256xf32> to vector<1x16x256xf32>
    %225 = vector.shape_cast %224 : vector<1x16x256xf32> to vector<16x256xf32>
    %226 = arith.mulf %223, %225 : vector<16x256xf32>
    %cst_60 = arith.constant dense<0.000000e+00> : vector<16xf32>
    %227 = vector.multi_reduction <add>, %226, %cst_60 [1] : vector<16x256xf32> to vector<16xf32>
    %228 = vector.shape_cast %227 : vector<16xf32> to vector<16x1xf32>
    %229 = arith.addf %221, %228 : vector<16x1xf32>
    %cst_61 = arith.constant 0.001953125 : f32
    %230 = vector.broadcast %cst_61 : f32 to vector<16x1xf32>
    %231 = arith.mulf %229, %230 : vector<16x1xf32>
    %cst_62 = arith.constant 9.99999974E-6 : f32
    %232 = vector.broadcast %cst_62 : f32 to vector<16x1xf32>
    %233 = arith.addf %231, %232 : vector<16x1xf32>
    %234 = math.rsqrt %233 : vector<16x1xf32>
    %235 = vector.shape_cast %234 : vector<16x1xf32> to vector<1x16x1xf32>
    %236 = vector.broadcast %235 : vector<1x16x1xf32> to vector<2x16x256xf32>
    %237 = arith.mulf %214, %236 : vector<2x16x256xf32>
    %c0_63 = arith.constant 0 : index
    %c0_64 = arith.constant 0 : index
    %c0_65 = arith.constant 0 : index
    %238 = vector.load %arg8[%c0_63, %c0_64, %c0_65] : memref<2x16x256xf32, #tpu.memory_space<vmem>>, vector<2x16x256xf32>
    tpu.vector_store %arg8[%c0_63, %c0_64, %c0_65], %237 {strides = array<i32>} : memref<2x16x256xf32, #tpu.memory_space<vmem>>, vector<2x16x256xf32>,
    %239 = vector.broadcast %2 : vector<1x16x1xf32> to vector<2x16x256xf32>
    %240 = arith.mulf %239, %237 : vector<2x16x256xf32>
    %241 = vector.broadcast %4 : vector<1x16x1xf32> to vector<2x16x256xf32>
    %242 = arith.addf %240, %241 : vector<2x16x256xf32>
    %cst_66 = arith.constant 0.000000e+00 : f32
    %243 = vector.broadcast %cst_66 : f32 to vector<2x16x256xf32>
    %244 = arith.maximumf %242, %243 : vector<2x16x256xf32>
    %c0_67 = arith.constant 0 : index
    %c0_68 = arith.constant 0 : index
    %c0_69 = arith.constant 0 : index
    %245 = vector.load %arg9[%c0_67, %c0_68, %c0_69] : memref<2x16x256xf32, #tpu.memory_space<vmem>>, vector<2x16x256xf32>
    tpu.vector_store %arg9[%c0_67, %c0_68, %c0_69], %244 {strides = array<i32>} : memref<2x16x256xf32, #tpu.memory_space<vmem>>, vector<2x16x256xf32>,
    %c0_70 = arith.constant 0 : index
    %c0_71 = arith.constant 0 : index
    %c0_72 = arith.constant 0 : index
    %246 = vector.load %arg1[%c0_70, %c0_71, %c0_72] : memref<2x8x256xf32, #tpu.memory_space<vmem>>, vector<2x8x256xf32>
    %247 = tpu.iota {dimensions = array<i32: 2>} : vector<1x1x256xi32>
    %c15_i32_73 = arith.constant 15 : i32
    %248 = vector.broadcast %c15_i32_73 : i32 to vector<1x1x256xi32>
    %249 = arith.andi %247, %248 : vector<1x1x256xi32>
    %cst_74 = arith.constant 0.000000e+00 : f32
    %250 = vector.broadcast %cst_74 : f32 to vector<16x256xf32>
    %cst_75 = arith.constant 0.000000e+00 : f32
    %251 = vector.broadcast %cst_75 : f32 to vector<16x256xf32>
    %c17_i32_76 = arith.constant 17 : i32
    %252 = tpu.dynamic_rotate %246 by %c17_i32_76 dim 2 : vector<2x8x256xf32>, i32 -> vector<2x8x256xf32>
    %c16_i32_77 = arith.constant 16 : i32
    %253 = vector.broadcast %c16_i32_77 : i32 to vector<1x1x256xi32>
    %254 = arith.cmpi sge, %247, %253 : vector<1x1x256xi32>
    %c1_i32_78 = arith.constant 1 : i32
    %255 = vector.broadcast %c1_i32_78 : i32 to vector<1x1x256xi32>
    %256 = arith.cmpi sge, %249, %255 : vector<1x1x256xi32>
    %257 = arith.andi %254, %256 : vector<1x1x256xi1>
    %cst_79 = arith.constant 0.000000e+00 : f32
    %258 = vector.shape_cast %257 : vector<1x1x256xi1> to vector<1x1x256xi1>
    %259 = vector.broadcast %258 : vector<1x1x256xi1> to vector<2x8x256xi1>
    %260 = vector.broadcast %cst_79 : f32 to vector<2x8x256xf32>
    %261 = arith.select %259, %252, %260 : vector<2x8x256xi1>, vector<2x8x256xf32>
    %262 = vector.extract_strided_slice %0 {offsets = [0, 0, 0], sizes = [1, 16, 8], strides = [1, 1, 1]} : vector<9x16x8xf32> to vector<1x16x8xf32>
    %263 = vector.shape_cast %262 : vector<1x16x8xf32> to vector<16x8xf32>
    %264 = vector.extract_strided_slice %261 {offsets = [0, 0, 0], sizes = [1, 8, 256], strides = [1, 1, 1]} : vector<2x8x256xf32> to vector<1x8x256xf32>
    %265 = vector.shape_cast %264 : vector<1x8x256xf32> to vector<8x256xf32>
    %cst_80 = arith.constant dense<0.000000e+00> : vector<16x256xf32>
    %266 = tpu.matmul %263, %265, %cst_80 {dimension_numbers = #tpu.dot_dimension_numbers<[1], [0], [0], [1], [0, 0, 1, 1], [], []>} : vector<16x8xf32>, vector<8x256xf32>, vector<16x256xf32> -> vector<16x256xf32>
    %267 = arith.addf %250, %266 : vector<16x256xf32>
    %268 = vector.extract_strided_slice %261 {offsets = [1, 0, 0], sizes = [1, 8, 256], strides = [1, 1, 1]} : vector<2x8x256xf32> to vector<1x8x256xf32>
    %269 = vector.shape_cast %268 : vector<1x8x256xf32> to vector<8x256xf32>
    %cst_81 = arith.constant dense<0.000000e+00> : vector<16x256xf32>
    %270 = tpu.matmul %263, %269, %cst_81 {dimension_numbers = #tpu.dot_dimension_numbers<[1], [0], [0], [1], [0, 0, 1, 1], [], []>} : vector<16x8xf32>, vector<8x256xf32>, vector<16x256xf32> -> vector<16x256xf32>
    %271 = arith.addf %251, %270 : vector<16x256xf32>
    %c16_i32_82 = arith.constant 16 : i32
    %272 = tpu.dynamic_rotate %246 by %c16_i32_82 dim 2 : vector<2x8x256xf32>, i32 -> vector<2x8x256xf32>
    %c16_i32_83 = arith.constant 16 : i32
    %273 = vector.broadcast %c16_i32_83 : i32 to vector<1x1x256xi32>
    %274 = arith.cmpi sge, %247, %273 : vector<1x1x256xi32>
    %cst_84 = arith.constant 0.000000e+00 : f32
    %275 = vector.shape_cast %274 : vector<1x1x256xi1> to vector<1x1x256xi1>
    %276 = vector.broadcast %275 : vector<1x1x256xi1> to vector<2x8x256xi1>
    %277 = vector.broadcast %cst_84 : f32 to vector<2x8x256xf32>
    %278 = arith.select %276, %272, %277 : vector<2x8x256xi1>, vector<2x8x256xf32>
    %279 = vector.extract_strided_slice %0 {offsets = [1, 0, 0], sizes = [1, 16, 8], strides = [1, 1, 1]} : vector<9x16x8xf32> to vector<1x16x8xf32>
    %280 = vector.shape_cast %279 : vector<1x16x8xf32> to vector<16x8xf32>
    %281 = vector.extract_strided_slice %278 {offsets = [0, 0, 0], sizes = [1, 8, 256], strides = [1, 1, 1]} : vector<2x8x256xf32> to vector<1x8x256xf32>
    %282 = vector.shape_cast %281 : vector<1x8x256xf32> to vector<8x256xf32>
    %cst_85 = arith.constant dense<0.000000e+00> : vector<16x256xf32>
    %283 = tpu.matmul %280, %282, %cst_85 {dimension_numbers = #tpu.dot_dimension_numbers<[1], [0], [0], [1], [0, 0, 1, 1], [], []>} : vector<16x8xf32>, vector<8x256xf32>, vector<16x256xf32> -> vector<16x256xf32>
    %284 = arith.addf %267, %283 : vector<16x256xf32>
    %285 = vector.extract_strided_slice %278 {offsets = [1, 0, 0], sizes = [1, 8, 256], strides = [1, 1, 1]} : vector<2x8x256xf32> to vector<1x8x256xf32>
    %286 = vector.shape_cast %285 : vector<1x8x256xf32> to vector<8x256xf32>
    %cst_86 = arith.constant dense<0.000000e+00> : vector<16x256xf32>
    %287 = tpu.matmul %280, %286, %cst_86 {dimension_numbers = #tpu.dot_dimension_numbers<[1], [0], [0], [1], [0, 0, 1, 1], [], []>} : vector<16x8xf32>, vector<8x256xf32>, vector<16x256xf32> -> vector<16x256xf32>
    %288 = arith.addf %271, %287 : vector<16x256xf32>
    %c15_i32_87 = arith.constant 15 : i32
    %289 = tpu.dynamic_rotate %246 by %c15_i32_87 dim 2 : vector<2x8x256xf32>, i32 -> vector<2x8x256xf32>
    %c16_i32_88 = arith.constant 16 : i32
    %290 = vector.broadcast %c16_i32_88 : i32 to vector<1x1x256xi32>
    %291 = arith.cmpi sge, %247, %290 : vector<1x1x256xi32>
    %c15_i32_89 = arith.constant 15 : i32
    %292 = vector.broadcast %c15_i32_89 : i32 to vector<1x1x256xi32>
    %293 = arith.cmpi slt, %249, %292 : vector<1x1x256xi32>
    %294 = arith.andi %291, %293 : vector<1x1x256xi1>
    %cst_90 = arith.constant 0.000000e+00 : f32
    %295 = vector.shape_cast %294 : vector<1x1x256xi1> to vector<1x1x256xi1>
    %296 = vector.broadcast %295 : vector<1x1x256xi1> to vector<2x8x256xi1>
    %297 = vector.broadcast %cst_90 : f32 to vector<2x8x256xf32>
    %298 = arith.select %296, %289, %297 : vector<2x8x256xi1>, vector<2x8x256xf32>
    %299 = vector.extract_strided_slice %0 {offsets = [2, 0, 0], sizes = [1, 16, 8], strides = [1, 1, 1]} : vector<9x16x8xf32> to vector<1x16x8xf32>
    %300 = vector.shape_cast %299 : vector<1x16x8xf32> to vector<16x8xf32>
    %301 = vector.extract_strided_slice %298 {offsets = [0, 0, 0], sizes = [1, 8, 256], strides = [1, 1, 1]} : vector<2x8x256xf32> to vector<1x8x256xf32>
    %302 = vector.shape_cast %301 : vector<1x8x256xf32> to vector<8x256xf32>
    %cst_91 = arith.constant dense<0.000000e+00> : vector<16x256xf32>
    %303 = tpu.matmul %300, %302, %cst_91 {dimension_numbers = #tpu.dot_dimension_numbers<[1], [0], [0], [1], [0, 0, 1, 1], [], []>} : vector<16x8xf32>, vector<8x256xf32>, vector<16x256xf32> -> vector<16x256xf32>
    %304 = arith.addf %284, %303 : vector<16x256xf32>
    %305 = vector.extract_strided_slice %298 {offsets = [1, 0, 0], sizes = [1, 8, 256], strides = [1, 1, 1]} : vector<2x8x256xf32> to vector<1x8x256xf32>
    %306 = vector.shape_cast %305 : vector<1x8x256xf32> to vector<8x256xf32>
    %cst_92 = arith.constant dense<0.000000e+00> : vector<16x256xf32>
    %307 = tpu.matmul %300, %306, %cst_92 {dimension_numbers = #tpu.dot_dimension_numbers<[1], [0], [0], [1], [0, 0, 1, 1], [], []>} : vector<16x8xf32>, vector<8x256xf32>, vector<16x256xf32> -> vector<16x256xf32>
    %308 = arith.addf %288, %307 : vector<16x256xf32>
    %c1_i32_93 = arith.constant 1 : i32
    %309 = tpu.dynamic_rotate %246 by %c1_i32_93 dim 2 : vector<2x8x256xf32>, i32 -> vector<2x8x256xf32>
    %c1_i32_94 = arith.constant 1 : i32
    %310 = vector.broadcast %c1_i32_94 : i32 to vector<1x1x256xi32>
    %311 = arith.cmpi sge, %249, %310 : vector<1x1x256xi32>
    %cst_95 = arith.constant 0.000000e+00 : f32
    %312 = vector.shape_cast %311 : vector<1x1x256xi1> to vector<1x1x256xi1>
    %313 = vector.broadcast %312 : vector<1x1x256xi1> to vector<2x8x256xi1>
    %314 = vector.broadcast %cst_95 : f32 to vector<2x8x256xf32>
    %315 = arith.select %313, %309, %314 : vector<2x8x256xi1>, vector<2x8x256xf32>
    %316 = vector.extract_strided_slice %0 {offsets = [3, 0, 0], sizes = [1, 16, 8], strides = [1, 1, 1]} : vector<9x16x8xf32> to vector<1x16x8xf32>
    %317 = vector.shape_cast %316 : vector<1x16x8xf32> to vector<16x8xf32>
    %318 = vector.extract_strided_slice %315 {offsets = [0, 0, 0], sizes = [1, 8, 256], strides = [1, 1, 1]} : vector<2x8x256xf32> to vector<1x8x256xf32>
    %319 = vector.shape_cast %318 : vector<1x8x256xf32> to vector<8x256xf32>
    %cst_96 = arith.constant dense<0.000000e+00> : vector<16x256xf32>
    %320 = tpu.matmul %317, %319, %cst_96 {dimension_numbers = #tpu.dot_dimension_numbers<[1], [0], [0], [1], [0, 0, 1, 1], [], []>} : vector<16x8xf32>, vector<8x256xf32>, vector<16x256xf32> -> vector<16x256xf32>
    %321 = arith.addf %304, %320 : vector<16x256xf32>
    %322 = vector.extract_strided_slice %315 {offsets = [1, 0, 0], sizes = [1, 8, 256], strides = [1, 1, 1]} : vector<2x8x256xf32> to vector<1x8x256xf32>
    %323 = vector.shape_cast %322 : vector<1x8x256xf32> to vector<8x256xf32>
    %cst_97 = arith.constant dense<0.000000e+00> : vector<16x256xf32>
    %324 = tpu.matmul %317, %323, %cst_97 {dimension_numbers = #tpu.dot_dimension_numbers<[1], [0], [0], [1], [0, 0, 1, 1], [], []>} : vector<16x8xf32>, vector<8x256xf32>, vector<16x256xf32> -> vector<16x256xf32>
    %325 = arith.addf %308, %324 : vector<16x256xf32>
    %326 = vector.extract_strided_slice %0 {offsets = [4, 0, 0], sizes = [1, 16, 8], strides = [1, 1, 1]} : vector<9x16x8xf32> to vector<1x16x8xf32>
    %327 = vector.shape_cast %326 : vector<1x16x8xf32> to vector<16x8xf32>
    %328 = vector.extract_strided_slice %246 {offsets = [0, 0, 0], sizes = [1, 8, 256], strides = [1, 1, 1]} : vector<2x8x256xf32> to vector<1x8x256xf32>
    %329 = vector.shape_cast %328 : vector<1x8x256xf32> to vector<8x256xf32>
    %cst_98 = arith.constant dense<0.000000e+00> : vector<16x256xf32>
    %330 = tpu.matmul %327, %329, %cst_98 {dimension_numbers = #tpu.dot_dimension_numbers<[1], [0], [0], [1], [0, 0, 1, 1], [], []>} : vector<16x8xf32>, vector<8x256xf32>, vector<16x256xf32> -> vector<16x256xf32>
    %331 = arith.addf %321, %330 : vector<16x256xf32>
    %332 = vector.extract_strided_slice %246 {offsets = [1, 0, 0], sizes = [1, 8, 256], strides = [1, 1, 1]} : vector<2x8x256xf32> to vector<1x8x256xf32>
    %333 = vector.shape_cast %332 : vector<1x8x256xf32> to vector<8x256xf32>
    %cst_99 = arith.constant dense<0.000000e+00> : vector<16x256xf32>
    %334 = tpu.matmul %327, %333, %cst_99 {dimension_numbers = #tpu.dot_dimension_numbers<[1], [0], [0], [1], [0, 0, 1, 1], [], []>} : vector<16x8xf32>, vector<8x256xf32>, vector<16x256xf32> -> vector<16x256xf32>
    %335 = arith.addf %325, %334 : vector<16x256xf32>
    %c255_i32_100 = arith.constant 255 : i32
    %336 = tpu.dynamic_rotate %246 by %c255_i32_100 dim 2 : vector<2x8x256xf32>, i32 -> vector<2x8x256xf32>
    %c15_i32_101 = arith.constant 15 : i32
    %337 = vector.broadcast %c15_i32_101 : i32 to vector<1x1x256xi32>
    %338 = arith.cmpi slt, %249, %337 : vector<1x1x256xi32>
    %cst_102 = arith.constant 0.000000e+00 : f32
    %339 = vector.shape_cast %338 : vector<1x1x256xi1> to vector<1x1x256xi1>
    %340 = vector.broadcast %339 : vector<1x1x256xi1> to vector<2x8x256xi1>
    %341 = vector.broadcast %cst_102 : f32 to vector<2x8x256xf32>
    %342 = arith.select %340, %336, %341 : vector<2x8x256xi1>, vector<2x8x256xf32>
    %343 = vector.extract_strided_slice %0 {offsets = [5, 0, 0], sizes = [1, 16, 8], strides = [1, 1, 1]} : vector<9x16x8xf32> to vector<1x16x8xf32>
    %344 = vector.shape_cast %343 : vector<1x16x8xf32> to vector<16x8xf32>
    %345 = vector.extract_strided_slice %342 {offsets = [0, 0, 0], sizes = [1, 8, 256], strides = [1, 1, 1]} : vector<2x8x256xf32> to vector<1x8x256xf32>
    %346 = vector.shape_cast %345 : vector<1x8x256xf32> to vector<8x256xf32>
    %cst_103 = arith.constant dense<0.000000e+00> : vector<16x256xf32>
    %347 = tpu.matmul %344, %346, %cst_103 {dimension_numbers = #tpu.dot_dimension_numbers<[1], [0], [0], [1], [0, 0, 1, 1], [], []>} : vector<16x8xf32>, vector<8x256xf32>, vector<16x256xf32> -> vector<16x256xf32>
    %348 = arith.addf %331, %347 : vector<16x256xf32>
    %349 = vector.extract_strided_slice %342 {offsets = [1, 0, 0], sizes = [1, 8, 256], strides = [1, 1, 1]} : vector<2x8x256xf32> to vector<1x8x256xf32>
    %350 = vector.shape_cast %349 : vector<1x8x256xf32> to vector<8x256xf32>
    %cst_104 = arith.constant dense<0.000000e+00> : vector<16x256xf32>
    %351 = tpu.matmul %344, %350, %cst_104 {dimension_numbers = #tpu.dot_dimension_numbers<[1], [0], [0], [1], [0, 0, 1, 1], [], []>} : vector<16x8xf32>, vector<8x256xf32>, vector<16x256xf32> -> vector<16x256xf32>
    %352 = arith.addf %335, %351 : vector<16x256xf32>
    %c241_i32_105 = arith.constant 241 : i32
    %353 = tpu.dynamic_rotate %246 by %c241_i32_105 dim 2 : vector<2x8x256xf32>, i32 -> vector<2x8x256xf32>
    %c240_i32_106 = arith.constant 240 : i32
    %354 = vector.broadcast %c240_i32_106 : i32 to vector<1x1x256xi32>
    %355 = arith.cmpi slt, %247, %354 : vector<1x1x256xi32>
    %c1_i32_107 = arith.constant 1 : i32
    %356 = vector.broadcast %c1_i32_107 : i32 to vector<1x1x256xi32>
    %357 = arith.cmpi sge, %249, %356 : vector<1x1x256xi32>
    %358 = arith.andi %355, %357 : vector<1x1x256xi1>
    %cst_108 = arith.constant 0.000000e+00 : f32
    %359 = vector.shape_cast %358 : vector<1x1x256xi1> to vector<1x1x256xi1>
    %360 = vector.broadcast %359 : vector<1x1x256xi1> to vector<2x8x256xi1>
    %361 = vector.broadcast %cst_108 : f32 to vector<2x8x256xf32>
    %362 = arith.select %360, %353, %361 : vector<2x8x256xi1>, vector<2x8x256xf32>
    %363 = vector.extract_strided_slice %0 {offsets = [6, 0, 0], sizes = [1, 16, 8], strides = [1, 1, 1]} : vector<9x16x8xf32> to vector<1x16x8xf32>
    %364 = vector.shape_cast %363 : vector<1x16x8xf32> to vector<16x8xf32>
    %365 = vector.extract_strided_slice %362 {offsets = [0, 0, 0], sizes = [1, 8, 256], strides = [1, 1, 1]} : vector<2x8x256xf32> to vector<1x8x256xf32>
    %366 = vector.shape_cast %365 : vector<1x8x256xf32> to vector<8x256xf32>
    %cst_109 = arith.constant dense<0.000000e+00> : vector<16x256xf32>
    %367 = tpu.matmul %364, %366, %cst_109 {dimension_numbers = #tpu.dot_dimension_numbers<[1], [0], [0], [1], [0, 0, 1, 1], [], []>} : vector<16x8xf32>, vector<8x256xf32>, vector<16x256xf32> -> vector<16x256xf32>
    %368 = arith.addf %348, %367 : vector<16x256xf32>
    %369 = vector.extract_strided_slice %362 {offsets = [1, 0, 0], sizes = [1, 8, 256], strides = [1, 1, 1]} : vector<2x8x256xf32> to vector<1x8x256xf32>
    %370 = vector.shape_cast %369 : vector<1x8x256xf32> to vector<8x256xf32>
    %cst_110 = arith.constant dense<0.000000e+00> : vector<16x256xf32>
    %371 = tpu.matmul %364, %370, %cst_110 {dimension_numbers = #tpu.dot_dimension_numbers<[1], [0], [0], [1], [0, 0, 1, 1], [], []>} : vector<16x8xf32>, vector<8x256xf32>, vector<16x256xf32> -> vector<16x256xf32>
    %372 = arith.addf %352, %371 : vector<16x256xf32>
    %c240_i32_111 = arith.constant 240 : i32
    %373 = tpu.dynamic_rotate %246 by %c240_i32_111 dim 2 : vector<2x8x256xf32>, i32 -> vector<2x8x256xf32>
    %c240_i32_112 = arith.constant 240 : i32
    %374 = vector.broadcast %c240_i32_112 : i32 to vector<1x1x256xi32>
    %375 = arith.cmpi slt, %247, %374 : vector<1x1x256xi32>
    %cst_113 = arith.constant 0.000000e+00 : f32
    %376 = vector.shape_cast %375 : vector<1x1x256xi1> to vector<1x1x256xi1>
    %377 = vector.broadcast %376 : vector<1x1x256xi1> to vector<2x8x256xi1>
    %378 = vector.broadcast %cst_113 : f32 to vector<2x8x256xf32>
    %379 = arith.select %377, %373, %378 : vector<2x8x256xi1>, vector<2x8x256xf32>
    %380 = vector.extract_strided_slice %0 {offsets = [7, 0, 0], sizes = [1, 16, 8], strides = [1, 1, 1]} : vector<9x16x8xf32> to vector<1x16x8xf32>
    %381 = vector.shape_cast %380 : vector<1x16x8xf32> to vector<16x8xf32>
    %382 = vector.extract_strided_slice %379 {offsets = [0, 0, 0], sizes = [1, 8, 256], strides = [1, 1, 1]} : vector<2x8x256xf32> to vector<1x8x256xf32>
    %383 = vector.shape_cast %382 : vector<1x8x256xf32> to vector<8x256xf32>
    %cst_114 = arith.constant dense<0.000000e+00> : vector<16x256xf32>
    %384 = tpu.matmul %381, %383, %cst_114 {dimension_numbers = #tpu.dot_dimension_numbers<[1], [0], [0], [1], [0, 0, 1, 1], [], []>} : vector<16x8xf32>, vector<8x256xf32>, vector<16x256xf32> -> vector<16x256xf32>
    %385 = arith.addf %368, %384 : vector<16x256xf32>
    %386 = vector.extract_strided_slice %379 {offsets = [1, 0, 0], sizes = [1, 8, 256], strides = [1, 1, 1]} : vector<2x8x256xf32> to vector<1x8x256xf32>
    %387 = vector.shape_cast %386 : vector<1x8x256xf32> to vector<8x256xf32>
    %cst_115 = arith.constant dense<0.000000e+00> : vector<16x256xf32>
    %388 = tpu.matmul %381, %387, %cst_115 {dimension_numbers = #tpu.dot_dimension_numbers<[1], [0], [0], [1], [0, 0, 1, 1], [], []>} : vector<16x8xf32>, vector<8x256xf32>, vector<16x256xf32> -> vector<16x256xf32>
    %389 = arith.addf %372, %388 : vector<16x256xf32>
    %c239_i32_116 = arith.constant 239 : i32
    %390 = tpu.dynamic_rotate %246 by %c239_i32_116 dim 2 : vector<2x8x256xf32>, i32 -> vector<2x8x256xf32>
    %c240_i32_117 = arith.constant 240 : i32
    %391 = vector.broadcast %c240_i32_117 : i32 to vector<1x1x256xi32>
    %392 = arith.cmpi slt, %247, %391 : vector<1x1x256xi32>
    %c15_i32_118 = arith.constant 15 : i32
    %393 = vector.broadcast %c15_i32_118 : i32 to vector<1x1x256xi32>
    %394 = arith.cmpi slt, %249, %393 : vector<1x1x256xi32>
    %395 = arith.andi %392, %394 : vector<1x1x256xi1>
    %cst_119 = arith.constant 0.000000e+00 : f32
    %396 = vector.shape_cast %395 : vector<1x1x256xi1> to vector<1x1x256xi1>
    %397 = vector.broadcast %396 : vector<1x1x256xi1> to vector<2x8x256xi1>
    %398 = vector.broadcast %cst_119 : f32 to vector<2x8x256xf32>
    %399 = arith.select %397, %390, %398 : vector<2x8x256xi1>, vector<2x8x256xf32>
    %400 = vector.extract_strided_slice %0 {offsets = [8, 0, 0], sizes = [1, 16, 8], strides = [1, 1, 1]} : vector<9x16x8xf32> to vector<1x16x8xf32>
    %401 = vector.shape_cast %400 : vector<1x16x8xf32> to vector<16x8xf32>
    %402 = vector.extract_strided_slice %399 {offsets = [0, 0, 0], sizes = [1, 8, 256], strides = [1, 1, 1]} : vector<2x8x256xf32> to vector<1x8x256xf32>
    %403 = vector.shape_cast %402 : vector<1x8x256xf32> to vector<8x256xf32>
    %cst_120 = arith.constant dense<0.000000e+00> : vector<16x256xf32>
    %404 = tpu.matmul %401, %403, %cst_120 {dimension_numbers = #tpu.dot_dimension_numbers<[1], [0], [0], [1], [0, 0, 1, 1], [], []>} : vector<16x8xf32>, vector<8x256xf32>, vector<16x256xf32> -> vector<16x256xf32>
    %405 = arith.addf %385, %404 : vector<16x256xf32>
    %406 = vector.extract_strided_slice %399 {offsets = [1, 0, 0], sizes = [1, 8, 256], strides = [1, 1, 1]} : vector<2x8x256xf32> to vector<1x8x256xf32>
    %407 = vector.shape_cast %406 : vector<1x8x256xf32> to vector<8x256xf32>
    %cst_121 = arith.constant dense<0.000000e+00> : vector<16x256xf32>
    %408 = tpu.matmul %401, %407, %cst_121 {dimension_numbers = #tpu.dot_dimension_numbers<[1], [0], [0], [1], [0, 0, 1, 1], [], []>} : vector<16x8xf32>, vector<8x256xf32>, vector<16x256xf32> -> vector<16x256xf32>
    %409 = arith.addf %389, %408 : vector<16x256xf32>
    %410 = vector.shape_cast %405 : vector<16x256xf32> to vector<1x16x256xf32>
    %411 = vector.shape_cast %409 : vector<16x256xf32> to vector<1x16x256xf32>
    %412 = tpu.concatenate %410, %411 in 0 : vector<1x16x256xf32>, vector<1x16x256xf32> -> vector<2x16x256xf32>
    %413 = vector.extract_strided_slice %412 {offsets = [0, 0, 0], sizes = [1, 16, 256], strides = [1, 1, 1]} : vector<2x16x256xf32> to vector<1x16x256xf32>
    %414 = vector.shape_cast %413 : vector<1x16x256xf32> to vector<16x256xf32>
    %cst_122 = arith.constant dense<0.000000e+00> : vector<16xf32>
    %415 = vector.multi_reduction <add>, %414, %cst_122 [1] : vector<16x256xf32> to vector<16xf32>
    %416 = vector.shape_cast %415 : vector<16xf32> to vector<16x1xf32>
    %417 = vector.extract_strided_slice %412 {offsets = [1, 0, 0], sizes = [1, 16, 256], strides = [1, 1, 1]} : vector<2x16x256xf32> to vector<1x16x256xf32>
    %418 = vector.shape_cast %417 : vector<1x16x256xf32> to vector<16x256xf32>
    %cst_123 = arith.constant dense<0.000000e+00> : vector<16xf32>
    %419 = vector.multi_reduction <add>, %418, %cst_123 [1] : vector<16x256xf32> to vector<16xf32>
    %420 = vector.shape_cast %419 : vector<16xf32> to vector<16x1xf32>
    %421 = arith.addf %416, %420 : vector<16x1xf32>
    %cst_124 = arith.constant 0.001953125 : f32
    %422 = vector.broadcast %cst_124 : f32 to vector<16x1xf32>
    %423 = arith.mulf %421, %422 : vector<16x1xf32>
    %424 = vector.shape_cast %423 : vector<16x1xf32> to vector<1x16x1xf32>
    %425 = vector.broadcast %424 : vector<1x16x1xf32> to vector<2x16x256xf32>
    %426 = arith.subf %412, %425 : vector<2x16x256xf32>
    %427 = vector.extract_strided_slice %426 {offsets = [0, 0, 0], sizes = [1, 16, 256], strides = [1, 1, 1]} : vector<2x16x256xf32> to vector<1x16x256xf32>
    %428 = vector.shape_cast %427 : vector<1x16x256xf32> to vector<16x256xf32>
    %429 = vector.extract_strided_slice %426 {offsets = [0, 0, 0], sizes = [1, 16, 256], strides = [1, 1, 1]} : vector<2x16x256xf32> to vector<1x16x256xf32>
    %430 = vector.shape_cast %429 : vector<1x16x256xf32> to vector<16x256xf32>
    %431 = arith.mulf %428, %430 : vector<16x256xf32>
    %cst_125 = arith.constant dense<0.000000e+00> : vector<16xf32>
    %432 = vector.multi_reduction <add>, %431, %cst_125 [1] : vector<16x256xf32> to vector<16xf32>
    %433 = vector.shape_cast %432 : vector<16xf32> to vector<16x1xf32>
    %434 = vector.extract_strided_slice %426 {offsets = [1, 0, 0], sizes = [1, 16, 256], strides = [1, 1, 1]} : vector<2x16x256xf32> to vector<1x16x256xf32>
    %435 = vector.shape_cast %434 : vector<1x16x256xf32> to vector<16x256xf32>
    %436 = vector.extract_strided_slice %426 {offsets = [1, 0, 0], sizes = [1, 16, 256], strides = [1, 1, 1]} : vector<2x16x256xf32> to vector<1x16x256xf32>
    %437 = vector.shape_cast %436 : vector<1x16x256xf32> to vector<16x256xf32>
    %438 = arith.mulf %435, %437 : vector<16x256xf32>
    %cst_126 = arith.constant dense<0.000000e+00> : vector<16xf32>
    %439 = vector.multi_reduction <add>, %438, %cst_126 [1] : vector<16x256xf32> to vector<16xf32>
    %440 = vector.shape_cast %439 : vector<16xf32> to vector<16x1xf32>
    %441 = arith.addf %433, %440 : vector<16x1xf32>
    %cst_127 = arith.constant 0.001953125 : f32
    %442 = vector.broadcast %cst_127 : f32 to vector<16x1xf32>
    %443 = arith.mulf %441, %442 : vector<16x1xf32>
    %cst_128 = arith.constant 9.99999974E-6 : f32
    %444 = vector.broadcast %cst_128 : f32 to vector<16x1xf32>
    %445 = arith.addf %443, %444 : vector<16x1xf32>
    %446 = math.rsqrt %445 : vector<16x1xf32>
    %447 = vector.shape_cast %446 : vector<16x1xf32> to vector<1x16x1xf32>
    %448 = vector.broadcast %447 : vector<1x16x1xf32> to vector<2x16x256xf32>
    %449 = arith.mulf %426, %448 : vector<2x16x256xf32>
    %c0_129 = arith.constant 0 : index
    %c0_130 = arith.constant 0 : index
    %c0_131 = arith.constant 0 : index
    %450 = vector.load %arg5[%c0_129, %c0_130, %c0_131] : memref<2x16x256xf32, #tpu.memory_space<vmem>>, vector<2x16x256xf32>
    %451 = arith.addf %449, %450 : vector<2x16x256xf32>
    %c0_132 = arith.constant 0 : index
    %c0_133 = arith.constant 0 : index
    %c0_134 = arith.constant 0 : index
    %452 = vector.load %arg10[%c0_132, %c0_133, %c0_134] : memref<2x16x256xf32, #tpu.memory_space<vmem>>, vector<2x16x256xf32>
    tpu.vector_store %arg10[%c0_132, %c0_133, %c0_134], %451 {strides = array<i32>} : memref<2x16x256xf32, #tpu.memory_space<vmem>>, vector<2x16x256xf32>,
    %453 = vector.broadcast %2 : vector<1x16x1xf32> to vector<2x16x256xf32>
    %454 = arith.mulf %453, %451 : vector<2x16x256xf32>
    %455 = vector.broadcast %4 : vector<1x16x1xf32> to vector<2x16x256xf32>
    %456 = arith.addf %454, %455 : vector<2x16x256xf32>
    %cst_135 = arith.constant 0.000000e+00 : f32
    %457 = vector.broadcast %cst_135 : f32 to vector<2x16x256xf32>
    %458 = arith.maximumf %456, %457 : vector<2x16x256xf32>
    %c0_136 = arith.constant 0 : index
    %c0_137 = arith.constant 0 : index
    %c0_138 = arith.constant 0 : index
    %459 = vector.load %arg11[%c0_136, %c0_137, %c0_138] : memref<2x16x256xf32, #tpu.memory_space<vmem>>, vector<2x16x256xf32>
    tpu.vector_store %arg11[%c0_136, %c0_137, %c0_138], %458 {strides = array<i32>} : memref<2x16x256xf32, #tpu.memory_space<vmem>>, vector<2x16x256xf32>,
    return
  }
}

module attributes {stable_mosaic.version = 11 : i64} {
  func.func @_decoder_top_kernel(%arg0: memref<10xf32, #tpu.memory_space<smem>>, %arg1: memref<2x16x256xf32, #tpu.memory_space<vmem>>, %arg2: memref<2x16x256xf32, #tpu.memory_space<vmem>>, %arg3: memref<2x16x1xf32, #tpu.memory_space<vmem>>, %arg4: memref<16x256xf32, #tpu.memory_space<vmem>>, %arg5: memref<16x256xf32, #tpu.memory_space<vmem>>, %arg6: memref<16x1xf32, #tpu.memory_space<vmem>>, %arg7: memref<16x1xf32, #tpu.memory_space<vmem>>, %arg8: memref<2x16x256xf32, #tpu.memory_space<vmem>>, %arg9: memref<2x16x256xf32, #tpu.memory_space<vmem>>) attributes {dimension_semantics = [], scalar_prefetch = 0 : i64, scratch_operands = 0 : i64, tpu.core_type = #tpu.core_type<tc>} {
    %c0 = arith.constant 0 : index
    %c0_0 = arith.constant 0 : index
    %c0_1 = arith.constant 0 : index
    %0 = vector.load %arg1[%c0, %c0_0, %c0_1] : memref<2x16x256xf32, #tpu.memory_space<vmem>>, vector<2x16x256xf32>
    %1 = vector.extract_strided_slice %0 {offsets = [0, 0, 0], sizes = [1, 16, 256], strides = [1, 1, 1]} : vector<2x16x256xf32> to vector<1x16x256xf32>
    %2 = vector.shape_cast %1 : vector<1x16x256xf32> to vector<16x256xf32>
    %cst = arith.constant dense<0.000000e+00> : vector<16xf32>
    %3 = vector.multi_reduction <add>, %2, %cst [1] : vector<16x256xf32> to vector<16xf32>
    %4 = vector.shape_cast %3 : vector<16xf32> to vector<16x1xf32>
    %5 = vector.extract_strided_slice %0 {offsets = [1, 0, 0], sizes = [1, 16, 256], strides = [1, 1, 1]} : vector<2x16x256xf32> to vector<1x16x256xf32>
    %6 = vector.shape_cast %5 : vector<1x16x256xf32> to vector<16x256xf32>
    %cst_2 = arith.constant dense<0.000000e+00> : vector<16xf32>
    %7 = vector.multi_reduction <add>, %6, %cst_2 [1] : vector<16x256xf32> to vector<16xf32>
    %8 = vector.shape_cast %7 : vector<16xf32> to vector<16x1xf32>
    %9 = arith.addf %4, %8 : vector<16x1xf32>
    %cst_3 = arith.constant 0.001953125 : f32
    %10 = vector.broadcast %cst_3 : f32 to vector<16x1xf32>
    %11 = arith.mulf %9, %10 : vector<16x1xf32>
    %12 = vector.shape_cast %11 : vector<16x1xf32> to vector<1x16x1xf32>
    %13 = vector.broadcast %12 : vector<1x16x1xf32> to vector<2x16x256xf32>
    %14 = arith.subf %0, %13 : vector<2x16x256xf32>
    %15 = vector.extract_strided_slice %14 {offsets = [0, 0, 0], sizes = [1, 16, 256], strides = [1, 1, 1]} : vector<2x16x256xf32> to vector<1x16x256xf32>
    %16 = vector.shape_cast %15 : vector<1x16x256xf32> to vector<16x256xf32>
    %17 = vector.extract_strided_slice %14 {offsets = [0, 0, 0], sizes = [1, 16, 256], strides = [1, 1, 1]} : vector<2x16x256xf32> to vector<1x16x256xf32>
    %18 = vector.shape_cast %17 : vector<1x16x256xf32> to vector<16x256xf32>
    %19 = arith.mulf %16, %18 : vector<16x256xf32>
    %cst_4 = arith.constant dense<0.000000e+00> : vector<16xf32>
    %20 = vector.multi_reduction <add>, %19, %cst_4 [1] : vector<16x256xf32> to vector<16xf32>
    %21 = vector.shape_cast %20 : vector<16xf32> to vector<16x1xf32>
    %22 = vector.extract_strided_slice %14 {offsets = [1, 0, 0], sizes = [1, 16, 256], strides = [1, 1, 1]} : vector<2x16x256xf32> to vector<1x16x256xf32>
    %23 = vector.shape_cast %22 : vector<1x16x256xf32> to vector<16x256xf32>
    %24 = vector.extract_strided_slice %14 {offsets = [1, 0, 0], sizes = [1, 16, 256], strides = [1, 1, 1]} : vector<2x16x256xf32> to vector<1x16x256xf32>
    %25 = vector.shape_cast %24 : vector<1x16x256xf32> to vector<16x256xf32>
    %26 = arith.mulf %23, %25 : vector<16x256xf32>
    %cst_5 = arith.constant dense<0.000000e+00> : vector<16xf32>
    %27 = vector.multi_reduction <add>, %26, %cst_5 [1] : vector<16x256xf32> to vector<16xf32>
    %28 = vector.shape_cast %27 : vector<16xf32> to vector<16x1xf32>
    %29 = arith.addf %21, %28 : vector<16x1xf32>
    %cst_6 = arith.constant 0.001953125 : f32
    %30 = vector.broadcast %cst_6 : f32 to vector<16x1xf32>
    %31 = arith.mulf %29, %30 : vector<16x1xf32>
    %cst_7 = arith.constant 9.99999974E-6 : f32
    %32 = vector.broadcast %cst_7 : f32 to vector<16x1xf32>
    %33 = arith.addf %31, %32 : vector<16x1xf32>
    %34 = math.rsqrt %33 : vector<16x1xf32>
    %35 = vector.shape_cast %34 : vector<16x1xf32> to vector<1x16x1xf32>
    %36 = vector.broadcast %35 : vector<1x16x1xf32> to vector<2x16x256xf32>
    %37 = arith.mulf %14, %36 : vector<2x16x256xf32>
    %c0_8 = arith.constant 0 : index
    %c0_9 = arith.constant 0 : index
    %c0_10 = arith.constant 0 : index
    %38 = vector.load %arg2[%c0_8, %c0_9, %c0_10] : memref<2x16x256xf32, #tpu.memory_space<vmem>>, vector<2x16x256xf32>
    %c0_11 = arith.constant 0 : index
    %c0_12 = arith.constant 0 : index
    %c0_13 = arith.constant 0 : index
    %39 = vector.load %arg3[%c0_11, %c0_12, %c0_13] : memref<2x16x1xf32, #tpu.memory_space<vmem>>, vector<2x16x1xf32>
    %c0_14 = arith.constant 0 : index
    %c0_15 = arith.constant 0 : index
    %40 = vector.load %arg4[%c0_14, %c0_15] : memref<16x256xf32, #tpu.memory_space<vmem>>, vector<16x256xf32>
    %41 = vector.shape_cast %40 : vector<16x256xf32> to vector<1x16x256xf32>
    %c0_16 = arith.constant 0 : index
    %c0_17 = arith.constant 0 : index
    %42 = vector.load %arg5[%c0_16, %c0_17] : memref<16x256xf32, #tpu.memory_space<vmem>>, vector<16x256xf32>
    %43 = vector.shape_cast %42 : vector<16x256xf32> to vector<1x16x256xf32>
    %c0_18 = arith.constant 0 : index
    %c0_19 = arith.constant 0 : index
    %44 = vector.load %arg6[%c0_18, %c0_19] : memref<16x1xf32, #tpu.memory_space<vmem>>, vector<16x1xf32>
    %45 = vector.shape_cast %44 : vector<16x1xf32> to vector<1x16x1xf32>
    %c0_20 = arith.constant 0 : index
    %c0_21 = arith.constant 0 : index
    %46 = vector.load %arg7[%c0_20, %c0_21] : memref<16x1xf32, #tpu.memory_space<vmem>>, vector<16x1xf32>
    %47 = vector.shape_cast %46 : vector<16x1xf32> to vector<1x16x1xf32>
    %c0_22 = arith.constant 0 : index
    %48 = memref.load %arg0[%c0_22] : memref<10xf32, #tpu.memory_space<smem>>
    %c1 = arith.constant 1 : index
    %49 = memref.load %arg0[%c1] : memref<10xf32, #tpu.memory_space<smem>>
    %c2 = arith.constant 2 : index
    %50 = memref.load %arg0[%c2] : memref<10xf32, #tpu.memory_space<smem>>
    %c3 = arith.constant 3 : index
    %51 = memref.load %arg0[%c3] : memref<10xf32, #tpu.memory_space<smem>>
    %c4 = arith.constant 4 : index
    %52 = memref.load %arg0[%c4] : memref<10xf32, #tpu.memory_space<smem>>
    %c5 = arith.constant 5 : index
    %53 = memref.load %arg0[%c5] : memref<10xf32, #tpu.memory_space<smem>>
    %c6 = arith.constant 6 : index
    %54 = memref.load %arg0[%c6] : memref<10xf32, #tpu.memory_space<smem>>
    %c7 = arith.constant 7 : index
    %55 = memref.load %arg0[%c7] : memref<10xf32, #tpu.memory_space<smem>>
    %c8 = arith.constant 8 : index
    %56 = memref.load %arg0[%c8] : memref<10xf32, #tpu.memory_space<smem>>
    %c9 = arith.constant 9 : index
    %57 = memref.load %arg0[%c9] : memref<10xf32, #tpu.memory_space<smem>>
    %58 = vector.broadcast %49 : f32 to vector<2x16x256xf32>
    %59 = arith.mulf %58, %37 : vector<2x16x256xf32>
    %60 = vector.broadcast %50 : f32 to vector<2x16x256xf32>
    %61 = arith.addf %59, %60 : vector<2x16x256xf32>
    %cst_23 = arith.constant 0.000000e+00 : f32
    %62 = vector.broadcast %cst_23 : f32 to vector<2x16x256xf32>
    %63 = arith.subf %62, %61 : vector<2x16x256xf32>
    %64 = math.exp %63 : vector<2x16x256xf32>
    %cst_24 = arith.constant 1.000000e+00 : f32
    %65 = vector.broadcast %cst_24 : f32 to vector<2x16x256xf32>
    %66 = arith.addf %65, %64 : vector<2x16x256xf32>
    %67 = tpu.reciprocal %66 {approx = true} : vector<2x16x256xf32> -> vector<2x16x256xf32>
    %68 = vector.broadcast %54 : f32 to vector<2x16x256xf32>
    %69 = arith.mulf %68, %37 : vector<2x16x256xf32>
    %70 = vector.broadcast %55 : f32 to vector<2x16x256xf32>
    %71 = arith.addf %69, %70 : vector<2x16x256xf32>
    %cst_25 = arith.constant 0.000000e+00 : f32
    %72 = vector.broadcast %cst_25 : f32 to vector<2x16x256xf32>
    %73 = arith.subf %72, %71 : vector<2x16x256xf32>
    %74 = math.exp %73 : vector<2x16x256xf32>
    %cst_26 = arith.constant 1.000000e+00 : f32
    %75 = vector.broadcast %cst_26 : f32 to vector<2x16x256xf32>
    %76 = arith.addf %75, %74 : vector<2x16x256xf32>
    %77 = tpu.reciprocal %76 {approx = true} : vector<2x16x256xf32> -> vector<2x16x256xf32>
    %78 = vector.broadcast %48 : f32 to vector<2x16x256xf32>
    %79 = arith.mulf %78, %67 : vector<2x16x256xf32>
    %80 = vector.broadcast %51 : f32 to vector<2x16x256xf32>
    %81 = arith.mulf %80, %37 : vector<2x16x256xf32>
    %82 = arith.addf %79, %81 : vector<2x16x256xf32>
    %83 = vector.broadcast %52 : f32 to vector<2x16x256xf32>
    %84 = arith.addf %82, %83 : vector<2x16x256xf32>
    %85 = vector.broadcast %53 : f32 to vector<2x16x256xf32>
    %86 = arith.mulf %85, %77 : vector<2x16x256xf32>
    %87 = vector.broadcast %56 : f32 to vector<2x16x256xf32>
    %88 = arith.mulf %87, %37 : vector<2x16x256xf32>
    %89 = arith.addf %86, %88 : vector<2x16x256xf32>
    %90 = vector.broadcast %57 : f32 to vector<2x16x256xf32>
    %91 = arith.addf %89, %90 : vector<2x16x256xf32>
    %92 = vector.broadcast %39 : vector<2x16x1xf32> to vector<2x16x256xf32>
    %93 = arith.mulf %92, %38 : vector<2x16x256xf32>
    %94 = arith.subf %93, %84 : vector<2x16x256xf32>
    %95 = arith.mulf %94, %91 : vector<2x16x256xf32>
    %96 = arith.addf %95, %84 : vector<2x16x256xf32>
    %97 = vector.broadcast %41 : vector<1x16x256xf32> to vector<2x16x256xf32>
    %98 = arith.subf %96, %97 : vector<2x16x256xf32>
    %99 = vector.broadcast %43 : vector<1x16x256xf32> to vector<2x16x256xf32>
    %100 = arith.divf %98, %99 : vector<2x16x256xf32>
    %101 = vector.broadcast %45 : vector<1x16x1xf32> to vector<2x16x256xf32>
    %102 = arith.mulf %101, %100 : vector<2x16x256xf32>
    %103 = vector.broadcast %47 : vector<1x16x1xf32> to vector<2x16x256xf32>
    %104 = arith.addf %102, %103 : vector<2x16x256xf32>
    %c0_27 = arith.constant 0 : index
    %c0_28 = arith.constant 0 : index
    %c0_29 = arith.constant 0 : index
    %105 = vector.load %arg8[%c0_27, %c0_28, %c0_29] : memref<2x16x256xf32, #tpu.memory_space<vmem>>, vector<2x16x256xf32>
    tpu.vector_store %arg8[%c0_27, %c0_28, %c0_29], %96 {strides = array<i32>} : memref<2x16x256xf32, #tpu.memory_space<vmem>>, vector<2x16x256xf32>,
    %c0_30 = arith.constant 0 : index
    %c0_31 = arith.constant 0 : index
    %c0_32 = arith.constant 0 : index
    %106 = vector.load %arg9[%c0_30, %c0_31, %c0_32] : memref<2x16x256xf32, #tpu.memory_space<vmem>>, vector<2x16x256xf32>
    tpu.vector_store %arg9[%c0_30, %c0_31, %c0_32], %104 {strides = array<i32>} : memref<2x16x256xf32, #tpu.memory_space<vmem>>, vector<2x16x256xf32>,
    return
  }
}

module attributes {stable_mosaic.version = 11 : i64} {
  func.func @kernel(%arg0: memref<10xf32, #tpu.memory_space<smem>>, %arg1: memref<2x16x256xf32, #tpu.memory_space<vmem>>, %arg2: memref<9x8x16xf32, #tpu.memory_space<vmem>>, %arg3: memref<2x8x256xf32, #tpu.memory_space<vmem>>, %arg4: memref<2x8x1xf32, #tpu.memory_space<vmem>>, %arg5: memref<2x8x1xf32, #tpu.memory_space<vmem>>, %arg6: memref<8x256xf32, #tpu.memory_space<vmem>>, %arg7: memref<8x256xf32, #tpu.memory_space<vmem>>, %arg8: memref<8x1xf32, #tpu.memory_space<vmem>>, %arg9: memref<8x1xf32, #tpu.memory_space<vmem>>, %arg10: memref<2x8x256xf32, #tpu.memory_space<vmem>>, %arg11: memref<2x8x256xf32, #tpu.memory_space<vmem>>) attributes {dimension_semantics = [], scalar_prefetch = 0 : i64, scratch_operands = 0 : i64, tpu.core_type = #tpu.core_type<tc>} {
    %c0 = arith.constant 0 : index
    %c0_0 = arith.constant 0 : index
    %c0_1 = arith.constant 0 : index
    %0 = vector.load %arg1[%c0, %c0_0, %c0_1] : memref<2x16x256xf32, #tpu.memory_space<vmem>>, vector<2x16x256xf32>
    %c0_2 = arith.constant 0 : index
    %c0_3 = arith.constant 0 : index
    %c0_4 = arith.constant 0 : index
    %1 = vector.load %arg2[%c0_2, %c0_3, %c0_4] : memref<9x8x16xf32, #tpu.memory_space<vmem>>, vector<9x8x16xf32>
    %2 = tpu.iota {dimensions = array<i32: 2>} : vector<1x1x256xi32>
    %c15_i32 = arith.constant 15 : i32
    %3 = vector.broadcast %c15_i32 : i32 to vector<1x1x256xi32>
    %4 = arith.andi %2, %3 : vector<1x1x256xi32>
    %cst = arith.constant 0.000000e+00 : f32
    %5 = vector.broadcast %cst : f32 to vector<8x256xf32>
    %cst_5 = arith.constant 0.000000e+00 : f32
    %6 = vector.broadcast %cst_5 : f32 to vector<8x256xf32>
    %c17_i32 = arith.constant 17 : i32
    %7 = tpu.dynamic_rotate %0 by %c17_i32 dim 2 : vector<2x16x256xf32>, i32 -> vector<2x16x256xf32>
    %c16_i32 = arith.constant 16 : i32
    %8 = vector.broadcast %c16_i32 : i32 to vector<1x1x256xi32>
    %9 = arith.cmpi sge, %2, %8 : vector<1x1x256xi32>
    %c1_i32 = arith.constant 1 : i32
    %10 = vector.broadcast %c1_i32 : i32 to vector<1x1x256xi32>
    %11 = arith.cmpi sge, %4, %10 : vector<1x1x256xi32>
    %12 = arith.andi %9, %11 : vector<1x1x256xi1>
    %cst_6 = arith.constant 0.000000e+00 : f32
    %13 = vector.shape_cast %12 : vector<1x1x256xi1> to vector<1x1x256xi1>
    %14 = vector.broadcast %13 : vector<1x1x256xi1> to vector<2x16x256xi1>
    %15 = vector.broadcast %cst_6 : f32 to vector<2x16x256xf32>
    %16 = arith.select %14, %7, %15 : vector<2x16x256xi1>, vector<2x16x256xf32>
    %17 = vector.extract_strided_slice %1 {offsets = [0, 0, 0], sizes = [1, 8, 16], strides = [1, 1, 1]} : vector<9x8x16xf32> to vector<1x8x16xf32>
    %18 = vector.shape_cast %17 : vector<1x8x16xf32> to vector<8x16xf32>
    %19 = vector.extract_strided_slice %16 {offsets = [0, 0, 0], sizes = [1, 16, 256], strides = [1, 1, 1]} : vector<2x16x256xf32> to vector<1x16x256xf32>
    %20 = vector.shape_cast %19 : vector<1x16x256xf32> to vector<16x256xf32>
    %cst_7 = arith.constant dense<0.000000e+00> : vector<8x256xf32>
    %21 = tpu.matmul %18, %20, %cst_7 {dimension_numbers = #tpu.dot_dimension_numbers<[1], [0], [0], [1], [0, 0, 1, 1], [], []>} : vector<8x16xf32>, vector<16x256xf32>, vector<8x256xf32> -> vector<8x256xf32>
    %22 = arith.addf %5, %21 : vector<8x256xf32>
    %23 = vector.extract_strided_slice %16 {offsets = [1, 0, 0], sizes = [1, 16, 256], strides = [1, 1, 1]} : vector<2x16x256xf32> to vector<1x16x256xf32>
    %24 = vector.shape_cast %23 : vector<1x16x256xf32> to vector<16x256xf32>
    %cst_8 = arith.constant dense<0.000000e+00> : vector<8x256xf32>
    %25 = tpu.matmul %18, %24, %cst_8 {dimension_numbers = #tpu.dot_dimension_numbers<[1], [0], [0], [1], [0, 0, 1, 1], [], []>} : vector<8x16xf32>, vector<16x256xf32>, vector<8x256xf32> -> vector<8x256xf32>
    %26 = arith.addf %6, %25 : vector<8x256xf32>
    %c16_i32_9 = arith.constant 16 : i32
    %27 = tpu.dynamic_rotate %0 by %c16_i32_9 dim 2 : vector<2x16x256xf32>, i32 -> vector<2x16x256xf32>
    %c16_i32_10 = arith.constant 16 : i32
    %28 = vector.broadcast %c16_i32_10 : i32 to vector<1x1x256xi32>
    %29 = arith.cmpi sge, %2, %28 : vector<1x1x256xi32>
    %cst_11 = arith.constant 0.000000e+00 : f32
    %30 = vector.shape_cast %29 : vector<1x1x256xi1> to vector<1x1x256xi1>
    %31 = vector.broadcast %30 : vector<1x1x256xi1> to vector<2x16x256xi1>
    %32 = vector.broadcast %cst_11 : f32 to vector<2x16x256xf32>
    %33 = arith.select %31, %27, %32 : vector<2x16x256xi1>, vector<2x16x256xf32>
    %34 = vector.extract_strided_slice %1 {offsets = [1, 0, 0], sizes = [1, 8, 16], strides = [1, 1, 1]} : vector<9x8x16xf32> to vector<1x8x16xf32>
    %35 = vector.shape_cast %34 : vector<1x8x16xf32> to vector<8x16xf32>
    %36 = vector.extract_strided_slice %33 {offsets = [0, 0, 0], sizes = [1, 16, 256], strides = [1, 1, 1]} : vector<2x16x256xf32> to vector<1x16x256xf32>
    %37 = vector.shape_cast %36 : vector<1x16x256xf32> to vector<16x256xf32>
    %cst_12 = arith.constant dense<0.000000e+00> : vector<8x256xf32>
    %38 = tpu.matmul %35, %37, %cst_12 {dimension_numbers = #tpu.dot_dimension_numbers<[1], [0], [0], [1], [0, 0, 1, 1], [], []>} : vector<8x16xf32>, vector<16x256xf32>, vector<8x256xf32> -> vector<8x256xf32>
    %39 = arith.addf %22, %38 : vector<8x256xf32>
    %40 = vector.extract_strided_slice %33 {offsets = [1, 0, 0], sizes = [1, 16, 256], strides = [1, 1, 1]} : vector<2x16x256xf32> to vector<1x16x256xf32>
    %41 = vector.shape_cast %40 : vector<1x16x256xf32> to vector<16x256xf32>
    %cst_13 = arith.constant dense<0.000000e+00> : vector<8x256xf32>
    %42 = tpu.matmul %35, %41, %cst_13 {dimension_numbers = #tpu.dot_dimension_numbers<[1], [0], [0], [1], [0, 0, 1, 1], [], []>} : vector<8x16xf32>, vector<16x256xf32>, vector<8x256xf32> -> vector<8x256xf32>
    %43 = arith.addf %26, %42 : vector<8x256xf32>
    %c15_i32_14 = arith.constant 15 : i32
    %44 = tpu.dynamic_rotate %0 by %c15_i32_14 dim 2 : vector<2x16x256xf32>, i32 -> vector<2x16x256xf32>
    %c16_i32_15 = arith.constant 16 : i32
    %45 = vector.broadcast %c16_i32_15 : i32 to vector<1x1x256xi32>
    %46 = arith.cmpi sge, %2, %45 : vector<1x1x256xi32>
    %c15_i32_16 = arith.constant 15 : i32
    %47 = vector.broadcast %c15_i32_16 : i32 to vector<1x1x256xi32>
    %48 = arith.cmpi slt, %4, %47 : vector<1x1x256xi32>
    %49 = arith.andi %46, %48 : vector<1x1x256xi1>
    %cst_17 = arith.constant 0.000000e+00 : f32
    %50 = vector.shape_cast %49 : vector<1x1x256xi1> to vector<1x1x256xi1>
    %51 = vector.broadcast %50 : vector<1x1x256xi1> to vector<2x16x256xi1>
    %52 = vector.broadcast %cst_17 : f32 to vector<2x16x256xf32>
    %53 = arith.select %51, %44, %52 : vector<2x16x256xi1>, vector<2x16x256xf32>
    %54 = vector.extract_strided_slice %1 {offsets = [2, 0, 0], sizes = [1, 8, 16], strides = [1, 1, 1]} : vector<9x8x16xf32> to vector<1x8x16xf32>
    %55 = vector.shape_cast %54 : vector<1x8x16xf32> to vector<8x16xf32>
    %56 = vector.extract_strided_slice %53 {offsets = [0, 0, 0], sizes = [1, 16, 256], strides = [1, 1, 1]} : vector<2x16x256xf32> to vector<1x16x256xf32>
    %57 = vector.shape_cast %56 : vector<1x16x256xf32> to vector<16x256xf32>
    %cst_18 = arith.constant dense<0.000000e+00> : vector<8x256xf32>
    %58 = tpu.matmul %55, %57, %cst_18 {dimension_numbers = #tpu.dot_dimension_numbers<[1], [0], [0], [1], [0, 0, 1, 1], [], []>} : vector<8x16xf32>, vector<16x256xf32>, vector<8x256xf32> -> vector<8x256xf32>
    %59 = arith.addf %39, %58 : vector<8x256xf32>
    %60 = vector.extract_strided_slice %53 {offsets = [1, 0, 0], sizes = [1, 16, 256], strides = [1, 1, 1]} : vector<2x16x256xf32> to vector<1x16x256xf32>
    %61 = vector.shape_cast %60 : vector<1x16x256xf32> to vector<16x256xf32>
    %cst_19 = arith.constant dense<0.000000e+00> : vector<8x256xf32>
    %62 = tpu.matmul %55, %61, %cst_19 {dimension_numbers = #tpu.dot_dimension_numbers<[1], [0], [0], [1], [0, 0, 1, 1], [], []>} : vector<8x16xf32>, vector<16x256xf32>, vector<8x256xf32> -> vector<8x256xf32>
    %63 = arith.addf %43, %62 : vector<8x256xf32>
    %c1_i32_20 = arith.constant 1 : i32
    %64 = tpu.dynamic_rotate %0 by %c1_i32_20 dim 2 : vector<2x16x256xf32>, i32 -> vector<2x16x256xf32>
    %c1_i32_21 = arith.constant 1 : i32
    %65 = vector.broadcast %c1_i32_21 : i32 to vector<1x1x256xi32>
    %66 = arith.cmpi sge, %4, %65 : vector<1x1x256xi32>
    %cst_22 = arith.constant 0.000000e+00 : f32
    %67 = vector.shape_cast %66 : vector<1x1x256xi1> to vector<1x1x256xi1>
    %68 = vector.broadcast %67 : vector<1x1x256xi1> to vector<2x16x256xi1>
    %69 = vector.broadcast %cst_22 : f32 to vector<2x16x256xf32>
    %70 = arith.select %68, %64, %69 : vector<2x16x256xi1>, vector<2x16x256xf32>
    %71 = vector.extract_strided_slice %1 {offsets = [3, 0, 0], sizes = [1, 8, 16], strides = [1, 1, 1]} : vector<9x8x16xf32> to vector<1x8x16xf32>
    %72 = vector.shape_cast %71 : vector<1x8x16xf32> to vector<8x16xf32>
    %73 = vector.extract_strided_slice %70 {offsets = [0, 0, 0], sizes = [1, 16, 256], strides = [1, 1, 1]} : vector<2x16x256xf32> to vector<1x16x256xf32>
    %74 = vector.shape_cast %73 : vector<1x16x256xf32> to vector<16x256xf32>
    %cst_23 = arith.constant dense<0.000000e+00> : vector<8x256xf32>
    %75 = tpu.matmul %72, %74, %cst_23 {dimension_numbers = #tpu.dot_dimension_numbers<[1], [0], [0], [1], [0, 0, 1, 1], [], []>} : vector<8x16xf32>, vector<16x256xf32>, vector<8x256xf32> -> vector<8x256xf32>
    %76 = arith.addf %59, %75 : vector<8x256xf32>
    %77 = vector.extract_strided_slice %70 {offsets = [1, 0, 0], sizes = [1, 16, 256], strides = [1, 1, 1]} : vector<2x16x256xf32> to vector<1x16x256xf32>
    %78 = vector.shape_cast %77 : vector<1x16x256xf32> to vector<16x256xf32>
    %cst_24 = arith.constant dense<0.000000e+00> : vector<8x256xf32>
    %79 = tpu.matmul %72, %78, %cst_24 {dimension_numbers = #tpu.dot_dimension_numbers<[1], [0], [0], [1], [0, 0, 1, 1], [], []>} : vector<8x16xf32>, vector<16x256xf32>, vector<8x256xf32> -> vector<8x256xf32>
    %80 = arith.addf %63, %79 : vector<8x256xf32>
    %81 = vector.extract_strided_slice %1 {offsets = [4, 0, 0], sizes = [1, 8, 16], strides = [1, 1, 1]} : vector<9x8x16xf32> to vector<1x8x16xf32>
    %82 = vector.shape_cast %81 : vector<1x8x16xf32> to vector<8x16xf32>
    %83 = vector.extract_strided_slice %0 {offsets = [0, 0, 0], sizes = [1, 16, 256], strides = [1, 1, 1]} : vector<2x16x256xf32> to vector<1x16x256xf32>
    %84 = vector.shape_cast %83 : vector<1x16x256xf32> to vector<16x256xf32>
    %cst_25 = arith.constant dense<0.000000e+00> : vector<8x256xf32>
    %85 = tpu.matmul %82, %84, %cst_25 {dimension_numbers = #tpu.dot_dimension_numbers<[1], [0], [0], [1], [0, 0, 1, 1], [], []>} : vector<8x16xf32>, vector<16x256xf32>, vector<8x256xf32> -> vector<8x256xf32>
    %86 = arith.addf %76, %85 : vector<8x256xf32>
    %87 = vector.extract_strided_slice %0 {offsets = [1, 0, 0], sizes = [1, 16, 256], strides = [1, 1, 1]} : vector<2x16x256xf32> to vector<1x16x256xf32>
    %88 = vector.shape_cast %87 : vector<1x16x256xf32> to vector<16x256xf32>
    %cst_26 = arith.constant dense<0.000000e+00> : vector<8x256xf32>
    %89 = tpu.matmul %82, %88, %cst_26 {dimension_numbers = #tpu.dot_dimension_numbers<[1], [0], [0], [1], [0, 0, 1, 1], [], []>} : vector<8x16xf32>, vector<16x256xf32>, vector<8x256xf32> -> vector<8x256xf32>
    %90 = arith.addf %80, %89 : vector<8x256xf32>
    %c255_i32 = arith.constant 255 : i32
    %91 = tpu.dynamic_rotate %0 by %c255_i32 dim 2 : vector<2x16x256xf32>, i32 -> vector<2x16x256xf32>
    %c15_i32_27 = arith.constant 15 : i32
    %92 = vector.broadcast %c15_i32_27 : i32 to vector<1x1x256xi32>
    %93 = arith.cmpi slt, %4, %92 : vector<1x1x256xi32>
    %cst_28 = arith.constant 0.000000e+00 : f32
    %94 = vector.shape_cast %93 : vector<1x1x256xi1> to vector<1x1x256xi1>
    %95 = vector.broadcast %94 : vector<1x1x256xi1> to vector<2x16x256xi1>
    %96 = vector.broadcast %cst_28 : f32 to vector<2x16x256xf32>
    %97 = arith.select %95, %91, %96 : vector<2x16x256xi1>, vector<2x16x256xf32>
    %98 = vector.extract_strided_slice %1 {offsets = [5, 0, 0], sizes = [1, 8, 16], strides = [1, 1, 1]} : vector<9x8x16xf32> to vector<1x8x16xf32>
    %99 = vector.shape_cast %98 : vector<1x8x16xf32> to vector<8x16xf32>
    %100 = vector.extract_strided_slice %97 {offsets = [0, 0, 0], sizes = [1, 16, 256], strides = [1, 1, 1]} : vector<2x16x256xf32> to vector<1x16x256xf32>
    %101 = vector.shape_cast %100 : vector<1x16x256xf32> to vector<16x256xf32>
    %cst_29 = arith.constant dense<0.000000e+00> : vector<8x256xf32>
    %102 = tpu.matmul %99, %101, %cst_29 {dimension_numbers = #tpu.dot_dimension_numbers<[1], [0], [0], [1], [0, 0, 1, 1], [], []>} : vector<8x16xf32>, vector<16x256xf32>, vector<8x256xf32> -> vector<8x256xf32>
    %103 = arith.addf %86, %102 : vector<8x256xf32>
    %104 = vector.extract_strided_slice %97 {offsets = [1, 0, 0], sizes = [1, 16, 256], strides = [1, 1, 1]} : vector<2x16x256xf32> to vector<1x16x256xf32>
    %105 = vector.shape_cast %104 : vector<1x16x256xf32> to vector<16x256xf32>
    %cst_30 = arith.constant dense<0.000000e+00> : vector<8x256xf32>
    %106 = tpu.matmul %99, %105, %cst_30 {dimension_numbers = #tpu.dot_dimension_numbers<[1], [0], [0], [1], [0, 0, 1, 1], [], []>} : vector<8x16xf32>, vector<16x256xf32>, vector<8x256xf32> -> vector<8x256xf32>
    %107 = arith.addf %90, %106 : vector<8x256xf32>
    %c241_i32 = arith.constant 241 : i32
    %108 = tpu.dynamic_rotate %0 by %c241_i32 dim 2 : vector<2x16x256xf32>, i32 -> vector<2x16x256xf32>
    %c240_i32 = arith.constant 240 : i32
    %109 = vector.broadcast %c240_i32 : i32 to vector<1x1x256xi32>
    %110 = arith.cmpi slt, %2, %109 : vector<1x1x256xi32>
    %c1_i32_31 = arith.constant 1 : i32
    %111 = vector.broadcast %c1_i32_31 : i32 to vector<1x1x256xi32>
    %112 = arith.cmpi sge, %4, %111 : vector<1x1x256xi32>
    %113 = arith.andi %110, %112 : vector<1x1x256xi1>
    %cst_32 = arith.constant 0.000000e+00 : f32
    %114 = vector.shape_cast %113 : vector<1x1x256xi1> to vector<1x1x256xi1>
    %115 = vector.broadcast %114 : vector<1x1x256xi1> to vector<2x16x256xi1>
    %116 = vector.broadcast %cst_32 : f32 to vector<2x16x256xf32>
    %117 = arith.select %115, %108, %116 : vector<2x16x256xi1>, vector<2x16x256xf32>
    %118 = vector.extract_strided_slice %1 {offsets = [6, 0, 0], sizes = [1, 8, 16], strides = [1, 1, 1]} : vector<9x8x16xf32> to vector<1x8x16xf32>
    %119 = vector.shape_cast %118 : vector<1x8x16xf32> to vector<8x16xf32>
    %120 = vector.extract_strided_slice %117 {offsets = [0, 0, 0], sizes = [1, 16, 256], strides = [1, 1, 1]} : vector<2x16x256xf32> to vector<1x16x256xf32>
    %121 = vector.shape_cast %120 : vector<1x16x256xf32> to vector<16x256xf32>
    %cst_33 = arith.constant dense<0.000000e+00> : vector<8x256xf32>
    %122 = tpu.matmul %119, %121, %cst_33 {dimension_numbers = #tpu.dot_dimension_numbers<[1], [0], [0], [1], [0, 0, 1, 1], [], []>} : vector<8x16xf32>, vector<16x256xf32>, vector<8x256xf32> -> vector<8x256xf32>
    %123 = arith.addf %103, %122 : vector<8x256xf32>
    %124 = vector.extract_strided_slice %117 {offsets = [1, 0, 0], sizes = [1, 16, 256], strides = [1, 1, 1]} : vector<2x16x256xf32> to vector<1x16x256xf32>
    %125 = vector.shape_cast %124 : vector<1x16x256xf32> to vector<16x256xf32>
    %cst_34 = arith.constant dense<0.000000e+00> : vector<8x256xf32>
    %126 = tpu.matmul %119, %125, %cst_34 {dimension_numbers = #tpu.dot_dimension_numbers<[1], [0], [0], [1], [0, 0, 1, 1], [], []>} : vector<8x16xf32>, vector<16x256xf32>, vector<8x256xf32> -> vector<8x256xf32>
    %127 = arith.addf %107, %126 : vector<8x256xf32>
    %c240_i32_35 = arith.constant 240 : i32
    %128 = tpu.dynamic_rotate %0 by %c240_i32_35 dim 2 : vector<2x16x256xf32>, i32 -> vector<2x16x256xf32>
    %c240_i32_36 = arith.constant 240 : i32
    %129 = vector.broadcast %c240_i32_36 : i32 to vector<1x1x256xi32>
    %130 = arith.cmpi slt, %2, %129 : vector<1x1x256xi32>
    %cst_37 = arith.constant 0.000000e+00 : f32
    %131 = vector.shape_cast %130 : vector<1x1x256xi1> to vector<1x1x256xi1>
    %132 = vector.broadcast %131 : vector<1x1x256xi1> to vector<2x16x256xi1>
    %133 = vector.broadcast %cst_37 : f32 to vector<2x16x256xf32>
    %134 = arith.select %132, %128, %133 : vector<2x16x256xi1>, vector<2x16x256xf32>
    %135 = vector.extract_strided_slice %1 {offsets = [7, 0, 0], sizes = [1, 8, 16], strides = [1, 1, 1]} : vector<9x8x16xf32> to vector<1x8x16xf32>
    %136 = vector.shape_cast %135 : vector<1x8x16xf32> to vector<8x16xf32>
    %137 = vector.extract_strided_slice %134 {offsets = [0, 0, 0], sizes = [1, 16, 256], strides = [1, 1, 1]} : vector<2x16x256xf32> to vector<1x16x256xf32>
    %138 = vector.shape_cast %137 : vector<1x16x256xf32> to vector<16x256xf32>
    %cst_38 = arith.constant dense<0.000000e+00> : vector<8x256xf32>
    %139 = tpu.matmul %136, %138, %cst_38 {dimension_numbers = #tpu.dot_dimension_numbers<[1], [0], [0], [1], [0, 0, 1, 1], [], []>} : vector<8x16xf32>, vector<16x256xf32>, vector<8x256xf32> -> vector<8x256xf32>
    %140 = arith.addf %123, %139 : vector<8x256xf32>
    %141 = vector.extract_strided_slice %134 {offsets = [1, 0, 0], sizes = [1, 16, 256], strides = [1, 1, 1]} : vector<2x16x256xf32> to vector<1x16x256xf32>
    %142 = vector.shape_cast %141 : vector<1x16x256xf32> to vector<16x256xf32>
    %cst_39 = arith.constant dense<0.000000e+00> : vector<8x256xf32>
    %143 = tpu.matmul %136, %142, %cst_39 {dimension_numbers = #tpu.dot_dimension_numbers<[1], [0], [0], [1], [0, 0, 1, 1], [], []>} : vector<8x16xf32>, vector<16x256xf32>, vector<8x256xf32> -> vector<8x256xf32>
    %144 = arith.addf %127, %143 : vector<8x256xf32>
    %c239_i32 = arith.constant 239 : i32
    %145 = tpu.dynamic_rotate %0 by %c239_i32 dim 2 : vector<2x16x256xf32>, i32 -> vector<2x16x256xf32>
    %c240_i32_40 = arith.constant 240 : i32
    %146 = vector.broadcast %c240_i32_40 : i32 to vector<1x1x256xi32>
    %147 = arith.cmpi slt, %2, %146 : vector<1x1x256xi32>
    %c15_i32_41 = arith.constant 15 : i32
    %148 = vector.broadcast %c15_i32_41 : i32 to vector<1x1x256xi32>
    %149 = arith.cmpi slt, %4, %148 : vector<1x1x256xi32>
    %150 = arith.andi %147, %149 : vector<1x1x256xi1>
    %cst_42 = arith.constant 0.000000e+00 : f32
    %151 = vector.shape_cast %150 : vector<1x1x256xi1> to vector<1x1x256xi1>
    %152 = vector.broadcast %151 : vector<1x1x256xi1> to vector<2x16x256xi1>
    %153 = vector.broadcast %cst_42 : f32 to vector<2x16x256xf32>
    %154 = arith.select %152, %145, %153 : vector<2x16x256xi1>, vector<2x16x256xf32>
    %155 = vector.extract_strided_slice %1 {offsets = [8, 0, 0], sizes = [1, 8, 16], strides = [1, 1, 1]} : vector<9x8x16xf32> to vector<1x8x16xf32>
    %156 = vector.shape_cast %155 : vector<1x8x16xf32> to vector<8x16xf32>
    %157 = vector.extract_strided_slice %154 {offsets = [0, 0, 0], sizes = [1, 16, 256], strides = [1, 1, 1]} : vector<2x16x256xf32> to vector<1x16x256xf32>
    %158 = vector.shape_cast %157 : vector<1x16x256xf32> to vector<16x256xf32>
    %cst_43 = arith.constant dense<0.000000e+00> : vector<8x256xf32>
    %159 = tpu.matmul %156, %158, %cst_43 {dimension_numbers = #tpu.dot_dimension_numbers<[1], [0], [0], [1], [0, 0, 1, 1], [], []>} : vector<8x16xf32>, vector<16x256xf32>, vector<8x256xf32> -> vector<8x256xf32>
    %160 = arith.addf %140, %159 : vector<8x256xf32>
    %161 = vector.extract_strided_slice %154 {offsets = [1, 0, 0], sizes = [1, 16, 256], strides = [1, 1, 1]} : vector<2x16x256xf32> to vector<1x16x256xf32>
    %162 = vector.shape_cast %161 : vector<1x16x256xf32> to vector<16x256xf32>
    %cst_44 = arith.constant dense<0.000000e+00> : vector<8x256xf32>
    %163 = tpu.matmul %156, %162, %cst_44 {dimension_numbers = #tpu.dot_dimension_numbers<[1], [0], [0], [1], [0, 0, 1, 1], [], []>} : vector<8x16xf32>, vector<16x256xf32>, vector<8x256xf32> -> vector<8x256xf32>
    %164 = arith.addf %144, %163 : vector<8x256xf32>
    %165 = vector.shape_cast %160 : vector<8x256xf32> to vector<1x8x256xf32>
    %166 = vector.shape_cast %164 : vector<8x256xf32> to vector<1x8x256xf32>
    %167 = tpu.concatenate %165, %166 in 0 : vector<1x8x256xf32>, vector<1x8x256xf32> -> vector<2x8x256xf32>
    %168 = vector.extract_strided_slice %167 {offsets = [0, 0, 0], sizes = [1, 8, 256], strides = [1, 1, 1]} : vector<2x8x256xf32> to vector<1x8x256xf32>
    %169 = vector.shape_cast %168 : vector<1x8x256xf32> to vector<8x256xf32>
    %cst_45 = arith.constant dense<0.000000e+00> : vector<8xf32>
    %170 = vector.multi_reduction <add>, %169, %cst_45 [1] : vector<8x256xf32> to vector<8xf32>
    %171 = vector.shape_cast %170 : vector<8xf32> to vector<8x1xf32>
    %172 = vector.extract_strided_slice %167 {offsets = [1, 0, 0], sizes = [1, 8, 256], strides = [1, 1, 1]} : vector<2x8x256xf32> to vector<1x8x256xf32>
    %173 = vector.shape_cast %172 : vector<1x8x256xf32> to vector<8x256xf32>
    %cst_46 = arith.constant dense<0.000000e+00> : vector<8xf32>
    %174 = vector.multi_reduction <add>, %173, %cst_46 [1] : vector<8x256xf32> to vector<8xf32>
    %175 = vector.shape_cast %174 : vector<8xf32> to vector<8x1xf32>
    %176 = arith.addf %171, %175 : vector<8x1xf32>
    %cst_47 = arith.constant 0.001953125 : f32
    %177 = vector.broadcast %cst_47 : f32 to vector<8x1xf32>
    %178 = arith.mulf %176, %177 : vector<8x1xf32>
    %179 = vector.shape_cast %178 : vector<8x1xf32> to vector<1x8x1xf32>
    %180 = vector.broadcast %179 : vector<1x8x1xf32> to vector<2x8x256xf32>
    %181 = arith.subf %167, %180 : vector<2x8x256xf32>
    %182 = vector.extract_strided_slice %181 {offsets = [0, 0, 0], sizes = [1, 8, 256], strides = [1, 1, 1]} : vector<2x8x256xf32> to vector<1x8x256xf32>
    %183 = vector.shape_cast %182 : vector<1x8x256xf32> to vector<8x256xf32>
    %184 = vector.extract_strided_slice %181 {offsets = [0, 0, 0], sizes = [1, 8, 256], strides = [1, 1, 1]} : vector<2x8x256xf32> to vector<1x8x256xf32>
    %185 = vector.shape_cast %184 : vector<1x8x256xf32> to vector<8x256xf32>
    %186 = arith.mulf %183, %185 : vector<8x256xf32>
    %cst_48 = arith.constant dense<0.000000e+00> : vector<8xf32>
    %187 = vector.multi_reduction <add>, %186, %cst_48 [1] : vector<8x256xf32> to vector<8xf32>
    %188 = vector.shape_cast %187 : vector<8xf32> to vector<8x1xf32>
    %189 = vector.extract_strided_slice %181 {offsets = [1, 0, 0], sizes = [1, 8, 256], strides = [1, 1, 1]} : vector<2x8x256xf32> to vector<1x8x256xf32>
    %190 = vector.shape_cast %189 : vector<1x8x256xf32> to vector<8x256xf32>
    %191 = vector.extract_strided_slice %181 {offsets = [1, 0, 0], sizes = [1, 8, 256], strides = [1, 1, 1]} : vector<2x8x256xf32> to vector<1x8x256xf32>
    %192 = vector.shape_cast %191 : vector<1x8x256xf32> to vector<8x256xf32>
    %193 = arith.mulf %190, %192 : vector<8x256xf32>
    %cst_49 = arith.constant dense<0.000000e+00> : vector<8xf32>
    %194 = vector.multi_reduction <add>, %193, %cst_49 [1] : vector<8x256xf32> to vector<8xf32>
    %195 = vector.shape_cast %194 : vector<8xf32> to vector<8x1xf32>
    %196 = arith.addf %188, %195 : vector<8x1xf32>
    %cst_50 = arith.constant 0.001953125 : f32
    %197 = vector.broadcast %cst_50 : f32 to vector<8x1xf32>
    %198 = arith.mulf %196, %197 : vector<8x1xf32>
    %cst_51 = arith.constant 9.99999974E-6 : f32
    %199 = vector.broadcast %cst_51 : f32 to vector<8x1xf32>
    %200 = arith.addf %198, %199 : vector<8x1xf32>
    %201 = math.rsqrt %200 : vector<8x1xf32>
    %202 = vector.shape_cast %201 : vector<8x1xf32> to vector<1x8x1xf32>
    %203 = vector.broadcast %202 : vector<1x8x1xf32> to vector<2x8x256xf32>
    %204 = arith.mulf %181, %203 : vector<2x8x256xf32>
    %c0_52 = arith.constant 0 : index
    %c0_53 = arith.constant 0 : index
    %c0_54 = arith.constant 0 : index
    %205 = vector.load %arg4[%c0_52, %c0_53, %c0_54] : memref<2x8x1xf32, #tpu.memory_space<vmem>>, vector<2x8x1xf32>
    %206 = vector.broadcast %205 : vector<2x8x1xf32> to vector<2x8x256xf32>
    %207 = arith.mulf %204, %206 : vector<2x8x256xf32>
    %c0_55 = arith.constant 0 : index
    %c0_56 = arith.constant 0 : index
    %c0_57 = arith.constant 0 : index
    %208 = vector.load %arg3[%c0_55, %c0_56, %c0_57] : memref<2x8x256xf32, #tpu.memory_space<vmem>>, vector<2x8x256xf32>
    %c0_58 = arith.constant 0 : index
    %c0_59 = arith.constant 0 : index
    %c0_60 = arith.constant 0 : index
    %209 = vector.load %arg5[%c0_58, %c0_59, %c0_60] : memref<2x8x1xf32, #tpu.memory_space<vmem>>, vector<2x8x1xf32>
    %c0_61 = arith.constant 0 : index
    %c0_62 = arith.constant 0 : index
    %210 = vector.load %arg6[%c0_61, %c0_62] : memref<8x256xf32, #tpu.memory_space<vmem>>, vector<8x256xf32>
    %211 = vector.shape_cast %210 : vector<8x256xf32> to vector<1x8x256xf32>
    %c0_63 = arith.constant 0 : index
    %c0_64 = arith.constant 0 : index
    %212 = vector.load %arg7[%c0_63, %c0_64] : memref<8x256xf32, #tpu.memory_space<vmem>>, vector<8x256xf32>
    %213 = vector.shape_cast %212 : vector<8x256xf32> to vector<1x8x256xf32>
    %c0_65 = arith.constant 0 : index
    %c0_66 = arith.constant 0 : index
    %214 = vector.load %arg8[%c0_65, %c0_66] : memref<8x1xf32, #tpu.memory_space<vmem>>, vector<8x1xf32>
    %215 = vector.shape_cast %214 : vector<8x1xf32> to vector<1x8x1xf32>
    %c0_67 = arith.constant 0 : index
    %c0_68 = arith.constant 0 : index
    %216 = vector.load %arg9[%c0_67, %c0_68] : memref<8x1xf32, #tpu.memory_space<vmem>>, vector<8x1xf32>
    %217 = vector.shape_cast %216 : vector<8x1xf32> to vector<1x8x1xf32>
    %c0_69 = arith.constant 0 : index
    %218 = memref.load %arg0[%c0_69] : memref<10xf32, #tpu.memory_space<smem>>
    %c1 = arith.constant 1 : index
    %219 = memref.load %arg0[%c1] : memref<10xf32, #tpu.memory_space<smem>>
    %c2 = arith.constant 2 : index
    %220 = memref.load %arg0[%c2] : memref<10xf32, #tpu.memory_space<smem>>
    %c3 = arith.constant 3 : index
    %221 = memref.load %arg0[%c3] : memref<10xf32, #tpu.memory_space<smem>>
    %c4 = arith.constant 4 : index
    %222 = memref.load %arg0[%c4] : memref<10xf32, #tpu.memory_space<smem>>
    %c5 = arith.constant 5 : index
    %223 = memref.load %arg0[%c5] : memref<10xf32, #tpu.memory_space<smem>>
    %c6 = arith.constant 6 : index
    %224 = memref.load %arg0[%c6] : memref<10xf32, #tpu.memory_space<smem>>
    %c7 = arith.constant 7 : index
    %225 = memref.load %arg0[%c7] : memref<10xf32, #tpu.memory_space<smem>>
    %c8 = arith.constant 8 : index
    %226 = memref.load %arg0[%c8] : memref<10xf32, #tpu.memory_space<smem>>
    %c9 = arith.constant 9 : index
    %227 = memref.load %arg0[%c9] : memref<10xf32, #tpu.memory_space<smem>>
    %228 = vector.broadcast %219 : f32 to vector<2x8x256xf32>
    %229 = arith.mulf %228, %207 : vector<2x8x256xf32>
    %230 = vector.broadcast %220 : f32 to vector<2x8x256xf32>
    %231 = arith.addf %229, %230 : vector<2x8x256xf32>
    %cst_70 = arith.constant 0.000000e+00 : f32
    %232 = vector.broadcast %cst_70 : f32 to vector<2x8x256xf32>
    %233 = arith.subf %232, %231 : vector<2x8x256xf32>
    %234 = math.exp %233 : vector<2x8x256xf32>
    %cst_71 = arith.constant 1.000000e+00 : f32
    %235 = vector.broadcast %cst_71 : f32 to vector<2x8x256xf32>
    %236 = arith.addf %235, %234 : vector<2x8x256xf32>
    %237 = tpu.reciprocal %236 {approx = true} : vector<2x8x256xf32> -> vector<2x8x256xf32>
    %238 = vector.broadcast %224 : f32 to vector<2x8x256xf32>
    %239 = arith.mulf %238, %207 : vector<2x8x256xf32>
    %240 = vector.broadcast %225 : f32 to vector<2x8x256xf32>
    %241 = arith.addf %239, %240 : vector<2x8x256xf32>
    %cst_72 = arith.constant 0.000000e+00 : f32
    %242 = vector.broadcast %cst_72 : f32 to vector<2x8x256xf32>
    %243 = arith.subf %242, %241 : vector<2x8x256xf32>
    %244 = math.exp %243 : vector<2x8x256xf32>
    %cst_73 = arith.constant 1.000000e+00 : f32
    %245 = vector.broadcast %cst_73 : f32 to vector<2x8x256xf32>
    %246 = arith.addf %245, %244 : vector<2x8x256xf32>
    %247 = tpu.reciprocal %246 {approx = true} : vector<2x8x256xf32> -> vector<2x8x256xf32>
    %248 = vector.broadcast %218 : f32 to vector<2x8x256xf32>
    %249 = arith.mulf %248, %237 : vector<2x8x256xf32>
    %250 = vector.broadcast %221 : f32 to vector<2x8x256xf32>
    %251 = arith.mulf %250, %207 : vector<2x8x256xf32>
    %252 = arith.addf %249, %251 : vector<2x8x256xf32>
    %253 = vector.broadcast %222 : f32 to vector<2x8x256xf32>
    %254 = arith.addf %252, %253 : vector<2x8x256xf32>
    %255 = vector.broadcast %223 : f32 to vector<2x8x256xf32>
    %256 = arith.mulf %255, %247 : vector<2x8x256xf32>
    %257 = vector.broadcast %226 : f32 to vector<2x8x256xf32>
    %258 = arith.mulf %257, %207 : vector<2x8x256xf32>
    %259 = arith.addf %256, %258 : vector<2x8x256xf32>
    %260 = vector.broadcast %227 : f32 to vector<2x8x256xf32>
    %261 = arith.addf %259, %260 : vector<2x8x256xf32>
    %262 = vector.broadcast %209 : vector<2x8x1xf32> to vector<2x8x256xf32>
    %263 = arith.mulf %262, %208 : vector<2x8x256xf32>
    %264 = arith.subf %263, %254 : vector<2x8x256xf32>
    %265 = arith.mulf %264, %261 : vector<2x8x256xf32>
    %266 = arith.addf %265, %254 : vector<2x8x256xf32>
    %267 = vector.broadcast %211 : vector<1x8x256xf32> to vector<2x8x256xf32>
    %268 = arith.subf %266, %267 : vector<2x8x256xf32>
    %269 = vector.broadcast %213 : vector<1x8x256xf32> to vector<2x8x256xf32>
    %270 = arith.divf %268, %269 : vector<2x8x256xf32>
    %271 = vector.broadcast %215 : vector<1x8x1xf32> to vector<2x8x256xf32>
    %272 = arith.mulf %271, %270 : vector<2x8x256xf32>
    %273 = vector.broadcast %217 : vector<1x8x1xf32> to vector<2x8x256xf32>
    %274 = arith.addf %272, %273 : vector<2x8x256xf32>
    %c0_74 = arith.constant 0 : index
    %c0_75 = arith.constant 0 : index
    %c0_76 = arith.constant 0 : index
    %275 = vector.load %arg10[%c0_74, %c0_75, %c0_76] : memref<2x8x256xf32, #tpu.memory_space<vmem>>, vector<2x8x256xf32>
    tpu.vector_store %arg10[%c0_74, %c0_75, %c0_76], %266 {strides = array<i32>} : memref<2x8x256xf32, #tpu.memory_space<vmem>>, vector<2x8x256xf32>,
    %c0_77 = arith.constant 0 : index
    %c0_78 = arith.constant 0 : index
    %c0_79 = arith.constant 0 : index
    %276 = vector.load %arg11[%c0_77, %c0_78, %c0_79] : memref<2x8x256xf32, #tpu.memory_space<vmem>>, vector<2x8x256xf32>
    tpu.vector_store %arg11[%c0_77, %c0_78, %c0_79], %274 {strides = array<i32>} : memref<2x8x256xf32, #tpu.memory_space<vmem>>, vector<2x8x256xf32>,
    return
  }
}

module attributes {stable_mosaic.version = 11 : i64} {
  func.func @_downplay_kernel(%arg0: memref<2x4x256xf32, #tpu.memory_space<vmem>>, %arg1: memref<2x4x256xf32, #tpu.memory_space<vmem>>) attributes {dimension_semantics = [], scalar_prefetch = 0 : i64, scratch_operands = 0 : i64, tpu.core_type = #tpu.core_type<tc>} {
    %c0 = arith.constant 0 : index
    %c0_0 = arith.constant 0 : index
    %c0_1 = arith.constant 0 : index
    %0 = vector.load %arg0[%c0, %c0_0, %c0_1] : memref<2x4x256xf32, #tpu.memory_space<vmem>>, vector<2x4x256xf32>
    %cst = arith.constant dense<0.000000e+00> : vector<2x256xf32>
    %1 = vector.multi_reduction <add>, %0, %cst [1] : vector<2x4x256xf32> to vector<2x256xf32>
    %2 = vector.shape_cast %1 : vector<2x256xf32> to vector<2x1x256xf32>
    %cst_2 = arith.constant 0.000000e+00 : f32
    %3 = vector.broadcast %cst_2 : f32 to vector<2x1x256xf32>
    %4 = arith.cmpf oeq, %2, %3 : vector<2x1x256xf32>
    %cst_3 = arith.constant 5.000000e+00 : f32
    %5 = vector.broadcast %cst_3 : f32 to vector<2x4x256xf32>
    %6 = arith.divf %0, %5 : vector<2x4x256xf32>
    %7 = vector.shape_cast %4 : vector<2x1x256xi1> to vector<2x1x256xi1>
    %8 = vector.broadcast %7 : vector<2x1x256xi1> to vector<2x4x256xi1>
    %9 = arith.select %8, %6, %0 : vector<2x4x256xi1>, vector<2x4x256xf32>
    %c0_4 = arith.constant 0 : index
    %c0_5 = arith.constant 0 : index
    %c0_6 = arith.constant 0 : index
    %10 = vector.load %arg1[%c0_4, %c0_5, %c0_6] : memref<2x4x256xf32, #tpu.memory_space<vmem>>, vector<2x4x256xf32>
    tpu.vector_store %arg1[%c0_4, %c0_5, %c0_6], %9 {strides = array<i32>} : memref<2x4x256xf32, #tpu.memory_space<vmem>>, vector<2x4x256xf32>,
    return
  }
}

module attributes {stable_mosaic.version = 11 : i64} {
  func.func @kernel(%arg0: memref<10xf32, #tpu.memory_space<smem>>, %arg1: memref<2x8x256xf32, #tpu.memory_space<vmem>>, %arg2: memref<9x4x8xf32, #tpu.memory_space<vmem>>, %arg3: memref<2x4x256xf32, #tpu.memory_space<vmem>>, %arg4: memref<2x4x1xf32, #tpu.memory_space<vmem>>, %arg5: memref<2x4x1xf32, #tpu.memory_space<vmem>>, %arg6: memref<4x256xf32, #tpu.memory_space<vmem>>, %arg7: memref<4x256xf32, #tpu.memory_space<vmem>>, %arg8: memref<4x1xf32, #tpu.memory_space<vmem>>, %arg9: memref<4x1xf32, #tpu.memory_space<vmem>>, %arg10: memref<2x4x256xf32, #tpu.memory_space<vmem>>, %arg11: memref<2x4x256xf32, #tpu.memory_space<vmem>>) attributes {dimension_semantics = [], scalar_prefetch = 0 : i64, scratch_operands = 0 : i64, tpu.core_type = #tpu.core_type<tc>} {
    %c0 = arith.constant 0 : index
    %c0_0 = arith.constant 0 : index
    %c0_1 = arith.constant 0 : index
    %0 = vector.load %arg1[%c0, %c0_0, %c0_1] : memref<2x8x256xf32, #tpu.memory_space<vmem>>, vector<2x8x256xf32>
    %c0_2 = arith.constant 0 : index
    %c0_3 = arith.constant 0 : index
    %c0_4 = arith.constant 0 : index
    %1 = vector.load %arg2[%c0_2, %c0_3, %c0_4] : memref<9x4x8xf32, #tpu.memory_space<vmem>>, vector<9x4x8xf32>
    %2 = tpu.iota {dimensions = array<i32: 2>} : vector<1x1x256xi32>
    %c15_i32 = arith.constant 15 : i32
    %3 = vector.broadcast %c15_i32 : i32 to vector<1x1x256xi32>
    %4 = arith.andi %2, %3 : vector<1x1x256xi32>
    %cst = arith.constant 0.000000e+00 : f32
    %5 = vector.broadcast %cst : f32 to vector<4x256xf32>
    %cst_5 = arith.constant 0.000000e+00 : f32
    %6 = vector.broadcast %cst_5 : f32 to vector<4x256xf32>
    %c17_i32 = arith.constant 17 : i32
    %7 = tpu.dynamic_rotate %0 by %c17_i32 dim 2 : vector<2x8x256xf32>, i32 -> vector<2x8x256xf32>
    %c16_i32 = arith.constant 16 : i32
    %8 = vector.broadcast %c16_i32 : i32 to vector<1x1x256xi32>
    %9 = arith.cmpi sge, %2, %8 : vector<1x1x256xi32>
    %c1_i32 = arith.constant 1 : i32
    %10 = vector.broadcast %c1_i32 : i32 to vector<1x1x256xi32>
    %11 = arith.cmpi sge, %4, %10 : vector<1x1x256xi32>
    %12 = arith.andi %9, %11 : vector<1x1x256xi1>
    %cst_6 = arith.constant 0.000000e+00 : f32
    %13 = vector.shape_cast %12 : vector<1x1x256xi1> to vector<1x1x256xi1>
    %14 = vector.broadcast %13 : vector<1x1x256xi1> to vector<2x8x256xi1>
    %15 = vector.broadcast %cst_6 : f32 to vector<2x8x256xf32>
    %16 = arith.select %14, %7, %15 : vector<2x8x256xi1>, vector<2x8x256xf32>
    %17 = vector.extract_strided_slice %1 {offsets = [0, 0, 0], sizes = [1, 4, 8], strides = [1, 1, 1]} : vector<9x4x8xf32> to vector<1x4x8xf32>
    %18 = vector.shape_cast %17 : vector<1x4x8xf32> to vector<4x8xf32>
    %19 = vector.extract_strided_slice %16 {offsets = [0, 0, 0], sizes = [1, 8, 256], strides = [1, 1, 1]} : vector<2x8x256xf32> to vector<1x8x256xf32>
    %20 = vector.shape_cast %19 : vector<1x8x256xf32> to vector<8x256xf32>
    %cst_7 = arith.constant dense<0.000000e+00> : vector<4x256xf32>
    %21 = tpu.matmul %18, %20, %cst_7 {dimension_numbers = #tpu.dot_dimension_numbers<[1], [0], [0], [1], [0, 0, 1, 1], [], []>} : vector<4x8xf32>, vector<8x256xf32>, vector<4x256xf32> -> vector<4x256xf32>
    %22 = arith.addf %5, %21 : vector<4x256xf32>
    %23 = vector.extract_strided_slice %16 {offsets = [1, 0, 0], sizes = [1, 8, 256], strides = [1, 1, 1]} : vector<2x8x256xf32> to vector<1x8x256xf32>
    %24 = vector.shape_cast %23 : vector<1x8x256xf32> to vector<8x256xf32>
    %cst_8 = arith.constant dense<0.000000e+00> : vector<4x256xf32>
    %25 = tpu.matmul %18, %24, %cst_8 {dimension_numbers = #tpu.dot_dimension_numbers<[1], [0], [0], [1], [0, 0, 1, 1], [], []>} : vector<4x8xf32>, vector<8x256xf32>, vector<4x256xf32> -> vector<4x256xf32>
    %26 = arith.addf %6, %25 : vector<4x256xf32>
    %c16_i32_9 = arith.constant 16 : i32
    %27 = tpu.dynamic_rotate %0 by %c16_i32_9 dim 2 : vector<2x8x256xf32>, i32 -> vector<2x8x256xf32>
    %c16_i32_10 = arith.constant 16 : i32
    %28 = vector.broadcast %c16_i32_10 : i32 to vector<1x1x256xi32>
    %29 = arith.cmpi sge, %2, %28 : vector<1x1x256xi32>
    %cst_11 = arith.constant 0.000000e+00 : f32
    %30 = vector.shape_cast %29 : vector<1x1x256xi1> to vector<1x1x256xi1>
    %31 = vector.broadcast %30 : vector<1x1x256xi1> to vector<2x8x256xi1>
    %32 = vector.broadcast %cst_11 : f32 to vector<2x8x256xf32>
    %33 = arith.select %31, %27, %32 : vector<2x8x256xi1>, vector<2x8x256xf32>
    %34 = vector.extract_strided_slice %1 {offsets = [1, 0, 0], sizes = [1, 4, 8], strides = [1, 1, 1]} : vector<9x4x8xf32> to vector<1x4x8xf32>
    %35 = vector.shape_cast %34 : vector<1x4x8xf32> to vector<4x8xf32>
    %36 = vector.extract_strided_slice %33 {offsets = [0, 0, 0], sizes = [1, 8, 256], strides = [1, 1, 1]} : vector<2x8x256xf32> to vector<1x8x256xf32>
    %37 = vector.shape_cast %36 : vector<1x8x256xf32> to vector<8x256xf32>
    %cst_12 = arith.constant dense<0.000000e+00> : vector<4x256xf32>
    %38 = tpu.matmul %35, %37, %cst_12 {dimension_numbers = #tpu.dot_dimension_numbers<[1], [0], [0], [1], [0, 0, 1, 1], [], []>} : vector<4x8xf32>, vector<8x256xf32>, vector<4x256xf32> -> vector<4x256xf32>
    %39 = arith.addf %22, %38 : vector<4x256xf32>
    %40 = vector.extract_strided_slice %33 {offsets = [1, 0, 0], sizes = [1, 8, 256], strides = [1, 1, 1]} : vector<2x8x256xf32> to vector<1x8x256xf32>
    %41 = vector.shape_cast %40 : vector<1x8x256xf32> to vector<8x256xf32>
    %cst_13 = arith.constant dense<0.000000e+00> : vector<4x256xf32>
    %42 = tpu.matmul %35, %41, %cst_13 {dimension_numbers = #tpu.dot_dimension_numbers<[1], [0], [0], [1], [0, 0, 1, 1], [], []>} : vector<4x8xf32>, vector<8x256xf32>, vector<4x256xf32> -> vector<4x256xf32>
    %43 = arith.addf %26, %42 : vector<4x256xf32>
    %c15_i32_14 = arith.constant 15 : i32
    %44 = tpu.dynamic_rotate %0 by %c15_i32_14 dim 2 : vector<2x8x256xf32>, i32 -> vector<2x8x256xf32>
    %c16_i32_15 = arith.constant 16 : i32
    %45 = vector.broadcast %c16_i32_15 : i32 to vector<1x1x256xi32>
    %46 = arith.cmpi sge, %2, %45 : vector<1x1x256xi32>
    %c15_i32_16 = arith.constant 15 : i32
    %47 = vector.broadcast %c15_i32_16 : i32 to vector<1x1x256xi32>
    %48 = arith.cmpi slt, %4, %47 : vector<1x1x256xi32>
    %49 = arith.andi %46, %48 : vector<1x1x256xi1>
    %cst_17 = arith.constant 0.000000e+00 : f32
    %50 = vector.shape_cast %49 : vector<1x1x256xi1> to vector<1x1x256xi1>
    %51 = vector.broadcast %50 : vector<1x1x256xi1> to vector<2x8x256xi1>
    %52 = vector.broadcast %cst_17 : f32 to vector<2x8x256xf32>
    %53 = arith.select %51, %44, %52 : vector<2x8x256xi1>, vector<2x8x256xf32>
    %54 = vector.extract_strided_slice %1 {offsets = [2, 0, 0], sizes = [1, 4, 8], strides = [1, 1, 1]} : vector<9x4x8xf32> to vector<1x4x8xf32>
    %55 = vector.shape_cast %54 : vector<1x4x8xf32> to vector<4x8xf32>
    %56 = vector.extract_strided_slice %53 {offsets = [0, 0, 0], sizes = [1, 8, 256], strides = [1, 1, 1]} : vector<2x8x256xf32> to vector<1x8x256xf32>
    %57 = vector.shape_cast %56 : vector<1x8x256xf32> to vector<8x256xf32>
    %cst_18 = arith.constant dense<0.000000e+00> : vector<4x256xf32>
    %58 = tpu.matmul %55, %57, %cst_18 {dimension_numbers = #tpu.dot_dimension_numbers<[1], [0], [0], [1], [0, 0, 1, 1], [], []>} : vector<4x8xf32>, vector<8x256xf32>, vector<4x256xf32> -> vector<4x256xf32>
    %59 = arith.addf %39, %58 : vector<4x256xf32>
    %60 = vector.extract_strided_slice %53 {offsets = [1, 0, 0], sizes = [1, 8, 256], strides = [1, 1, 1]} : vector<2x8x256xf32> to vector<1x8x256xf32>
    %61 = vector.shape_cast %60 : vector<1x8x256xf32> to vector<8x256xf32>
    %cst_19 = arith.constant dense<0.000000e+00> : vector<4x256xf32>
    %62 = tpu.matmul %55, %61, %cst_19 {dimension_numbers = #tpu.dot_dimension_numbers<[1], [0], [0], [1], [0, 0, 1, 1], [], []>} : vector<4x8xf32>, vector<8x256xf32>, vector<4x256xf32> -> vector<4x256xf32>
    %63 = arith.addf %43, %62 : vector<4x256xf32>
    %c1_i32_20 = arith.constant 1 : i32
    %64 = tpu.dynamic_rotate %0 by %c1_i32_20 dim 2 : vector<2x8x256xf32>, i32 -> vector<2x8x256xf32>
    %c1_i32_21 = arith.constant 1 : i32
    %65 = vector.broadcast %c1_i32_21 : i32 to vector<1x1x256xi32>
    %66 = arith.cmpi sge, %4, %65 : vector<1x1x256xi32>
    %cst_22 = arith.constant 0.000000e+00 : f32
    %67 = vector.shape_cast %66 : vector<1x1x256xi1> to vector<1x1x256xi1>
    %68 = vector.broadcast %67 : vector<1x1x256xi1> to vector<2x8x256xi1>
    %69 = vector.broadcast %cst_22 : f32 to vector<2x8x256xf32>
    %70 = arith.select %68, %64, %69 : vector<2x8x256xi1>, vector<2x8x256xf32>
    %71 = vector.extract_strided_slice %1 {offsets = [3, 0, 0], sizes = [1, 4, 8], strides = [1, 1, 1]} : vector<9x4x8xf32> to vector<1x4x8xf32>
    %72 = vector.shape_cast %71 : vector<1x4x8xf32> to vector<4x8xf32>
    %73 = vector.extract_strided_slice %70 {offsets = [0, 0, 0], sizes = [1, 8, 256], strides = [1, 1, 1]} : vector<2x8x256xf32> to vector<1x8x256xf32>
    %74 = vector.shape_cast %73 : vector<1x8x256xf32> to vector<8x256xf32>
    %cst_23 = arith.constant dense<0.000000e+00> : vector<4x256xf32>
    %75 = tpu.matmul %72, %74, %cst_23 {dimension_numbers = #tpu.dot_dimension_numbers<[1], [0], [0], [1], [0, 0, 1, 1], [], []>} : vector<4x8xf32>, vector<8x256xf32>, vector<4x256xf32> -> vector<4x256xf32>
    %76 = arith.addf %59, %75 : vector<4x256xf32>
    %77 = vector.extract_strided_slice %70 {offsets = [1, 0, 0], sizes = [1, 8, 256], strides = [1, 1, 1]} : vector<2x8x256xf32> to vector<1x8x256xf32>
    %78 = vector.shape_cast %77 : vector<1x8x256xf32> to vector<8x256xf32>
    %cst_24 = arith.constant dense<0.000000e+00> : vector<4x256xf32>
    %79 = tpu.matmul %72, %78, %cst_24 {dimension_numbers = #tpu.dot_dimension_numbers<[1], [0], [0], [1], [0, 0, 1, 1], [], []>} : vector<4x8xf32>, vector<8x256xf32>, vector<4x256xf32> -> vector<4x256xf32>
    %80 = arith.addf %63, %79 : vector<4x256xf32>
    %81 = vector.extract_strided_slice %1 {offsets = [4, 0, 0], sizes = [1, 4, 8], strides = [1, 1, 1]} : vector<9x4x8xf32> to vector<1x4x8xf32>
    %82 = vector.shape_cast %81 : vector<1x4x8xf32> to vector<4x8xf32>
    %83 = vector.extract_strided_slice %0 {offsets = [0, 0, 0], sizes = [1, 8, 256], strides = [1, 1, 1]} : vector<2x8x256xf32> to vector<1x8x256xf32>
    %84 = vector.shape_cast %83 : vector<1x8x256xf32> to vector<8x256xf32>
    %cst_25 = arith.constant dense<0.000000e+00> : vector<4x256xf32>
    %85 = tpu.matmul %82, %84, %cst_25 {dimension_numbers = #tpu.dot_dimension_numbers<[1], [0], [0], [1], [0, 0, 1, 1], [], []>} : vector<4x8xf32>, vector<8x256xf32>, vector<4x256xf32> -> vector<4x256xf32>
    %86 = arith.addf %76, %85 : vector<4x256xf32>
    %87 = vector.extract_strided_slice %0 {offsets = [1, 0, 0], sizes = [1, 8, 256], strides = [1, 1, 1]} : vector<2x8x256xf32> to vector<1x8x256xf32>
    %88 = vector.shape_cast %87 : vector<1x8x256xf32> to vector<8x256xf32>
    %cst_26 = arith.constant dense<0.000000e+00> : vector<4x256xf32>
    %89 = tpu.matmul %82, %88, %cst_26 {dimension_numbers = #tpu.dot_dimension_numbers<[1], [0], [0], [1], [0, 0, 1, 1], [], []>} : vector<4x8xf32>, vector<8x256xf32>, vector<4x256xf32> -> vector<4x256xf32>
    %90 = arith.addf %80, %89 : vector<4x256xf32>
    %c255_i32 = arith.constant 255 : i32
    %91 = tpu.dynamic_rotate %0 by %c255_i32 dim 2 : vector<2x8x256xf32>, i32 -> vector<2x8x256xf32>
    %c15_i32_27 = arith.constant 15 : i32
    %92 = vector.broadcast %c15_i32_27 : i32 to vector<1x1x256xi32>
    %93 = arith.cmpi slt, %4, %92 : vector<1x1x256xi32>
    %cst_28 = arith.constant 0.000000e+00 : f32
    %94 = vector.shape_cast %93 : vector<1x1x256xi1> to vector<1x1x256xi1>
    %95 = vector.broadcast %94 : vector<1x1x256xi1> to vector<2x8x256xi1>
    %96 = vector.broadcast %cst_28 : f32 to vector<2x8x256xf32>
    %97 = arith.select %95, %91, %96 : vector<2x8x256xi1>, vector<2x8x256xf32>
    %98 = vector.extract_strided_slice %1 {offsets = [5, 0, 0], sizes = [1, 4, 8], strides = [1, 1, 1]} : vector<9x4x8xf32> to vector<1x4x8xf32>
    %99 = vector.shape_cast %98 : vector<1x4x8xf32> to vector<4x8xf32>
    %100 = vector.extract_strided_slice %97 {offsets = [0, 0, 0], sizes = [1, 8, 256], strides = [1, 1, 1]} : vector<2x8x256xf32> to vector<1x8x256xf32>
    %101 = vector.shape_cast %100 : vector<1x8x256xf32> to vector<8x256xf32>
    %cst_29 = arith.constant dense<0.000000e+00> : vector<4x256xf32>
    %102 = tpu.matmul %99, %101, %cst_29 {dimension_numbers = #tpu.dot_dimension_numbers<[1], [0], [0], [1], [0, 0, 1, 1], [], []>} : vector<4x8xf32>, vector<8x256xf32>, vector<4x256xf32> -> vector<4x256xf32>
    %103 = arith.addf %86, %102 : vector<4x256xf32>
    %104 = vector.extract_strided_slice %97 {offsets = [1, 0, 0], sizes = [1, 8, 256], strides = [1, 1, 1]} : vector<2x8x256xf32> to vector<1x8x256xf32>
    %105 = vector.shape_cast %104 : vector<1x8x256xf32> to vector<8x256xf32>
    %cst_30 = arith.constant dense<0.000000e+00> : vector<4x256xf32>
    %106 = tpu.matmul %99, %105, %cst_30 {dimension_numbers = #tpu.dot_dimension_numbers<[1], [0], [0], [1], [0, 0, 1, 1], [], []>} : vector<4x8xf32>, vector<8x256xf32>, vector<4x256xf32> -> vector<4x256xf32>
    %107 = arith.addf %90, %106 : vector<4x256xf32>
    %c241_i32 = arith.constant 241 : i32
    %108 = tpu.dynamic_rotate %0 by %c241_i32 dim 2 : vector<2x8x256xf32>, i32 -> vector<2x8x256xf32>
    %c240_i32 = arith.constant 240 : i32
    %109 = vector.broadcast %c240_i32 : i32 to vector<1x1x256xi32>
    %110 = arith.cmpi slt, %2, %109 : vector<1x1x256xi32>
    %c1_i32_31 = arith.constant 1 : i32
    %111 = vector.broadcast %c1_i32_31 : i32 to vector<1x1x256xi32>
    %112 = arith.cmpi sge, %4, %111 : vector<1x1x256xi32>
    %113 = arith.andi %110, %112 : vector<1x1x256xi1>
    %cst_32 = arith.constant 0.000000e+00 : f32
    %114 = vector.shape_cast %113 : vector<1x1x256xi1> to vector<1x1x256xi1>
    %115 = vector.broadcast %114 : vector<1x1x256xi1> to vector<2x8x256xi1>
    %116 = vector.broadcast %cst_32 : f32 to vector<2x8x256xf32>
    %117 = arith.select %115, %108, %116 : vector<2x8x256xi1>, vector<2x8x256xf32>
    %118 = vector.extract_strided_slice %1 {offsets = [6, 0, 0], sizes = [1, 4, 8], strides = [1, 1, 1]} : vector<9x4x8xf32> to vector<1x4x8xf32>
    %119 = vector.shape_cast %118 : vector<1x4x8xf32> to vector<4x8xf32>
    %120 = vector.extract_strided_slice %117 {offsets = [0, 0, 0], sizes = [1, 8, 256], strides = [1, 1, 1]} : vector<2x8x256xf32> to vector<1x8x256xf32>
    %121 = vector.shape_cast %120 : vector<1x8x256xf32> to vector<8x256xf32>
    %cst_33 = arith.constant dense<0.000000e+00> : vector<4x256xf32>
    %122 = tpu.matmul %119, %121, %cst_33 {dimension_numbers = #tpu.dot_dimension_numbers<[1], [0], [0], [1], [0, 0, 1, 1], [], []>} : vector<4x8xf32>, vector<8x256xf32>, vector<4x256xf32> -> vector<4x256xf32>
    %123 = arith.addf %103, %122 : vector<4x256xf32>
    %124 = vector.extract_strided_slice %117 {offsets = [1, 0, 0], sizes = [1, 8, 256], strides = [1, 1, 1]} : vector<2x8x256xf32> to vector<1x8x256xf32>
    %125 = vector.shape_cast %124 : vector<1x8x256xf32> to vector<8x256xf32>
    %cst_34 = arith.constant dense<0.000000e+00> : vector<4x256xf32>
    %126 = tpu.matmul %119, %125, %cst_34 {dimension_numbers = #tpu.dot_dimension_numbers<[1], [0], [0], [1], [0, 0, 1, 1], [], []>} : vector<4x8xf32>, vector<8x256xf32>, vector<4x256xf32> -> vector<4x256xf32>
    %127 = arith.addf %107, %126 : vector<4x256xf32>
    %c240_i32_35 = arith.constant 240 : i32
    %128 = tpu.dynamic_rotate %0 by %c240_i32_35 dim 2 : vector<2x8x256xf32>, i32 -> vector<2x8x256xf32>
    %c240_i32_36 = arith.constant 240 : i32
    %129 = vector.broadcast %c240_i32_36 : i32 to vector<1x1x256xi32>
    %130 = arith.cmpi slt, %2, %129 : vector<1x1x256xi32>
    %cst_37 = arith.constant 0.000000e+00 : f32
    %131 = vector.shape_cast %130 : vector<1x1x256xi1> to vector<1x1x256xi1>
    %132 = vector.broadcast %131 : vector<1x1x256xi1> to vector<2x8x256xi1>
    %133 = vector.broadcast %cst_37 : f32 to vector<2x8x256xf32>
    %134 = arith.select %132, %128, %133 : vector<2x8x256xi1>, vector<2x8x256xf32>
    %135 = vector.extract_strided_slice %1 {offsets = [7, 0, 0], sizes = [1, 4, 8], strides = [1, 1, 1]} : vector<9x4x8xf32> to vector<1x4x8xf32>
    %136 = vector.shape_cast %135 : vector<1x4x8xf32> to vector<4x8xf32>
    %137 = vector.extract_strided_slice %134 {offsets = [0, 0, 0], sizes = [1, 8, 256], strides = [1, 1, 1]} : vector<2x8x256xf32> to vector<1x8x256xf32>
    %138 = vector.shape_cast %137 : vector<1x8x256xf32> to vector<8x256xf32>
    %cst_38 = arith.constant dense<0.000000e+00> : vector<4x256xf32>
    %139 = tpu.matmul %136, %138, %cst_38 {dimension_numbers = #tpu.dot_dimension_numbers<[1], [0], [0], [1], [0, 0, 1, 1], [], []>} : vector<4x8xf32>, vector<8x256xf32>, vector<4x256xf32> -> vector<4x256xf32>
    %140 = arith.addf %123, %139 : vector<4x256xf32>
    %141 = vector.extract_strided_slice %134 {offsets = [1, 0, 0], sizes = [1, 8, 256], strides = [1, 1, 1]} : vector<2x8x256xf32> to vector<1x8x256xf32>
    %142 = vector.shape_cast %141 : vector<1x8x256xf32> to vector<8x256xf32>
    %cst_39 = arith.constant dense<0.000000e+00> : vector<4x256xf32>
    %143 = tpu.matmul %136, %142, %cst_39 {dimension_numbers = #tpu.dot_dimension_numbers<[1], [0], [0], [1], [0, 0, 1, 1], [], []>} : vector<4x8xf32>, vector<8x256xf32>, vector<4x256xf32> -> vector<4x256xf32>
    %144 = arith.addf %127, %143 : vector<4x256xf32>
    %c239_i32 = arith.constant 239 : i32
    %145 = tpu.dynamic_rotate %0 by %c239_i32 dim 2 : vector<2x8x256xf32>, i32 -> vector<2x8x256xf32>
    %c240_i32_40 = arith.constant 240 : i32
    %146 = vector.broadcast %c240_i32_40 : i32 to vector<1x1x256xi32>
    %147 = arith.cmpi slt, %2, %146 : vector<1x1x256xi32>
    %c15_i32_41 = arith.constant 15 : i32
    %148 = vector.broadcast %c15_i32_41 : i32 to vector<1x1x256xi32>
    %149 = arith.cmpi slt, %4, %148 : vector<1x1x256xi32>
    %150 = arith.andi %147, %149 : vector<1x1x256xi1>
    %cst_42 = arith.constant 0.000000e+00 : f32
    %151 = vector.shape_cast %150 : vector<1x1x256xi1> to vector<1x1x256xi1>
    %152 = vector.broadcast %151 : vector<1x1x256xi1> to vector<2x8x256xi1>
    %153 = vector.broadcast %cst_42 : f32 to vector<2x8x256xf32>
    %154 = arith.select %152, %145, %153 : vector<2x8x256xi1>, vector<2x8x256xf32>
    %155 = vector.extract_strided_slice %1 {offsets = [8, 0, 0], sizes = [1, 4, 8], strides = [1, 1, 1]} : vector<9x4x8xf32> to vector<1x4x8xf32>
    %156 = vector.shape_cast %155 : vector<1x4x8xf32> to vector<4x8xf32>
    %157 = vector.extract_strided_slice %154 {offsets = [0, 0, 0], sizes = [1, 8, 256], strides = [1, 1, 1]} : vector<2x8x256xf32> to vector<1x8x256xf32>
    %158 = vector.shape_cast %157 : vector<1x8x256xf32> to vector<8x256xf32>
    %cst_43 = arith.constant dense<0.000000e+00> : vector<4x256xf32>
    %159 = tpu.matmul %156, %158, %cst_43 {dimension_numbers = #tpu.dot_dimension_numbers<[1], [0], [0], [1], [0, 0, 1, 1], [], []>} : vector<4x8xf32>, vector<8x256xf32>, vector<4x256xf32> -> vector<4x256xf32>
    %160 = arith.addf %140, %159 : vector<4x256xf32>
    %161 = vector.extract_strided_slice %154 {offsets = [1, 0, 0], sizes = [1, 8, 256], strides = [1, 1, 1]} : vector<2x8x256xf32> to vector<1x8x256xf32>
    %162 = vector.shape_cast %161 : vector<1x8x256xf32> to vector<8x256xf32>
    %cst_44 = arith.constant dense<0.000000e+00> : vector<4x256xf32>
    %163 = tpu.matmul %156, %162, %cst_44 {dimension_numbers = #tpu.dot_dimension_numbers<[1], [0], [0], [1], [0, 0, 1, 1], [], []>} : vector<4x8xf32>, vector<8x256xf32>, vector<4x256xf32> -> vector<4x256xf32>
    %164 = arith.addf %144, %163 : vector<4x256xf32>
    %165 = vector.shape_cast %160 : vector<4x256xf32> to vector<1x4x256xf32>
    %166 = vector.shape_cast %164 : vector<4x256xf32> to vector<1x4x256xf32>
    %167 = tpu.concatenate %165, %166 in 0 : vector<1x4x256xf32>, vector<1x4x256xf32> -> vector<2x4x256xf32>
    %168 = vector.extract_strided_slice %167 {offsets = [0, 0, 0], sizes = [1, 4, 256], strides = [1, 1, 1]} : vector<2x4x256xf32> to vector<1x4x256xf32>
    %169 = vector.shape_cast %168 : vector<1x4x256xf32> to vector<4x256xf32>
    %cst_45 = arith.constant dense<0.000000e+00> : vector<4xf32>
    %170 = vector.multi_reduction <add>, %169, %cst_45 [1] : vector<4x256xf32> to vector<4xf32>
    %171 = vector.shape_cast %170 : vector<4xf32> to vector<4x1xf32>
    %172 = vector.extract_strided_slice %167 {offsets = [1, 0, 0], sizes = [1, 4, 256], strides = [1, 1, 1]} : vector<2x4x256xf32> to vector<1x4x256xf32>
    %173 = vector.shape_cast %172 : vector<1x4x256xf32> to vector<4x256xf32>
    %cst_46 = arith.constant dense<0.000000e+00> : vector<4xf32>
    %174 = vector.multi_reduction <add>, %173, %cst_46 [1] : vector<4x256xf32> to vector<4xf32>
    %175 = vector.shape_cast %174 : vector<4xf32> to vector<4x1xf32>
    %176 = arith.addf %171, %175 : vector<4x1xf32>
    %cst_47 = arith.constant 0.001953125 : f32
    %177 = vector.broadcast %cst_47 : f32 to vector<4x1xf32>
    %178 = arith.mulf %176, %177 : vector<4x1xf32>
    %179 = vector.shape_cast %178 : vector<4x1xf32> to vector<1x4x1xf32>
    %180 = vector.broadcast %179 : vector<1x4x1xf32> to vector<2x4x256xf32>
    %181 = arith.subf %167, %180 : vector<2x4x256xf32>
    %182 = vector.extract_strided_slice %181 {offsets = [0, 0, 0], sizes = [1, 4, 256], strides = [1, 1, 1]} : vector<2x4x256xf32> to vector<1x4x256xf32>
    %183 = vector.shape_cast %182 : vector<1x4x256xf32> to vector<4x256xf32>
    %184 = vector.extract_strided_slice %181 {offsets = [0, 0, 0], sizes = [1, 4, 256], strides = [1, 1, 1]} : vector<2x4x256xf32> to vector<1x4x256xf32>
    %185 = vector.shape_cast %184 : vector<1x4x256xf32> to vector<4x256xf32>
    %186 = arith.mulf %183, %185 : vector<4x256xf32>
    %cst_48 = arith.constant dense<0.000000e+00> : vector<4xf32>
    %187 = vector.multi_reduction <add>, %186, %cst_48 [1] : vector<4x256xf32> to vector<4xf32>
    %188 = vector.shape_cast %187 : vector<4xf32> to vector<4x1xf32>
    %189 = vector.extract_strided_slice %181 {offsets = [1, 0, 0], sizes = [1, 4, 256], strides = [1, 1, 1]} : vector<2x4x256xf32> to vector<1x4x256xf32>
    %190 = vector.shape_cast %189 : vector<1x4x256xf32> to vector<4x256xf32>
    %191 = vector.extract_strided_slice %181 {offsets = [1, 0, 0], sizes = [1, 4, 256], strides = [1, 1, 1]} : vector<2x4x256xf32> to vector<1x4x256xf32>
    %192 = vector.shape_cast %191 : vector<1x4x256xf32> to vector<4x256xf32>
    %193 = arith.mulf %190, %192 : vector<4x256xf32>
    %cst_49 = arith.constant dense<0.000000e+00> : vector<4xf32>
    %194 = vector.multi_reduction <add>, %193, %cst_49 [1] : vector<4x256xf32> to vector<4xf32>
    %195 = vector.shape_cast %194 : vector<4xf32> to vector<4x1xf32>
    %196 = arith.addf %188, %195 : vector<4x1xf32>
    %cst_50 = arith.constant 0.001953125 : f32
    %197 = vector.broadcast %cst_50 : f32 to vector<4x1xf32>
    %198 = arith.mulf %196, %197 : vector<4x1xf32>
    %cst_51 = arith.constant 9.99999974E-6 : f32
    %199 = vector.broadcast %cst_51 : f32 to vector<4x1xf32>
    %200 = arith.addf %198, %199 : vector<4x1xf32>
    %201 = math.rsqrt %200 : vector<4x1xf32>
    %202 = vector.shape_cast %201 : vector<4x1xf32> to vector<1x4x1xf32>
    %203 = vector.broadcast %202 : vector<1x4x1xf32> to vector<2x4x256xf32>
    %204 = arith.mulf %181, %203 : vector<2x4x256xf32>
    %c0_52 = arith.constant 0 : index
    %c0_53 = arith.constant 0 : index
    %c0_54 = arith.constant 0 : index
    %205 = vector.load %arg4[%c0_52, %c0_53, %c0_54] : memref<2x4x1xf32, #tpu.memory_space<vmem>>, vector<2x4x1xf32>
    %206 = vector.broadcast %205 : vector<2x4x1xf32> to vector<2x4x256xf32>
    %207 = arith.mulf %204, %206 : vector<2x4x256xf32>
    %c0_55 = arith.constant 0 : index
    %c0_56 = arith.constant 0 : index
    %c0_57 = arith.constant 0 : index
    %208 = vector.load %arg3[%c0_55, %c0_56, %c0_57] : memref<2x4x256xf32, #tpu.memory_space<vmem>>, vector<2x4x256xf32>
    %c0_58 = arith.constant 0 : index
    %c0_59 = arith.constant 0 : index
    %c0_60 = arith.constant 0 : index
    %209 = vector.load %arg5[%c0_58, %c0_59, %c0_60] : memref<2x4x1xf32, #tpu.memory_space<vmem>>, vector<2x4x1xf32>
    %c0_61 = arith.constant 0 : index
    %c0_62 = arith.constant 0 : index
    %210 = vector.load %arg6[%c0_61, %c0_62] : memref<4x256xf32, #tpu.memory_space<vmem>>, vector<4x256xf32>
    %211 = vector.shape_cast %210 : vector<4x256xf32> to vector<1x4x256xf32>
    %c0_63 = arith.constant 0 : index
    %c0_64 = arith.constant 0 : index
    %212 = vector.load %arg7[%c0_63, %c0_64] : memref<4x256xf32, #tpu.memory_space<vmem>>, vector<4x256xf32>
    %213 = vector.shape_cast %212 : vector<4x256xf32> to vector<1x4x256xf32>
    %c0_65 = arith.constant 0 : index
    %c0_66 = arith.constant 0 : index
    %214 = vector.load %arg8[%c0_65, %c0_66] : memref<4x1xf32, #tpu.memory_space<vmem>>, vector<4x1xf32>
    %215 = vector.shape_cast %214 : vector<4x1xf32> to vector<1x4x1xf32>
    %c0_67 = arith.constant 0 : index
    %c0_68 = arith.constant 0 : index
    %216 = vector.load %arg9[%c0_67, %c0_68] : memref<4x1xf32, #tpu.memory_space<vmem>>, vector<4x1xf32>
    %217 = vector.shape_cast %216 : vector<4x1xf32> to vector<1x4x1xf32>
    %c0_69 = arith.constant 0 : index
    %218 = memref.load %arg0[%c0_69] : memref<10xf32, #tpu.memory_space<smem>>
    %c1 = arith.constant 1 : index
    %219 = memref.load %arg0[%c1] : memref<10xf32, #tpu.memory_space<smem>>
    %c2 = arith.constant 2 : index
    %220 = memref.load %arg0[%c2] : memref<10xf32, #tpu.memory_space<smem>>
    %c3 = arith.constant 3 : index
    %221 = memref.load %arg0[%c3] : memref<10xf32, #tpu.memory_space<smem>>
    %c4 = arith.constant 4 : index
    %222 = memref.load %arg0[%c4] : memref<10xf32, #tpu.memory_space<smem>>
    %c5 = arith.constant 5 : index
    %223 = memref.load %arg0[%c5] : memref<10xf32, #tpu.memory_space<smem>>
    %c6 = arith.constant 6 : index
    %224 = memref.load %arg0[%c6] : memref<10xf32, #tpu.memory_space<smem>>
    %c7 = arith.constant 7 : index
    %225 = memref.load %arg0[%c7] : memref<10xf32, #tpu.memory_space<smem>>
    %c8 = arith.constant 8 : index
    %226 = memref.load %arg0[%c8] : memref<10xf32, #tpu.memory_space<smem>>
    %c9 = arith.constant 9 : index
    %227 = memref.load %arg0[%c9] : memref<10xf32, #tpu.memory_space<smem>>
    %228 = vector.broadcast %219 : f32 to vector<2x4x256xf32>
    %229 = arith.mulf %228, %207 : vector<2x4x256xf32>
    %230 = vector.broadcast %220 : f32 to vector<2x4x256xf32>
    %231 = arith.addf %229, %230 : vector<2x4x256xf32>
    %cst_70 = arith.constant 0.000000e+00 : f32
    %232 = vector.broadcast %cst_70 : f32 to vector<2x4x256xf32>
    %233 = arith.subf %232, %231 : vector<2x4x256xf32>
    %234 = math.exp %233 : vector<2x4x256xf32>
    %cst_71 = arith.constant 1.000000e+00 : f32
    %235 = vector.broadcast %cst_71 : f32 to vector<2x4x256xf32>
    %236 = arith.addf %235, %234 : vector<2x4x256xf32>
    %237 = tpu.reciprocal %236 {approx = true} : vector<2x4x256xf32> -> vector<2x4x256xf32>
    %238 = vector.broadcast %224 : f32 to vector<2x4x256xf32>
    %239 = arith.mulf %238, %207 : vector<2x4x256xf32>
    %240 = vector.broadcast %225 : f32 to vector<2x4x256xf32>
    %241 = arith.addf %239, %240 : vector<2x4x256xf32>
    %cst_72 = arith.constant 0.000000e+00 : f32
    %242 = vector.broadcast %cst_72 : f32 to vector<2x4x256xf32>
    %243 = arith.subf %242, %241 : vector<2x4x256xf32>
    %244 = math.exp %243 : vector<2x4x256xf32>
    %cst_73 = arith.constant 1.000000e+00 : f32
    %245 = vector.broadcast %cst_73 : f32 to vector<2x4x256xf32>
    %246 = arith.addf %245, %244 : vector<2x4x256xf32>
    %247 = tpu.reciprocal %246 {approx = true} : vector<2x4x256xf32> -> vector<2x4x256xf32>
    %248 = vector.broadcast %218 : f32 to vector<2x4x256xf32>
    %249 = arith.mulf %248, %237 : vector<2x4x256xf32>
    %250 = vector.broadcast %221 : f32 to vector<2x4x256xf32>
    %251 = arith.mulf %250, %207 : vector<2x4x256xf32>
    %252 = arith.addf %249, %251 : vector<2x4x256xf32>
    %253 = vector.broadcast %222 : f32 to vector<2x4x256xf32>
    %254 = arith.addf %252, %253 : vector<2x4x256xf32>
    %255 = vector.broadcast %223 : f32 to vector<2x4x256xf32>
    %256 = arith.mulf %255, %247 : vector<2x4x256xf32>
    %257 = vector.broadcast %226 : f32 to vector<2x4x256xf32>
    %258 = arith.mulf %257, %207 : vector<2x4x256xf32>
    %259 = arith.addf %256, %258 : vector<2x4x256xf32>
    %260 = vector.broadcast %227 : f32 to vector<2x4x256xf32>
    %261 = arith.addf %259, %260 : vector<2x4x256xf32>
    %262 = vector.broadcast %209 : vector<2x4x1xf32> to vector<2x4x256xf32>
    %263 = arith.mulf %262, %208 : vector<2x4x256xf32>
    %264 = arith.subf %263, %254 : vector<2x4x256xf32>
    %265 = arith.mulf %264, %261 : vector<2x4x256xf32>
    %266 = arith.addf %265, %254 : vector<2x4x256xf32>
    %267 = vector.broadcast %211 : vector<1x4x256xf32> to vector<2x4x256xf32>
    %268 = arith.subf %266, %267 : vector<2x4x256xf32>
    %269 = vector.broadcast %213 : vector<1x4x256xf32> to vector<2x4x256xf32>
    %270 = arith.divf %268, %269 : vector<2x4x256xf32>
    %271 = vector.broadcast %215 : vector<1x4x1xf32> to vector<2x4x256xf32>
    %272 = arith.mulf %271, %270 : vector<2x4x256xf32>
    %273 = vector.broadcast %217 : vector<1x4x1xf32> to vector<2x4x256xf32>
    %274 = arith.addf %272, %273 : vector<2x4x256xf32>
    %c0_74 = arith.constant 0 : index
    %c0_75 = arith.constant 0 : index
    %c0_76 = arith.constant 0 : index
    %275 = vector.load %arg10[%c0_74, %c0_75, %c0_76] : memref<2x4x256xf32, #tpu.memory_space<vmem>>, vector<2x4x256xf32>
    tpu.vector_store %arg10[%c0_74, %c0_75, %c0_76], %266 {strides = array<i32>} : memref<2x4x256xf32, #tpu.memory_space<vmem>>, vector<2x4x256xf32>,
    %c0_77 = arith.constant 0 : index
    %c0_78 = arith.constant 0 : index
    %c0_79 = arith.constant 0 : index
    %276 = vector.load %arg11[%c0_77, %c0_78, %c0_79] : memref<2x4x256xf32, #tpu.memory_space<vmem>>, vector<2x4x256xf32>
    tpu.vector_store %arg11[%c0_77, %c0_78, %c0_79], %274 {strides = array<i32>} : memref<2x4x256xf32, #tpu.memory_space<vmem>>, vector<2x4x256xf32>,
    return
  }
}

</mosaic_0001>

<bundles_post_ra>
// kernel: ladder_forward.9
= control target key start
LH: loop header
LB: loop body
LE: loop exit
PB: predicated region body
PF: predicated region fallthrough
CT: control target
= control target key end

     0   :  { %vm38_vm0 = vcmask 1043456   ;;  %v129_v24 = vmov 839922192   ;;  %v58_v26 = vlaneseq  ;;  %s198_s0 = inlined_call_operand.vmem [shape: f32[2,4,256], index: 0, kind: input, shape index: {}]   ;;  %s199_s2 = inlined_call_operand.vmem [shape: f32[4,256], index: 2, kind: output, shape index: {0}]   ;;  %s200_s3 = inlined_call_operand.vmem [shape: f32[4,256], index: 3, kind: output, shape index: {1}]   ;;  %s201_s1 = inlined_call_operand.vmem [shape: f32[2,4,256], index: 1, kind: input, shape index: {}]   ;;  %s202_s4 = inlined_call_operand.vmem [shape: f32[2,4,256], index: 4, kind: output, shape index: {2}]   ;;  %s203_s5 = inlined_call_operand.vmem [shape: f32[2,4,256], index: 5, kind: output, shape index: {3}]  }
   0x1   :  { %v15_v0 = vld [vmem:[%s198_s0] sm:$0xff]  ;;  %v16_v1 = vld [vmem:[%s198_s0 + $0x8] sm:$0xff]  ;;  %v56_v25 = vunpack.c.l.s4 %v129_v24 }
   0x2   :  { %v36_v2 = vcombine.high %v15_v0, %v15_v0  ;;  %v39_v3 = vsel %vm38_vm0, %v15_v0, 0.0  ;;  %v45_v4 = vcombine.high %v16_v1, %v16_v1  ;;  %v17_v5 = vadd.f32 %v16_v1, %v15_v0  ;;  %v100_v54 = vld [vmem:[%s201_s1] sm:$0xff]  ;;  %v101_v55 = vld [vmem:[%s201_s1 + $0x8] sm:$0xff] }
   0x3   :  { %v47_v7 = vsel %vm38_vm0, %v16_v1, 0.0  ;;  %v57_v28 = vunpack.c.0.s8 %v56_v25  ;;  %v59_v29 = vshrl.u32 %v58_v26, 7 }
   0x4   :  { %v40_v6 = vsel %vm38_vm0, %v36_v2, 0.0  ;;  %v48_v8 = vsel %vm38_vm0, %v45_v4, 0.0  ;;  %v18_v10 = vmul.f32 0.5, %v17_v5 }
   0x5   :  { %v41_v9 = vadd.f32 %v40_v6, %v39_v3  ;;  %v49_v11 = vadd.f32 %v48_v8, %v47_v7  ;;  %v60_v31 = vsub.s32 %v57_v28, %v59_v29 }
   0x6   :  { %v19_v12 = vsub.f32 %v15_v0, %v18_v10  ;;  %v21_v13 = vsub.f32 %v16_v1, %v18_v10  ;;  %33 = vst [vmem:[%s199_s2] sm:$0xff] %v18_v10 }
   0x7   :  { %42 = vadd.xlane.f32.xlu0 %v41_v9 }
   0x8   :  { %v20_v14 = vmul.f32 %v19_v12, %v19_v12  ;;  %v22_v15 = vmul.f32 %v21_v13, %v21_v13 }
   0xa   :  { %v23_v16 = vadd.f32 %v22_v15, %v20_v14 }
   0xb   :  { %50 = vadd.xlane.f32.xlu0 %v49_v11 }
   0xc   :  { %v24_v17 = vmul.f32 0.5, %v23_v16 }
   0xe   :  { %v25_v18 = vadd.f32 1e-05, %v24_v17 }
  0x10   :  { %125 = vrsqrt.f32 %v25_v18  ;;  %vm28_vm1 = vcmp.eq.f32.partialorder %v25_v18, inf  ;;  %v31_v20 = vand.u32 2147483648, %v25_v18  ;;  %vm30_vm2 = vcmp.eq.f32.partialorder %v25_v18, 0.0 }
  0x1a   :  { %v126_v19 = vpop.eup %125 }
  0x1b   :  { %v27_v21 = vmul.f32 %v126_v19, %v25_v18 }
  0x1d   :  { %v29_v22 = vsel %vm28_vm1, %v25_v18, %v27_v21 }
  0x1e   :  { %v32_v23 = vsel %vm30_vm2, %v31_v20, %v29_v22 }
  0x1f   :  { %34 = vst [vmem:[%s200_s3] sm:$0xff] %v32_v23 }
  0x94   :  { %v43_v27 = vpop.xlane.xlu0 %42 }
  0x98   :  { %v51_v30 = vpop.xlane.xlu0 %50 }
  0x99   :  { %v52_v32 = vadd.f32 %v51_v30, %v43_v27 }
  0x9b   :  { %v53_v33 = vmul.f32 0.001953125, %v52_v32 }
  0x9d   :  { %v61_v34 = vrot.slane %v53_v33, %v60_v31 }
  0x9f   :  { %v64_v35 = vsub.f32 %v16_v1, %v61_v34  ;;  %v63_v36 = vsub.f32 %v15_v0, %v61_v34 }
  0xa1   :  { %v65_v37 = vmul.f32 %v63_v36, %v63_v36  ;;  %v74_v38 = vmul.f32 %v64_v35, %v64_v35 }
  0xa3   :  { %v67_v39 = vcombine.high %v65_v37, %v65_v37  ;;  %v76_v40 = vcombine.high %v74_v38, %v74_v38  ;;  %v69_v41 = vsel %vm38_vm0, %v65_v37, 0.0  ;;  %v78_v45 = vsel %vm38_vm0, %v74_v38, 0.0 }
  0xa5   :  { %v70_v42 = vsel %vm38_vm0, %v67_v39, 0.0  ;;  %v79_v44 = vsel %vm38_vm0, %v76_v40, 0.0 }
  0xa6   :  { %v71_v43 = vadd.f32 %v70_v42, %v69_v41  ;;  %v80_v46 = vadd.f32 %v79_v44, %v78_v45 }
  0xa8   :  { %72 = vadd.xlane.f32.xlu1 %v71_v43 }
  0xac   :  { %81 = vadd.xlane.f32.xlu1 %v80_v46 }
 0x135   :  { %v73_v47 = vpop.xlane.xlu1 %72 }
 0x139   :  { %v82_v48 = vpop.xlane.xlu1 %81 }
 0x13a   :  { %v83_v49 = vadd.f32 %v82_v48, %v73_v47 }
 0x13c   :  { %v84_v50 = vmul.f32 0.001953125, %v83_v49 }
 0x13e   :  { %v85_v51 = vadd.f32 1e-05, %v84_v50 }
 0x140   :  { %127 = vrsqrt.f32 %v85_v51 }
 0x14a   :  { %v128_v52 = vpop.eup %127 }
 0x14b   :  { %v94_v53 = vrot.slane %v128_v52, %v60_v31 }
 0x14d   :  { %v96_v56 = vmul.f32 %v94_v53, %v63_v36  ;;  %v97_v57 = vmul.f32 %v94_v53, %v64_v35 }
 0x14f   :  { %98 = vst [vmem:[%s202_s4] sm:$0xff] %v96_v56  ;;  %99 = vst [vmem:[%s202_s4 + $0x8] sm:$0xff] %v97_v57  ;;  %v102_v58 = vadd.f32 %v100_v54, %v96_v56  ;;  %v103_v59 = vadd.f32 %v101_v55, %v97_v57 }
 0x151   :  { %104 = vst [vmem:[%s203_s5] sm:$0xff] %v102_v58  ;;  %105 = vst [vmem:[%s203_s5 + $0x8] sm:$0xff] %v103_v59 }

// kernel: ladder_forward.10
= control target key start
LH: loop header
LB: loop body
LE: loop exit
PB: predicated region body
PF: predicated region fallthrough
CT: control target
= control target key end

     0   :  { %v3596_v2 = vmov 0.0   ;;  %s3597_s21 = smov 16   ;;  %s3599_s22 = smov 15   ;;  %v42_v9 = vlaneseq  ;;  %vm105_vm1 = vcmask 1043456   ;;  %vm101_vm3 = vcmask 31744   ;;  %s4480_s0 = inlined_call_operand.vmem [shape: f32[2,4,256], index: 0, kind: input, shape index: {}]   ;;  %s4481_s1 = inlined_call_operand.vmem [shape: f32[2,4,256], index: 1, kind: input, shape index: {}]   ;;  %s4482_s2 = inlined_call_operand.vmem [shape: f32[9,8,4], index: 2, kind: input, shape index: {}]   ;;  %s4483_s6 = inlined_call_operand.vmem [shape: f32[8,256], index: 6, kind: output, shape index: {0}]   ;;  %s4484_s7 = inlined_call_operand.vmem [shape: f32[8,256], index: 7, kind: output, shape index: {1}]   ;;  %s4485_s3 = inlined_call_operand.vmem [shape: f32[8,1], index: 3, kind: input, shape index: {}]   ;;  %s4486_s4 = inlined_call_operand.vmem [shape: f32[8,1], index: 4, kind: input, shape index: {}]   ;;  %s4487_s5 = inlined_call_operand.vmem [shape: f32[2,8,256], index: 5, kind: input, shape index: {}]   ;;  %s4488_s8 = inlined_call_operand.vmem [shape: f32[2,8,256], index: 8, kind: output, shape index: {2}]   ;;  %s4489_s10 = inlined_call_operand.vmem [shape: f32[2,8,256], index: 10, kind: output, shape index: {4}]   ;;  %s4490_s9 = inlined_call_operand.vmem [shape: f32[2,8,256], index: 9, kind: output, shape index: {3}]   ;;  %s4491_s11 = inlined_call_operand.vmem [shape: f32[2,8,256], index: 11, kind: output, shape index: {5}]  }
   0x1   :  { %v3669_v0 = vld [vmem:[%s4480_s0] sm:$0xff]  ;;  %v3674_v1 = vld [vmem:[%s4480_s0 + $0x8] sm:$0xff]  ;;  %176 = vmatprep.mubr.f32.mxu0 %v3596_v2  ;;  %333 = vmatprep.mubr.f32.mxu1 %v3596_v2  ;;  %s3598_s0 = smov 17   ;;  %s3600_s23 = smov 1   ;;  %v3944_v52 = vld [vmem:[%s4482_s2 + $0x10] sm:$0xff] }
   0x2   :  { %80 = vrot.lane.b32.xlu0 %v3669_v0, %s3597_s21  ;;  %v3682_v3 = vcombine.high %v3669_v0, %v3669_v0  ;;  %v3688_v4 = vcombine.high %v3674_v1, %v3674_v1  ;;  %s3601_s24 = smov 127   ;;  %s3602_s25 = smov 113   ;;  %v3751_v5 = vld [vmem:[%s4481_s1] sm:$0xff]  ;;  %v3758_v6 = vld [vmem:[%s4481_s1 + $0x8] sm:$0xff]  ;;  %v3814_v10 = vand.u32 127, %v42_v9 }
   0x3   :  { %s3603_s26 = smov 112   ;;  %s3604_s27 = smov 111   ;;  %v3764_v7 = vcombine.high %v3751_v5, %v3751_v5  ;;  %v3770_v8 = vcombine.high %v3758_v6, %v3758_v6  ;;  %v3833_v15 = vld [vmem:[%s4482_s2 + $0x8] sm:$0xff]  ;;  %v3896_v36 = vld [vmem:[%s4482_s2] sm:$0xff] }
   0x4   :  { %84 = vrot.lane.b32.xlu1 %v3682_v3, %s3597_s21  ;;  %vm88_vm0 = vcmp.lt.s32.totalorder %v3814_v10, 16  ;;  %vm66_vm2 = vcmp.ge.s32.totalorder %v3814_v10, 16  ;;  %v3836_v16 = vadd.s32 128, %v3814_v10  ;;  %v45_v19 = vand.u32 15, %v3814_v10 }
   0x5   :  { %vm61_vm5 = vcmp.lt.s32.totalorder %v3814_v10, 17  ;;  %vm4495_vm9 = vcmp.lt.s32.totalorder %v3814_v10, 15  ;;  %vm4493_vm12 = vcmp.lt.s32.totalorder %v3814_v10, 1  ;;  %vm4492_vm13 = vcmp.lt.s32.totalorder %v3814_v10, 127 }
   0x6   :  { %82 = vrot.lane.b32.xlu0 %v3674_v1, %s3597_s21  ;;  %v46_v23 = vand.u32 15, %v3836_v16  ;;  %vm3858_vm4 = vcmp.ge.s32.totalorder %v45_v19, 1  ;;  %vm3908_vm8 = vcmp.lt.s32.totalorder %v45_v19, 15  ;;  %vm1138_vm14 = vcmp.lt.s32.totalorder %v3836_v16, 240 }
   0x7   :  { %vm3878_vm7 = vmand %vm66_vm2, %vm3858_vm4  ;;  %vm4494_vm15 = vcmp.lt.s32.totalorder %v3814_v10, 113 }
   0x8   :  { %86 = vrot.lane.b32.xlu1 %v3688_v4, %s3597_s21  ;;  %vm3870_vm6 = vcmp.ge.s32.totalorder %v46_v23, 1  ;;  %vm3920_vm10 = vcmp.lt.s32.totalorder %v46_v23, 15  ;;  %vm3928_vm11 = vmand %vm66_vm2, %vm3908_vm8 }
   0xa   :  { %53 = vrot.lane.b32.xlu0 %v3669_v0, %s3598_s0 }
   0xc   :  { %55 = vrot.lane.b32.xlu1 %v3674_v1, %s3598_s0 }
   0xe   :  { %57 = vrot.lane.b32.xlu0 %v3682_v3, %s3598_s0 }
  0x10   :  { %59 = vrot.lane.b32.xlu1 %v3688_v4, %s3598_s0 }
  0x12   :  { %417 = vrot.lane.b32.xlu0 %v3669_v0, %s3599_s22 }
  0x14   :  { %419 = vrot.lane.b32.xlu1 %v3674_v1, %s3599_s22 }
  0x16   :  { %421 = vrot.lane.b32.xlu0 %v3682_v3, %s3599_s22 }
  0x18   :  { %423 = vrot.lane.b32.xlu1 %v3688_v4, %s3599_s22 }
  0x1a   :  { %603 = vrot.lane.b32.xlu0 %v3669_v0, %s3600_s23 }
  0x1c   :  { %605 = vrot.lane.b32.xlu1 %v3674_v1, %s3600_s23 }
  0x1e   :  { %607 = vrot.lane.b32.xlu0 %v3682_v3, %s3600_s23 }
  0x20   :  { %609 = vrot.lane.b32.xlu1 %v3688_v4, %s3600_s23 }
  0x22   :  { %942 = vrot.lane.b32.xlu0 %v3669_v0, %s3601_s24 }
  0x24   :  { %944 = vrot.lane.b32.xlu1 %v3674_v1, %s3601_s24 }
  0x26   :  { %946 = vrot.lane.b32.xlu0 %v3682_v3, %s3601_s24 }
  0x28   :  { %948 = vrot.lane.b32.xlu1 %v3688_v4, %s3601_s24 }
  0x2a   :  { %1124 = vrot.lane.b32.xlu0 %v3669_v0, %s3602_s25 }
  0x2c   :  { %1126 = vrot.lane.b32.xlu1 %v3674_v1, %s3602_s25 }
  0x2e   :  { %1128 = vrot.lane.b32.xlu0 %v3682_v3, %s3602_s25 }
  0x30   :  { %1130 = vrot.lane.b32.xlu1 %v3688_v4, %s3602_s25 }
  0x32   :  { %1310 = vrot.lane.b32.xlu0 %v3669_v0, %s3603_s26 }
  0x34   :  { %1312 = vrot.lane.b32.xlu1 %v3674_v1, %s3603_s26 }
  0x36   :  { %1314 = vrot.lane.b32.xlu0 %v3682_v3, %s3603_s26 }
  0x38   :  { %1316 = vrot.lane.b32.xlu1 %v3688_v4, %s3603_s26 }
  0x3a   :  { %1492 = vrot.lane.b32.xlu0 %v3669_v0, %s3604_s27 }
  0x3c   :  { %1494 = vrot.lane.b32.xlu1 %v3674_v1, %s3604_s27 }
  0x3e   :  { %1496 = vrot.lane.b32.xlu0 %v3682_v3, %s3604_s27 }
  0x40   :  { %1498 = vrot.lane.b32.xlu1 %v3688_v4, %s3604_s27 }
  0x42   :  { %1796 = vrot.lane.b32.xlu0 %v3751_v5, %s3597_s21 }
  0x44   :  { %1798 = vrot.lane.b32.xlu1 %v3758_v6, %s3597_s21 }
  0x46   :  { %1800 = vrot.lane.b32.xlu0 %v3764_v7, %s3597_s21 }
  0x48   :  { %1802 = vrot.lane.b32.xlu1 %v3770_v8, %s3597_s21 }
  0x4a   :  { %1780 = vrot.lane.b32.xlu0 %v3751_v5, %s3598_s0 }
  0x4c   :  { %1782 = vrot.lane.b32.xlu1 %v3758_v6, %s3598_s0 }
  0x4e   :  { %1784 = vrot.lane.b32.xlu0 %v3764_v7, %s3598_s0 }
  0x50   :  { %1786 = vrot.lane.b32.xlu1 %v3770_v8, %s3598_s0 }
  0x52   :  { %2120 = vrot.lane.b32.xlu0 %v3751_v5, %s3599_s22 }
  0x54   :  { %2122 = vrot.lane.b32.xlu1 %v3758_v6, %s3599_s22 }
  0x56   :  { %2124 = vrot.lane.b32.xlu0 %v3764_v7, %s3599_s22 }
  0x58   :  { %2126 = vrot.lane.b32.xlu1 %v3770_v8, %s3599_s22 }
  0x5a   :  { %2294 = vrot.lane.b32.xlu0 %v3751_v5, %s3600_s23 }
  0x5c   :  { %2296 = vrot.lane.b32.xlu1 %v3758_v6, %s3600_s23 }
  0x5e   :  { %2298 = vrot.lane.b32.xlu0 %v3764_v7, %s3600_s23 }
  0x60   :  { %2300 = vrot.lane.b32.xlu1 %v3770_v8, %s3600_s23 }
  0x62   :  { %2622 = vrot.lane.b32.xlu0 %v3751_v5, %s3601_s24 }
  0x64   :  { %2624 = vrot.lane.b32.xlu1 %v3758_v6, %s3601_s24 }
  0x66   :  { %2626 = vrot.lane.b32.xlu0 %v3764_v7, %s3601_s24 }
  0x68   :  { %2628 = vrot.lane.b32.xlu1 %v3770_v8, %s3601_s24 }
  0x6a   :  { %2796 = vrot.lane.b32.xlu0 %v3751_v5, %s3602_s25 }
  0x6c   :  { %2798 = vrot.lane.b32.xlu1 %v3758_v6, %s3602_s25 }
  0x6e   :  { %2800 = vrot.lane.b32.xlu0 %v3764_v7, %s3602_s25 }
  0x70   :  { %2802 = vrot.lane.b32.xlu1 %v3770_v8, %s3602_s25 }
  0x72   :  { %2970 = vrot.lane.b32.xlu0 %v3751_v5, %s3603_s26 }
  0x74   :  { %v81_v11 = vpop.permute.xlu0 %80  ;;  %2972 = vrot.lane.b32.xlu1 %v3758_v6, %s3603_s26 }
  0x76   :  { %v85_v12 = vpop.permute.xlu1 %84  ;;  %2974 = vrot.lane.b32.xlu0 %v3764_v7, %s3603_s26 }
  0x77   :  { %v91_v13 = vsel %vm88_vm0, %v85_v12, %v81_v11  ;;  %v89_v14 = vsel %vm88_vm0, %v81_v11, %v85_v12  ;;  %v3976_v11 = vld [vmem:[%s4482_s2 + $0x18] sm:$0xff] }
  0x78   :  { %v83_v17 = vpop.permute.xlu0 %82  ;;  %3400 = vmatprep.subr.msk.mxu0 %vm105_vm1, %v89_v14  ;;  %v97_v18 = vsel %vm66_vm2, %v91_v13, 0.0  ;;  %2976 = vrot.lane.b32.xlu1 %v3770_v8, %s3603_s26 }
  0x79   :  { %3401 = vmatpush1.msk.msra.mxu0 %vm105_vm1, %v97_v18 }
  0x7a   :  { %v87_v20 = vpop.permute.xlu1 %86  ;;  %3402 = vmatmul.mubr.msk.f32.vlgmr.msra.gmra.mrb[0].mxu0 %vm101_vm3, %v3833_v15  ;;  %3144 = vrot.lane.b32.xlu0 %v3751_v5, %s3604_s27 }
  0x7b   :  { %v92_v21 = vsel %vm88_vm0, %v87_v20, %v83_v17  ;;  %v90_v22 = vsel %vm88_vm0, %v83_v17, %v87_v20  ;;  %256 = vmatprep.mubr.f32.mxu0 %v3596_v2 }
  0x7c   :  { %v54_v24 = vpop.permute.xlu0 %53  ;;  %3406 = vmatprep.subr.msk.mxu1 %vm105_vm1, %v90_v22  ;;  %v99_v25 = vsel %vm66_vm2, %v92_v21, 0.0  ;;  %3146 = vrot.lane.b32.xlu1 %v3758_v6, %s3604_s27  ;;  %v4014_v22 = vld [vmem:[%s4482_s2 + $0x20] sm:$0xff] }
  0x7d   :  { %3407 = vmatpush1.msk.msra.mxu1 %vm105_vm1, %v99_v25 }
  0x7e   :  { %v56_v27 = vpop.permute.xlu1 %55  ;;  %3408 = vmatmul.mubr.msk.f32.vlgmr.msra.gmra.mrb[0].mxu1 %vm101_vm3, %v3833_v15  ;;  %3148 = vrot.lane.b32.xlu0 %v3764_v7, %s3604_s27 }
  0x7f   :  { %410 = vmatprep.mubr.f32.mxu1 %v3596_v2 }
  0x80   :  { %v58_v30 = vpop.permute.xlu0 %57  ;;  %3150 = vrot.lane.b32.xlu1 %v3770_v8, %s3604_s27 }
  0x81   :  { %v62_v31 = vsel %vm61_vm5, %v54_v24, %v58_v30  ;;  %v64_v32 = vsel %vm61_vm5, %v58_v30, %v54_v24 }
  0x82   :  { %v76_v33 = vsel %vm3878_vm7, %v64_v32, 0.0  ;;  %v77_v34 = vsel %vm3870_vm6, %v62_v31, 0.0  ;;  %v60_v35 = vpop.permute.xlu1 %59 }
  0x83   :  { %v63_v37 = vsel %vm61_vm5, %v56_v27, %v60_v35  ;;  %v65_v38 = vsel %vm61_vm5, %v60_v35, %v56_v27  ;;  %3403 = vmatprep.subr.msk.mxu0 %vm105_vm1, %v77_v34 }
  0x84   :  { %v78_v39 = vsel %vm3878_vm7, %v65_v38, 0.0  ;;  %v79_v40 = vsel %vm3870_vm6, %v63_v37, 0.0  ;;  %v418_v41 = vpop.permute.xlu0 %417  ;;  %3404 = vmatpush1.msk.msra.mxu0 %vm105_vm1, %v76_v33  ;;  %v4055_v38 = vld [vmem:[%s4482_s2 + $0x28] sm:$0xff] }
  0x85   :  { %3405 = vmatmul.mubr.msk.f32.vlgmr.msra.gmra.mrb[0].mxu0 %vm101_vm3, %v3896_v36  ;;  %3409 = vmatprep.subr.msk.mxu1 %vm105_vm1, %v79_v40 }
  0x86   :  { %3410 = vmatpush1.msk.msra.mxu1 %vm105_vm1, %v78_v39  ;;  %v420_v43 = vpop.permute.xlu1 %419  ;;  %515 = vmatprep.mubr.f32.mxu0 %v3596_v2 }
  0x87   :  { %3411 = vmatmul.mubr.msk.f32.vlgmr.msra.gmra.mrb[0].mxu1 %vm101_vm3, %v3896_v36 }
  0x88   :  { %v422_v46 = vpop.permute.xlu0 %421  ;;  %594 = vmatprep.mubr.f32.mxu1 %v3596_v2 }
  0x89   :  { %v426_v47 = vsel %vm4495_vm9, %v418_v41, %v422_v46  ;;  %v428_v48 = vsel %vm4495_vm9, %v422_v46, %v418_v41 }
  0x8a   :  { %v438_v49 = vsel %vm3928_vm11, %v428_v48, 0.0  ;;  %v439_v50 = vsel %vm3920_vm10, %v426_v47, 0.0  ;;  %v424_v51 = vpop.permute.xlu1 %423 }
  0x8b   :  { %v427_v53 = vsel %vm4495_vm9, %v420_v43, %v424_v51  ;;  %v429_v54 = vsel %vm4495_vm9, %v424_v51, %v420_v43  ;;  %3412 = vmatprep.subr.msk.mxu0 %vm105_vm1, %v439_v50  ;;  %vm4108_vm9 = vmand %vm1138_vm14, %vm3920_vm10 }
  0x8c   :  { %v440_v55 = vsel %vm3928_vm11, %v429_v54, 0.0  ;;  %v441_v56 = vsel %vm3920_vm10, %v427_v53, 0.0  ;;  %v604_v57 = vpop.permute.xlu0 %603  ;;  %3413 = vmatpush1.msk.msra.mxu0 %vm105_vm1, %v438_v49  ;;  %v4085_v54 = vld [vmem:[%s4482_s2 + $0x30] sm:$0xff] }
  0x8d   :  { %3414 = vmatmul.mubr.msk.f32.vlgmr.msra.gmra.mrb[0].mxu0 %vm101_vm3, %v3944_v52  ;;  %3415 = vmatprep.subr.msk.mxu1 %vm105_vm1, %v441_v56 }
  0x8e   :  { %3416 = vmatpush1.msk.msra.mxu1 %vm105_vm1, %v440_v55  ;;  %v606_v58 = vpop.permute.xlu1 %605  ;;  %697 = vmatprep.mubr.f32.mxu0 %v3596_v2 }
  0x8f   :  { %3417 = vmatmul.mubr.msk.f32.vlgmr.msra.gmra.mrb[0].mxu1 %vm101_vm3, %v3944_v52 }
  0x90   :  { %v608_v59 = vpop.permute.xlu0 %607  ;;  %776 = vmatprep.mubr.f32.mxu1 %v3596_v2 }
  0x91   :  { %v612_v60 = vsel %vm4493_vm12, %v604_v57, %v608_v59  ;;  %v614_v61 = vsel %vm4493_vm12, %v608_v59, %v604_v57 }
  0x92   :  { %v620_v62 = vsel %vm3858_vm4, %v614_v61, 0.0  ;;  %v621_v63 = vsel %vm3870_vm6, %v612_v60, 0.0  ;;  %v610_v9 = vpop.permute.xlu1 %609 }
  0x93   :  { %v613_v12 = vsel %vm4493_vm12, %v606_v58, %v610_v9  ;;  %v615_v13 = vsel %vm4493_vm12, %v610_v9, %v606_v58  ;;  %3418 = vmatprep.subr.msk.mxu0 %vm105_vm1, %v621_v63  ;;  %vm1318_vm12 = vcmp.lt.s32.totalorder %v3814_v10, 112 }
  0x94   :  { %v622_v14 = vsel %vm3858_vm4, %v615_v13, 0.0  ;;  %v623_v17 = vsel %vm3870_vm6, %v613_v12, 0.0  ;;  %v943_v18 = vpop.permute.xlu0 %942  ;;  %3419 = vmatpush1.msk.msra.mxu0 %vm105_vm1, %v620_v62 }
  0x95   :  { %3420 = vmatmul.mubr.msk.f32.vlgmr.msra.gmra.mrb[0].mxu0 %vm101_vm3, %v3976_v11  ;;  %3421 = vmatprep.subr.msk.mxu1 %vm105_vm1, %v623_v17 }
  0x96   :  { %3422 = vmatpush1.msk.msra.mxu1 %vm105_vm1, %v622_v14  ;;  %3424 = vmatprep.subr.msk.mxu0 %vm105_vm1, %v3682_v3  ;;  %v945_v19 = vpop.permute.xlu1 %944  ;;  %v4123_v14 = vld [vmem:[%s4482_s2 + $0x38] sm:$0xff] }
  0x97   :  { %3423 = vmatmul.mubr.msk.f32.vlgmr.msra.gmra.mrb[0].mxu1 %vm101_vm3, %v3976_v11  ;;  %3425 = vmatpush1.msk.msra.mxu0 %vm105_vm1, %v3669_v0 }
  0x98   :  { %v947_v20 = vpop.permute.xlu0 %946  ;;  %856 = vmatprep.mubr.f32.mxu0 %v3596_v2  ;;  %3427 = vmatprep.subr.msk.mxu1 %vm105_vm1, %v3688_v4 }
  0x99   :  { %v953_v21 = vsel %vm4492_vm13, %v947_v20, %v943_v18  ;;  %3428 = vmatpush1.msk.msra.mxu1 %vm105_vm1, %v3674_v1  ;;  %933 = vmatprep.mubr.f32.mxu1 %v3596_v2  ;;  %v951_v3 = vsel %vm4492_vm13, %v943_v18, %v947_v20 }
  0x9a   :  { %v960_v0 = vsel %vm3920_vm10, %v953_v21, 0.0  ;;  %v949_v4 = vpop.permute.xlu1 %948  ;;  %v959_v27 = vsel %vm3908_vm8, %v951_v3, 0.0 }
  0x9b   :  { %3430 = vmatprep.subr.msk.mxu0 %vm105_vm1, %v960_v0  ;;  %v952_v23 = vsel %vm4492_vm13, %v945_v19, %v949_v4  ;;  %v954_v1 = vsel %vm4492_vm13, %v949_v4, %v945_v19  ;;  %vm4040_vm13 = vmand %vm1138_vm14, %vm3870_vm6 }
  0x9c   :  { %v1125_v24 = vpop.permute.xlu0 %1124  ;;  %v962_v25 = vsel %vm3920_vm10, %v954_v1, 0.0  ;;  %v961_v30 = vsel %vm3908_vm8, %v952_v23, 0.0 }
  0x9d   :  { %3426 = vmatmul.mubr.msk.f32.vlgmr.msra.gmra.mrb[0].mxu0 %vm101_vm3, %v4014_v22  ;;  %3433 = vmatprep.subr.msk.mxu1 %vm105_vm1, %v962_v25  ;;  %v4153_v25 = vld [vmem:[%s4482_s2 + $0x40] sm:$0xff] }
  0x9e   :  { %3431 = vmatpush1.msk.msra.mxu0 %vm105_vm1, %v959_v27  ;;  %v1127_v31 = vpop.permute.xlu1 %1126  ;;  %1036 = vmatprep.mubr.f32.mxu0 %v3596_v2 }
  0x9f   :  { %3429 = vmatmul.mubr.msk.f32.vlgmr.msra.gmra.mrb[0].mxu1 %vm101_vm3, %v4014_v22 }
  0xa0   :  { %v1129_v33 = vpop.permute.xlu0 %1128  ;;  %3434 = vmatpush1.msk.msra.mxu1 %vm105_vm1, %v961_v30  ;;  %1115 = vmatprep.mubr.f32.mxu1 %v3596_v2 }
  0xa1   :  { %v1135_v34 = vsel %vm4494_vm15, %v1129_v33, %v1125_v24  ;;  %v1133_v35 = vsel %vm4494_vm15, %v1125_v24, %v1129_v33 }
  0xa2   :  { %v1146_v37 = vsel %vm4040_vm13, %v1135_v34, 0.0  ;;  %v1131_v39 = vpop.permute.xlu1 %1130  ;;  %v1145_v47 = vsel %vm3858_vm4, %v1133_v35, 0.0 }
  0xa3   :  { %3436 = vmatprep.subr.msk.mxu0 %vm105_vm1, %v1146_v37  ;;  %v1134_v40 = vsel %vm4494_vm15, %v1127_v31, %v1131_v39  ;;  %v1136_v41 = vsel %vm4494_vm15, %v1131_v39, %v1127_v31  ;;  %vm1500_vm15 = vcmp.lt.s32.totalorder %v3814_v10, 111 }
  0xa4   :  { %v1311_v43 = vpop.permute.xlu0 %1310  ;;  %v1148_v46 = vsel %vm4040_vm13, %v1136_v41, 0.0  ;;  %v1147_v48 = vsel %vm3858_vm4, %v1134_v40, 0.0 }
  0xa5   :  { %3432 = vmatmul.mubr.msk.f32.vlgmr.msra.gmra.mrb[0].mxu0 %vm101_vm3, %v4055_v38  ;;  %3439 = vmatprep.subr.msk.mxu1 %vm105_vm1, %v1148_v46 }
  0xa6   :  { %3437 = vmatpush1.msk.msra.mxu0 %vm105_vm1, %v1145_v47  ;;  %v1313_v49 = vpop.permute.xlu1 %1312  ;;  %1222 = vmatprep.mubr.f32.mxu0 %v3596_v2 }
  0xa7   :  { %3435 = vmatmul.mubr.msk.f32.vlgmr.msra.gmra.mrb[0].mxu1 %vm101_vm3, %v4055_v38 }
  0xa8   :  { %v1315_v50 = vpop.permute.xlu0 %1314  ;;  %3440 = vmatpush1.msk.msra.mxu1 %vm105_vm1, %v1147_v48  ;;  %1301 = vmatprep.mubr.f32.mxu1 %v3596_v2 }
  0xa9   :  { %v1321_v51 = vsel %vm1318_vm12, %v1315_v50, %v1311_v43  ;;  %v1319_v59 = vsel %vm1318_vm12, %v1311_v43, %v1315_v50 }
  0xaa   :  { %v1328_v53 = vsel %vm1138_vm14, %v1321_v51, 0.0  ;;  %v1317_v55 = vpop.permute.xlu1 %1316 }
  0xab   :  { %3442 = vmatprep.subr.msk.mxu0 %vm105_vm1, %v1328_v53  ;;  %v1322_v56 = vsel %vm1318_vm12, %v1317_v55, %v1313_v49  ;;  %v1320_v60 = vsel %vm1318_vm12, %v1313_v49, %v1317_v55 }
  0xac   :  { %v1493_v57 = vpop.permute.xlu0 %1492  ;;  %v1330_v58 = vsel %vm1138_vm14, %v1322_v56, 0.0 }
  0xad   :  { %3438 = vmatmul.mubr.msk.f32.vlgmr.msra.gmra.mrb[0].mxu0 %vm101_vm3, %v4085_v54  ;;  %3445 = vmatprep.subr.msk.mxu1 %vm105_vm1, %v1330_v58 }
  0xae   :  { %3443 = vmatpush1.msk.msra.mxu0 %vm105_vm1, %v1319_v59  ;;  %v1495_v61 = vpop.permute.xlu1 %1494  ;;  %1404 = vmatprep.mubr.f32.mxu0 %v3596_v2 }
  0xaf   :  { %3441 = vmatmul.mubr.msk.f32.vlgmr.msra.gmra.mrb[0].mxu1 %vm101_vm3, %v4085_v54 }
  0xb0   :  { %v1497_v63 = vpop.permute.xlu0 %1496  ;;  %3446 = vmatpush1.msk.msra.mxu1 %vm105_vm1, %v1320_v60  ;;  %1483 = vmatprep.mubr.f32.mxu1 %v3596_v2 }
  0xb1   :  { %v1503_v9 = vsel %vm1500_vm15, %v1497_v63, %v1493_v57  ;;  %v1501_v12 = vsel %vm1500_vm15, %v1493_v57, %v1497_v63 }
  0xb2   :  { %v1512_v13 = vsel %vm4108_vm9, %v1503_v9, 0.0  ;;  %v1499_v17 = vpop.permute.xlu1 %1498  ;;  %v1511_v3 = vsel %vm3908_vm8, %v1501_v12, 0.0 }
  0xb3   :  { %3448 = vmatprep.subr.msk.mxu0 %vm105_vm1, %v1512_v13  ;;  %v1502_v18 = vsel %vm1500_vm15, %v1495_v61, %v1499_v17  ;;  %v1504_v19 = vsel %vm1500_vm15, %v1499_v17, %v1495_v61 }
  0xb4   :  { %v1797_v20 = vpop.permute.xlu0 %1796  ;;  %v1514_v21 = vsel %vm4108_vm9, %v1504_v19, 0.0  ;;  %v1513_v0 = vsel %vm3908_vm8, %v1502_v18, 0.0 }
  0xb5   :  { %3444 = vmatmul.mubr.msk.f32.vlgmr.msra.gmra.mrb[0].mxu0 %vm101_vm3, %v4123_v14  ;;  %3451 = vmatprep.subr.msk.mxu1 %vm105_vm1, %v1514_v21 }
  0xb6   :  { %3449 = vmatpush1.msk.msra.mxu0 %vm105_vm1, %v1511_v3  ;;  %v1799_v4 = vpop.permute.xlu1 %1798  ;;  %1588 = vmatprep.mubr.f32.mxu0 %v3596_v2 }
  0xb7   :  { %3447 = vmatmul.mubr.msk.f32.vlgmr.msra.gmra.mrb[0].mxu1 %vm101_vm3, %v4123_v14 }
  0xb8   :  { %v1801_v23 = vpop.permute.xlu0 %1800  ;;  %3452 = vmatpush1.msk.msra.mxu1 %vm105_vm1, %v1513_v0  ;;  %1667 = vmatprep.mubr.f32.mxu1 %v3596_v2 }
  0xb9   :  { %v1804_v1 = vsel %vm88_vm0, %v1797_v20, %v1801_v23  ;;  %v1806_v24 = vsel %vm88_vm0, %v1801_v23, %v1797_v20 }
  0xba   :  { %3454 = vmatprep.subr.msk.mxu0 %vm105_vm1, %v1804_v1  ;;  %v1803_v27 = vpop.permute.xlu1 %1802  ;;  %v1808_v34 = vsel %vm66_vm2, %v1806_v24, 0.0 }
  0xbb   :  { %v1805_v30 = vsel %vm88_vm0, %v1799_v4, %v1803_v27  ;;  %v1807_v31 = vsel %vm88_vm0, %v1803_v27, %v1799_v4  ;;  %vm4512_vm0 = vcmp.lt.s32.totalorder %v3814_v10, 15 }
  0xbc   :  { %v1781_v33 = vpop.permute.xlu0 %1780  ;;  %3460 = vmatprep.subr.msk.mxu1 %vm105_vm1, %v1805_v30  ;;  %v1810_v35 = vsel %vm66_vm2, %v1807_v31, 0.0  ;;  %vm4513_vm2 = vmmov %vm4512_vm0 }
  0xbd   :  { %3450 = vmatmul.mubr.msk.f32.vlgmr.msra.gmra.mrb[0].mxu0 %vm101_vm3, %v4153_v25 }
  0xbe   :  { %3455 = vmatpush1.msk.msra.mxu0 %vm105_vm1, %v1808_v34  ;;  %1882 = vmatprep.mubr.f32.mxu0 %v3596_v2  ;;  %v1783_v37 = vpop.permute.xlu1 %1782 }
  0xbf   :  { %3453 = vmatmul.mubr.msk.f32.vlgmr.msra.gmra.mrb[0].mxu1 %vm101_vm3, %v4153_v25 }
  0xc0   :  { %v1785_v39 = vpop.permute.xlu0 %1784  ;;  %3461 = vmatpush1.msk.msra.mxu1 %vm105_vm1, %v1810_v35  ;;  %2036 = vmatprep.mubr.f32.mxu1 %v3596_v2 }
  0xc1   :  { %v1788_v40 = vsel %vm61_vm5, %v1781_v33, %v1785_v39  ;;  %v1790_v41 = vsel %vm61_vm5, %v1785_v39, %v1781_v33  ;;  %3456 = vmatmul.mubr.msk.f32.vlgmr.msra.gmra.mrb[2].mxu0 %vm101_vm3, %v3833_v15 }
  0xc2   :  { %v1792_v43 = vsel %vm3878_vm7, %v1790_v41, 0.0  ;;  %v1793_v46 = vsel %vm3870_vm6, %v1788_v40, 0.0  ;;  %v1787_v47 = vpop.permute.xlu1 %1786  ;;  %1959 = vmatprep.mubr.f32.mxu0 %v3596_v2 }
  0xc3   :  { %3457 = vmatprep.subr.msk.mxu0 %vm105_vm1, %v1793_v46  ;;  %3462 = vmatmul.mubr.msk.f32.vlgmr.msra.gmra.mrb[2].mxu1 %vm101_vm3, %v3833_v15  ;;  %v1789_v48 = vsel %vm61_vm5, %v1783_v37, %v1787_v47  ;;  %v1791_v49 = vsel %vm61_vm5, %v1787_v47, %v1783_v37  ;;  %vm4514_vm5 = vmmov %vm4512_vm0 }
  0xc4   :  { %v2121_v50 = vpop.permute.xlu0 %2120  ;;  %3458 = vmatpush1.msk.msra.mxu0 %vm105_vm1, %v1792_v43  ;;  %v1794_v51 = vsel %vm3878_vm7, %v1791_v49, 0.0  ;;  %v1795_v53 = vsel %vm3870_vm6, %v1789_v48, 0.0  ;;  %2113 = vmatprep.mubr.f32.mxu1 %v3596_v2  ;;  %vm4515_vm7 = vmmov %vm4512_vm0 }
  0xc5   :  { %3463 = vmatprep.subr.msk.mxu1 %vm105_vm1, %v1795_v53 }
  0xc6   :  { %3464 = vmatpush1.msk.msra.mxu1 %vm105_vm1, %v1794_v51  ;;  %v2123_v15 = vpop.permute.xlu1 %2122 }
  0xc8   :  { %v2125_v55 = vpop.permute.xlu0 %2124 }
  0xc9   :  { %v2128_v56 = vsel %vm4512_vm0, %v2121_v50, %v2125_v55  ;;  %v2130_v57 = vsel %vm4513_vm2, %v2125_v55, %v2121_v50  ;;  %3459 = vmatmul.mubr.msk.f32.vlgmr.msra.gmra.mrb[2].mxu0 %vm101_vm3, %v3896_v36  ;;  %vm4516_vm0 = vcmp.lt.s32.totalorder %v3814_v10, 1 }
  0xca   :  { %v2132_v29 = vsel %vm3928_vm11, %v2130_v57, 0.0  ;;  %v2133_v58 = vsel %vm3920_vm10, %v2128_v56, 0.0  ;;  %v2127_v59 = vpop.permute.xlu1 %2126  ;;  %2206 = vmatprep.mubr.f32.mxu0 %v3596_v2  ;;  %vm4517_vm2 = vmmov %vm4516_vm0 }
  0xcb   :  { %3465 = vmatmul.mubr.msk.f32.vlgmr.msra.gmra.mrb[2].mxu1 %vm101_vm3, %v3896_v36  ;;  %3466 = vmatprep.subr.msk.mxu0 %vm105_vm1, %v2133_v58  ;;  %v2129_v60 = vsel %vm4514_vm5, %v2123_v15, %v2127_v59  ;;  %v2131_v61 = vsel %vm4515_vm7, %v2127_v59, %v2123_v15  ;;  %vm4519_vm5 = vmmov %vm4516_vm0 }
  0xcc   :  { %v2295_v63 = vpop.permute.xlu0 %2294  ;;  %3467 = vmatpush1.msk.msra.mxu0 %vm105_vm1, %v2132_v29  ;;  %v2134_v9 = vsel %vm3928_vm11, %v2131_v61, 0.0  ;;  %v2135_v12 = vsel %vm3920_vm10, %v2129_v60, 0.0  ;;  %2285 = vmatprep.mubr.f32.mxu1 %v3596_v2  ;;  %vm4518_vm11 = vmmov %vm4516_vm0 }
  0xcd   :  { %3469 = vmatprep.subr.msk.mxu1 %vm105_vm1, %v2135_v12 }
  0xce   :  { %3470 = vmatpush1.msk.msra.mxu1 %vm105_vm1, %v2134_v9  ;;  %v2297_v36 = vpop.permute.xlu1 %2296 }
  0xd0   :  { %v2299_v13 = vpop.permute.xlu0 %2298 }
  0xd1   :  { %v2302_v17 = vsel %vm4516_vm0, %v2295_v63, %v2299_v13  ;;  %v2304_v18 = vsel %vm4517_vm2, %v2299_v13, %v2295_v63  ;;  %3468 = vmatmul.mubr.msk.f32.vlgmr.msra.gmra.mrb[2].mxu0 %vm101_vm3, %v3944_v52 }
  0xd2   :  { %v2306_v45 = vsel %vm3858_vm4, %v2304_v18, 0.0  ;;  %v2307_v19 = vsel %vm3870_vm6, %v2302_v17, 0.0  ;;  %v2301_v20 = vpop.permute.xlu1 %2300  ;;  %2380 = vmatprep.mubr.f32.mxu0 %v3596_v2 }
  0xd3   :  { %3471 = vmatmul.mubr.msk.f32.vlgmr.msra.gmra.mrb[2].mxu1 %vm101_vm3, %v3944_v52  ;;  %3472 = vmatprep.subr.msk.mxu0 %vm105_vm1, %v2307_v19  ;;  %v2303_v21 = vsel %vm4518_vm11, %v2297_v36, %v2301_v20  ;;  %v2305_v3 = vsel %vm4519_vm5, %v2301_v20, %v2297_v36  ;;  %vm4524_vm11 = vcmp.lt.s32.totalorder %v3814_v10, 113 }
  0xd4   :  { %3473 = vmatpush1.msk.msra.mxu0 %vm105_vm1, %v2306_v45  ;;  %v2308_v0 = vsel %vm3858_vm4, %v2305_v3, 0.0  ;;  %v2309_v4 = vsel %vm3870_vm6, %v2303_v21, 0.0  ;;  %v2623_v23 = vpop.permute.xlu0 %2622  ;;  %2459 = vmatprep.mubr.f32.mxu1 %v3596_v2  ;;  %vm4520_vm6 = vcmp.lt.s32.totalorder %v3814_v10, 127 }
  0xd5   :  { %3475 = vmatprep.subr.msk.mxu1 %vm105_vm1, %v2309_v4  ;;  %3478 = vmatprep.subr.msk.mxu0 %vm105_vm1, %v3764_v7  ;;  %vm4521_vm7 = vmmov %vm4520_vm6 }
  0xd6   :  { %3476 = vmatpush1.msk.msra.mxu1 %vm105_vm1, %v2308_v0  ;;  %v2625_v52 = vpop.permute.xlu1 %2624  ;;  %vm4522_vm0 = vmmov %vm4520_vm6 }
  0xd7   :  { %3481 = vmatprep.subr.msk.mxu1 %vm105_vm1, %v3770_v8  ;;  %vm4523_vm2 = vmmov %vm4522_vm0 }
  0xd8   :  { %v2627_v1 = vpop.permute.xlu0 %2626 }
  0xd9   :  { %3474 = vmatmul.mubr.msk.f32.vlgmr.msra.gmra.mrb[2].mxu0 %vm101_vm3, %v3976_v11  ;;  %v2632_v28 = vsel %vm4520_vm6, %v2627_v1, %v2623_v23  ;;  %v2630_v27 = vsel %vm4522_vm0, %v2623_v23, %v2627_v1 }
  0xda   :  { %v2635_v24 = vsel %vm3920_vm10, %v2632_v28, 0.0  ;;  %3479 = vmatpush1.msk.msra.mxu0 %vm105_vm1, %v3751_v5  ;;  %2536 = vmatprep.mubr.f32.mxu0 %v3596_v2  ;;  %v2629_v7 = vpop.permute.xlu1 %2628  ;;  %v2634_v33 = vsel %vm3908_vm8, %v2630_v27, 0.0 }
  0xdb   :  { %3477 = vmatmul.mubr.msk.f32.vlgmr.msra.gmra.mrb[2].mxu1 %vm101_vm3, %v3976_v11  ;;  %3484 = vmatprep.subr.msk.mxu0 %vm105_vm1, %v2635_v24  ;;  %v2633_v8 = vsel %vm4521_vm7, %v2629_v7, %v2625_v52  ;;  %v2631_v11 = vsel %vm4523_vm2, %v2625_v52, %v2629_v7 }
  0xdc   :  { %v2797_v30 = vpop.permute.xlu0 %2796  ;;  %3482 = vmatpush1.msk.msra.mxu1 %vm105_vm1, %v3758_v6  ;;  %2613 = vmatprep.mubr.f32.mxu1 %v3596_v2  ;;  %v2637_v5 = vsel %vm3920_vm10, %v2633_v8, 0.0  ;;  %v2636_v44 = vsel %vm3908_vm8, %v2631_v11, 0.0  ;;  %vm4525_vm10 = vmmov %vm4524_vm11 }
  0xdd   :  { %3487 = vmatprep.subr.msk.mxu1 %vm105_vm1, %v2637_v5  ;;  %vm4526_vm5 = vmmov %vm4525_vm10 }
  0xde   :  { %v2799_v31 = vpop.permute.xlu1 %2798  ;;  %vm4527_vm6 = vmmov %vm4526_vm5 }
  0xe0   :  { %v2801_v34 = vpop.permute.xlu0 %2800 }
  0xe1   :  { %3480 = vmatmul.mubr.msk.f32.vlgmr.msra.gmra.mrb[2].mxu0 %vm101_vm3, %v4014_v22  ;;  %v2806_v6 = vsel %vm4524_vm11, %v2801_v34, %v2797_v30  ;;  %v2804_v40 = vsel %vm4526_vm5, %v2797_v30, %v2801_v34 }
  0xe2   :  { %3485 = vmatpush1.msk.msra.mxu0 %vm105_vm1, %v2634_v33  ;;  %v2809_v35 = vsel %vm4040_vm13, %v2806_v6, 0.0  ;;  %2708 = vmatprep.mubr.f32.mxu0 %v3596_v2  ;;  %v2803_v37 = vpop.permute.xlu1 %2802  ;;  %v2808_v47 = vsel %vm3858_vm4, %v2804_v40, 0.0 }
  0xe3   :  { %3483 = vmatmul.mubr.msk.f32.vlgmr.msra.gmra.mrb[2].mxu1 %vm101_vm3, %v4014_v22  ;;  %3490 = vmatprep.subr.msk.mxu0 %vm105_vm1, %v2809_v35  ;;  %v2807_v39 = vsel %vm4525_vm10, %v2803_v37, %v2799_v31  ;;  %v2805_v22 = vsel %vm4527_vm6, %v2799_v31, %v2803_v37 }
  0xe4   :  { %v2971_v41 = vpop.permute.xlu0 %2970  ;;  %3488 = vmatpush1.msk.msra.mxu1 %vm105_vm1, %v2636_v44  ;;  %2787 = vmatprep.mubr.f32.mxu1 %v3596_v2  ;;  %v2811_v43 = vsel %vm4040_vm13, %v2807_v39, 0.0  ;;  %v2810_v32 = vsel %vm3858_vm4, %v2805_v22, 0.0  ;;  %v3605_v22 = vmov 0  }
  0xe5   :  { %3493 = vmatprep.subr.msk.mxu1 %vm105_vm1, %v2811_v43  ;;  %3582 = vset.pattern.permute.xlu1 %v3605_v22 }
  0xe6   :  { %v2973_v46 = vpop.permute.xlu1 %2972  ;;  %3583 = vset.pattern.permute.xlu0 %v3605_v22 }
  0xe8   :  { %v2975_v48 = vpop.permute.xlu0 %2974 }
  0xe9   :  { %3486 = vmatmul.mubr.msk.f32.vlgmr.msra.gmra.mrb[2].mxu0 %vm101_vm3, %v4055_v38  ;;  %v2980_v49 = vsel %vm1318_vm12, %v2975_v48, %v2971_v41  ;;  %v2978_v56 = vsel %vm1318_vm12, %v2971_v41, %v2975_v48 }
  0xea   :  { %3491 = vmatpush1.msk.msra.mxu0 %vm105_vm1, %v2808_v47  ;;  %v2983_v50 = vsel %vm1138_vm14, %v2980_v49, 0.0  ;;  %2882 = vmatprep.mubr.f32.mxu0 %v3596_v2  ;;  %v2977_v51 = vpop.permute.xlu1 %2976 }
  0xeb   :  { %3489 = vmatmul.mubr.msk.f32.vlgmr.msra.gmra.mrb[2].mxu1 %vm101_vm3, %v4055_v38  ;;  %3496 = vmatprep.subr.msk.mxu0 %vm105_vm1, %v2983_v50  ;;  %v2981_v53 = vsel %vm1318_vm12, %v2977_v51, %v2973_v46  ;;  %v2979_v57 = vsel %vm1318_vm12, %v2973_v46, %v2977_v51 }
  0xec   :  { %3494 = vmatpush1.msk.msra.mxu1 %vm105_vm1, %v2810_v32  ;;  %2961 = vmatprep.mubr.f32.mxu1 %v3596_v2  ;;  %v3145_v26 = vpop.permute.xlu0 %3144  ;;  %v2985_v15 = vsel %vm1138_vm14, %v2981_v53, 0.0 }
  0xed   :  { %3499 = vmatprep.subr.msk.mxu1 %vm105_vm1, %v2985_v15 }
  0xee   :  { %v3147_v55 = vpop.permute.xlu1 %3146 }
  0xf0   :  { %v3149_v38 = vpop.permute.xlu0 %3148 }
  0xf1   :  { %3492 = vmatmul.mubr.msk.f32.vlgmr.msra.gmra.mrb[2].mxu0 %vm101_vm3, %v4085_v54  ;;  %v3154_v29 = vsel %vm1500_vm15, %v3149_v38, %v3145_v26  ;;  %v3152_v60 = vsel %vm1500_vm15, %v3145_v26, %v3149_v38 }
  0xf2   :  { %3497 = vmatpush1.msk.msra.mxu0 %vm105_vm1, %v2978_v56  ;;  %v3157_v16 = vsel %vm4108_vm9, %v3154_v29, 0.0  ;;  %3056 = vmatprep.mubr.f32.mxu0 %v3596_v2  ;;  %v3151_v58 = vpop.permute.xlu1 %3150  ;;  %v3156_v63 = vsel %vm3908_vm8, %v3152_v60, 0.0 }
  0xf3   :  { %3495 = vmatmul.mubr.msk.f32.vlgmr.msra.gmra.mrb[2].mxu1 %vm101_vm3, %v4085_v54  ;;  %3502 = vmatprep.subr.msk.mxu0 %vm105_vm1, %v3157_v16  ;;  %v3155_v59 = vsel %vm1500_vm15, %v3151_v58, %v3147_v55  ;;  %v3153_v54 = vsel %vm1500_vm15, %v3147_v55, %v3151_v58 }
  0xf4   :  { %3500 = vmatpush1.msk.msra.mxu1 %vm105_vm1, %v2979_v57  ;;  %3135 = vmatprep.mubr.f32.mxu1 %v3596_v2  ;;  %v3159_v61 = vsel %vm4108_vm9, %v3155_v59, 0.0  ;;  %v3158_v9 = vsel %vm3908_vm8, %v3153_v54, 0.0 }
  0xf5   :  { %3505 = vmatprep.subr.msk.mxu1 %vm105_vm1, %v3159_v61 }
  0xf9   :  { %3498 = vmatmul.mubr.msk.f32.vlgmr.msra.gmra.mrb[2].mxu0 %vm101_vm3, %v4123_v14 }
  0xfa   :  { %3503 = vmatpush1.msk.msra.mxu0 %vm105_vm1, %v3156_v63  ;;  %3230 = vmatprep.mubr.f32.mxu0 %v3596_v2 }
  0xfb   :  { %3501 = vmatmul.mubr.msk.f32.vlgmr.msra.gmra.mrb[2].mxu1 %vm101_vm3, %v4123_v14 }
  0xfc   :  { %3506 = vmatpush1.msk.msra.mxu1 %vm105_vm1, %v3158_v9  ;;  %3309 = vmatprep.mubr.f32.mxu1 %v3596_v2 }
 0x101   :  { %3504 = vmatmul.mubr.msk.f32.vlgmr.msra.gmra.mrb[2].mxu0 %vm101_vm3, %v4153_v25 }
 0x103   :  { %3507 = vmatmul.mubr.msk.f32.vlgmr.msra.gmra.mrb[2].mxu1 %vm101_vm3, %v4153_v25 }
 0x190   :  { %v4368_v10 = vpop.f32.mrb[0].mxu0 }
 0x191   :  { %v4370_v42 = vpop.f32.mrb[1].mxu0 }
 0x192   :  { %v4372_v62 = vpop.f32.mrb[0].mxu1  ;;  %v1712_v12 = vadd.f32 %v4370_v42, %v4368_v10 }
 0x193   :  { %v1676_v14 = vadd.f32 %v4372_v62, %v4368_v10  ;;  %v4378_v36 = vpop.f32.mrb[1].mxu1 }
 0x194   :  { %v1677_v2 = vadd.f32 %v4378_v36, %v4370_v42  ;;  %v1715_v25 = vadd.f32 %v4378_v36, %v4372_v62 }
 0x195   :  { %v1678_v13 = vmul.f32 0.5, %v1676_v14 }
 0x196   :  { %v1679_v17 = vmul.f32 0.5, %v1677_v2  ;;  %v39_v2 = vld [vmem:[%s4486_s4] sm:$0xff] }
 0x197   :  { %v1680_v18 = vsub.f32 %v4368_v10, %v1678_v13  ;;  %v1684_v45 = vsub.f32 %v4372_v62, %v1678_v13  ;;  %1708 = vst [vmem:[%s4483_s6] sm:$0xff] %v1678_v13 }
 0x198   :  { %v1681_v19 = vsub.f32 %v4370_v42, %v1679_v17  ;;  %v1685_v20 = vsub.f32 %v4378_v36, %v1679_v17  ;;  %1709 = vst [vmem:[%s4483_s6 + $0x8] sm:$0xff] %v1679_v17 }
 0x199   :  { %v1682_v21 = vmul.f32 %v1680_v18, %v1680_v18  ;;  %v1686_v3 = vmul.f32 %v1684_v45, %v1684_v45 }
 0x19a   :  { %v1683_v0 = vmul.f32 %v1681_v19, %v1681_v19  ;;  %v1687_v4 = vmul.f32 %v1685_v20, %v1685_v20 }
 0x19b   :  { %v1688_v23 = vadd.f32 %v1686_v3, %v1682_v21 }
 0x19c   :  { %v1689_v52 = vadd.f32 %v1687_v4, %v1683_v0 }
 0x19d   :  { %v1690_v1 = vmul.f32 0.5, %v1688_v23 }
 0x19e   :  { %v1691_v28 = vmul.f32 0.5, %v1689_v52 }
 0x19f   :  { %v1692_v24 = vadd.f32 1e-05, %v1690_v1 }
 0x1a0   :  { %v1693_v7 = vadd.f32 1e-05, %v1691_v28 }
 0x1a1   :  { %3588 = vrsqrt.f32 %v1692_v24  ;;  %vm1696_vm1 = vcmp.eq.f32.partialorder %v1692_v24, inf  ;;  %v1699_v5 = vand.u32 2147483648, %v1692_v24  ;;  %vm1698_vm3 = vcmp.eq.f32.partialorder %v1692_v24, 0.0 }
 0x1a2   :  { %3590 = vrsqrt.f32 %v1693_v7  ;;  %vm1703_vm4 = vcmp.eq.f32.partialorder %v1693_v7, inf  ;;  %v1706_v33 = vand.u32 2147483648, %v1693_v7  ;;  %vm1705_vm8 = vcmp.eq.f32.partialorder %v1693_v7, 0.0 }
 0x1ab   :  { %v3589_v8 = vpop.eup %3588 }
 0x1ac   :  { %v3591_v27 = vpop.eup %3590  ;;  %v1695_v30 = vmul.f32 %v3589_v8, %v1692_v24 }
 0x1ad   :  { %v1702_v11 = vmul.f32 %v3591_v27, %v1693_v7 }
 0x1ae   :  { %v1697_v31 = vsel %vm1696_vm1, %v1692_v24, %v1695_v30 }
 0x1af   :  { %v1700_v34 = vsel %vm1698_vm3, %v1699_v5, %v1697_v31  ;;  %v1704_v6 = vsel %vm1703_vm4, %v1693_v7, %v1702_v11  ;;  %v3348_v7 = vld [vmem:[%s4487_s5] sm:$0xff] }
 0x1b0   :  { %1710 = vst [vmem:[%s4484_s7] sm:$0xff] %v1700_v34  ;;  %v1707_v44 = vsel %vm1705_vm8, %v1706_v33, %v1704_v6  ;;  %v3349_v33 = vld [vmem:[%s4487_s5 + $0x8] sm:$0xff]  ;;  %v3350_v34 = vld [vmem:[%s4487_s5 + $0x10] sm:$0xff]  ;;  %v3351_v6 = vld [vmem:[%s4487_s5 + $0x18] sm:$0xff] }
 0x1b1   :  { %1711 = vst [vmem:[%s4484_s7 + $0x8] sm:$0xff] %v1707_v44 }
 0x1d4   :  { %v3232_v35 = vpop.f32.mrb[2].mxu0 }
 0x1d5   :  { %v3234_v37 = vpop.f32.mrb[3].mxu0 }
 0x1d6   :  { %v3318_v39 = vadd.f32 %v3234_v37, %v3232_v35  ;;  %v3311_v40 = vpop.f32.mrb[2].mxu1 }
 0x1d7   :  { %v3313_v41 = vpop.f32.mrb[3].mxu1 }
 0x1d8   :  { %v3321_v43 = vadd.f32 %v3313_v41, %v3311_v40  ;;  %3319 = vadd.xlane.f32.xlu0 %v3318_v39 }
 0x1da   :  { %3322 = vadd.xlane.f32.xlu1 %v3321_v43 }
 0x1dc   :  { %1713 = vadd.xlane.f32.xlu0 %v1712_v12 }
 0x1e0   :  { %1716 = vadd.xlane.f32.xlu0 %v1715_v25 }
 0x265   :  { %v3320_v46 = vpop.xlane.xlu0 %3319 }
 0x267   :  { %v3323_v47 = vpop.xlane.xlu1 %3322 }
 0x268   :  { %v3324_v48 = vadd.f32 %v3323_v47, %v3320_v46 }
 0x269   :  { %v1714_v49 = vpop.xlane.xlu0 %1713 }
 0x26a   :  { %v3325_v32 = vmul.f32 0.001953125, %v3324_v48 }
 0x26c   :  { %v4400_v26 = vsub.f32 %v3311_v40, %v3325_v32  ;;  %v4402_v15 = vsub.f32 %v3313_v41, %v3325_v32  ;;  %v3326_v55 = vsub.f32 %v3232_v35, %v3325_v32  ;;  %v3327_v56 = vsub.f32 %v3234_v37, %v3325_v32 }
 0x26d   :  { %v1717_v50 = vpop.xlane.xlu0 %1716 }
 0x26e   :  { %v1718_v51 = vadd.f32 %v1717_v50, %v1714_v49  ;;  %v3335_v54 = vmul.f32 %v4400_v26, %v4400_v26  ;;  %v3336_v63 = vmul.f32 %v4402_v15, %v4402_v15  ;;  %v3330_v14 = vmul.f32 %v3326_v55, %v3326_v55 }
 0x270   :  { %v1719_v53 = vmul.f32 0.001953125, %v1718_v51 }
 0x272   :  { %v1722_v38 = vsub.f32 %v4372_v62, %v1719_v53  ;;  %v1723_v57 = vsub.f32 %v4378_v36, %v1719_v53  ;;  %v1720_v29 = vsub.f32 %v4368_v10, %v1719_v53  ;;  %v1721_v16 = vsub.f32 %v4370_v42, %v1719_v53  ;;  %v38_v42 = vld [vmem:[%s4485_s3] sm:$0xff] }
 0x273   :  { %v3331_v62 = vmul.f32 %v3327_v56, %v3327_v56  ;;  %v3337_v36 = vadd.f32 %v3336_v63, %v3335_v54 }
 0x274   :  { %v1729_v58 = vmul.f32 %v1722_v38, %v1722_v38  ;;  %v1730_v59 = vmul.f32 %v1723_v57, %v1723_v57  ;;  %v1724_v60 = vmul.f32 %v1720_v29, %v1720_v29  ;;  %v1725_v61 = vmul.f32 %v1721_v16, %v1721_v16 }
 0x275   :  { %v3332_v10 = vadd.f32 %v3331_v62, %v3330_v14 }
 0x276   :  { %v1731_v9 = vadd.f32 %v1730_v59, %v1729_v58  ;;  %v1726_v12 = vadd.f32 %v1725_v61, %v1724_v60 }
 0x278   :  { %1732 = vadd.xlane.f32.xlu0 %v1731_v9  ;;  %1727 = vadd.xlane.f32.xlu1 %v1726_v12 }
 0x27c   :  { %3338 = vadd.xlane.f32.xlu0 %v3337_v36  ;;  %3333 = vadd.xlane.f32.xlu1 %v3332_v10 }
 0x28d   :  { %1748 = vperm.xlu1 %3582, %v38_v42  }
 0x292   :  { %1757 = vperm.xlu0 %3583, %v39_v2  }
 0x305   :  { %v1733_v25 = vpop.xlane.xlu0 %1732  ;;  %v1728_v13 = vpop.xlane.xlu1 %1727 }
 0x306   :  { %v1734_v17 = vadd.f32 %v1733_v25, %v1728_v13 }
 0x308   :  { %v1735_v18 = vmul.f32 0.001953125, %v1734_v17 }
 0x309   :  { %v3339_v45 = vpop.xlane.xlu0 %3338  ;;  %v3334_v19 = vpop.xlane.xlu1 %3333 }
 0x30a   :  { %v1736_v20 = vadd.f32 1e-05, %v1735_v18  ;;  %v3340_v21 = vadd.f32 %v3339_v45, %v3334_v19 }
 0x30c   :  { %3592 = vrsqrt.f32 %v1736_v20  ;;  %v3341_v3 = vmul.f32 0.001953125, %v3340_v21 }
 0x30d   :  { %v1749_v23 = vpop.permute.xlu1 %1748 }
 0x30e   :  { %v3342_v0 = vadd.f32 1e-05, %v3341_v3 }
 0x310   :  { %3594 = vrsqrt.f32 %v3342_v0 }
 0x311   :  { %v1758_v11 = vpop.permute.xlu0 %1757 }
 0x316   :  { %v3593_v4 = vpop.eup %3592 }
 0x317   :  { %v1738_v52 = vmul.f32 %v3593_v4, %v1720_v29  ;;  %v1739_v1 = vmul.f32 %v3593_v4, %v1721_v16  ;;  %v1740_v28 = vmul.f32 %v3593_v4, %v1722_v38  ;;  %v1741_v24 = vmul.f32 %v3593_v4, %v1723_v57 }
 0x319   :  { %1742 = vst [vmem:[%s4488_s8] sm:$0xff] %v1738_v52  ;;  %1743 = vst [vmem:[%s4488_s8 + $0x8] sm:$0xff] %v1739_v1  ;;  %v1751_v8 = vmul.f32 %v1749_v23, %v1738_v52  ;;  %v1752_v27 = vmul.f32 %v1749_v23, %v1739_v1  ;;  %v1753_v30 = vmul.f32 %v1749_v23, %v1740_v28 }
 0x31a   :  { %1744 = vst [vmem:[%s4488_s8 + $0x10] sm:$0xff] %v1740_v28  ;;  %1745 = vst [vmem:[%s4488_s8 + $0x18] sm:$0xff] %v1741_v24  ;;  %v1754_v5 = vmul.f32 %v1749_v23, %v1741_v24  ;;  %v3595_v31 = vpop.eup %3594 }
 0x31b   :  { %v3344_v44 = vmul.f32 %v3595_v31, %v3326_v55  ;;  %v3345_v35 = vmul.f32 %v3595_v31, %v3327_v56  ;;  %v3346_v37 = vmul.f32 %v3595_v31, %v4400_v26  ;;  %v3347_v39 = vmul.f32 %v3595_v31, %v4402_v15 }
 0x31c   :  { %v1760_v40 = vadd.f32 %v1758_v11, %v1751_v8  ;;  %v1761_v41 = vadd.f32 %v1758_v11, %v1752_v27  ;;  %v1762_v43 = vadd.f32 %v1758_v11, %v1753_v30  ;;  %v1763_v22 = vadd.f32 %v1758_v11, %v1754_v5 }
 0x31d   :  { %v3352_v46 = vadd.f32 %v3348_v7, %v3344_v44  ;;  %v3353_v47 = vadd.f32 %v3349_v33, %v3345_v35  ;;  %v3354_v48 = vadd.f32 %v3350_v34, %v3346_v37  ;;  %v3355_v49 = vadd.f32 %v3351_v6, %v3347_v39 }
 0x31e   :  { %v1764_v32 = vmax.f32 %v1760_v40, 0.0  ;;  %v1765_v50 = vmax.f32 %v1761_v41, 0.0  ;;  %v1766_v51 = vmax.f32 %v1762_v43, 0.0  ;;  %v1767_v53 = vmax.f32 %v1763_v22, 0.0 }
 0x31f   :  { %3356 = vst [vmem:[%s4489_s10] sm:$0xff] %v3352_v46  ;;  %3357 = vst [vmem:[%s4489_s10 + $0x8] sm:$0xff] %v3353_v47  ;;  %v3360_v26 = vmul.f32 %v3352_v46, %v1749_v23  ;;  %v3361_v15 = vmul.f32 %v3353_v47, %v1749_v23  ;;  %v3362_v55 = vmul.f32 %v3354_v48, %v1749_v23 }
 0x320   :  { %3358 = vst [vmem:[%s4489_s10 + $0x10] sm:$0xff] %v3354_v48  ;;  %3359 = vst [vmem:[%s4489_s10 + $0x18] sm:$0xff] %v3355_v49  ;;  %v3363_v56 = vmul.f32 %v3355_v49, %v1749_v23 }
 0x321   :  { %1768 = vst [vmem:[%s4490_s9] sm:$0xff] %v1764_v32  ;;  %1769 = vst [vmem:[%s4490_s9 + $0x8] sm:$0xff] %v1765_v50  ;;  %v3364_v38 = vadd.f32 %v3360_v26, %v1758_v11  ;;  %v3365_v57 = vadd.f32 %v3361_v15, %v1758_v11  ;;  %v3366_v29 = vadd.f32 %v3362_v55, %v1758_v11 }
 0x322   :  { %1770 = vst [vmem:[%s4490_s9 + $0x10] sm:$0xff] %v1766_v51  ;;  %1771 = vst [vmem:[%s4490_s9 + $0x18] sm:$0xff] %v1767_v53  ;;  %v3367_v16 = vadd.f32 %v3363_v56, %v1758_v11 }
 0x323   :  { %v3368_v58 = vmax.f32 %v3364_v38, 0.0  ;;  %v3369_v59 = vmax.f32 %v3365_v57, 0.0  ;;  %v3370_v60 = vmax.f32 %v3366_v29, 0.0 }
 0x324   :  { %v3371_v61 = vmax.f32 %v3367_v16, 0.0 }
 0x325   :  { %3372 = vst [vmem:[%s4491_s11] sm:$0xff] %v3368_v58  ;;  %3373 = vst [vmem:[%s4491_s11 + $0x8] sm:$0xff] %v3369_v59 }
 0x326   :  { %3374 = vst [vmem:[%s4491_s11 + $0x10] sm:$0xff] %v3370_v60  ;;  %3375 = vst [vmem:[%s4491_s11 + $0x18] sm:$0xff] %v3371_v61 }

// kernel: ladder_forward.12
= control target key start
LH: loop header
LB: loop body
LE: loop exit
PB: predicated region body
PF: predicated region fallthrough
CT: control target
= control target key end

     0   :  { %15 = vsyncpa [#allocation3], 0  ;;  %s1036_s0 = inlined_call_operand.vmem [shape: f32[10], index: 0, kind: input, shape index: {}]   ;;  %s1037_s1 = inlined_call_operand.vmem [shape: f32[2,16,256], index: 1, kind: input, shape index: {}]   ;;  %s1038_s2 = inlined_call_operand.vmem [shape: f32[2,16,256], index: 2, kind: input, shape index: {}]   ;;  %s1039_s3 = inlined_call_operand.vmem [shape: f32[2,16,1], index: 3, kind: input, shape index: {}]   ;;  %s1040_s4 = inlined_call_operand.vmem [shape: f32[16,256], index: 4, kind: input, shape index: {}]   ;;  %s1041_s5 = inlined_call_operand.vmem [shape: f32[16,256], index: 5, kind: input, shape index: {}]   ;;  %s1042_s6 = inlined_call_operand.vmem [shape: f32[16,1], index: 6, kind: input, shape index: {}]   ;;  %s1043_s7 = inlined_call_operand.vmem [shape: f32[16,1], index: 7, kind: input, shape index: {}]   ;;  %s1044_s8 = inlined_call_operand.vmem [shape: f32[2,16,256], index: 8, kind: output, shape index: {0}]   ;;  %s1045_s9 = inlined_call_operand.vmem [shape: f32[2,16,256], index: 9, kind: output, shape index: {1}]  }
   0x1   :  { %s22_s11 = sshll.u32 %s1036_s0, 4  ;;  %s23_s11 = int_to_ptr.vmem [resolvable:$true] %s22_s11 }
   0x2   :  { %s554_s12 = scalar_lea.vmem %s23_s11, 16  ;;  %p559_p1 = scmp.lt.s32.totalorder %s23_s11, %s23_s11 }
   0x3   :  { %p555_p0 = scmp.ne.s32.totalorder %s23_s11, %s554_s12  ;;  %p560_p2 = scmp.lt.s32.totalorder %s554_s12, %s554_s12 }
   0x5   :  { %p561_p3 = por %p560_p2, %p559_p1 }
   0x7   :  { %p562_p4 = pnand %p561_p3, %p555_p0 }
   0x9   :  { %565 = shalt.err (!%p562_p4)
}
   0xa   :  { %s568_s13 = smov [#allocation2]  }
   0xb   :  { %25 = dma.vmem_to_smem %s23_s11, 16, %s568_s13, [#allocation3]  }
   0xc   :  { %566 = dma.done.wait [#allocation3], 16  }
   0xd   :  { %567 = vsyncadd [#allocation3], 4294967280 }
   0xe   :  { %43 = sfence }
   0xf   :  { %v48_v0 = vld [vmem:[%s1037_s1 + $0x20] sm:$0xff]  ;;  %v49_v1 = vld [vmem:[%s1037_s1 + $0x28] sm:$0xff]  ;;  %v50_v5 = vld [vmem:[%s1037_s1 + $0x30] sm:$0xff]  ;;  %v569_v12 = vmov 0   ;;  %s466_s22 = sld [smem:[#allocation2 + $0x2]]  ;;  %s471_s23 = sld [smem:[#allocation2 + $0x7]] }
  0x10   :  { %v44_v2 = vld [vmem:[%s1037_s1] sm:$0xff]  ;;  %v58_v3 = vadd.f32 %v49_v1, %v48_v0  ;;  %v45_v4 = vld [vmem:[%s1037_s1 + $0x8] sm:$0xff]  ;;  %v51_v6 = vld [vmem:[%s1037_s1 + $0x38] sm:$0xff]  ;;  %477 = vset.pattern.permute.xlu1 %v569_v12  ;;  %476 = vset.pattern.permute.xlu0 %v569_v12  ;;  %s748_s29 = sld [smem:[#allocation2 + $0x8]]  ;;  %s759_s10 = sld [smem:[#allocation2 + $0x4]] }
  0x11   :  { %v52_v7 = vadd.f32 %v45_v4, %v44_v2  ;;  %v46_v8 = vld [vmem:[%s1037_s1 + $0x10] sm:$0xff]  ;;  %v47_v9 = vld [vmem:[%s1037_s1 + $0x18] sm:$0xff]  ;;  %v61_v10 = vadd.f32 %v51_v6, %v50_v5  ;;  %v121_v41 = vld [vmem:[%s1039_s3 + $0x8] sm:$0xff]  ;;  %s746_s1 = sld [smem:[#allocation2 + $0x3]]  ;;  %s754_s30 = sld [smem:[#allocation2]] }
  0x12   :  { %59 = vadd.xlane.f32.xlu1 %v58_v3  ;;  %v55_v11 = vadd.f32 %v47_v9, %v46_v8  ;;  %v120_v42 = vld [vmem:[%s1039_s3] sm:$0xff]  ;;  %v122_v43 = vld [vmem:[%s1039_s3 + $0x10] sm:$0xff]  ;;  %v123_v44 = vld [vmem:[%s1039_s3 + $0x18] sm:$0xff]  ;;  %s465_s3 = sld [smem:[#allocation2 + $0x1]]  ;;  %s761_s11 = sld [smem:[#allocation2 + $0x5]] }
  0x13   :  { %53 = vadd.xlane.f32.xlu0 %v52_v7  ;;  %v132_v45 = vld [vmem:[%s1042_s6] sm:$0xff]  ;;  %v133_v46 = vld [vmem:[%s1042_s6 + $0x8] sm:$0xff]  ;;  %s470_s6 = sld [smem:[#allocation2 + $0x6]]  ;;  %s770_s12 = sld [smem:[#allocation2 + $0x9]] }
  0x14   :  { %v134_v47 = vld [vmem:[%s1043_s7] sm:$0xff]  ;;  %v135_v48 = vld [vmem:[%s1043_s7 + $0x8] sm:$0xff] }
  0x16   :  { %62 = vadd.xlane.f32.xlu1 %v61_v10  ;;  %v719_v10 = vstv %s471_s23 }
  0x17   :  { %56 = vadd.xlane.f32.xlu0 %v55_v11 }
  0x18   :  { %v689_v60 = vstv %s465_s3 }
  0x19   :  { %v691_v61 = vstv %s470_s6 }
  0x9f   :  { %v60_v13 = vpop.xlane.xlu1 %59 }
  0xa0   :  { %v54_v14 = vpop.xlane.xlu0 %53 }
  0xa1   :  { %v64_v15 = vadd.f32 %v60_v13, %v54_v14 }
  0xa3   :  { %v66_v16 = vmul.f32 0.001953125, %v64_v15  ;;  %v63_v17 = vpop.xlane.xlu1 %62 }
  0xa4   :  { %v57_v18 = vpop.xlane.xlu0 %56 }
  0xa5   :  { %v65_v19 = vadd.f32 %v63_v17, %v57_v18  ;;  %v647_v20 = vsub.f32 %v44_v2, %v66_v16  ;;  %v649_v21 = vsub.f32 %v45_v4, %v66_v16  ;;  %v72_v22 = vsub.f32 %v48_v0, %v66_v16  ;;  %v128_v0 = vld [vmem:[%s1041_s5] sm:$0xff]  ;;  %v129_v4 = vld [vmem:[%s1041_s5 + $0x8] sm:$0xff]  ;;  %v130_v17 = vld [vmem:[%s1041_s5 + $0x10] sm:$0xff] }
  0xa6   :  { %v73_v23 = vsub.f32 %v49_v1, %v66_v16  ;;  %v702_v1 = vstv %s466_s22 }
  0xa7   :  { %v67_v24 = vmul.f32 0.001953125, %v65_v19  ;;  %v76_v25 = vmul.f32 %v647_v20, %v647_v20  ;;  %v77_v26 = vmul.f32 %v649_v21, %v649_v21  ;;  %v86_v27 = vmul.f32 %v72_v22, %v72_v22 }
  0xa8   :  { %v87_v28 = vmul.f32 %v73_v23, %v73_v23 }
  0xa9   :  { %v80_v29 = vadd.f32 %v77_v26, %v76_v25  ;;  %v70_v30 = vsub.f32 %v46_v8, %v67_v24  ;;  %v71_v31 = vsub.f32 %v47_v9, %v67_v24  ;;  %v655_v32 = vsub.f32 %v50_v5, %v67_v24 }
  0xaa   :  { %v657_v33 = vsub.f32 %v51_v6, %v67_v24  ;;  %v90_v36 = vadd.f32 %v87_v28, %v86_v27 }
  0xab   :  { %81 = vadd.xlane.f32.xlu0 %v80_v29  ;;  %v78_v34 = vmul.f32 %v70_v30, %v70_v30  ;;  %v79_v35 = vmul.f32 %v71_v31, %v71_v31  ;;  %v88_v38 = vmul.f32 %v655_v32, %v655_v32 }
  0xac   :  { %v89_v39 = vmul.f32 %v657_v33, %v657_v33 }
  0xad   :  { %v83_v37 = vadd.f32 %v79_v35, %v78_v34 }
  0xae   :  { %v93_v40 = vadd.f32 %v89_v39, %v88_v38 }
  0xaf   :  { %91 = vadd.xlane.f32.xlu0 %v90_v36  ;;  %84 = vadd.xlane.f32.xlu1 %v83_v37 }
  0xb3   :  { %94 = vadd.xlane.f32.xlu1 %v93_v40 }
  0xc4   :  { %339 = vperm.xlu1 %477, %v121_v41  }
  0xc5   :  { %334 = vperm.xlu0 %476, %v120_v42  }
  0xc8   :  { %344 = vperm.xlu1 %477, %v122_v43  }
  0xcc   :  { %349 = vperm.xlu1 %477, %v123_v44  }
  0xd0   :  { %406 = vperm.xlu1 %477, %v132_v45  }
  0xd4   :  { %411 = vperm.xlu1 %477, %v133_v46  }
  0xd8   :  { %424 = vperm.xlu1 %477, %v134_v47  }
  0xdc   :  { %429 = vperm.xlu1 %477, %v135_v48  }
 0x138   :  { %v82_v49 = vpop.xlane.xlu0 %81 }
 0x13c   :  { %v85_v50 = vpop.xlane.xlu1 %84  ;;  %v92_v51 = vpop.xlane.xlu0 %91 }
 0x13d   :  { %v96_v52 = vadd.f32 %v92_v51, %v82_v49 }
 0x13f   :  { %v98_v53 = vmul.f32 0.001953125, %v96_v52 }
 0x140   :  { %v95_v54 = vpop.xlane.xlu1 %94 }
 0x141   :  { %v100_v55 = vadd.f32 1e-05, %v98_v53  ;;  %v97_v56 = vadd.f32 %v95_v54, %v85_v50 }
 0x143   :  { %478 = vrsqrt.f32 %v100_v55  ;;  %v99_v57 = vmul.f32 0.001953125, %v97_v56 }
 0x144   :  { %v340_v53 = vpop.permute.xlu1 %339 }
 0x145   :  { %v101_v58 = vadd.f32 1e-05, %v99_v57 }
 0x147   :  { %480 = vrsqrt.f32 %v101_v58 }
 0x148   :  { %482 = vrcp.f32 %v128_v0 }
 0x149   :  { %484 = vrcp.f32 %v129_v4 }
 0x14a   :  { %486 = vrcp.f32 %v130_v17  ;;  %v806_v17 = vstv %s761_s11 }
 0x14d   :  { %v687_v59 = vpop.eup %478 }
 0x14e   :  { %v694_v62 = vmul.f32 %v687_v59, %v72_v22  ;;  %v697_v63 = vmul.f32 %v687_v59, %v73_v23  ;;  %v778_v4 = vmul.f32 %v687_v59, %v647_v20  ;;  %v794_v20 = vstv %s748_s29 }
 0x150   :  { %v151_v2 = vmul.f32 %v689_v60, %v694_v62  ;;  %v152_v3 = vmul.f32 %v689_v60, %v697_v63  ;;  %v209_v6 = vmul.f32 %v691_v61, %v694_v62  ;;  %v210_v7 = vmul.f32 %v691_v61, %v697_v63 }
 0x151   :  { %v481_v5 = vpop.eup %480 }
 0x152   :  { %v715_v8 = vmul.f32 %v481_v5, %v70_v30  ;;  %v717_v9 = vmul.f32 %v481_v5, %v71_v31  ;;  %v160_v11 = vadd.f32 %v702_v1, %v151_v2  ;;  %v161_v12 = vadd.f32 %v702_v1, %v152_v3  ;;  %v757_v45 = vpop.eup %482 }
 0x153   :  { %v218_v18 = vadd.f32 %v719_v10, %v209_v6  ;;  %v219_v19 = vadd.f32 %v719_v10, %v210_v7  ;;  %v737_v22 = vmul.f32 %v481_v5, %v655_v32  ;;  %v740_v23 = vmul.f32 %v481_v5, %v657_v33  ;;  %v768_v49 = vpop.eup %484 }
 0x154   :  { %v149_v13 = vmul.f32 %v689_v60, %v715_v8  ;;  %v150_v14 = vmul.f32 %v689_v60, %v717_v9  ;;  %v207_v15 = vmul.f32 %v691_v61, %v715_v8  ;;  %v208_v16 = vmul.f32 %v691_v61, %v717_v9  ;;  %v774_v3 = vpop.eup %486 }
 0x155   :  { %v168_v28 = vsub.f32 0.0, %v160_v11  ;;  %v169_v29 = vsub.f32 0.0, %v161_v12  ;;  %v226_v35 = vsub.f32 0.0, %v218_v18  ;;  %v227_v36 = vsub.f32 0.0, %v219_v19  ;;  %v114_v11 = vld [vmem:[%s1038_s2 + $0x10] sm:$0xff] }
 0x156   :  { %v158_v24 = vadd.f32 %v702_v1, %v149_v13  ;;  %v159_v25 = vadd.f32 %v702_v1, %v150_v14  ;;  %v216_v26 = vadd.f32 %v719_v10, %v207_v15  ;;  %v217_v27 = vadd.f32 %v719_v10, %v208_v16  ;;  %v345_v14 = vpop.permute.xlu1 %344  ;;  %v131_v15 = vld [vmem:[%s1041_s5 + $0x18] sm:$0xff] }
 0x157   :  { %v180_v33 = vmul.f32 1.442695, %v168_v28  ;;  %v153_v37 = vmul.f32 %v689_v60, %v737_v22  ;;  %v154_v41 = vmul.f32 %v689_v60, %v740_v23  ;;  %v182_v43 = vmul.f32 1.442695, %v169_v29 }
 0x158   :  { %v166_v30 = vsub.f32 0.0, %v158_v24  ;;  %v167_v31 = vsub.f32 0.0, %v159_v25  ;;  %v224_v32 = vsub.f32 0.0, %v216_v26  ;;  %v225_v34 = vsub.f32 0.0, %v217_v27  ;;  %v116_v25 = vld [vmem:[%s1038_s2 + $0x20] sm:$0xff] }
 0x159   :  { %488 = vpow2.f32 %v180_v33  ;;  %v162_v44 = vadd.f32 %v702_v1, %v153_v37  ;;  %v163_v46 = vadd.f32 %v702_v1, %v154_v41  ;;  %v211_v47 = vmul.f32 %v691_v61, %v737_v22 }
 0x15a   :  { %v176_v38 = vmul.f32 1.442695, %v166_v30  ;;  %v178_v39 = vmul.f32 1.442695, %v167_v31  ;;  %v234_v40 = vmul.f32 1.442695, %v224_v32  ;;  %v212_v48 = vmul.f32 %v691_v61, %v740_v23 }
 0x15b   :  { %v236_v42 = vmul.f32 1.442695, %v225_v34  ;;  %v238_v50 = vmul.f32 1.442695, %v226_v35  ;;  %v240_v51 = vmul.f32 1.442695, %v227_v36  ;;  %v220_v55 = vadd.f32 %v719_v10, %v211_v47 }
 0x15c   :  { %490 = vpow2.f32 %v176_v38  ;;  %v170_v52 = vsub.f32 0.0, %v162_v44  ;;  %v171_v54 = vsub.f32 0.0, %v163_v46  ;;  %v221_v56 = vadd.f32 %v719_v10, %v212_v48  ;;  %v117_v31 = vld [vmem:[%s1038_s2 + $0x28] sm:$0xff]  ;;  %v350_v46 = vpop.permute.xlu1 %349 }
 0x15d   :  { %492 = vpow2.f32 %v178_v39  ;;  %v228_v0 = vsub.f32 0.0, %v220_v55  ;;  %v782_v7 = vmul.f32 %v687_v59, %v649_v21  ;;  %v788_v12 = vstv %s754_s30  ;;  %v115_v59 = vld [vmem:[%s1038_s2 + $0x18] sm:$0xff] }
 0x15e   :  { %494 = vpow2.f32 %v234_v40  ;;  %v184_v57 = vmul.f32 1.442695, %v170_v52  ;;  %v186_v58 = vmul.f32 1.442695, %v171_v54  ;;  %v229_v2 = vsub.f32 0.0, %v221_v56  ;;  %v119_v40 = vld [vmem:[%s1038_s2 + $0x38] sm:$0xff] }
 0x15f   :  { %496 = vpow2.f32 %v236_v42  ;;  %v242_v5 = vmul.f32 1.442695, %v228_v0  ;;  %v791_v13 = vstv %s746_s1  ;;  %v803_v16 = vstv %s759_s10 }
 0x160   :  { %498 = vpow2.f32 %v182_v43  ;;  %v244_v6 = vmul.f32 1.442695, %v229_v2  ;;  %v147_v18 = vmul.f32 %v689_v60, %v778_v4  ;;  %v811_v24 = vstv %s770_s12 }
 0x161   :  { %500 = vpow2.f32 %v238_v50  ;;  %v148_v27 = vmul.f32 %v689_v60, %v782_v7  ;;  %v818_v30 = vmul.f32 %v340_v53, %v114_v11  ;;  %v205_v32 = vmul.f32 %v691_v61, %v778_v4  ;;  %v118_v60 = vld [vmem:[%s1038_s2 + $0x30] sm:$0xff] }
 0x162   :  { %502 = vpow2.f32 %v240_v51  ;;  %v825_v35 = vmul.f32 %v340_v53, %v115_v59  ;;  %v206_v36 = vmul.f32 %v691_v61, %v782_v7  ;;  %v832_v39 = vmul.f32 %v345_v14, %v116_v25 }
 0x163   :  { %504 = vpow2.f32 %v184_v57  ;;  %v489_v21 = vpop.eup %488  ;;  %v156_v41 = vadd.f32 %v702_v1, %v147_v18  ;;  %v838_v44 = vmul.f32 %v345_v14, %v117_v31  ;;  %v157_v47 = vadd.f32 %v702_v1, %v148_v27 }
 0x164   :  { %506 = vpow2.f32 %v186_v58  ;;  %v192_v26 = vadd.f32 1.0, %v489_v21  ;;  %v841_v50 = vmul.f32 %v350_v46, %v118_v60  ;;  %v214_v51 = vadd.f32 %v719_v10, %v205_v32  ;;  %v872_v60 = vpop.permute.xlu1 %406 }
 0x165   :  { %508 = vpow2.f32 %v242_v5  ;;  %v844_v54 = vmul.f32 %v350_v46, %v119_v40  ;;  %v215_v55 = vadd.f32 %v719_v10, %v206_v36  ;;  %v276_v1 = vmul.f32 %v791_v13, %v694_v62 }
 0x166   :  { %v491_v19 = vpop.eup %490  ;;  %510 = vpow2.f32 %v244_v6  ;;  %v164_v58 = vsub.f32 0.0, %v156_v41  ;;  %v851_v2 = vmul.f32 %v791_v13, %v697_v63  ;;  %v165_v6 = vsub.f32 0.0, %v157_v47 }
 0x167   :  { %v493_v28 = vpop.eup %492  ;;  %v190_v29 = vadd.f32 1.0, %v491_v19  ;;  %512 = vrcp.f32 %v131_v15  ;;  %v855_v10 = vmul.f32 %v794_v20, %v694_v62  ;;  %v222_v15 = vsub.f32 0.0, %v214_v51 }
 0x168   :  { %v495_v34 = vpop.eup %494  ;;  %v191_v33 = vadd.f32 1.0, %v493_v28  ;;  %514 = vrcp.f32 %v192_v26  ;;  %v859_v59 = vmul.f32 %v794_v20, %v697_v63  ;;  %v223_v19 = vsub.f32 0.0, %v215_v55 }
 0x169   :  { %v497_v37 = vpop.eup %496  ;;  %516 = vrcp.f32 %v190_v29  ;;  %v248_v38 = vadd.f32 1.0, %v495_v34  ;;  %v274_v26 = vmul.f32 %v791_v13, %v715_v8  ;;  %v172_v28 = vmul.f32 1.442695, %v164_v58 }
 0x16a   :  { %v499_v42 = vpop.eup %498  ;;  %518 = vrcp.f32 %v191_v33  ;;  %v249_v43 = vadd.f32 1.0, %v497_v37  ;;  %v275_v29 = vmul.f32 %v791_v13, %v717_v9  ;;  %v309_v31 = vmul.f32 %v794_v20, %v715_v8 }
 0x16b   :  { %v501_v61 = vpop.eup %500  ;;  %520 = vrcp.f32 %v248_v38  ;;  %v193_v48 = vadd.f32 1.0, %v499_v42  ;;  %v174_v63 = vmul.f32 1.442695, %v165_v6  ;;  %v310_v34 = vmul.f32 %v794_v20, %v717_v9 }
 0x16c   :  { %v503_v52 = vpop.eup %502  ;;  %522 = vrcp.f32 %v249_v43  ;;  %v250_v53 = vadd.f32 1.0, %v501_v61  ;;  %v230_v36 = vmul.f32 1.442695, %v222_v15  ;;  %v278_v40 = vmul.f32 %v791_v13, %v737_v22 }
 0x16d   :  { %v505_v56 = vpop.eup %504  ;;  %524 = vrcp.f32 %v193_v48  ;;  %v251_v57 = vadd.f32 1.0, %v503_v52  ;;  %v279_v8 = vmul.f32 %v791_v13, %v740_v23  ;;  %v232_v41 = vmul.f32 1.442695, %v223_v19 }
 0x16e   :  { %v507_v0 = vpop.eup %506  ;;  %526 = vrcp.f32 %v250_v53  ;;  %v194_v5 = vadd.f32 1.0, %v505_v56  ;;  %v313_v46 = vmul.f32 %v794_v20, %v737_v22  ;;  %v314_v51 = vmul.f32 %v794_v20, %v740_v23 }
 0x16f   :  { %v509_v11 = vpop.eup %508  ;;  %528 = vrcp.f32 %v251_v57  ;;  %v195_v14 = vadd.f32 1.0, %v507_v0 }
 0x170   :  { %v511_v21 = vpop.eup %510  ;;  %530 = vrcp.f32 %v194_v5  ;;  %v252_v18 = vadd.f32 1.0, %v509_v11 }
 0x171   :  { %v861_v25 = vpop.eup %512  ;;  %532 = vrcp.f32 %v195_v14  ;;  %v253_v27 = vadd.f32 1.0, %v511_v21  ;;  %v892_v14 = vpop.permute.xlu1 %411 }
 0x172   :  { %v515_v62 = vpop.eup %514  ;;  %534 = vrcp.f32 %v252_v18 }
 0x173   :  { %v517_v32 = vpop.eup %516  ;;  %v267_v33 = vmul.f32 %v515_v62, %v788_v12  ;;  %536 = vrcp.f32 %v253_v27 }
 0x174   :  { %v519_v37 = vpop.eup %518  ;;  %v265_v38 = vmul.f32 %v517_v32, %v788_v12  ;;  %538 = vpow2.f32 %v172_v28 }
 0x175   :  { %v521_v42 = vpop.eup %520  ;;  %v266_v43 = vmul.f32 %v519_v37, %v788_v12  ;;  %v284_v9 = vadd.f32 %v276_v1, %v267_v33  ;;  %540 = vpow2.f32 %v174_v63 }
 0x176   :  { %v523_v47 = vpop.eup %522  ;;  %v282_v61 = vadd.f32 %v274_v26, %v265_v38  ;;  %v300_v48 = vmul.f32 %v521_v42, %v806_v17  ;;  %542 = vpow2.f32 %v230_v36 }
 0x177   :  { %v525_v52 = vpop.eup %524  ;;  %v283_v53 = vadd.f32 %v275_v29, %v266_v43  ;;  %v301_v55 = vmul.f32 %v523_v47, %v806_v17  ;;  %v293_v56 = vadd.f32 %v803_v16, %v284_v9  ;;  %544 = vpow2.f32 %v232_v41  ;;  %v917_v43 = vld [vmem:[%s1040_s4 + $0x18] sm:$0xff] }
 0x178   :  { %v527_v57 = vpop.eup %526  ;;  %v291_v1 = vadd.f32 %v803_v16, %v282_v61  ;;  %v317_v22 = vadd.f32 %v309_v31, %v300_v48  ;;  %v268_v58 = vmul.f32 %v525_v52, %v788_v12  ;;  %v921_v52 = vpop.permute.xlu1 %424 }
 0x179   :  { %v529_v0 = vpop.eup %528  ;;  %v292_v5 = vadd.f32 %v803_v16, %v283_v53  ;;  %v318_v6 = vadd.f32 %v310_v34, %v301_v55  ;;  %v302_v23 = vmul.f32 %v527_v57, %v806_v17  ;;  %v364_v11 = vsub.f32 %v832_v39, %v293_v56  ;;  %v930_v57 = vld [vmem:[%s1040_s4] sm:$0xff] }
 0x17a   :  { %v531_v15 = vpop.eup %530  ;;  %v326_v21 = vadd.f32 %v811_v24, %v317_v22  ;;  %v362_v18 = vsub.f32 %v818_v30, %v291_v1  ;;  %v285_v19 = vadd.f32 %v851_v2, %v268_v58  ;;  %v303_v26 = vmul.f32 %v529_v0, %v806_v17 }
 0x17b   :  { %v533_v27 = vpop.eup %532  ;;  %v327_v28 = vadd.f32 %v811_v24, %v318_v6  ;;  %v363_v62 = vsub.f32 %v825_v35, %v292_v5  ;;  %v319_v29 = vadd.f32 %v855_v10, %v302_v23  ;;  %v269_v39 = vmul.f32 %v531_v15, %v788_v12  ;;  %v910_v35 = vld [vmem:[%s1040_s4 + $0x10] sm:$0xff] }
 0x17c   :  { %v535_v31 = vpop.eup %534  ;;  %v370_v63 = vmul.f32 %v362_v18, %v326_v21  ;;  %v294_v32 = vadd.f32 %v803_v16, %v285_v19  ;;  %v320_v34 = vadd.f32 %v859_v59, %v303_v26  ;;  %v270_v30 = vmul.f32 %v533_v27, %v788_v12 }
 0x17d   :  { %v537_v2 = vpop.eup %536  ;;  %v371_v33 = vmul.f32 %v363_v62, %v327_v28  ;;  %v328_v36 = vadd.f32 %v811_v24, %v319_v29  ;;  %v286_v37 = vadd.f32 %v278_v40, %v269_v39  ;;  %v304_v38 = vmul.f32 %v535_v31, %v806_v17  ;;  %v430_v31 = vpop.permute.xlu1 %429 }
 0x17e   :  { %v378_v10 = vadd.f32 %v370_v63, %v291_v1  ;;  %v329_v41 = vadd.f32 %v811_v24, %v320_v34  ;;  %v365_v42 = vsub.f32 %v838_v44, %v294_v32  ;;  %v287_v59 = vadd.f32 %v279_v8, %v270_v30  ;;  %v539_v9 = vpop.eup %538 }
 0x17f   :  { %v379_v40 = vadd.f32 %v371_v33, %v292_v5  ;;  %v372_v47 = vmul.f32 %v364_v11, %v328_v36  ;;  %v295_v61 = vadd.f32 %v803_v16, %v286_v37  ;;  %v305_v48 = vmul.f32 %v537_v2, %v806_v17  ;;  %v541_v53 = vpop.eup %540 }
 0x180   :  { %442 = vst [vmem:[%s1044_s8 + $0x10] sm:$0xff] %v378_v10  ;;  %v373_v44 = vmul.f32 %v365_v42, %v329_v41  ;;  %v296_v8 = vadd.f32 %v803_v16, %v287_v59  ;;  %v321_v55 = vadd.f32 %v313_v46, %v304_v38  ;;  %v386_v1 = vsub.f32 %v378_v10, %v910_v35  ;;  %v543_v22 = vpop.eup %542  ;;  %v940_v46 = vld [vmem:[%s1040_s4 + $0x8] sm:$0xff] }
 0x181   :  { %443 = vst [vmem:[%s1044_s8 + $0x18] sm:$0xff] %v379_v40  ;;  %v380_v58 = vadd.f32 %v372_v47, %v293_v56  ;;  %v322_v0 = vadd.f32 %v314_v51, %v305_v48  ;;  %v366_v5 = vsub.f32 %v841_v50, %v295_v61  ;;  %v387_v6 = vsub.f32 %v379_v40, %v917_v43  ;;  %v545_v23 = vpop.eup %544 }
 0x182   :  { %v381_v11 = vadd.f32 %v373_v44, %v294_v32  ;;  %v330_v15 = vadd.f32 %v811_v24, %v321_v55  ;;  %v367_v21 = vsub.f32 %v844_v54, %v296_v8  ;;  %v397_v18 = vmul.f32 %v774_v3, %v386_v1 }
 0x183   :  { %444 = vst [vmem:[%s1044_s8 + $0x20] sm:$0xff] %v380_v58  ;;  %v331_v50 = vadd.f32 %v811_v24, %v322_v0  ;;  %v388_v51 = vsub.f32 %v380_v58, %v930_v57  ;;  %v399_v56 = vmul.f32 %v861_v25, %v387_v6  ;;  %v188_v19 = vadd.f32 1.0, %v539_v9 }
 0x184   :  { %445 = vst [vmem:[%s1044_s8 + $0x28] sm:$0xff] %v381_v11  ;;  %v374_v26 = vmul.f32 %v366_v5, %v330_v15  ;;  %v389_v54 = vsub.f32 %v381_v11, %v940_v46  ;;  %v416_v27 = vmul.f32 %v892_v14, %v397_v18  ;;  %v189_v28 = vadd.f32 1.0, %v541_v53  ;;  %v335_v53 = vpop.permute.xlu0 %334 }
 0x185   :  { %v375_v62 = vmul.f32 %v367_v21, %v331_v50  ;;  %v400_v29 = vmul.f32 %v757_v45, %v388_v51  ;;  %v417_v39 = vmul.f32 %v892_v14, %v399_v56  ;;  %546 = vrcp.f32 %v188_v19 }
 0x186   :  { %v382_v63 = vadd.f32 %v374_v26, %v295_v61  ;;  %v401_v32 = vmul.f32 %v768_v49, %v389_v54  ;;  %v434_v34 = vadd.f32 %v430_v31, %v416_v27  ;;  %548 = vrcp.f32 %v189_v28 }
 0x187   :  { %v383_v30 = vadd.f32 %v375_v62, %v296_v8  ;;  %v418_v2 = vmul.f32 %v872_v60, %v400_v29  ;;  %v435_v33 = vadd.f32 %v430_v31, %v417_v39  ;;  %v246_v36 = vadd.f32 1.0, %v543_v22 }
 0x188   :  { %446 = vst [vmem:[%s1044_s8 + $0x30] sm:$0xff] %v382_v63  ;;  %v419_v37 = vmul.f32 %v872_v60, %v401_v32  ;;  %v390_v38 = vsub.f32 %v382_v63, %v910_v35  ;;  %450 = vst [vmem:[%s1045_s9 + $0x10] sm:$0xff] %v434_v34  ;;  %v247_v10 = vadd.f32 1.0, %v545_v23  ;;  %v273_v1 = vmul.f32 %v791_v13, %v782_v7 }
 0x189   :  { %447 = vst [vmem:[%s1044_s8 + $0x38] sm:$0xff] %v383_v30  ;;  %v436_v41 = vadd.f32 %v921_v52, %v418_v2  ;;  %v391_v42 = vsub.f32 %v383_v30, %v917_v43  ;;  %451 = vst [vmem:[%s1045_s9 + $0x18] sm:$0xff] %v435_v33  ;;  %550 = vrcp.f32 %v246_v36  ;;  %v307_v21 = vmul.f32 %v794_v20, %v778_v4 }
 0x18a   :  { %v437_v35 = vadd.f32 %v921_v52, %v419_v37  ;;  %v402_v59 = vmul.f32 %v774_v3, %v390_v38  ;;  %552 = vrcp.f32 %v247_v10  ;;  %v112_v3 = vld [vmem:[%s1038_s2] sm:$0xff] }
 0x18b   :  { %452 = vst [vmem:[%s1045_s9 + $0x20] sm:$0xff] %v436_v41  ;;  %v403_v9 = vmul.f32 %v861_v25, %v391_v42  ;;  %v113_v25 = vld [vmem:[%s1038_s2 + $0x8] sm:$0xff]  ;;  %v352_v58 = vmul.f32 %v335_v53, %v112_v3 }
 0x18c   :  { %453 = vst [vmem:[%s1045_s9 + $0x28] sm:$0xff] %v437_v35  ;;  %v420_v43 = vmul.f32 %v892_v14, %v402_v59  ;;  %v353_v6 = vmul.f32 %v335_v53, %v113_v25 }
 0x18d   :  { %v421_v40 = vmul.f32 %v892_v14, %v403_v9  ;;  %v272_v14 = vmul.f32 %v791_v13, %v778_v4  ;;  %v308_v13 = vmul.f32 %v794_v20, %v782_v7 }
 0x18e   :  { %v438_v47 = vadd.f32 %v430_v31, %v420_v43 }
 0x18f   :  { %v547_v61 = vpop.eup %546  ;;  %v439_v48 = vadd.f32 %v430_v31, %v421_v40 }
 0x190   :  { %v549_v44 = vpop.eup %548  ;;  %454 = vst [vmem:[%s1045_s9 + $0x30] sm:$0xff] %v438_v47  ;;  %v263_v8 = vmul.f32 %v547_v61, %v788_v12 }
 0x191   :  { %455 = vst [vmem:[%s1045_s9 + $0x38] sm:$0xff] %v439_v48  ;;  %v264_v55 = vmul.f32 %v549_v44, %v788_v12 }
 0x192   :  { %v280_v22 = vadd.f32 %v272_v14, %v263_v8 }
 0x193   :  { %v551_v0 = vpop.eup %550  ;;  %v281_v5 = vadd.f32 %v273_v1, %v264_v55 }
 0x194   :  { %v553_v23 = vpop.eup %552  ;;  %v289_v11 = vadd.f32 %v803_v16, %v280_v22  ;;  %v298_v15 = vmul.f32 %v551_v0, %v806_v17 }
 0x195   :  { %v290_v18 = vadd.f32 %v803_v16, %v281_v5  ;;  %v299_v12 = vmul.f32 %v553_v23, %v806_v17 }
 0x196   :  { %v315_v50 = vadd.f32 %v307_v21, %v298_v15  ;;  %v360_v51 = vsub.f32 %v352_v58, %v289_v11 }
 0x197   :  { %v316_v56 = vadd.f32 %v308_v13, %v299_v12  ;;  %v361_v19 = vsub.f32 %v353_v6, %v290_v18 }
 0x198   :  { %v324_v26 = vadd.f32 %v811_v24, %v315_v50 }
 0x199   :  { %v325_v54 = vadd.f32 %v811_v24, %v316_v56 }
 0x19a   :  { %v368_v27 = vmul.f32 %v360_v51, %v324_v26 }
 0x19b   :  { %v369_v28 = vmul.f32 %v361_v19, %v325_v54 }
 0x19c   :  { %v376_v62 = vadd.f32 %v368_v27, %v289_v11 }
 0x19d   :  { %v377_v29 = vadd.f32 %v369_v28, %v290_v18 }
 0x19e   :  { %v384_v4 = vsub.f32 %v376_v62, %v930_v57  ;;  %440 = vst [vmem:[%s1044_s8] sm:$0xff] %v376_v62 }
 0x19f   :  { %v385_v7 = vsub.f32 %v377_v29, %v940_v46  ;;  %441 = vst [vmem:[%s1044_s8 + $0x8] sm:$0xff] %v377_v29 }
 0x1a0   :  { %v393_v20 = vmul.f32 %v757_v45, %v384_v4 }
 0x1a1   :  { %v395_v16 = vmul.f32 %v768_v49, %v385_v7 }
 0x1a2   :  { %v414_v17 = vmul.f32 %v872_v60, %v393_v20 }
 0x1a3   :  { %v415_v24 = vmul.f32 %v872_v60, %v395_v16 }
 0x1a4   :  { %v432_v57 = vadd.f32 %v921_v52, %v414_v17 }
 0x1a5   :  { %v433_v39 = vadd.f32 %v921_v52, %v415_v24 }
 0x1a6   :  { %448 = vst [vmem:[%s1045_s9] sm:$0xff] %v432_v57 }
 0x1a7   :  { %449 = vst [vmem:[%s1045_s9 + $0x8] sm:$0xff] %v433_v39 }
 0x1a8   :  { %464 = vsyncpa [#allocation3], 1 }

// kernel: ladder_forward.11
= control target key start
LH: loop header
LB: loop body
LE: loop exit
PB: predicated region body
PF: predicated region fallthrough
CT: control target
= control target key end

     0   :  { %s3970_s21 = smov 16   ;;  %v3971_v4 = vmov 0.0   ;;  %s5163_s0 = inlined_call_operand.vmem [shape: f32[2,8,256], index: 0, kind: input, shape index: {}]   ;;  %s5164_s1 = inlined_call_operand.vmem [shape: f32[2,8,256], index: 1, kind: input, shape index: {}]   ;;  %s5165_s2 = inlined_call_operand.vmem [shape: f32[9,16,8], index: 2, kind: input, shape index: {}]   ;;  %s5166_s3 = inlined_call_operand.vmem [shape: f32[16,1], index: 3, kind: input, shape index: {}]   ;;  %s5167_s4 = inlined_call_operand.vmem [shape: f32[16,1], index: 4, kind: input, shape index: {}]   ;;  %s5168_s5 = inlined_call_operand.vmem [shape: f32[2,16,256], index: 5, kind: input, shape index: {}]   ;;  %s5169_s6 = inlined_call_operand.vmem [shape: f32[16,256], index: 6, kind: output, shape index: {0}]   ;;  %s5170_s7 = inlined_call_operand.vmem [shape: f32[16,256], index: 7, kind: output, shape index: {1}]   ;;  %s5171_s8 = inlined_call_operand.vmem [shape: f32[2,16,256], index: 8, kind: output, shape index: {2}]   ;;  %s5172_s9 = inlined_call_operand.hbm [shape: f32[2,16,256], index: 9, kind: output, shape index: {3}]   ;;  %s5173_s10 = inlined_call_operand.vmem [shape: f32[2,16,256], index: 10, kind: output, shape index: {4}]   ;;  %s5174_s11 = inlined_call_operand.vmem [shape: f32[2,16,256], index: 11, kind: output, shape index: {5}]  }
   0x1   :  { %v4045_v0 = vld [vmem:[%s5163_s0 + $0x8] sm:$0xff]  ;;  %v4050_v1 = vld [vmem:[%s5163_s0] sm:$0xff]  ;;  %v4059_v2 = vld [vmem:[%s5163_s0 + $0x18] sm:$0xff]  ;;  %180 = vmatprep.mubr.f32.mxu0 %v3971_v4  ;;  %340 = vmatprep.mubr.f32.mxu1 %v3971_v4 }
   0x2   :  { %92 = vrot.lane.b32.xlu1 %v4045_v0, %s3970_s21  ;;  %88 = vrot.lane.b32.xlu0 %v4050_v1, %s3970_s21  ;;  %v4064_v3 = vld [vmem:[%s5163_s0 + $0x10] sm:$0xff] }
   0x3   :  { %17 = vsyncpa [#allocation3], 0  ;;  %s3972_s26 = smov 17   ;;  %s3973_s0 = smov 15   ;;  %v4131_v5 = vld [vmem:[%s5164_s1] sm:$0xff]  ;;  %v4136_v6 = vld [vmem:[%s5164_s1 + $0x10] sm:$0xff]  ;;  %v56_v9 = vlaneseq }
   0x4   :  { %s3974_s27 = smov 1   ;;  %s3975_s28 = smov 127   ;;  %v4145_v7 = vld [vmem:[%s5164_s1 + $0x8] sm:$0xff]  ;;  %v4150_v8 = vld [vmem:[%s5164_s1 + $0x18] sm:$0xff]  ;;  %v4211_v15 = vld [vmem:[%s5165_s2 + $0x10] sm:$0xff]  ;;  %vm109_vm2 = vcmask 64512  }
   0x5   :  { %s3976_s29 = smov 113   ;;  %s3977_s30 = smov 112   ;;  %v4192_v10 = vand.u32 127, %v56_v9  ;;  %v4232_v21 = vld [vmem:[%s5165_s2 + $0x18] sm:$0xff]  ;;  %v4283_v35 = vld [vmem:[%s5165_s2] sm:$0xff]  ;;  %v4302_v38 = vld [vmem:[%s5165_s2 + $0x8] sm:$0xff] }
   0x6   :  { %94 = vrot.lane.b32.xlu1 %v4059_v2, %s3970_s21  ;;  %90 = vrot.lane.b32.xlu0 %v4064_v3, %s3970_s21  ;;  %s3978_s12 = smov 111   ;;  %v4337_v48 = vld [vmem:[%s5165_s2 + $0x20] sm:$0xff]  ;;  %v4356_v51 = vld [vmem:[%s5165_s2 + $0x28] sm:$0xff] }
   0x7   :  { %vm96_vm0 = vcmp.lt.s32.totalorder %v4192_v10, 16  ;;  %vm74_vm1 = vcmp.ge.s32.totalorder %v4192_v10, 16  ;;  %v4218_v16 = vadd.s32 128, %v4192_v10  ;;  %v59_v22 = vand.u32 15, %v4192_v10  ;;  %v4379_v58 = vld [vmem:[%s5165_s2 + $0x30] sm:$0xff]  ;;  %v4396_v61 = vld [vmem:[%s5165_s2 + $0x38] sm:$0xff] }
   0x8   :  { %vm69_vm4 = vcmp.lt.s32.totalorder %v4192_v10, 17  ;;  %vm438_vm8 = vcmp.lt.s32.totalorder %v4192_v10, 15  ;;  %vm631_vm11 = vcmp.lt.s32.totalorder %v4192_v10, 1  ;;  %vm5176_vm12 = vcmp.lt.s32.totalorder %v4192_v10, 127 }
   0x9   :  { %v60_v23 = vand.u32 15, %v4218_v16  ;;  %vm4247_vm3 = vcmp.ge.s32.totalorder %v59_v22, 1  ;;  %vm4304_vm7 = vcmp.lt.s32.totalorder %v59_v22, 15  ;;  %vm1183_vm13 = vcmp.lt.s32.totalorder %v4218_v16, 240 }
   0xa   :  { %63 = vrot.lane.b32.xlu1 %v4064_v3, %s3972_s26  ;;  %61 = vrot.lane.b32.xlu0 %v4050_v1, %s3972_s26  ;;  %vm4267_vm6 = vmand %vm74_vm1, %vm4247_vm3  ;;  %vm5175_vm14 = vcmp.lt.s32.totalorder %v4192_v10, 113 }
   0xb   :  { %vm4255_vm5 = vcmp.ge.s32.totalorder %v60_v23, 1  ;;  %vm4309_vm9 = vcmp.lt.s32.totalorder %v60_v23, 15  ;;  %vm4321_vm10 = vmand %vm74_vm1, %vm4304_vm7 }
   0xc   :  { %vm4447_vm15 = vmand %vm1183_vm13, %vm4255_vm5 }
   0xe   :  { %67 = vrot.lane.b32.xlu1 %v4059_v2, %s3972_s26  ;;  %65 = vrot.lane.b32.xlu0 %v4045_v0, %s3972_s26 }
  0x12   :  { %432 = vrot.lane.b32.xlu1 %v4064_v3, %s3973_s0  ;;  %430 = vrot.lane.b32.xlu0 %v4050_v1, %s3973_s0 }
  0x16   :  { %436 = vrot.lane.b32.xlu1 %v4059_v2, %s3973_s0  ;;  %434 = vrot.lane.b32.xlu0 %v4045_v0, %s3973_s0 }
  0x1a   :  { %625 = vrot.lane.b32.xlu1 %v4064_v3, %s3974_s27  ;;  %623 = vrot.lane.b32.xlu0 %v4050_v1, %s3974_s27 }
  0x1e   :  { %629 = vrot.lane.b32.xlu1 %v4059_v2, %s3974_s27  ;;  %627 = vrot.lane.b32.xlu0 %v4045_v0, %s3974_s27 }
  0x22   :  { %980 = vrot.lane.b32.xlu0 %v4050_v1, %s3975_s28  ;;  %982 = vrot.lane.b32.xlu1 %v4064_v3, %s3975_s28 }
  0x26   :  { %984 = vrot.lane.b32.xlu0 %v4045_v0, %s3975_s28  ;;  %986 = vrot.lane.b32.xlu1 %v4059_v2, %s3975_s28 }
  0x2a   :  { %1169 = vrot.lane.b32.xlu0 %v4050_v1, %s3976_s29  ;;  %1171 = vrot.lane.b32.xlu1 %v4064_v3, %s3976_s29 }
  0x2e   :  { %1173 = vrot.lane.b32.xlu0 %v4045_v0, %s3976_s29  ;;  %1175 = vrot.lane.b32.xlu1 %v4059_v2, %s3976_s29 }
  0x32   :  { %1362 = vrot.lane.b32.xlu0 %v4050_v1, %s3977_s30  ;;  %1364 = vrot.lane.b32.xlu1 %v4064_v3, %s3977_s30 }
  0x36   :  { %1366 = vrot.lane.b32.xlu0 %v4045_v0, %s3977_s30  ;;  %1368 = vrot.lane.b32.xlu1 %v4059_v2, %s3977_s30 }
  0x3a   :  { %1551 = vrot.lane.b32.xlu0 %v4050_v1, %s3978_s12  ;;  %1553 = vrot.lane.b32.xlu1 %v4064_v3, %s3978_s12 }
  0x3e   :  { %1555 = vrot.lane.b32.xlu0 %v4045_v0, %s3978_s12  ;;  %1557 = vrot.lane.b32.xlu1 %v4059_v2, %s3978_s12 }
  0x42   :  { %1954 = vrot.lane.b32.xlu0 %v4131_v5, %s3970_s21  ;;  %1956 = vrot.lane.b32.xlu1 %v4136_v6, %s3970_s21 }
  0x46   :  { %1958 = vrot.lane.b32.xlu0 %v4145_v7, %s3970_s21  ;;  %1960 = vrot.lane.b32.xlu1 %v4150_v8, %s3970_s21 }
  0x4a   :  { %1938 = vrot.lane.b32.xlu0 %v4131_v5, %s3972_s26  ;;  %1940 = vrot.lane.b32.xlu1 %v4136_v6, %s3972_s26 }
  0x4e   :  { %1942 = vrot.lane.b32.xlu0 %v4145_v7, %s3972_s26  ;;  %1944 = vrot.lane.b32.xlu1 %v4150_v8, %s3972_s26 }
  0x52   :  { %2278 = vrot.lane.b32.xlu0 %v4131_v5, %s3973_s0  ;;  %2280 = vrot.lane.b32.xlu1 %v4136_v6, %s3973_s0 }
  0x56   :  { %2282 = vrot.lane.b32.xlu0 %v4145_v7, %s3973_s0  ;;  %2284 = vrot.lane.b32.xlu1 %v4150_v8, %s3973_s0 }
  0x5a   :  { %2456 = vrot.lane.b32.xlu0 %v4131_v5, %s3974_s27  ;;  %2458 = vrot.lane.b32.xlu1 %v4136_v6, %s3974_s27 }
  0x5e   :  { %2460 = vrot.lane.b32.xlu0 %v4145_v7, %s3974_s27  ;;  %2462 = vrot.lane.b32.xlu1 %v4150_v8, %s3974_s27 }
  0x62   :  { %2796 = vrot.lane.b32.xlu0 %v4131_v5, %s3975_s28  ;;  %2798 = vrot.lane.b32.xlu1 %v4136_v6, %s3975_s28 }
  0x66   :  { %2800 = vrot.lane.b32.xlu0 %v4145_v7, %s3975_s28  ;;  %2802 = vrot.lane.b32.xlu1 %v4150_v8, %s3975_s28 }
  0x6a   :  { %2974 = vrot.lane.b32.xlu0 %v4131_v5, %s3976_s29  ;;  %2976 = vrot.lane.b32.xlu1 %v4136_v6, %s3976_s29 }
  0x6e   :  { %2978 = vrot.lane.b32.xlu0 %v4145_v7, %s3976_s29  ;;  %2980 = vrot.lane.b32.xlu1 %v4150_v8, %s3976_s29 }
  0x72   :  { %3152 = vrot.lane.b32.xlu0 %v4131_v5, %s3977_s30  ;;  %3154 = vrot.lane.b32.xlu1 %v4136_v6, %s3977_s30 }
  0x74   :  { %v93_v11 = vpop.permute.xlu1 %92  ;;  %v89_v12 = vpop.permute.xlu0 %88 }
  0x75   :  { %v97_v13 = vsel %vm96_vm0, %v89_v12, %v93_v11  ;;  %v99_v14 = vsel %vm96_vm0, %v93_v11, %v89_v12 }
  0x76   :  { %116 = vmatprep.subr.mxu0 %v97_v13  ;;  %3156 = vrot.lane.b32.xlu0 %v4145_v7, %s3977_s30  ;;  %v4437_v13 = vld [vmem:[%s5165_s2 + $0x48] sm:$0xff] }
  0x77   :  { %3660 = vmatpush1.msk.msra.mxu0 %vm74_vm1, %v99_v14  ;;  %3158 = vrot.lane.b32.xlu1 %v4150_v8, %s3977_s30 }
  0x78   :  { %v95_v17 = vpop.permute.xlu1 %94  ;;  %v91_v18 = vpop.permute.xlu0 %90  ;;  %3661 = vmatmul.mubr.msk.f32.vlgmr.msra.gmra.mrb[0].mxu0 %vm109_vm2, %v4211_v15 }
  0x79   :  { %v98_v19 = vsel %vm96_vm0, %v91_v18, %v95_v17  ;;  %v100_v20 = vsel %vm96_vm0, %v95_v17, %v91_v18  ;;  %186 = vmatprep.mubr.f32.mxu0 %v3971_v4 }
  0x7a   :  { %276 = vmatprep.subr.mxu1 %v98_v19  ;;  %3330 = vrot.lane.b32.xlu0 %v4131_v5, %s3978_s12 }
  0x7b   :  { %3667 = vmatpush1.msk.msra.mxu1 %vm74_vm1, %v100_v20  ;;  %3332 = vrot.lane.b32.xlu1 %v4136_v6, %s3978_s12  ;;  %v4462_v20 = vld [vmem:[%s5165_s2 + $0x50] sm:$0xff] }
  0x7c   :  { %v64_v24 = vpop.permute.xlu1 %63  ;;  %v62_v25 = vpop.permute.xlu0 %61  ;;  %3668 = vmatmul.mubr.msk.f32.vlgmr.msra.gmra.mrb[0].mxu1 %vm109_vm2, %v4211_v15  ;;  %3662 = vmatmul.mubr.msk.f32.gmra.mrb[2].mxu0 %vm109_vm2, %v4232_v21 }
  0x7d   :  { %346 = vmatprep.mubr.f32.mxu1 %v3971_v4  ;;  %263 = vmatprep.mubr.f32.mxu0 %v3971_v4 }
  0x7e   :  { %3334 = vrot.lane.b32.xlu0 %v4145_v7, %s3978_s12 }
  0x7f   :  { %3336 = vrot.lane.b32.xlu1 %v4150_v8, %s3978_s12 }
  0x80   :  { %v68_v28 = vpop.permute.xlu1 %67  ;;  %v66_v29 = vpop.permute.xlu0 %65  ;;  %3669 = vmatmul.mubr.msk.f32.gmra.mrb[2].mxu1 %vm109_vm2, %v4232_v21 }
  0x81   :  { %v71_v31 = vsel %vm69_vm4, %v64_v24, %v68_v28  ;;  %v73_v32 = vsel %vm69_vm4, %v68_v28, %v64_v24  ;;  %v70_v33 = vsel %vm69_vm4, %v62_v25, %v66_v29  ;;  %v72_v34 = vsel %vm69_vm4, %v66_v29, %v62_v25  ;;  %417 = vmatprep.mubr.f32.mxu1 %v3971_v4  ;;  %v4484_v29 = vld [vmem:[%s5165_s2 + $0x58] sm:$0xff] }
  0x82   :  { %3663 = vmatprep.subr.msk.mxu0 %vm4255_vm5, %v70_v33  ;;  %3670 = vmatprep.subr.msk.mxu1 %vm4255_vm5, %v71_v31 }
  0x83   :  { %3664 = vmatpush1.msk.msra.mxu0 %vm4267_vm6, %v72_v34  ;;  %3671 = vmatpush1.msk.msra.mxu1 %vm4267_vm6, %v73_v32  ;;  %v4501_v34 = vld [vmem:[%s5165_s2 + $0x60] sm:$0xff] }
  0x84   :  { %v433_v36 = vpop.permute.xlu1 %432  ;;  %v431_v37 = vpop.permute.xlu0 %430  ;;  %3665 = vmatmul.mubr.msk.f32.vlgmr.msra.gmra.mrb[0].mxu0 %vm109_vm2, %v4283_v35  ;;  %3672 = vmatmul.mubr.msk.f32.vlgmr.msra.gmra.mrb[0].mxu1 %vm109_vm2, %v4283_v35 }
  0x85   :  { %269 = vmatprep.mubr.f32.mxu0 %v3971_v4  ;;  %423 = vmatprep.mubr.f32.mxu1 %v3971_v4 }
  0x88   :  { %v437_v41 = vpop.permute.xlu1 %436  ;;  %v435_v42 = vpop.permute.xlu0 %434  ;;  %3666 = vmatmul.mubr.msk.f32.gmra.mrb[2].mxu0 %vm109_vm2, %v4302_v38  ;;  %3673 = vmatmul.mubr.msk.f32.gmra.mrb[2].mxu1 %vm109_vm2, %v4302_v38 }
  0x89   :  { %v440_v44 = vsel %vm438_vm8, %v433_v36, %v437_v41  ;;  %v442_v45 = vsel %vm438_vm8, %v437_v41, %v433_v36  ;;  %v439_v46 = vsel %vm438_vm8, %v431_v37, %v435_v42  ;;  %v441_v47 = vsel %vm438_vm8, %v435_v42, %v431_v37  ;;  %525 = vmatprep.mubr.f32.mxu0 %v3971_v4 }
  0x8a   :  { %3674 = vmatprep.subr.msk.mxu0 %vm4309_vm9, %v439_v46  ;;  %3678 = vmatprep.subr.msk.mxu1 %vm4309_vm9, %v440_v44 }
  0x8b   :  { %3675 = vmatpush1.msk.msra.mxu0 %vm4321_vm10, %v441_v47  ;;  %3679 = vmatpush1.msk.msra.mxu1 %vm4321_vm10, %v442_v45  ;;  %v4521_v45 = vld [vmem:[%s5165_s2 + $0x68] sm:$0xff] }
  0x8c   :  { %606 = vmatprep.mubr.f32.mxu1 %v3971_v4  ;;  %v626_v49 = vpop.permute.xlu1 %625  ;;  %v624_v50 = vpop.permute.xlu0 %623  ;;  %3676 = vmatmul.mubr.msk.f32.vlgmr.msra.gmra.mrb[0].mxu0 %vm109_vm2, %v4337_v48 }
  0x8d   :  { %3680 = vmatmul.mubr.msk.f32.vlgmr.msra.gmra.mrb[0].mxu1 %vm109_vm2, %v4337_v48  ;;  %531 = vmatprep.mubr.f32.mxu0 %v3971_v4 }
  0x8e   :  { %612 = vmatprep.mubr.f32.mxu1 %v3971_v4 }
  0x90   :  { %v630_v52 = vpop.permute.xlu1 %629  ;;  %v628_v53 = vpop.permute.xlu0 %627  ;;  %3677 = vmatmul.mubr.msk.f32.gmra.mrb[2].mxu0 %vm109_vm2, %v4356_v51 }
  0x91   :  { %v633_v54 = vsel %vm631_vm11, %v626_v49, %v630_v52  ;;  %v635_v55 = vsel %vm631_vm11, %v630_v52, %v626_v49  ;;  %v632_v56 = vsel %vm631_vm11, %v624_v50, %v628_v53  ;;  %v634_v57 = vsel %vm631_vm11, %v628_v53, %v624_v50  ;;  %3681 = vmatmul.mubr.msk.f32.gmra.mrb[2].mxu1 %vm109_vm2, %v4356_v51  ;;  %v4544_v52 = vld [vmem:[%s5165_s2 + $0x70] sm:$0xff] }
  0x92   :  { %3682 = vmatprep.subr.msk.mxu0 %vm4255_vm5, %v632_v56  ;;  %3686 = vmatprep.subr.msk.mxu1 %vm4255_vm5, %v633_v54 }
  0x93   :  { %3683 = vmatpush1.msk.msra.mxu0 %vm4247_vm3, %v634_v57  ;;  %714 = vmatprep.mubr.f32.mxu0 %v3971_v4 }
  0x94   :  { %3687 = vmatpush1.msk.msra.mxu1 %vm4247_vm3, %v635_v55  ;;  %795 = vmatprep.mubr.f32.mxu1 %v3971_v4  ;;  %v981_v59 = vpop.permute.xlu0 %980  ;;  %v983_v60 = vpop.permute.xlu1 %982 }
  0x95   :  { %3684 = vmatmul.mubr.msk.f32.vlgmr.msra.gmra.mrb[0].mxu0 %vm109_vm2, %v4379_v58  ;;  %3688 = vmatmul.mubr.msk.f32.vlgmr.msra.gmra.mrb[0].mxu1 %vm109_vm2, %v4379_v58 }
  0x96   :  { %720 = vmatprep.mubr.f32.mxu0 %v3971_v4  ;;  %801 = vmatprep.mubr.f32.mxu1 %v3971_v4 }
  0x97   :  { %818 = vmatprep.subr.mxu0 %v4045_v0  ;;  %899 = vmatprep.subr.mxu1 %v4059_v2  ;;  %v4414_v0 = vld [vmem:[%s5165_s2 + $0x40] sm:$0xff] }
  0x98   :  { %v985_v62 = vpop.permute.xlu0 %984  ;;  %819 = vmatpush1.msra.mxu0 %v4050_v1  ;;  %900 = vmatpush1.msra.mxu1 %v4064_v3  ;;  %v987_v63 = vpop.permute.xlu1 %986 }
  0x99   :  { %3685 = vmatmul.mubr.msk.f32.gmra.mrb[2].mxu0 %vm109_vm2, %v4396_v61  ;;  %3689 = vmatmul.mubr.msk.f32.gmra.mrb[2].mxu1 %vm109_vm2, %v4396_v61  ;;  %v991_v9 = vsel %vm5176_vm12, %v985_v62, %v981_v59  ;;  %v992_v1 = vsel %vm5176_vm12, %v987_v63, %v983_v60  ;;  %v989_v2 = vsel %vm5176_vm12, %v981_v59, %v985_v62  ;;  %v4566_v59 = vld [vmem:[%s5165_s2 + $0x78] sm:$0xff] }
  0x9a   :  { %882 = vmatprep.mubr.f32.mxu0 %v3971_v4  ;;  %963 = vmatprep.mubr.f32.mxu1 %v3971_v4  ;;  %v990_v3 = vsel %vm5176_vm12, %v983_v60, %v987_v63  ;;  %vm1559_vm12 = vcmp.lt.s32.totalorder %v4192_v10, 111 }
  0x9b   :  { %3694 = vmatprep.subr.msk.mxu0 %vm4309_vm9, %v991_v9  ;;  %3698 = vmatprep.subr.msk.mxu1 %vm4309_vm9, %v992_v1  ;;  %v4582_v9 = vld [vmem:[%s5165_s2 + $0x80] sm:$0xff] }
  0x9c   :  { %v1170_v11 = vpop.permute.xlu0 %1169  ;;  %v1172_v12 = vpop.permute.xlu1 %1171 }
  0x9d   :  { %3690 = vmatmul.mubr.msk.f32.vlgmr.msra.gmra.mrb[0].mxu0 %vm109_vm2, %v4414_v0  ;;  %3692 = vmatmul.mubr.msk.f32.vlgmr.msra.gmra.mrb[0].mxu1 %vm109_vm2, %v4414_v0 }
  0x9e   :  { %3695 = vmatpush1.msk.msra.mxu0 %vm4304_vm7, %v989_v2  ;;  %888 = vmatprep.mubr.f32.mxu0 %v3971_v4 }
  0x9f   :  { %969 = vmatprep.mubr.f32.mxu1 %v3971_v4  ;;  %3699 = vmatpush1.msk.msra.mxu1 %vm4304_vm7, %v990_v3 }
  0xa0   :  { %v1174_v14 = vpop.permute.xlu0 %1173  ;;  %v1176_v18 = vpop.permute.xlu1 %1175 }
  0xa1   :  { %3691 = vmatmul.mubr.msk.f32.gmra.mrb[2].mxu0 %vm109_vm2, %v4437_v13  ;;  %3693 = vmatmul.mubr.msk.f32.gmra.mrb[2].mxu1 %vm109_vm2, %v4437_v13  ;;  %v1180_v19 = vsel %vm5175_vm14, %v1174_v14, %v1170_v11  ;;  %v1181_v22 = vsel %vm5175_vm14, %v1176_v18, %v1172_v12  ;;  %v1178_v23 = vsel %vm5175_vm14, %v1170_v11, %v1174_v14  ;;  %v4600_v14 = vld [vmem:[%s5165_s2 + $0x88] sm:$0xff] }
  0xa2   :  { %1071 = vmatprep.mubr.f32.mxu0 %v3971_v4  ;;  %1152 = vmatprep.mubr.f32.mxu1 %v3971_v4  ;;  %v1179_v24 = vsel %vm5175_vm14, %v1172_v12, %v1176_v18  ;;  %vm5177_vm14 = vcmp.lt.s32.totalorder %v4192_v10, 112 }
  0xa3   :  { %3702 = vmatprep.subr.msk.mxu0 %vm4447_vm15, %v1180_v19  ;;  %3706 = vmatprep.subr.msk.mxu1 %vm4447_vm15, %v1181_v22 }
  0xa4   :  { %v1363_v25 = vpop.permute.xlu0 %1362  ;;  %v1365_v28 = vpop.permute.xlu1 %1364 }
  0xa5   :  { %3696 = vmatmul.mubr.msk.f32.vlgmr.msra.gmra.mrb[0].mxu0 %vm109_vm2, %v4462_v20  ;;  %3700 = vmatmul.mubr.msk.f32.vlgmr.msra.gmra.mrb[0].mxu1 %vm109_vm2, %v4462_v20 }
  0xa6   :  { %3703 = vmatpush1.msk.msra.mxu0 %vm4247_vm3, %v1178_v23  ;;  %1077 = vmatprep.mubr.f32.mxu0 %v3971_v4 }
  0xa7   :  { %1158 = vmatprep.mubr.f32.mxu1 %v3971_v4  ;;  %3707 = vmatpush1.msk.msra.mxu1 %vm4247_vm3, %v1179_v24 }
  0xa8   :  { %v1367_v31 = vpop.permute.xlu0 %1366  ;;  %v1369_v32 = vpop.permute.xlu1 %1368 }
  0xa9   :  { %3697 = vmatmul.mubr.msk.f32.gmra.mrb[2].mxu0 %vm109_vm2, %v4484_v29  ;;  %3701 = vmatmul.mubr.msk.f32.gmra.mrb[2].mxu1 %vm109_vm2, %v4484_v29  ;;  %v1373_v33 = vsel %vm5177_vm14, %v1367_v31, %v1363_v25  ;;  %v1374_v36 = vsel %vm5177_vm14, %v1369_v32, %v1365_v28  ;;  %v1371_v37 = vsel %vm5177_vm14, %v1363_v25, %v1367_v31 }
  0xaa   :  { %1264 = vmatprep.mubr.f32.mxu0 %v3971_v4  ;;  %1345 = vmatprep.mubr.f32.mxu1 %v3971_v4  ;;  %v1372_v41 = vsel %vm5177_vm14, %v1365_v28, %v1369_v32  ;;  %vm4529_vm14 = vmand %vm1183_vm13, %vm4309_vm9 }
  0xab   :  { %3710 = vmatprep.subr.msk.mxu0 %vm1183_vm13, %v1373_v33  ;;  %3713 = vmatprep.subr.msk.mxu1 %vm1183_vm13, %v1374_v36 }
  0xac   :  { %v1552_v42 = vpop.permute.xlu0 %1551  ;;  %v1554_v44 = vpop.permute.xlu1 %1553 }
  0xad   :  { %3704 = vmatmul.mubr.msk.f32.vlgmr.msra.gmra.mrb[0].mxu0 %vm109_vm2, %v4501_v34  ;;  %3708 = vmatmul.mubr.msk.f32.vlgmr.msra.gmra.mrb[0].mxu1 %vm109_vm2, %v4501_v34 }
  0xae   :  { %1390 = vmatpush1.msra.mxu0 %v1371_v37  ;;  %1270 = vmatprep.mubr.f32.mxu0 %v3971_v4 }
  0xaf   :  { %1351 = vmatprep.mubr.f32.mxu1 %v3971_v4  ;;  %1471 = vmatpush1.msra.mxu1 %v1372_v41 }
  0xb0   :  { %v1556_v46 = vpop.permute.xlu0 %1555  ;;  %v1558_v49 = vpop.permute.xlu1 %1557 }
  0xb1   :  { %3705 = vmatmul.mubr.msk.f32.gmra.mrb[2].mxu0 %vm109_vm2, %v4521_v45  ;;  %3709 = vmatmul.mubr.msk.f32.gmra.mrb[2].mxu1 %vm109_vm2, %v4521_v45  ;;  %v1562_v50 = vsel %vm1559_vm12, %v1556_v46, %v1552_v42  ;;  %v1563_v53 = vsel %vm1559_vm12, %v1558_v49, %v1554_v44  ;;  %v1560_v54 = vsel %vm1559_vm12, %v1552_v42, %v1556_v46 }
  0xb2   :  { %1453 = vmatprep.mubr.f32.mxu0 %v3971_v4  ;;  %1534 = vmatprep.mubr.f32.mxu1 %v3971_v4  ;;  %v1561_v55 = vsel %vm1559_vm12, %v1554_v44, %v1558_v49 }
  0xb3   :  { %3716 = vmatprep.subr.msk.mxu0 %vm4529_vm14, %v1562_v50  ;;  %3720 = vmatprep.subr.msk.mxu1 %vm4529_vm14, %v1563_v53 }
  0xb4   :  { %v1955_v56 = vpop.permute.xlu0 %1954  ;;  %v1957_v57 = vpop.permute.xlu1 %1956 }
  0xb5   :  { %3711 = vmatmul.mubr.msk.f32.vlgmr.msra.gmra.mrb[0].mxu0 %vm109_vm2, %v4544_v52  ;;  %3714 = vmatmul.mubr.msk.f32.vlgmr.msra.gmra.mrb[0].mxu1 %vm109_vm2, %v4544_v52 }
  0xb6   :  { %3717 = vmatpush1.msk.msra.mxu0 %vm4304_vm7, %v1560_v54  ;;  %1459 = vmatprep.mubr.f32.mxu0 %v3971_v4 }
  0xb7   :  { %1540 = vmatprep.mubr.f32.mxu1 %v3971_v4  ;;  %3721 = vmatpush1.msk.msra.mxu1 %vm4304_vm7, %v1561_v55 }
  0xb8   :  { %v1959_v60 = vpop.permute.xlu0 %1958  ;;  %v1961_v62 = vpop.permute.xlu1 %1960 }
  0xb9   :  { %3712 = vmatmul.mubr.msk.f32.gmra.mrb[2].mxu0 %vm109_vm2, %v4566_v59  ;;  %3715 = vmatmul.mubr.msk.f32.gmra.mrb[2].mxu1 %vm109_vm2, %v4566_v59  ;;  %v1962_v63 = vsel %vm96_vm0, %v1955_v56, %v1959_v60  ;;  %v1963_v1 = vsel %vm96_vm0, %v1957_v57, %v1961_v62  ;;  %v1964_v2 = vsel %vm96_vm0, %v1959_v60, %v1955_v56 }
  0xba   :  { %1644 = vmatprep.mubr.f32.mxu0 %v3971_v4  ;;  %1725 = vmatprep.mubr.f32.mxu1 %v3971_v4  ;;  %v1965_v3 = vsel %vm96_vm0, %v1961_v62, %v1957_v57  ;;  %vm5194_vm0 = vcmp.lt.s32.totalorder %v4192_v10, 127 }
  0xbb   :  { %1970 = vmatprep.subr.mxu0 %v1962_v63  ;;  %2124 = vmatprep.subr.mxu1 %v1963_v1 }
  0xbc   :  { %v1939_v11 = vpop.permute.xlu0 %1938  ;;  %v1941_v12 = vpop.permute.xlu1 %1940 }
  0xbd   :  { %3718 = vmatmul.mubr.msk.f32.vlgmr.msra.gmra.mrb[0].mxu0 %vm109_vm2, %v4582_v9  ;;  %3722 = vmatmul.mubr.msk.f32.vlgmr.msra.gmra.mrb[0].mxu1 %vm109_vm2, %v4582_v9 }
  0xbe   :  { %3724 = vmatpush1.msk.msra.mxu0 %vm74_vm1, %v1964_v2  ;;  %1650 = vmatprep.mubr.f32.mxu0 %v3971_v4 }
  0xbf   :  { %1731 = vmatprep.mubr.f32.mxu1 %v3971_v4  ;;  %3731 = vmatpush1.msk.msra.mxu1 %vm74_vm1, %v1965_v3  ;;  %vm5195_vm1 = vmmov %vm5194_vm0 }
  0xc0   :  { %v1943_v18 = vpop.permute.xlu0 %1942  ;;  %v1945_v19 = vpop.permute.xlu1 %1944 }
  0xc1   :  { %3719 = vmatmul.mubr.msk.f32.gmra.mrb[2].mxu0 %vm109_vm2, %v4600_v14  ;;  %3723 = vmatmul.mubr.msk.f32.gmra.mrb[2].mxu1 %vm109_vm2, %v4600_v14  ;;  %v1946_v22 = vsel %vm69_vm4, %v1939_v11, %v1943_v18  ;;  %v1947_v23 = vsel %vm69_vm4, %v1941_v12, %v1945_v19  ;;  %v1948_v24 = vsel %vm69_vm4, %v1943_v18, %v1939_v11 }
  0xc2   :  { %2034 = vmatprep.mubr.f32.mxu0 %v3971_v4  ;;  %2188 = vmatprep.mubr.f32.mxu1 %v3971_v4  ;;  %v1949_v25 = vsel %vm69_vm4, %v1945_v19, %v1941_v12  ;;  %vm5196_vm4 = vmmov %vm5194_vm0 }
  0xc3   :  { %3727 = vmatprep.subr.msk.mxu0 %vm4255_vm5, %v1946_v22  ;;  %3734 = vmatprep.subr.msk.mxu1 %vm4255_vm5, %v1947_v23 }
  0xc4   :  { %v2279_v28 = vpop.permute.xlu0 %2278  ;;  %v2281_v31 = vpop.permute.xlu1 %2280 }
  0xc5   :  { %3725 = vmatmul.mubr.msk.f32.vlgmr.msra.gmra.mrb[4].mxu0 %vm109_vm2, %v4211_v15  ;;  %3732 = vmatmul.mubr.msk.f32.vlgmr.msra.gmra.mrb[4].mxu1 %vm109_vm2, %v4211_v15 }
  0xc6   :  { %3728 = vmatpush1.msk.msra.mxu0 %vm4267_vm6, %v1948_v24  ;;  %2040 = vmatprep.mubr.f32.mxu0 %v3971_v4 }
  0xc7   :  { %2194 = vmatprep.mubr.f32.mxu1 %v3971_v4  ;;  %3735 = vmatpush1.msk.msra.mxu1 %vm4267_vm6, %v1949_v25  ;;  %vm5198_vm6 = vcmp.lt.s32.totalorder %v4192_v10, 113 }
  0xc8   :  { %v2283_v32 = vpop.permute.xlu0 %2282  ;;  %v2285_v33 = vpop.permute.xlu1 %2284 }
  0xc9   :  { %3726 = vmatmul.mubr.msk.f32.gmra.mrb[6].mxu0 %vm109_vm2, %v4232_v21  ;;  %3733 = vmatmul.mubr.msk.f32.gmra.mrb[6].mxu1 %vm109_vm2, %v4232_v21  ;;  %v2286_v15 = vsel %vm438_vm8, %v2279_v28, %v2283_v32  ;;  %v2287_v36 = vsel %vm438_vm8, %v2281_v31, %v2285_v33  ;;  %v2288_v30 = vsel %vm438_vm8, %v2283_v32, %v2279_v28 }
  0xca   :  { %2111 = vmatprep.mubr.f32.mxu0 %v3971_v4  ;;  %2265 = vmatprep.mubr.f32.mxu1 %v3971_v4  ;;  %v2289_v21 = vsel %vm438_vm8, %v2285_v33, %v2281_v31  ;;  %vm5199_vm8 = vmmov %vm5198_vm6 }
  0xcb   :  { %3738 = vmatprep.subr.msk.mxu0 %vm4309_vm9, %v2286_v15  ;;  %3742 = vmatprep.subr.msk.mxu1 %vm4309_vm9, %v2287_v36 }
  0xcc   :  { %v2457_v37 = vpop.permute.xlu0 %2456  ;;  %v2459_v41 = vpop.permute.xlu1 %2458 }
  0xcd   :  { %3729 = vmatmul.mubr.msk.f32.vlgmr.msra.gmra.mrb[4].mxu0 %vm109_vm2, %v4283_v35  ;;  %3736 = vmatmul.mubr.msk.f32.vlgmr.msra.gmra.mrb[4].mxu1 %vm109_vm2, %v4283_v35 }
  0xce   :  { %3739 = vmatpush1.msk.msra.mxu0 %vm4321_vm10, %v2288_v30  ;;  %2117 = vmatprep.mubr.f32.mxu0 %v3971_v4 }
  0xcf   :  { %2271 = vmatprep.mubr.f32.mxu1 %v3971_v4  ;;  %3743 = vmatpush1.msk.msra.mxu1 %vm4321_vm10, %v2289_v21  ;;  %vm5201_vm10 = vmmov %vm5198_vm6 }
  0xd0   :  { %v2461_v42 = vpop.permute.xlu0 %2460  ;;  %v2463_v44 = vpop.permute.xlu1 %2462 }
  0xd1   :  { %3730 = vmatmul.mubr.msk.f32.gmra.mrb[6].mxu0 %vm109_vm2, %v4302_v38  ;;  %3737 = vmatmul.mubr.msk.f32.gmra.mrb[6].mxu1 %vm109_vm2, %v4302_v38  ;;  %v2464_v35 = vsel %vm631_vm11, %v2457_v37, %v2461_v42  ;;  %v2465_v46 = vsel %vm631_vm11, %v2459_v41, %v2463_v44  ;;  %v2466_v43 = vsel %vm631_vm11, %v2461_v42, %v2457_v37 }
  0xd2   :  { %2358 = vmatprep.mubr.f32.mxu0 %v3971_v4  ;;  %2439 = vmatprep.mubr.f32.mxu1 %v3971_v4  ;;  %v2467_v38 = vsel %vm631_vm11, %v2463_v44, %v2459_v41  ;;  %vm5202_vm11 = vcmp.lt.s32.totalorder %v4192_v10, 112 }
  0xd3   :  { %3746 = vmatprep.subr.msk.mxu0 %vm4255_vm5, %v2464_v35  ;;  %3750 = vmatprep.subr.msk.mxu1 %vm4255_vm5, %v2465_v46  ;;  %vm5197_vm5 = vmmov %vm5194_vm0 }
  0xd4   :  { %v2797_v49 = vpop.permute.xlu0 %2796  ;;  %v2799_v50 = vpop.permute.xlu1 %2798 }
  0xd5   :  { %3740 = vmatmul.mubr.msk.f32.vlgmr.msra.gmra.mrb[4].mxu0 %vm109_vm2, %v4337_v48  ;;  %3744 = vmatmul.mubr.msk.f32.vlgmr.msra.gmra.mrb[4].mxu1 %vm109_vm2, %v4337_v48 }
  0xd6   :  { %3747 = vmatpush1.msk.msra.mxu0 %vm4247_vm3, %v2466_v43  ;;  %2364 = vmatprep.mubr.f32.mxu0 %v3971_v4 }
  0xd7   :  { %2445 = vmatprep.mubr.f32.mxu1 %v3971_v4  ;;  %3751 = vmatpush1.msk.msra.mxu1 %vm4247_vm3, %v2467_v38 }
  0xd8   :  { %2634 = vmatprep.subr.mxu0 %v4145_v7  ;;  %2715 = vmatprep.subr.mxu1 %v4150_v8  ;;  %v2801_v27 = vpop.permute.xlu0 %2800  ;;  %v2803_v53 = vpop.permute.xlu1 %2802 }
  0xd9   :  { %3741 = vmatmul.mubr.msk.f32.gmra.mrb[6].mxu0 %vm109_vm2, %v4356_v51  ;;  %3745 = vmatmul.mubr.msk.f32.gmra.mrb[6].mxu1 %vm109_vm2, %v4356_v51  ;;  %v2806_v7 = vsel %vm5194_vm0, %v2801_v27, %v2797_v49  ;;  %v2807_v8 = vsel %vm5195_vm1, %v2803_v53, %v2799_v50 }
  0xda   :  { %2536 = vmatprep.mubr.f32.mxu0 %v3971_v4  ;;  %2617 = vmatprep.mubr.f32.mxu1 %v3971_v4 }
  0xdc   :  { %v2975_v48 = vpop.permute.xlu0 %2974  ;;  %v2977_v54 = vpop.permute.xlu1 %2976 }
  0xdd   :  { %3748 = vmatmul.mubr.msk.f32.vlgmr.msra.gmra.mrb[4].mxu0 %vm109_vm2, %v4379_v58  ;;  %3752 = vmatmul.mubr.msk.f32.vlgmr.msra.gmra.mrb[4].mxu1 %vm109_vm2, %v4379_v58 }
  0xde   :  { %2542 = vmatprep.mubr.f32.mxu0 %v3971_v4  ;;  %2623 = vmatprep.mubr.f32.mxu1 %v3971_v4 }
  0xdf   :  { %2635 = vmatpush1.msra.mxu0 %v4131_v5  ;;  %2716 = vmatpush1.msra.mxu1 %v4136_v6  ;;  %v2804_v5 = vsel %vm5196_vm4, %v2797_v49, %v2801_v27  ;;  %v2805_v6 = vsel %vm5197_vm5, %v2799_v50, %v2803_v53 }
  0xe0   :  { %3758 = vmatprep.subr.msk.mxu0 %vm4309_vm9, %v2806_v7  ;;  %3762 = vmatprep.subr.msk.mxu1 %vm4309_vm9, %v2807_v8  ;;  %v2979_v51 = vpop.permute.xlu0 %2978  ;;  %v2981_v58 = vpop.permute.xlu1 %2980  ;;  %vm5200_vm9 = vmmov %vm5198_vm6 }
  0xe1   :  { %3749 = vmatmul.mubr.msk.f32.gmra.mrb[6].mxu0 %vm109_vm2, %v4396_v61  ;;  %3753 = vmatmul.mubr.msk.f32.gmra.mrb[6].mxu1 %vm109_vm2, %v4396_v61  ;;  %v2984_v61 = vsel %vm5198_vm6, %v2979_v51, %v2975_v48  ;;  %v2985_v56 = vsel %vm5199_vm8, %v2981_v58, %v2977_v54  ;;  %v2982_v60 = vsel %vm5200_vm9, %v2975_v48, %v2979_v51 }
  0xe2   :  { %2698 = vmatprep.mubr.f32.mxu0 %v3971_v4  ;;  %2779 = vmatprep.mubr.f32.mxu1 %v3971_v4  ;;  %v2983_v62 = vsel %vm5201_vm10, %v2977_v54, %v2981_v58 }
  0xe4   :  { %v3153_v40 = vpop.permute.xlu0 %3152  ;;  %v3155_v55 = vpop.permute.xlu1 %3154 }
  0xe5   :  { %3754 = vmatmul.mubr.msk.f32.vlgmr.msra.gmra.mrb[4].mxu0 %vm109_vm2, %v4414_v0  ;;  %3756 = vmatmul.mubr.msk.f32.vlgmr.msra.gmra.mrb[4].mxu1 %vm109_vm2, %v4414_v0 }
  0xe6   :  { %3759 = vmatpush1.msk.msra.mxu0 %vm4304_vm7, %v2804_v5  ;;  %2704 = vmatprep.mubr.f32.mxu0 %v3971_v4 }
  0xe7   :  { %2785 = vmatprep.mubr.f32.mxu1 %v3971_v4  ;;  %3763 = vmatpush1.msk.msra.mxu1 %vm4304_vm7, %v2805_v6 }
  0xe8   :  { %3766 = vmatprep.subr.msk.mxu0 %vm4447_vm15, %v2984_v61  ;;  %3770 = vmatprep.subr.msk.mxu1 %vm4447_vm15, %v2985_v56  ;;  %v3157_v0 = vpop.permute.xlu0 %3156  ;;  %vm5203_vm15 = vmmov %vm5202_vm11 }
  0xe9   :  { %3755 = vmatmul.mubr.msk.f32.gmra.mrb[6].mxu0 %vm109_vm2, %v4437_v13  ;;  %3757 = vmatmul.mubr.msk.f32.gmra.mrb[6].mxu1 %vm109_vm2, %v4437_v13  ;;  %v3159_v57 = vpop.permute.xlu1 %3158  ;;  %v3162_v13 = vsel %vm5202_vm11, %v3157_v0, %v3153_v40 }
  0xea   :  { %2876 = vmatprep.mubr.f32.mxu0 %v3971_v4  ;;  %2957 = vmatprep.mubr.f32.mxu1 %v3971_v4  ;;  %v3163_v63 = vsel %vm5203_vm15, %v3159_v57, %v3155_v55 }
  0xec   :  { %v3331_v17 = vpop.permute.xlu0 %3330 }
  0xed   :  { %3760 = vmatmul.mubr.msk.f32.vlgmr.msra.gmra.mrb[4].mxu0 %vm109_vm2, %v4462_v20  ;;  %3764 = vmatmul.mubr.msk.f32.vlgmr.msra.gmra.mrb[4].mxu1 %vm109_vm2, %v4462_v20  ;;  %v3333_v1 = vpop.permute.xlu1 %3332 }
  0xee   :  { %3767 = vmatpush1.msk.msra.mxu0 %vm4247_vm3, %v2982_v60  ;;  %2882 = vmatprep.mubr.f32.mxu0 %v3971_v4 }
  0xef   :  { %2963 = vmatprep.mubr.f32.mxu1 %v3971_v4  ;;  %3771 = vmatpush1.msk.msra.mxu1 %vm4247_vm3, %v2983_v62  ;;  %vm5204_vm3 = vmmov %vm5202_vm11 }
  0xf0   :  { %3774 = vmatprep.subr.msk.mxu0 %vm1183_vm13, %v3162_v13  ;;  %3777 = vmatprep.subr.msk.mxu1 %vm1183_vm13, %v3163_v63  ;;  %v3335_v20 = vpop.permute.xlu0 %3334  ;;  %v3160_v26 = vsel %vm5204_vm3, %v3153_v40, %v3157_v0  ;;  %vm5205_vm0 = vmmov %vm5204_vm3  ;;  %v3979_v0 = vmov 0  }
  0xf1   :  { %3761 = vmatmul.mubr.msk.f32.gmra.mrb[6].mxu0 %vm109_vm2, %v4484_v29  ;;  %3765 = vmatmul.mubr.msk.f32.gmra.mrb[6].mxu1 %vm109_vm2, %v4484_v29  ;;  %v3337_v2 = vpop.permute.xlu1 %3336  ;;  %v3161_v3 = vsel %vm5205_vm0, %v3155_v55, %v3159_v57  ;;  %v3340_v16 = vsel %vm1559_vm12, %v3335_v20, %v3331_v17 }
  0xf2   :  { %3054 = vmatprep.mubr.f32.mxu0 %v3971_v4  ;;  %3135 = vmatprep.mubr.f32.mxu1 %v3971_v4  ;;  %v3341_v29 = vsel %vm1559_vm12, %v3337_v2, %v3333_v1  ;;  %v3339_v11 = vsel %vm1559_vm12, %v3333_v1, %v3337_v2 }
  0xf3   :  { %3928 = vset.pattern.permute.xlu1 %v3979_v0  ;;  %3929 = vset.pattern.permute.xlu0 %v3979_v0 }
  0xf5   :  { %3768 = vmatmul.mubr.msk.f32.vlgmr.msra.gmra.mrb[4].mxu0 %vm109_vm2, %v4501_v34  ;;  %3772 = vmatmul.mubr.msk.f32.vlgmr.msra.gmra.mrb[4].mxu1 %vm109_vm2, %v4501_v34  ;;  %v3338_v34 = vsel %vm1559_vm12, %v3331_v17, %v3335_v20 }
  0xf6   :  { %3169 = vmatpush1.msra.mxu0 %v3160_v26  ;;  %3060 = vmatprep.mubr.f32.mxu0 %v3971_v4 }
  0xf7   :  { %3141 = vmatprep.mubr.f32.mxu1 %v3971_v4  ;;  %3250 = vmatpush1.msra.mxu1 %v3161_v3 }
  0xf8   :  { %3780 = vmatprep.subr.msk.mxu0 %vm4529_vm14, %v3340_v16  ;;  %3784 = vmatprep.subr.msk.mxu1 %vm4529_vm14, %v3341_v29 }
  0xf9   :  { %3769 = vmatmul.mubr.msk.f32.gmra.mrb[6].mxu0 %vm109_vm2, %v4521_v45  ;;  %3773 = vmatmul.mubr.msk.f32.gmra.mrb[6].mxu1 %vm109_vm2, %v4521_v45 }
  0xfa   :  { %3232 = vmatprep.mubr.f32.mxu0 %v3971_v4  ;;  %3313 = vmatprep.mubr.f32.mxu1 %v3971_v4 }
  0xfd   :  { %3775 = vmatmul.mubr.msk.f32.vlgmr.msra.gmra.mrb[4].mxu0 %vm109_vm2, %v4544_v52  ;;  %3778 = vmatmul.mubr.msk.f32.vlgmr.msra.gmra.mrb[4].mxu1 %vm109_vm2, %v4544_v52 }
  0xfe   :  { %3781 = vmatpush1.msk.msra.mxu0 %vm4304_vm7, %v3338_v34  ;;  %3238 = vmatprep.mubr.f32.mxu0 %v3971_v4 }
  0xff   :  { %3319 = vmatprep.mubr.f32.mxu1 %v3971_v4  ;;  %3785 = vmatpush1.msk.msra.mxu1 %vm4304_vm7, %v3339_v11 }
 0x101   :  { %3776 = vmatmul.mubr.msk.f32.gmra.mrb[6].mxu0 %vm109_vm2, %v4566_v59  ;;  %3779 = vmatmul.mubr.msk.f32.gmra.mrb[6].mxu1 %vm109_vm2, %v4566_v59 }
 0x102   :  { %3410 = vmatprep.mubr.f32.mxu0 %v3971_v4  ;;  %3491 = vmatprep.mubr.f32.mxu1 %v3971_v4 }
 0x105   :  { %3782 = vmatmul.mubr.msk.f32.vlgmr.msra.gmra.mrb[4].mxu0 %vm109_vm2, %v4582_v9  ;;  %3786 = vmatmul.mubr.msk.f32.vlgmr.msra.gmra.mrb[4].mxu1 %vm109_vm2, %v4582_v9 }
 0x106   :  { %3416 = vmatprep.mubr.f32.mxu0 %v3971_v4  ;;  %3497 = vmatprep.mubr.f32.mxu1 %v3971_v4 }
 0x109   :  { %3783 = vmatmul.mubr.msk.f32.gmra.mrb[6].mxu0 %vm109_vm2, %v4600_v14  ;;  %3787 = vmatmul.mubr.msk.f32.gmra.mrb[6].mxu1 %vm109_vm2, %v4600_v14 }
 0x190   :  { %v4829_v10 = vpop.f32.mrb[0].mxu0  ;;  %v4831_v39 = vpop.f32.mrb[0].mxu1 }
 0x191   :  { %v1742_v45 = vadd.f32 %v4831_v39, %v4829_v10  ;;  %v4835_v47 = vpop.f32.mrb[1].mxu0  ;;  %v4837_v52 = vpop.f32.mrb[1].mxu1 }
 0x192   :  { %v1743_v4 = vadd.f32 %v4837_v52, %v4835_v47  ;;  %v1814_v59 = vadd.f32 %v4835_v47, %v4829_v10  ;;  %v4845_v9 = vadd.f32 %v4837_v52, %v4831_v39 }
 0x193   :  { %v1746_v12 = vmul.f32 0.5, %v1742_v45 }
 0x194   :  { %v1747_v14 = vmul.f32 0.5, %v1743_v4  ;;  %v4847_v18 = vpop.f32.mrb[2].mxu1  ;;  %1815 = vadd.xlane.f32.xlu1 %v1814_v59  ;;  %v4849_v19 = vpop.f32.mrb[2].mxu0 }
 0x195   :  { %v1750_v22 = vsub.f32 %v4829_v10, %v1746_v12  ;;  %v1758_v23 = vsub.f32 %v4831_v39, %v1746_v12  ;;  %1806 = vst [vmem:[%s5169_s6] sm:$0xff] %v1746_v12  ;;  %v1744_v24 = vadd.f32 %v4847_v18, %v4849_v19  ;;  %v4858_v25 = vpop.f32.mrb[3].mxu0  ;;  %v4860_v28 = vpop.f32.mrb[3].mxu1 }
 0x196   :  { %v1751_v31 = vsub.f32 %v4835_v47, %v1747_v14  ;;  %v1759_v32 = vsub.f32 %v4837_v52, %v1747_v14  ;;  %1807 = vst [vmem:[%s5169_s6 + $0x8] sm:$0xff] %v1747_v14  ;;  %v1745_v33 = vadd.f32 %v4860_v28, %v4858_v25  ;;  %v1817_v15 = vadd.f32 %v4858_v25, %v4849_v19 }
 0x197   :  { %v1754_v36 = vmul.f32 %v1750_v22, %v1750_v22  ;;  %v1762_v30 = vmul.f32 %v1758_v23, %v1758_v23  ;;  %v1748_v21 = vmul.f32 0.5, %v1744_v24  ;;  %v4873_v37 = vadd.f32 %v4860_v28, %v4847_v18 }
 0x198   :  { %v1755_v41 = vmul.f32 %v1751_v31, %v1751_v31  ;;  %v1763_v42 = vmul.f32 %v1759_v32, %v1759_v32  ;;  %v1749_v44 = vmul.f32 0.5, %v1745_v33  ;;  %1818 = vadd.xlane.f32.xlu0 %v1817_v15 }
 0x199   :  { %v1766_v35 = vadd.f32 %v1762_v30, %v1754_v36  ;;  %v1752_v46 = vsub.f32 %v4849_v19, %v1748_v21  ;;  %v1760_v43 = vsub.f32 %v4847_v18, %v1748_v21  ;;  %1808 = vst [vmem:[%s5169_s6 + $0x10] sm:$0xff] %v1748_v21 }
 0x19a   :  { %v1767_v38 = vadd.f32 %v1763_v42, %v1755_v41  ;;  %v1753_v49 = vsub.f32 %v4858_v25, %v1749_v44  ;;  %v1761_v50 = vsub.f32 %v4860_v28, %v1749_v44  ;;  %1809 = vst [vmem:[%s5169_s6 + $0x18] sm:$0xff] %v1749_v44  ;;  %v48_v44 = vld [vmem:[%s5166_s3] sm:$0xff] }
 0x19b   :  { %v1770_v27 = vmul.f32 0.5, %v1766_v35  ;;  %v1756_v53 = vmul.f32 %v1752_v46, %v1752_v46  ;;  %v1764_v48 = vmul.f32 %v1760_v43, %v1760_v43 }
 0x19c   :  { %v1771_v54 = vmul.f32 0.5, %v1767_v38  ;;  %v1757_v7 = vmul.f32 %v1753_v49, %v1753_v49  ;;  %v1765_v8 = vmul.f32 %v1761_v50, %v1761_v50 }
 0x19d   :  { %v1774_v51 = vadd.f32 1e-05, %v1770_v27  ;;  %v1768_v58 = vadd.f32 %v1764_v48, %v1756_v53 }
 0x19e   :  { %v1775_v5 = vadd.f32 1e-05, %v1771_v54  ;;  %v1769_v6 = vadd.f32 %v1765_v8, %v1757_v7 }
 0x19f   :  { %3930 = vrsqrt.f32 %v1774_v51  ;;  %v1772_v40 = vmul.f32 0.5, %v1768_v58  ;;  %vm1780_vm2 = vcmp.eq.f32.partialorder %v1774_v51, inf  ;;  %v1783_v17 = vand.u32 2147483648, %v1774_v51 }
 0x1a0   :  { %3932 = vrsqrt.f32 %v1775_v5  ;;  %v1773_v55 = vmul.f32 0.5, %v1769_v6  ;;  %vm1782_vm7 = vcmp.eq.f32.partialorder %v1774_v51, 0.0  ;;  %vm1787_vm12 = vcmp.eq.f32.partialorder %v1775_v5, inf }
 0x1a1   :  { %v1776_v61 = vadd.f32 1e-05, %v1772_v40  ;;  %v1790_v1 = vand.u32 2147483648, %v1775_v5  ;;  %vm1789_vm13 = vcmp.eq.f32.partialorder %v1775_v5, 0.0 }
 0x1a2   :  { %v1777_v56 = vadd.f32 1e-05, %v1773_v55 }
 0x1a3   :  { %3934 = vrsqrt.f32 %v1776_v61  ;;  %vm1794_vm14 = vcmp.eq.f32.partialorder %v1776_v61, inf  ;;  %v1797_v34 = vand.u32 2147483648, %v1776_v61  ;;  %vm1796_vm1 = vcmp.eq.f32.partialorder %v1776_v61, 0.0 }
 0x1a4   :  { %3936 = vrsqrt.f32 %v1777_v56  ;;  %vm1801_vm4 = vcmp.eq.f32.partialorder %v1777_v56, inf  ;;  %v1804_v4 = vand.u32 2147483648, %v1777_v56  ;;  %vm1803_vm5 = vcmp.eq.f32.partialorder %v1777_v56, 0.0 }
 0x1a9   :  { %v3931_v57 = vpop.eup %3930 }
 0x1aa   :  { %v3933_v60 = vpop.eup %3932  ;;  %v1779_v62 = vmul.f32 %v3931_v57, %v1774_v51 }
 0x1ab   :  { %v1786_v13 = vmul.f32 %v3933_v60, %v1775_v5 }
 0x1ac   :  { %v1781_v63 = vsel %vm1780_vm2, %v1774_v51, %v1779_v62 }
 0x1ad   :  { %v1784_v20 = vsel %vm1782_vm7, %v1783_v17, %v1781_v63  ;;  %v1788_v2 = vsel %vm1787_vm12, %v1775_v5, %v1786_v13  ;;  %v3935_v3 = vpop.eup %3934 }
 0x1ae   :  { %1810 = vst [vmem:[%s5170_s7] sm:$0xff] %v1784_v20  ;;  %v1791_v26 = vsel %vm1789_vm13, %v1790_v1, %v1788_v2  ;;  %v3937_v16 = vpop.eup %3936  ;;  %v1793_v29 = vmul.f32 %v3935_v3, %v1776_v61 }
 0x1af   :  { %1811 = vst [vmem:[%s5170_s7 + $0x8] sm:$0xff] %v1791_v26  ;;  %v1800_v11 = vmul.f32 %v3937_v16, %v1777_v56 }
 0x1b0   :  { %v1795_v45 = vsel %vm1794_vm14, %v1776_v61, %v1793_v29 }
 0x1b1   :  { %v1798_v59 = vsel %vm1796_vm1, %v1797_v34, %v1795_v45  ;;  %v1802_v12 = vsel %vm1801_vm4, %v1777_v56, %v1800_v11 }
 0x1b2   :  { %1812 = vst [vmem:[%s5170_s7 + $0x10] sm:$0xff] %v1798_v59  ;;  %v1805_v14 = vsel %vm1803_vm5, %v1804_v4, %v1802_v12 }
 0x1b3   :  { %1813 = vst [vmem:[%s5170_s7 + $0x18] sm:$0xff] %v1805_v14 }
 0x1d8   :  { %v3412_v22 = vpop.f32.mrb[4].mxu0  ;;  %v3493_v23 = vpop.f32.mrb[4].mxu1 }
 0x1d9   :  { %v3414_v24 = vpop.f32.mrb[5].mxu0  ;;  %v3495_v31 = vpop.f32.mrb[5].mxu1 }
 0x1da   :  { %v3508_v32 = vadd.f32 %v3414_v24, %v3412_v22  ;;  %v3514_v33 = vadd.f32 %v3495_v31, %v3493_v23 }
 0x1dc   :  { %v3418_v15 = vpop.f32.mrb[6].mxu0  ;;  %v4897_v36 = vpop.f32.mrb[6].mxu1  ;;  %3509 = vadd.xlane.f32.xlu0 %v3508_v32 }
 0x1dd   :  { %v3420_v30 = vpop.f32.mrb[7].mxu0  ;;  %v4899_v21 = vpop.f32.mrb[7].mxu1 }
 0x1de   :  { %v3511_v41 = vadd.f32 %v3420_v30, %v3418_v15  ;;  %v3517_v42 = vadd.f32 %v4899_v21, %v4897_v36 }
 0x1e0   :  { %3512 = vadd.xlane.f32.xlu1 %v3511_v41  ;;  %3515 = vadd.xlane.f32.xlu0 %v3514_v33  ;;  %v50_v33 = vld [vmem:[%s5167_s4] sm:$0xff] }
 0x1e4   :  { %1821 = vadd.xlane.f32.xlu1 %v4845_v9  ;;  %3518 = vadd.xlane.f32.xlu0 %v3517_v42 }
 0x1e8   :  { %1824 = vadd.xlane.f32.xlu0 %v4873_v37 }
 0x1f5   :  { %1884 = vperm.xlu1 %3928, %v48_v44  }
 0x221   :  { %v1816_v46 = vpop.xlane.xlu1 %1815 }
 0x225   :  { %v1819_v35 = vpop.xlane.xlu0 %1818 }
 0x269   :  { %v3510_v43 = vpop.xlane.xlu0 %3509 }
 0x26d   :  { %v3513_v38 = vpop.xlane.xlu1 %3512  ;;  %v3516_v49 = vpop.xlane.xlu0 %3515 }
 0x26e   :  { %v3520_v50 = vadd.f32 %v3516_v49, %v3510_v43 }
 0x270   :  { %v3522_v54 = vmul.f32 0.001953125, %v3520_v50 }
 0x271   :  { %v1822_v27 = vpop.xlane.xlu1 %1821  ;;  %v3519_v53 = vpop.xlane.xlu0 %3518 }
 0x272   :  { %v1826_v48 = vadd.f32 %v1822_v27, %v1816_v46  ;;  %v3521_v9 = vadd.f32 %v3519_v53, %v3513_v38  ;;  %v4924_v56 = vsub.f32 %v3412_v22, %v3522_v54  ;;  %v4930_v0 = vsub.f32 %v3414_v24, %v3522_v54 }
 0x273   :  { %v4948_v1 = vsub.f32 %v3493_v23, %v3522_v54 }
 0x274   :  { %v1828_v7 = vmul.f32 0.001953125, %v1826_v48 }
 0x275   :  { %v1825_v8 = vpop.xlane.xlu0 %1824  ;;  %v3542_v34 = vmul.f32 %v4948_v1, %v4948_v1 }
 0x276   :  { %v1827_v51 = vadd.f32 %v1825_v8, %v1819_v35  ;;  %v4909_v37 = vsub.f32 %v4829_v10, %v1828_v7  ;;  %v4912_v58 = vsub.f32 %v4835_v47, %v1828_v7  ;;  %v4915_v5 = vsub.f32 %v4831_v39, %v1828_v7 }
 0x277   :  { %v4918_v6 = vsub.f32 %v4837_v52, %v1828_v7  ;;  %v3523_v10 = vmul.f32 0.001953125, %v3521_v9 }
 0x278   :  { %v1829_v40 = vmul.f32 0.001953125, %v1827_v51  ;;  %v1838_v55 = vmul.f32 %v4909_v37, %v4909_v37  ;;  %v1839_v61 = vmul.f32 %v4912_v58, %v4912_v58  ;;  %v1848_v47 = vmul.f32 %v4915_v5, %v4915_v5 }
 0x279   :  { %v1849_v39 = vmul.f32 %v4918_v6, %v4918_v6  ;;  %v4956_v20 = vsub.f32 %v3418_v15, %v3523_v10  ;;  %v4973_v12 = vsub.f32 %v4897_v36, %v3523_v10  ;;  %v4976_v14 = vsub.f32 %v4899_v21, %v3523_v10  ;;  %v51_v15 = vld [vmem:[%s5167_s4 + $0x8] sm:$0xff] }
 0x27a   :  { %v1842_v52 = vadd.f32 %v1839_v61, %v1838_v55  ;;  %v4933_v57 = vsub.f32 %v4849_v19, %v1829_v40  ;;  %v4936_v60 = vsub.f32 %v4858_v25, %v1829_v40  ;;  %v4939_v62 = vsub.f32 %v4847_v18, %v1829_v40  ;;  %v49_v36 = vld [vmem:[%s5166_s3 + $0x8] sm:$0xff] }
 0x27b   :  { %v4942_v17 = vsub.f32 %v4860_v28, %v1829_v40  ;;  %v4950_v19 = vsub.f32 %v3495_v31, %v3522_v54  ;;  %v3532_v25 = vmul.f32 %v4924_v56, %v4924_v56  ;;  %v3533_v18 = vmul.f32 %v4930_v0, %v4930_v0 }
 0x27c   :  { %1843 = vadd.xlane.f32.xlu1 %v1842_v52  ;;  %v1840_v13 = vmul.f32 %v4933_v57, %v4933_v57  ;;  %v1841_v63 = vmul.f32 %v4936_v60, %v4936_v60  ;;  %v4958_v28 = vsub.f32 %v3420_v30, %v3523_v10  ;;  %v1852_v2 = vadd.f32 %v1849_v39, %v1848_v47  ;;  %v4991_v30 = vpop.permute.xlu1 %1884 }
 0x27d   :  { %v1850_v3 = vmul.f32 %v4939_v62, %v4939_v62  ;;  %v1851_v16 = vmul.f32 %v4942_v17, %v4942_v17  ;;  %v3536_v29 = vadd.f32 %v3533_v18, %v3532_v25  ;;  %v3543_v11 = vmul.f32 %v4950_v19, %v4950_v19 }
 0x27e   :  { %v1845_v26 = vadd.f32 %v1841_v63, %v1840_v13  ;;  %v3534_v45 = vmul.f32 %v4956_v20, %v4956_v20  ;;  %v3535_v59 = vmul.f32 %v4958_v28, %v4958_v28  ;;  %v3544_v24 = vmul.f32 %v4973_v12, %v4973_v12 }
 0x27f   :  { %v1855_v4 = vadd.f32 %v1851_v16, %v1850_v3  ;;  %v3546_v22 = vadd.f32 %v3543_v11, %v3542_v34  ;;  %v3545_v31 = vmul.f32 %v4976_v14, %v4976_v14 }
 0x280   :  { %1853 = vadd.xlane.f32.xlu1 %v1852_v2  ;;  %1846 = vadd.xlane.f32.xlu0 %v1845_v26  ;;  %v3539_v23 = vadd.f32 %v3535_v59, %v3534_v45  ;;  %v3568_v45 = vld [vmem:[%s5168_s5] sm:$0xff] }
 0x281   :  { %v3549_v32 = vadd.f32 %v3545_v31, %v3544_v24  ;;  %v3569_v31 = vld [vmem:[%s5168_s5 + $0x8] sm:$0xff] }
 0x284   :  { %3537 = vadd.xlane.f32.xlu1 %v3536_v29  ;;  %1856 = vadd.xlane.f32.xlu0 %v1855_v4 }
 0x288   :  { %3547 = vadd.xlane.f32.xlu1 %v3546_v22  ;;  %3540 = vadd.xlane.f32.xlu0 %v3539_v23 }
 0x28c   :  { %3550 = vadd.xlane.f32.xlu0 %v3549_v32 }
 0x299   :  { %1902 = vperm.xlu1 %3928, %v50_v33  }
 0x29d   :  { %1907 = vperm.xlu1 %3928, %v51_v15  }
 0x2a2   :  { %1889 = vperm.xlu0 %3929, %v49_v36  }
 0x309   :  { %v1844_v21 = vpop.xlane.xlu1 %1843 }
 0x30d   :  { %v1854_v41 = vpop.xlane.xlu1 %1853  ;;  %v1847_v42 = vpop.xlane.xlu0 %1846 }
 0x30e   :  { %v1858_v44 = vadd.f32 %v1854_v41, %v1844_v21 }
 0x310   :  { %v1860_v35 = vmul.f32 0.001953125, %v1858_v44 }
 0x311   :  { %v3538_v46 = vpop.xlane.xlu1 %3537  ;;  %v1857_v43 = vpop.xlane.xlu0 %1856 }
 0x312   :  { %v1862_v38 = vadd.f32 1e-05, %v1860_v35  ;;  %v1859_v49 = vadd.f32 %v1857_v43, %v1847_v42 }
 0x314   :  { %3938 = vrsqrt.f32 %v1862_v38  ;;  %v1861_v50 = vmul.f32 0.001953125, %v1859_v49  ;;  %v3570_v49 = vld [vmem:[%s5168_s5 + $0x10] sm:$0xff] }
 0x315   :  { %v3548_v27 = vpop.xlane.xlu1 %3547  ;;  %v3541_v53 = vpop.xlane.xlu0 %3540 }
 0x316   :  { %v1863_v48 = vadd.f32 1e-05, %v1861_v50  ;;  %v3552_v54 = vadd.f32 %v3548_v27, %v3538_v46 }
 0x318   :  { %3940 = vrsqrt.f32 %v1863_v48  ;;  %v3554_v7 = vmul.f32 0.001953125, %v3552_v54 }
 0x319   :  { %v3551_v9 = vpop.xlane.xlu0 %3550  ;;  %v5013_v13 = vpop.permute.xlu1 %1902 }
 0x31a   :  { %v3556_v8 = vadd.f32 1e-05, %v3554_v7  ;;  %v3553_v51 = vadd.f32 %v3551_v9, %v3541_v53 }
 0x31c   :  { %3942 = vrsqrt.f32 %v3556_v8  ;;  %v3555_v40 = vmul.f32 0.001953125, %v3553_v51  ;;  %v3571_v51 = vld [vmem:[%s5168_s5 + $0x18] sm:$0xff] }
 0x31d   :  { %v5057_v42 = vpop.permute.xlu1 %1907 }
 0x31e   :  { %v3939_v55 = vpop.eup %3938  ;;  %v3557_v61 = vadd.f32 1e-05, %v3555_v40  ;;  %v3574_v40 = vld [vmem:[%s5168_s5 + $0x30] sm:$0xff] }
 0x31f   :  { %v1866_v10 = vmul.f32 %v3939_v55, %v4909_v37  ;;  %v1867_v47 = vmul.f32 %v3939_v55, %v4912_v58  ;;  %v1870_v39 = vmul.f32 %v3939_v55, %v4915_v5  ;;  %v1871_v52 = vmul.f32 %v3939_v55, %v4918_v6  ;;  %v3575_v55 = vld [vmem:[%s5168_s5 + $0x38] sm:$0xff] }
 0x320   :  { %3944 = vrsqrt.f32 %v3557_v61 }
 0x321   :  { %1874 = vst [vmem:[%s5171_s8] sm:$0xff] %v1866_v10  ;;  %1875 = vst [vmem:[%s5171_s8 + $0x8] sm:$0xff] %v1867_v47  ;;  %v1892_v37 = vmul.f32 %v4991_v30, %v1866_v10  ;;  %v1893_v58 = vmul.f32 %v4991_v30, %v1867_v47  ;;  %v1896_v5 = vmul.f32 %v4991_v30, %v1870_v39  ;;  %v5019_v3 = vpop.permute.xlu0 %1889 }
 0x322   :  { %1878 = vst [vmem:[%s5171_s8 + $0x20] sm:$0xff] %v1870_v39  ;;  %1879 = vst [vmem:[%s5171_s8 + $0x28] sm:$0xff] %v1871_v52  ;;  %v1897_v6 = vmul.f32 %v4991_v30, %v1871_v52  ;;  %v3941_v63 = vpop.eup %3940 }
 0x323   :  { %v1910_v25 = vadd.f32 %v5013_v13, %v1892_v37  ;;  %v1911_v18 = vadd.f32 %v5013_v13, %v1893_v58  ;;  %v1914_v2 = vadd.f32 %v5013_v13, %v1896_v5  ;;  %v1868_v16 = vmul.f32 %v3941_v63, %v4933_v57  ;;  %v3572_v57 = vld [vmem:[%s5168_s5 + $0x20] sm:$0xff] }
 0x324   :  { %v1915_v26 = vadd.f32 %v5013_v13, %v1897_v6  ;;  %v1869_v29 = vmul.f32 %v3941_v63, %v4936_v60  ;;  %v1872_v34 = vmul.f32 %v3941_v63, %v4939_v62  ;;  %v1873_v11 = vmul.f32 %v3941_v63, %v4942_v17  ;;  %v3573_v60 = vld [vmem:[%s5168_s5 + $0x28] sm:$0xff] }
 0x325   :  { %v1918_v4 = vmax.f32 %v1910_v25, 0.0  ;;  %v1919_v59 = vmax.f32 %v1911_v18, 0.0  ;;  %v1922_v22 = vmax.f32 %v1914_v2, 0.0  ;;  %1876 = vst [vmem:[%s5171_s8 + $0x10] sm:$0xff] %v1868_v16  ;;  %v1894_v62 = vmul.f32 %v5019_v3, %v1868_v16 }
 0x326   :  { %v1923_v23 = vmax.f32 %v1915_v26, 0.0  ;;  %v3943_v24 = vpop.eup %3942  ;;  %1877 = vst [vmem:[%s5171_s8 + $0x18] sm:$0xff] %v1869_v29  ;;  %1880 = vst [vmem:[%s5171_s8 + $0x30] sm:$0xff] %v1872_v34  ;;  %v1895_v17 = vmul.f32 %v5019_v3, %v1869_v29  ;;  %v1898_v32 = vmul.f32 %v5019_v3, %v1872_v34  ;;  %v1899_v33 = vmul.f32 %v5019_v3, %v1873_v11 }
 0x327   :  { %1881 = vst [vmem:[%s5171_s8 + $0x38] sm:$0xff] %v1873_v11  ;;  %v3560_v15 = vmul.f32 %v3943_v24, %v4924_v56  ;;  %v3561_v36 = vmul.f32 %v3943_v24, %v4930_v0  ;;  %v3564_v21 = vmul.f32 %v3943_v24, %v4948_v1  ;;  %v3565_v41 = vmul.f32 %v3943_v24, %v4950_v19  ;;  %s3980_s8 = smov [#allocation2]  }
 0x328   :  { %1926 = vst [vmem:[#allocation2] sm:$0xff] %v1918_v4  ;;  %1927 = vst [vmem:[#allocation2 + $0x8] sm:$0xff] %v1919_v59  ;;  %s3635_s2 = sshll.u32 %s3980_s8, 4  ;;  %v1912_v44 = vadd.f32 %v5057_v42, %v1894_v62  ;;  %v1913_v35 = vadd.f32 %v5057_v42, %v1895_v17  ;;  %v1916_v56 = vadd.f32 %v5057_v42, %v1898_v32  ;;  %s5066_s2 = int_to_ptr.vmem [resolvable:$true] %s3635_s2 }
 0x329   :  { %1930 = vst [vmem:[#allocation2 + $0x20] sm:$0xff] %v1922_v22  ;;  %1931 = vst [vmem:[#allocation2 + $0x28] sm:$0xff] %v1923_v23  ;;  %v1917_v0 = vadd.f32 %v5057_v42, %v1899_v33  ;;  %v3576_v46 = vadd.f32 %v3568_v45, %v3560_v15  ;;  %v3577_v1 = vadd.f32 %v3569_v31, %v3561_v36  ;;  %s3946_s5 = scalar_lea.vmem %s5066_s2, 1024  ;;  %p3951_p1 = scmp.lt.s32.totalorder %s5066_s2, %s5066_s2 }
 0x32a   :  { %v3580_v43 = vadd.f32 %v3572_v57, %v3564_v21  ;;  %v3581_v19 = vadd.f32 %v3573_v60, %v3565_v41  ;;  %v3945_v38 = vpop.eup %3944  ;;  %v1920_v50 = vmax.f32 %v1912_v44, 0.0  ;;  %v1921_v27 = vmax.f32 %v1913_v35, 0.0  ;;  %p3947_p0 = scmp.ne.s32.totalorder %s5066_s2, %s3946_s5  ;;  %p3952_p2 = scmp.lt.s32.totalorder %s3946_s5, %s3946_s5 }
 0x32b   :  { %v1924_v53 = vmax.f32 %v1916_v56, 0.0  ;;  %v1925_v48 = vmax.f32 %v1917_v0, 0.0  ;;  %3584 = vst [vmem:[%s5173_s10] sm:$0xff] %v3576_v46  ;;  %3585 = vst [vmem:[%s5173_s10 + $0x8] sm:$0xff] %v3577_v1  ;;  %v3592_v54 = vmul.f32 %v3576_v46, %v4991_v30  ;;  %v3593_v7 = vmul.f32 %v3577_v1, %v4991_v30 }
 0x32c   :  { %3588 = vst [vmem:[%s5173_s10 + $0x20] sm:$0xff] %v3580_v43  ;;  %3589 = vst [vmem:[%s5173_s10 + $0x28] sm:$0xff] %v3581_v19  ;;  %v3596_v9 = vmul.f32 %v3580_v43, %v4991_v30  ;;  %v3597_v8 = vmul.f32 %v3581_v19, %v4991_v30  ;;  %v3562_v61 = vmul.f32 %v3945_v38, %v4956_v20  ;;  %p3953_p3 = por %p3952_p2, %p3951_p1 }
 0x32d   :  { %v3563_v10 = vmul.f32 %v3945_v38, %v4958_v28  ;;  %v3566_v30 = vmul.f32 %v3945_v38, %v4973_v12  ;;  %v3567_v47 = vmul.f32 %v3945_v38, %v4976_v14  ;;  %1928 = vst [vmem:[#allocation2 + $0x10] sm:$0xff] %v1920_v50  ;;  %1929 = vst [vmem:[#allocation2 + $0x18] sm:$0xff] %v1921_v27 }
 0x32e   :  { %1932 = vst [vmem:[#allocation2 + $0x30] sm:$0xff] %v1924_v53  ;;  %1933 = vst [vmem:[#allocation2 + $0x38] sm:$0xff] %v1925_v48  ;;  %v3600_v39 = vadd.f32 %v3592_v54, %v5013_v13  ;;  %v3601_v52 = vadd.f32 %v3593_v7, %v5013_v13  ;;  %v3604_v37 = vadd.f32 %v3596_v9, %v5013_v13  ;;  %p3954_p4 = pnand %p3953_p3, %p3947_p0 }
 0x32f   :  { %v3605_v58 = vadd.f32 %v3597_v8, %v5013_v13 }
 0x330   :  { %3957 = shalt.err (!%p3954_p4)
}
 0x331   :  { %s3958_s30 = scalar_lea.hbm %s5172_s9, 1024 }
 0x332   :  { %p3959_p5 = scmp.ne.s32.totalorder %s5172_s9, %s3958_s30  ;;  %p3962_p6 = scmp.lt.u32.totalorder %s3958_s30, %s5172_s9 }
 0x334   :  { %p3964_p7 = pnand %p3962_p6, %p3959_p5 }
 0x336   :  { %3967 = shalt.err (!%p3964_p7)
}
 0x337   :  { %s3981_s16 = smov 256   ;;  %v3578_v20 = vadd.f32 %v3570_v49, %v3562_v61  ;;  %v3579_v28 = vadd.f32 %v3571_v51, %v3563_v10  ;;  %v3582_v12 = vadd.f32 %v3574_v40, %v3566_v30  ;;  %v3583_v14 = vadd.f32 %v3575_v55, %v3567_v47 }
 0x338   :  { %3641 = dma.vmem_to_hbm [thread:$0]  %s5066_s2, 1024, %s5172_s9, [#allocation3], %s3981_s16, %s3981_s16, %s3970_s21   ;;  %v3608_v5 = vmax.f32 %v3600_v39, 0.0  ;;  %v3609_v6 = vmax.f32 %v3601_v52, 0.0  ;;  %v3612_v13 = vmax.f32 %v3604_v37, 0.0  ;;  %v3613_v63 = vmax.f32 %v3605_v58, 0.0 }
 0x339   :  { %3586 = vst [vmem:[%s5173_s10 + $0x10] sm:$0xff] %v3578_v20  ;;  %3587 = vst [vmem:[%s5173_s10 + $0x18] sm:$0xff] %v3579_v28  ;;  %v3594_v25 = vmul.f32 %v3578_v20, %v5019_v3  ;;  %v3595_v18 = vmul.f32 %v3579_v28, %v5019_v3  ;;  %v3598_v2 = vmul.f32 %v3582_v12, %v5019_v3 }
 0x33a   :  { %3590 = vst [vmem:[%s5173_s10 + $0x30] sm:$0xff] %v3582_v12  ;;  %3591 = vst [vmem:[%s5173_s10 + $0x38] sm:$0xff] %v3583_v14  ;;  %v3599_v26 = vmul.f32 %v3583_v14, %v5019_v3 }
 0x33b   :  { %3616 = vst [vmem:[%s5174_s11] sm:$0xff] %v3608_v5  ;;  %3617 = vst [vmem:[%s5174_s11 + $0x8] sm:$0xff] %v3609_v6  ;;  %v3602_v16 = vadd.f32 %v3594_v25, %v5057_v42  ;;  %v3603_v3 = vadd.f32 %v3595_v18, %v5057_v42  ;;  %v3606_v29 = vadd.f32 %v3598_v2, %v5057_v42 }
 0x33c   :  { %3620 = vst [vmem:[%s5174_s11 + $0x20] sm:$0xff] %v3612_v13  ;;  %3621 = vst [vmem:[%s5174_s11 + $0x28] sm:$0xff] %v3613_v63  ;;  %v3607_v34 = vadd.f32 %v3599_v26, %v5057_v42 }
 0x33d   :  { %v3610_v11 = vmax.f32 %v3602_v16, 0.0  ;;  %v3611_v45 = vmax.f32 %v3603_v3, 0.0  ;;  %v3614_v4 = vmax.f32 %v3606_v29, 0.0 }
 0x33e   :  { %v3615_v59 = vmax.f32 %v3607_v34, 0.0 }
 0x33f   :  { %3618 = vst [vmem:[%s5174_s11 + $0x10] sm:$0xff] %v3610_v11  ;;  %3619 = vst [vmem:[%s5174_s11 + $0x18] sm:$0xff] %v3611_v45 }
 0x340   :  { %3622 = vst [vmem:[%s5174_s11 + $0x30] sm:$0xff] %v3614_v4  ;;  %3623 = vst [vmem:[%s5174_s11 + $0x38] sm:$0xff] %v3615_v59 }
 0x341   :  { %3968 = dma.done.wait [#allocation3], 1024  }
 0x342   :  { %3969 = vsyncadd [#allocation3], 4294966272 }
 0x343   :  { %3659 = vsyncpa [#allocation3], 1 }

// kernel: ladder_forward.15
= control target key start
LH: loop header
LB: loop body
LE: loop exit
PB: predicated region body
PF: predicated region fallthrough
CT: control target
= control target key end

     0   :  { %vm16_vm0 = vcmask 1043456   ;;  %s108_s0 = inlined_call_operand.vmem [shape: f32[2,4,256], index: 0, kind: input, shape index: {}]   ;;  %s109_s1 = inlined_call_operand.vmem [shape: f32[2,4,256], index: 1, kind: output, shape index: {}]  }
   0x1   :  { %v8_v0 = vld [vmem:[%s108_s0] sm:$0xff]  ;;  %v9_v1 = vld [vmem:[%s108_s0 + $0x8] sm:$0xff] }
   0x2   :  { %v12_v2 = vcombine.high %v8_v0, %v8_v0  ;;  %v17_v3 = vsel %vm16_vm0, %v8_v0, 0.0  ;;  %v13_v4 = vcombine.high %v9_v1, %v9_v1  ;;  %v31_v6 = vsel %vm16_vm0, %v9_v1, 0.0 }
   0x3   :  { %v18_v5 = vrot.slane %v17_v3, 4  ;;  %v32_v8 = vrot.slane %v31_v6, 4  ;;  %v50_v21 = vmul.f32 0.2, %v8_v0  ;;  %v51_v23 = vmul.f32 0.2, %v9_v1 }
   0x4   :  { %v24_v7 = vsel %vm16_vm0, %v12_v2, 0.0  ;;  %v38_v9 = vsel %vm16_vm0, %v13_v4, 0.0 }
   0x5   :  { %v19_v10 = vadd.f32 %v18_v5, %v17_v3  ;;  %v25_v11 = vrot.slane %v24_v7, 4  ;;  %v39_v12 = vrot.slane %v38_v9, 4  ;;  %v33_v13 = vadd.f32 %v32_v8, %v31_v6 }
   0x6   :  { %v62_v31 = vcombine.high %v50_v21, %v50_v21  ;;  %v63_v33 = vcombine.high %v51_v23, %v51_v23 }
   0x7   :  { %v20_v14 = vrot.slane %v19_v10, 2  ;;  %v26_v15 = vadd.f32 %v25_v11, %v24_v7  ;;  %v40_v16 = vadd.f32 %v39_v12, %v38_v9  ;;  %v34_v17 = vrot.slane %v33_v13, 2 }
   0x9   :  { %v21_v18 = vadd.f32 %v20_v14, %v19_v10  ;;  %v27_v19 = vrot.slane %v26_v15, 2  ;;  %v41_v20 = vrot.slane %v40_v16, 2  ;;  %v35_v22 = vadd.f32 %v34_v17, %v33_v13 }
   0xb   :  { %v22_v24 = vrot.slane %v21_v18, 1  ;;  %v28_v25 = vadd.f32 %v27_v19, %v26_v15  ;;  %v42_v26 = vadd.f32 %v41_v20, %v40_v16  ;;  %v36_v27 = vrot.slane %v35_v22, 1 }
   0xd   :  { %v23_v28 = vadd.f32 %v22_v24, %v21_v18  ;;  %v29_v29 = vrot.slane %v28_v25, 1  ;;  %v43_v30 = vrot.slane %v42_v26, 1  ;;  %v37_v32 = vadd.f32 %v36_v27, %v35_v22 }
   0xf   :  { %v30_v34 = vadd.f32 %v29_v29, %v28_v25  ;;  %vm45_vm1 = vcmp.eq.f32.partialorder %v23_v28, 0.0  ;;  %v44_v35 = vadd.f32 %v43_v30, %v42_v26  ;;  %vm47_vm2 = vcmp.eq.f32.partialorder %v37_v32, 0.0 }
  0x10   :  { %v66_v36 = vsel %vm45_vm1, %v50_v21, %v8_v0  ;;  %v68_v37 = vsel %vm47_vm2, %v51_v23, %v9_v1 }
  0x11   :  { %vm46_vm3 = vcmp.eq.f32.partialorder %v30_v34, 0.0  ;;  %vm48_vm4 = vcmp.eq.f32.partialorder %v44_v35, 0.0 }
  0x12   :  { %v67_v38 = vsel %vm46_vm3, %v62_v31, %v12_v2  ;;  %v69_v39 = vsel %vm48_vm4, %v63_v33, %v13_v4 }
  0x13   :  { %v74_v40 = vcombine.low %v66_v36, %v67_v38  ;;  %v75_v41 = vcombine.low %v68_v37, %v69_v39 }
  0x15   :  { %78 = vst [vmem:[%s109_s1] sm:$0xff] %v74_v40  ;;  %79 = vst [vmem:[%s109_s1 + $0x8] sm:$0xff] %v75_v41 }

// kernel: ladder_forward.13
= control target key start
LH: loop header
LB: loop body
LE: loop exit
PB: predicated region body
PF: predicated region fallthrough
CT: control target
= control target key end

     0   :  { %17 = vsyncpa [#allocation3], 0  ;;  %s2997_s0 = inlined_call_operand.vmem [shape: f32[10], index: 0, kind: input, shape index: {}]   ;;  %s2998_s1 = inlined_call_operand.vmem [shape: f32[2,16,256], index: 1, kind: input, shape index: {}]   ;;  %s2999_s2 = inlined_call_operand.vmem [shape: f32[9,8,16], index: 2, kind: input, shape index: {}]   ;;  %s3000_s3 = inlined_call_operand.vmem [shape: f32[2,8,256], index: 3, kind: input, shape index: {}]   ;;  %s3001_s4 = inlined_call_operand.vmem [shape: f32[2,8,1], index: 4, kind: input, shape index: {}]   ;;  %s3002_s5 = inlined_call_operand.vmem [shape: f32[2,8,1], index: 5, kind: input, shape index: {}]   ;;  %s3003_s6 = inlined_call_operand.vmem [shape: f32[8,256], index: 6, kind: input, shape index: {}]   ;;  %s3004_s7 = inlined_call_operand.vmem [shape: f32[8,256], index: 7, kind: input, shape index: {}]   ;;  %s3005_s8 = inlined_call_operand.vmem [shape: f32[8,1], index: 8, kind: input, shape index: {}]   ;;  %s3006_s9 = inlined_call_operand.vmem [shape: f32[8,1], index: 9, kind: input, shape index: {}]   ;;  %s3007_s10 = inlined_call_operand.vmem [shape: f32[2,8,256], index: 10, kind: output, shape index: {0}]   ;;  %s3008_s11 = inlined_call_operand.vmem [shape: f32[2,8,256], index: 11, kind: output, shape index: {1}]  }
   0x1   :  { %s24_s19 = sshll.u32 %s2997_s0, 4  ;;  %s25_s19 = int_to_ptr.vmem [resolvable:$true] %s24_s19 }
   0x2   :  { %s2381_s20 = scalar_lea.vmem %s25_s19, 16  ;;  %p2386_p1 = scmp.lt.s32.totalorder %s25_s19, %s25_s19 }
   0x3   :  { %p2382_p0 = scmp.ne.s32.totalorder %s25_s19, %s2381_s20  ;;  %p2387_p2 = scmp.lt.s32.totalorder %s2381_s20, %s2381_s20 }
   0x5   :  { %p2388_p3 = por %p2387_p2, %p2386_p1 }
   0x7   :  { %p2389_p4 = pnand %p2388_p3, %p2382_p0 }
   0x9   :  { %2392 = shalt.err (!%p2389_p4)
}
   0xa   :  { %s2395_s21 = smov [#allocation2]  }
   0xb   :  { %27 = dma.vmem_to_smem %s25_s19, 16, %s2395_s21, [#allocation3]  }
   0xc   :  { %2393 = dma.done.wait [#allocation3], 16  }
   0xd   :  { %2394 = vsyncadd [#allocation3], 4294967280 }
   0xe   :  { %49 = sfence }
   0xf   :  { %v2472_v0 = vld [vmem:[%s2998_s1 + $0x8] sm:$0xff]  ;;  %v2477_v1 = vld [vmem:[%s2998_s1 + $0x18] sm:$0xff]  ;;  %v2482_v2 = vld [vmem:[%s2998_s1] sm:$0xff]  ;;  %s2396_s18 = smov 16   ;;  %v2397_v12 = vmov 0.0   ;;  %s2398_s19 = smov 17   ;;  %v67_v17 = vlaneseq }
  0x10   :  { %v2191_v3 = vpack.i.bf16 %v2477_v1, %v2472_v0  ;;  %v2489_v4 = vld [vmem:[%s2998_s1 + $0x10] sm:$0xff]  ;;  %v2494_v5 = vld [vmem:[%s2998_s1 + $0x28] sm:$0xff]  ;;  %v2499_v6 = vld [vmem:[%s2998_s1 + $0x38] sm:$0xff]  ;;  %220 = vmatprep.mubr.f32.mxu0 %v2397_v12  ;;  %365 = vmatprep.mubr.f32.mxu1 %v2397_v12  ;;  %s2400_s20 = smov 1   ;;  %v2084_v13 = vpack.c.bf16 %v2477_v1, %v2472_v0  ;;  %s2401_s21 = smov 127   ;;  %vm152_vm3 = vcmask 130048  }
  0x11   :  { %v2181_v7 = vpack.i.bf16 %v2489_v4, %v2482_v2  ;;  %v2506_v8 = vld [vmem:[%s2998_s1 + $0x20] sm:$0xff]  ;;  %v2511_v9 = vld [vmem:[%s2998_s1 + $0x30] sm:$0xff]  ;;  %v2196_v10 = vpack.i.bf16 %v2499_v6, %v2494_v5  ;;  %s2399_s1 = smov 15   ;;  %v2088_v14 = vpack.c.bf16 %v2499_v6, %v2494_v5  ;;  %v2086_v15 = vpack.c.bf16 %v2489_v4, %v2482_v2  ;;  %s2402_s22 = smov 113   ;;  %v59_v46 = vld [vmem:[%s2999_s2 + $0x8] sm:$0xff] }
  0x12   :  { %2192 = vrot.lane.b32.xlu1 %v2191_v3, %s2396_s18  ;;  %v2186_v11 = vpack.i.bf16 %v2511_v9, %v2506_v8  ;;  %v2090_v16 = vpack.c.bf16 %v2511_v9, %v2506_v8  ;;  %s2403_s23 = smov 112   ;;  %s2404_s24 = smov 111   ;;  %v2527_v18 = vand.u32 127, %v67_v17 }
  0x13   :  { %2182 = vrot.lane.b32.xlu0 %v2181_v7, %s2396_s18  ;;  %s2034_s30 = sld [smem:[#allocation2 + $0x6]]  ;;  %s2030_s12 = sld [smem:[#allocation2 + $0x2]] }
  0x14   :  { %vm131_vm0 = vcmp.lt.s32.totalorder %v2527_v18, 16  ;;  %vm97_vm1 = vcmp.ge.s32.totalorder %v2527_v18, 16  ;;  %v2532_v25 = vadd.s32 128, %v2527_v18  ;;  %v70_v39 = vand.u32 15, %v2527_v18  ;;  %s2035_s13 = sld [smem:[#allocation2 + $0x7]]  ;;  %s2031_s14 = sld [smem:[#allocation2 + $0x3]] }
  0x15   :  { %vm2545_vm2 = vmpackc.low %vm97_vm1, %vm97_vm1  ;;  %vm88_vm5 = vcmp.lt.s32.totalorder %v2527_v18, 17  ;;  %vm459_vm11 = vcmp.lt.s32.totalorder %v2527_v18, 15  ;;  %s2036_s15 = sld [smem:[#allocation2 + $0x8]]  ;;  %s2033_s16 = sld [smem:[#allocation2 + $0x5]] }
  0x16   :  { %2197 = vrot.lane.b32.xlu1 %v2196_v10, %s2396_s18  ;;  %v71_v40 = vand.u32 15, %v2532_v25  ;;  %vm2564_vm4 = vcmp.ge.s32.totalorder %v70_v39, 1  ;;  %vm2615_vm10 = vcmp.lt.s32.totalorder %v70_v39, 15  ;;  %s2032_s17 = sld [smem:[#allocation2 + $0x4]] }
  0x17   :  { %2187 = vrot.lane.b32.xlu0 %v2186_v11, %s2396_s18  ;;  %vm2581_vm7 = vmand %vm97_vm1, %vm2564_vm4  ;;  %s2037_s18 = sld [smem:[#allocation2 + $0x9]] }
  0x18   :  { %vm2572_vm6 = vcmp.ge.s32.totalorder %v71_v40, 1  ;;  %vm2047_vm9 = vmpackc.low %vm2581_vm7, %vm2581_vm7  ;;  %vm2625_vm12 = vcmp.lt.s32.totalorder %v71_v40, 15 }
  0x19   :  { %vm2597_vm8 = vmpackc.low %vm2572_vm6, %vm2572_vm6 }
  0x1a   :  { %2207 = vrot.lane.b32.xlu1 %v2186_v11, %s2398_s19  ;;  %vm2633_vm13 = vmand %vm97_vm1, %vm2615_vm10 }
  0x1b   :  { %2202 = vrot.lane.b32.xlu0 %v2181_v7, %s2398_s19  ;;  %vm2649_vm14 = vmpackc.low %vm2625_vm12, %vm2625_vm12 }
  0x1c   :  { %vm2064_vm15 = vmpackc.low %vm2633_vm13, %vm2633_vm13 }
  0x1d   :  { %vm2692_vm1 = vmpackc.low %vm2564_vm4, %vm2564_vm4  ;;  %vm1180_vm4 = vcmp.lt.s32.totalorder %v2532_v25, 240 }
  0x1e   :  { %2217 = vrot.lane.b32.xlu1 %v2196_v10, %s2398_s19  ;;  %vm2759_vm7 = vmand %vm1180_vm4, %vm2572_vm6 }
  0x1f   :  { %2212 = vrot.lane.b32.xlu0 %v2191_v3, %s2398_s19  ;;  %vm2105_vm6 = vmpackc.low %vm2759_vm7, %vm2759_vm7 }
  0x20   :  { %vm2854_vm13 = vmand %vm1180_vm4, %vm2625_vm12 }
  0x21   :  { %vm2127_vm12 = vmpackc.low %vm2854_vm13, %vm2854_vm13 }
  0x22   :  { %2227 = vrot.lane.b32.xlu1 %v2186_v11, %s2399_s1 }
  0x23   :  { %2222 = vrot.lane.b32.xlu0 %v2181_v7, %s2399_s1 }
  0x26   :  { %2237 = vrot.lane.b32.xlu1 %v2196_v10, %s2399_s1 }
  0x27   :  { %2232 = vrot.lane.b32.xlu0 %v2191_v3, %s2399_s1 }
  0x2a   :  { %2247 = vrot.lane.b32.xlu1 %v2186_v11, %s2400_s20 }
  0x2b   :  { %2242 = vrot.lane.b32.xlu0 %v2181_v7, %s2400_s20 }
  0x2e   :  { %2257 = vrot.lane.b32.xlu1 %v2196_v10, %s2400_s20 }
  0x2f   :  { %2252 = vrot.lane.b32.xlu0 %v2191_v3, %s2400_s20 }
  0x32   :  { %2267 = vrot.lane.b32.xlu1 %v2186_v11, %s2401_s21 }
  0x33   :  { %2262 = vrot.lane.b32.xlu0 %v2181_v7, %s2401_s21 }
  0x36   :  { %2277 = vrot.lane.b32.xlu1 %v2196_v10, %s2401_s21 }
  0x37   :  { %2272 = vrot.lane.b32.xlu0 %v2191_v3, %s2401_s21 }
  0x3a   :  { %2287 = vrot.lane.b32.xlu1 %v2186_v11, %s2402_s22 }
  0x3b   :  { %2282 = vrot.lane.b32.xlu0 %v2181_v7, %s2402_s22 }
  0x3e   :  { %2297 = vrot.lane.b32.xlu1 %v2196_v10, %s2402_s22 }
  0x3f   :  { %2292 = vrot.lane.b32.xlu0 %v2191_v3, %s2402_s22 }
  0x42   :  { %2307 = vrot.lane.b32.xlu1 %v2186_v11, %s2403_s23 }
  0x43   :  { %2302 = vrot.lane.b32.xlu0 %v2181_v7, %s2403_s23 }
  0x46   :  { %2317 = vrot.lane.b32.xlu1 %v2196_v10, %s2403_s23 }
  0x47   :  { %2312 = vrot.lane.b32.xlu0 %v2191_v3, %s2403_s23 }
  0x4a   :  { %2327 = vrot.lane.b32.xlu1 %v2186_v11, %s2404_s24 }
  0x4b   :  { %2322 = vrot.lane.b32.xlu0 %v2181_v7, %s2404_s24 }
  0x4e   :  { %2337 = vrot.lane.b32.xlu1 %v2196_v10, %s2404_s24 }
  0x4f   :  { %2332 = vrot.lane.b32.xlu0 %v2191_v3, %s2404_s24 }
  0x84   :  { %v2193_v19 = vpop.permute.xlu1 %2192 }
  0x85   :  { %v2195_v20 = vunpack.i.h.bf16 %v2193_v19  ;;  %v2194_v21 = vunpack.i.l.bf16 %v2193_v19  ;;  %v2183_v22 = vpop.permute.xlu0 %2182 }
  0x86   :  { %v2185_v23 = vunpack.i.h.bf16 %v2183_v22  ;;  %v2184_v24 = vunpack.i.l.bf16 %v2183_v22 }
  0x88   :  { %v2198_v26 = vpop.permute.xlu1 %2197  ;;  %v132_v27 = vsel %vm131_vm0, %v2184_v24, %v2194_v21  ;;  %v133_v28 = vsel %vm131_vm0, %v2185_v23, %v2195_v20  ;;  %v136_v29 = vsel %vm131_vm0, %v2194_v21, %v2184_v24  ;;  %v137_v30 = vsel %vm131_vm0, %v2195_v20, %v2185_v23 }
  0x89   :  { %v2200_v31 = vunpack.i.h.bf16 %v2198_v26  ;;  %v2199_v32 = vunpack.i.l.bf16 %v2198_v26  ;;  %v2188_v33 = vpop.permute.xlu0 %2187  ;;  %v2038_v34 = vpack.c.bf16 %v133_v28, %v132_v27  ;;  %v2040_v35 = vpack.c.bf16 %v137_v30, %v136_v29 }
  0x8a   :  { %v2190_v37 = vunpack.i.h.bf16 %v2188_v33  ;;  %v2189_v38 = vunpack.i.l.bf16 %v2188_v33 }
  0x8b   :  { %2039 = vmatprep.subr.bf16.mxu0 %v2038_v34 }
  0x8c   :  { %2042 = vmatpush1.bf16.msk.msra.mxu0 %vm2545_vm2, %v2040_v35  ;;  %v2208_v41 = vpop.permute.xlu1 %2207  ;;  %v134_v42 = vsel %vm131_vm0, %v2189_v38, %v2199_v32  ;;  %v135_v43 = vsel %vm131_vm0, %v2190_v37, %v2200_v31  ;;  %v138_v44 = vsel %vm131_vm0, %v2199_v32, %v2189_v38  ;;  %v139_v45 = vsel %vm131_vm0, %v2200_v31, %v2190_v37  ;;  %v58_v31 = vld [vmem:[%s2999_s2] sm:$0xff] }
  0x8d   :  { %v2203_v47 = vpop.permute.xlu0 %2202  ;;  %v2049_v48 = vpack.c.bf16 %v135_v43, %v134_v42  ;;  %v2051_v49 = vpack.c.bf16 %v139_v45, %v138_v44  ;;  %v2210_v53 = vunpack.i.h.bf16 %v2208_v41  ;;  %v2209_v54 = vunpack.i.l.bf16 %v2208_v41 }
  0x8e   :  { %v2205_v59 = vunpack.i.h.bf16 %v2203_v47  ;;  %v2204_v60 = vunpack.i.l.bf16 %v2203_v47  ;;  %vm649_vm0 = vcmp.lt.s32.totalorder %v2527_v18, 1  ;;  %v2405_v47 = vmov 0  }
  0x8f   :  { %2050 = vmatprep.subr.bf16.mxu1 %v2049_v48  ;;  %1957 = vmatmul.mubr.msk.f32.vlgmr.msra.gmra.mrb[0].mxu0 %vm152_vm3, %v59_v46 }
  0x90   :  { %2053 = vmatpush1.bf16.msk.msra.mxu1 %vm2545_vm2, %v2051_v49  ;;  %v2218_v51 = vpop.permute.xlu1 %2217  ;;  %294 = vmatprep.mubr.f32.mxu0 %v2397_v12  ;;  %vm984_vm2 = vcmp.lt.s32.totalorder %v2527_v18, 127 }
  0x91   :  { %v2220_v55 = vunpack.i.h.bf16 %v2218_v51  ;;  %v2219_v56 = vunpack.i.l.bf16 %v2218_v51  ;;  %v2213_v57 = vpop.permute.xlu0 %2212  ;;  %2341 = vset.pattern.permute.xlu1 %v2405_v47  ;;  %2342 = vset.pattern.permute.xlu0 %v2405_v47 }
  0x92   :  { %v2215_v61 = vunpack.i.h.bf16 %v2213_v57  ;;  %v2214_v62 = vunpack.i.l.bf16 %v2213_v57 }
  0x93   :  { %v91_v63 = vsel %vm88_vm5, %v2209_v54, %v2219_v56  ;;  %v92_v3 = vsel %vm88_vm5, %v2210_v53, %v2220_v55  ;;  %v95_v7 = vsel %vm88_vm5, %v2219_v56, %v2209_v54  ;;  %v96_v10 = vsel %vm88_vm5, %v2220_v55, %v2210_v53  ;;  %1965 = vmatmul.mubr.msk.f32.vlgmr.msra.gmra.mrb[0].mxu1 %vm152_vm3, %v59_v46 }
  0x94   :  { %v2054_v17 = vpack.c.bf16 %v92_v3, %v91_v63  ;;  %v2057_v19 = vpack.c.bf16 %v96_v10, %v95_v7  ;;  %v89_v20 = vsel %vm88_vm5, %v2204_v60, %v2214_v62  ;;  %v90_v21 = vsel %vm88_vm5, %v2205_v59, %v2215_v61  ;;  %v2228_v22 = vpop.permute.xlu1 %2227  ;;  %436 = vmatprep.mubr.f32.mxu1 %v2397_v12 }
  0x95   :  { %v93_v23 = vsel %vm88_vm5, %v2214_v62, %v2204_v60  ;;  %v94_v24 = vsel %vm88_vm5, %v2215_v61, %v2205_v59  ;;  %v2043_v26 = vpack.c.bf16 %v90_v21, %v89_v20  ;;  %v2223_v27 = vpop.permute.xlu0 %2222  ;;  %v2230_v33 = vunpack.i.h.bf16 %v2228_v22  ;;  %v60_v61 = vld [vmem:[%s2999_s2 + $0x10] sm:$0xff] }
  0x96   :  { %v2046_v28 = vpack.c.bf16 %v94_v24, %v93_v23  ;;  %2056 = vmatprep.subr.msk.bf16.mxu1 %vm2597_vm8, %v2054_v17  ;;  %v2229_v34 = vunpack.i.l.bf16 %v2228_v22  ;;  %v2225_v39 = vunpack.i.h.bf16 %v2223_v27  ;;  %v2224_v41 = vunpack.i.l.bf16 %v2223_v27 }
  0x97   :  { %2045 = vmatprep.subr.msk.bf16.mxu0 %vm2597_vm8, %v2043_v26  ;;  %2059 = vmatpush1.bf16.msk.msra.mxu1 %vm2047_vm9, %v2057_v19  ;;  %vm1170_vm5 = vcmp.lt.s32.totalorder %v2527_v18, 113 }
  0x98   :  { %2048 = vmatpush1.bf16.msk.msra.mxu0 %vm2047_vm9, %v2046_v28  ;;  %v2238_v30 = vpop.permute.xlu1 %2237  ;;  %vm1360_vm9 = vcmp.lt.s32.totalorder %v2527_v18, 112 }
  0x99   :  { %v2240_v35 = vunpack.i.h.bf16 %v2238_v30  ;;  %v2239_v36 = vunpack.i.l.bf16 %v2238_v30  ;;  %v2233_v37 = vpop.permute.xlu0 %2232 }
  0x9a   :  { %v2235_v42 = vunpack.i.h.bf16 %v2233_v37  ;;  %v2234_v40 = vunpack.i.l.bf16 %v2233_v37 }
  0x9b   :  { %v462_v43 = vsel %vm459_vm11, %v2229_v34, %v2239_v36  ;;  %v463_v44 = vsel %vm459_vm11, %v2230_v33, %v2240_v35  ;;  %v466_v45 = vsel %vm459_vm11, %v2239_v36, %v2229_v34  ;;  %v467_v46 = vsel %vm459_vm11, %v2240_v35, %v2230_v33  ;;  %1962 = vmatmul.mubr.msk.f32.vlgmr.msra.gmra.mrb[0].mxu0 %vm152_vm3, %v58_v31 }
  0x9c   :  { %v2066_v48 = vpack.c.bf16 %v463_v44, %v462_v43  ;;  %v2069_v49 = vpack.c.bf16 %v467_v46, %v466_v45  ;;  %v460_v51 = vsel %vm459_vm11, %v2224_v41, %v2234_v40  ;;  %v461_v53 = vsel %vm459_vm11, %v2225_v39, %v2235_v42  ;;  %1970 = vmatmul.mubr.msk.f32.vlgmr.msra.gmra.mrb[0].mxu1 %vm152_vm3, %v58_v31  ;;  %v2248_v54 = vpop.permute.xlu1 %2247 }
  0x9d   :  { %v464_v55 = vsel %vm459_vm11, %v2234_v40, %v2224_v41  ;;  %v465_v56 = vsel %vm459_vm11, %v2235_v42, %v2225_v39  ;;  %v2060_v57 = vpack.c.bf16 %v461_v53, %v460_v51  ;;  %v2243_v58 = vpop.permute.xlu0 %2242  ;;  %551 = vmatprep.mubr.f32.mxu0 %v2397_v12  ;;  %624 = vmatprep.mubr.f32.mxu1 %v2397_v12  ;;  %v2250_v62 = vunpack.i.h.bf16 %v2248_v54  ;;  %v61_v40 = vld [vmem:[%s2999_s2 + $0x18] sm:$0xff] }
  0x9e   :  { %v2063_v59 = vpack.c.bf16 %v465_v56, %v464_v55  ;;  %2068 = vmatprep.subr.msk.bf16.mxu1 %vm2649_vm14, %v2066_v48  ;;  %v2249_v63 = vunpack.i.l.bf16 %v2248_v54  ;;  %v2245_v17 = vunpack.i.h.bf16 %v2243_v58  ;;  %v2244_v19 = vunpack.i.l.bf16 %v2243_v58 }
  0x9f   :  { %2062 = vmatprep.subr.msk.bf16.mxu0 %vm2649_vm14, %v2060_v57  ;;  %2071 = vmatpush1.bf16.msk.msra.mxu1 %vm2064_vm15, %v2069_v49  ;;  %vm1546_vm11 = vcmp.lt.s32.totalorder %v2527_v18, 111  ;;  %v65_v18 = vld [vmem:[%s2999_s2 + $0x38] sm:$0xff] }
  0xa0   :  { %2065 = vmatpush1.bf16.msk.msra.mxu0 %vm2064_vm15, %v2063_v59  ;;  %v2258_v60 = vpop.permute.xlu1 %2257 }
  0xa1   :  { %v2260_v3 = vunpack.i.h.bf16 %v2258_v60  ;;  %v2259_v7 = vunpack.i.l.bf16 %v2258_v60  ;;  %v2253_v10 = vpop.permute.xlu0 %2252 }
  0xa2   :  { %v2255_v20 = vunpack.i.h.bf16 %v2253_v10  ;;  %v2254_v21 = vunpack.i.l.bf16 %v2253_v10 }
  0xa3   :  { %v652_v22 = vsel %vm649_vm0, %v2249_v63, %v2259_v7  ;;  %v653_v23 = vsel %vm649_vm0, %v2250_v62, %v2260_v3  ;;  %v656_v24 = vsel %vm649_vm0, %v2259_v7, %v2249_v63  ;;  %v657_v26 = vsel %vm649_vm0, %v2260_v3, %v2250_v62  ;;  %1975 = vmatmul.mubr.msk.f32.vlgmr.msra.gmra.mrb[0].mxu0 %vm152_vm3, %v60_v61 }
  0xa4   :  { %v2078_v27 = vpack.c.bf16 %v653_v23, %v652_v22  ;;  %v2081_v28 = vpack.c.bf16 %v657_v26, %v656_v24  ;;  %v650_v30 = vsel %vm649_vm0, %v2244_v19, %v2254_v21  ;;  %v651_v31 = vsel %vm649_vm0, %v2245_v17, %v2255_v20  ;;  %1980 = vmatmul.mubr.msk.f32.vlgmr.msra.gmra.mrb[0].mxu1 %vm152_vm3, %v60_v61  ;;  %v2268_v33 = vpop.permute.xlu1 %2267 }
  0xa5   :  { %v654_v35 = vsel %vm649_vm0, %v2254_v21, %v2244_v19  ;;  %v655_v36 = vsel %vm649_vm0, %v2255_v20, %v2245_v17  ;;  %v2072_v37 = vpack.c.bf16 %v651_v31, %v650_v30  ;;  %v2263_v38 = vpop.permute.xlu0 %2262  ;;  %737 = vmatprep.mubr.f32.mxu0 %v2397_v12  ;;  %810 = vmatprep.mubr.f32.mxu1 %v2397_v12  ;;  %v2270_v50 = vunpack.i.h.bf16 %v2268_v33 }
  0xa6   :  { %v2075_v39 = vpack.c.bf16 %v655_v36, %v654_v35  ;;  %2080 = vmatprep.subr.msk.bf16.mxu1 %vm2597_vm8, %v2078_v27  ;;  %v2269_v41 = vunpack.i.l.bf16 %v2268_v33  ;;  %v2264_v42 = vunpack.i.l.bf16 %v2263_v38  ;;  %v2265_v11 = vunpack.i.h.bf16 %v2263_v38  ;;  %v63_v35 = vld [vmem:[%s2999_s2 + $0x28] sm:$0xff] }
  0xa7   :  { %2074 = vmatprep.subr.msk.bf16.mxu0 %vm2597_vm8, %v2072_v37  ;;  %2083 = vmatpush1.bf16.msk.msra.mxu1 %vm2692_vm1, %v2081_v28  ;;  %vm2766_vm8 = vmpackc.low %vm2615_vm10, %vm2615_vm10 }
  0xa8   :  { %2077 = vmatpush1.bf16.msk.msra.mxu0 %vm2692_vm1, %v2075_v39  ;;  %v2278_v43 = vpop.permute.xlu1 %2277  ;;  %2089 = vmatprep.subr.bf16.mxu1 %v2088_v14  ;;  %vm2819_vm10 = vmpackc.low %vm1180_vm4, %vm1180_vm4 }
  0xa9   :  { %v2280_v44 = vunpack.i.h.bf16 %v2278_v43  ;;  %v2279_v45 = vunpack.i.l.bf16 %v2278_v43  ;;  %v2273_v46 = vpop.permute.xlu0 %2272  ;;  %2085 = vmatprep.subr.bf16.mxu0 %v2084_v13 }
  0xaa   :  { %v2275_v48 = vunpack.i.h.bf16 %v2273_v46  ;;  %v2274_v49 = vunpack.i.l.bf16 %v2273_v46 }
  0xab   :  { %1985 = vmatmul.mubr.msk.f32.vlgmr.msra.gmra.mrb[0].mxu0 %vm152_vm3, %v61_v40  ;;  %v991_v51 = vsel %vm984_vm2, %v2279_v45, %v2269_v41  ;;  %v992_v53 = vsel %vm984_vm2, %v2280_v44, %v2270_v50  ;;  %v987_v55 = vsel %vm984_vm2, %v2269_v41, %v2279_v45  ;;  %v988_v56 = vsel %vm984_vm2, %v2270_v50, %v2280_v44 }
  0xac   :  { %1990 = vmatmul.mubr.msk.f32.vlgmr.msra.gmra.mrb[0].mxu1 %vm152_vm3, %v61_v40  ;;  %v2098_v5 = vpack.c.bf16 %v992_v53, %v991_v51  ;;  %v985_v6 = vsel %vm984_vm2, %v2264_v42, %v2274_v49  ;;  %v2288_v14 = vpop.permute.xlu1 %2287  ;;  %v986_v0 = vsel %vm984_vm2, %v2265_v11, %v2275_v48  ;;  %v989_v1 = vsel %vm984_vm2, %v2274_v49, %v2264_v42 }
  0xad   :  { %v990_v13 = vsel %vm984_vm2, %v2275_v48, %v2265_v11  ;;  %2087 = vmatpush1.bf16.msra.mxu0 %v2086_v15  ;;  %2091 = vmatpush1.bf16.msra.mxu1 %v2090_v16  ;;  %v2283_v54 = vpop.permute.xlu0 %2282  ;;  %v2290_v2 = vunpack.i.h.bf16 %v2288_v14  ;;  %v2289_v4 = vunpack.i.l.bf16 %v2288_v14  ;;  %v2095_v8 = vpack.c.bf16 %v986_v0, %v985_v6  ;;  %v62_v15 = vld [vmem:[%s2999_s2 + $0x20] sm:$0xff] }
  0xae   :  { %v2092_v57 = vpack.c.bf16 %v990_v13, %v989_v1  ;;  %886 = vmatprep.mubr.f32.mxu0 %v2397_v12  ;;  %959 = vmatprep.mubr.f32.mxu1 %v2397_v12  ;;  %v2284_v9 = vunpack.i.l.bf16 %v2283_v54  ;;  %v2101_v59 = vpack.c.bf16 %v988_v56, %v987_v55  ;;  %v2285_v60 = vunpack.i.h.bf16 %v2283_v54  ;;  %v64_v55 = vld [vmem:[%s2999_s2 + $0x30] sm:$0xff] }
  0xaf   :  { %2100 = vmatprep.subr.msk.bf16.mxu1 %vm2649_vm14, %v2098_v5 }
  0xb0   :  { %2094 = vmatprep.subr.msk.bf16.mxu0 %vm2649_vm14, %v2092_v57  ;;  %v2298_v16 = vpop.permute.xlu1 %2297 }
  0xb1   :  { %v2300_v61 = vunpack.i.h.bf16 %v2298_v16  ;;  %v2299_v62 = vunpack.i.l.bf16 %v2298_v16  ;;  %v2293_v63 = vpop.permute.xlu0 %2292 }
  0xb2   :  { %v2295_v3 = vunpack.i.h.bf16 %v2293_v63  ;;  %v2294_v52 = vunpack.i.l.bf16 %v2293_v63 }
  0xb3   :  { %1991 = vmatmul.mubr.msk.f32.vlgmr.msra.gmra.mrb[0].mxu0 %vm152_vm3, %v62_v15  ;;  %v1177_v7 = vsel %vm1170_vm5, %v2299_v62, %v2289_v4  ;;  %v1178_v10 = vsel %vm1170_vm5, %v2300_v61, %v2290_v2  ;;  %v1173_v24 = vsel %vm1170_vm5, %v2289_v4, %v2299_v62  ;;  %v1174_v26 = vsel %vm1170_vm5, %v2290_v2, %v2300_v61 }
  0xb4   :  { %1992 = vmatmul.mubr.msk.f32.vlgmr.msra.gmra.mrb[0].mxu1 %vm152_vm3, %v62_v15  ;;  %2097 = vmatpush1.bf16.msk.msra.mxu0 %vm2766_vm8, %v2095_v8  ;;  %v2110_v29 = vpack.c.bf16 %v1178_v10, %v1177_v7  ;;  %v1171_v17 = vsel %vm1170_vm5, %v2284_v9, %v2294_v52  ;;  %v2308_v19 = vpop.permute.xlu1 %2307  ;;  %v1172_v20 = vsel %vm1170_vm5, %v2285_v60, %v2295_v3 }
  0xb5   :  { %2103 = vmatpush1.bf16.msk.msra.mxu1 %vm2766_vm8, %v2101_v59  ;;  %v1175_v21 = vsel %vm1170_vm5, %v2294_v52, %v2284_v9  ;;  %v1176_v22 = vsel %vm1170_vm5, %v2295_v3, %v2285_v60  ;;  %v2303_v23 = vpop.permute.xlu0 %2302  ;;  %1072 = vmatprep.mubr.f32.mxu0 %v2397_v12  ;;  %v2310_v28 = vunpack.i.h.bf16 %v2308_v19  ;;  %v2309_v30 = vunpack.i.l.bf16 %v2308_v19 }
  0xb6   :  { %v2104_v27 = vpack.c.bf16 %v1176_v22, %v1175_v21  ;;  %1145 = vmatprep.mubr.f32.mxu1 %v2397_v12  ;;  %2112 = vmatprep.subr.msk.bf16.mxu1 %vm2105_vm6, %v2110_v29  ;;  %v2107_v31 = vpack.c.bf16 %v1172_v20, %v1171_v17  ;;  %v2304_v33 = vunpack.i.l.bf16 %v2303_v23  ;;  %v2113_v37 = vpack.c.bf16 %v1174_v26, %v1173_v24  ;;  %v66_v17 = vld [vmem:[%s2999_s2 + $0x40] sm:$0xff] }
  0xb7   :  { %v2305_v38 = vunpack.i.h.bf16 %v2303_v23  ;;  %v1768_v26 = vld [vmem:[%s3002_s5] sm:$0xff] }
  0xb8   :  { %2106 = vmatprep.subr.msk.bf16.mxu0 %vm2105_vm6, %v2104_v27  ;;  %v2318_v36 = vpop.permute.xlu1 %2317  ;;  %v1769_v27 = vld [vmem:[%s3002_s5 + $0x8] sm:$0xff] }
  0xb9   :  { %v2320_v39 = vunpack.i.h.bf16 %v2318_v36  ;;  %v2319_v50 = vunpack.i.l.bf16 %v2318_v36  ;;  %v2313_v41 = vpop.permute.xlu0 %2312 }
  0xba   :  { %v2315_v42 = vunpack.i.h.bf16 %v2313_v41  ;;  %v2314_v40 = vunpack.i.l.bf16 %v2313_v41 }
  0xbb   :  { %1997 = vmatmul.mubr.msk.f32.vlgmr.msra.gmra.mrb[0].mxu0 %vm152_vm3, %v63_v35  ;;  %v1367_v43 = vsel %vm1360_vm9, %v2319_v50, %v2309_v30  ;;  %v1368_v11 = vsel %vm1360_vm9, %v2320_v39, %v2310_v28  ;;  %v1363_v6 = vsel %vm1360_vm9, %v2309_v30, %v2319_v50  ;;  %v1364_v14 = vsel %vm1360_vm9, %v2310_v28, %v2320_v39  ;;  %v1774_v28 = vld [vmem:[%s3005_s8] sm:$0xff] }
  0xbc   :  { %2002 = vmatmul.mubr.msk.f32.vlgmr.msra.gmra.mrb[0].mxu1 %vm152_vm3, %v63_v35  ;;  %2109 = vmatpush1.bf16.msk.msra.mxu0 %vm2692_vm1, %v2107_v31  ;;  %v2121_v45 = vpack.c.bf16 %v1368_v11, %v1367_v43  ;;  %v1361_v46 = vsel %vm1360_vm9, %v2304_v33, %v2314_v40  ;;  %v2328_v48 = vpop.permute.xlu1 %2327  ;;  %v1362_v49 = vsel %vm1360_vm9, %v2305_v38, %v2315_v42  ;;  %v1775_v30 = vld [vmem:[%s3006_s9] sm:$0xff]  ;;  %s2029_s9 = sld [smem:[#allocation2 + $0x1]] }
  0xbd   :  { %2115 = vmatpush1.bf16.msk.msra.mxu1 %vm2692_vm1, %v2113_v37  ;;  %v1365_v51 = vsel %vm1360_vm9, %v2314_v40, %v2304_v33  ;;  %v1366_v53 = vsel %vm1360_vm9, %v2315_v42, %v2305_v38  ;;  %v2323_v5 = vpop.permute.xlu0 %2322  ;;  %1262 = vmatprep.mubr.f32.mxu0 %v2397_v12  ;;  %v2330_v0 = vunpack.i.h.bf16 %v2328_v48  ;;  %v2329_v1 = vunpack.i.l.bf16 %v2328_v48 }
  0xbe   :  { %v2116_v34 = vpack.c.bf16 %v1366_v53, %v1365_v51  ;;  %1335 = vmatprep.mubr.f32.mxu1 %v2397_v12  ;;  %2123 = vmatprep.subr.msk.bf16.mxu1 %vm2819_vm10, %v2121_v45  ;;  %v2119_v13 = vpack.c.bf16 %v1362_v49, %v1361_v46  ;;  %v2324_v54 = vunpack.i.l.bf16 %v2323_v5  ;;  %v2124_v2 = vpack.c.bf16 %v1364_v14, %v1363_v6  ;;  %v1749_v45 = vld [vmem:[%s3001_s4 + $0x8] sm:$0xff] }
  0xbf   :  { %v2325_v4 = vunpack.i.h.bf16 %v2323_v5 }
  0xc0   :  { %2118 = vmatprep.subr.msk.bf16.mxu0 %vm2819_vm10, %v2116_v34  ;;  %v2338_v56 = vpop.permute.xlu1 %2337 }
  0xc1   :  { %v2340_v8 = vunpack.i.h.bf16 %v2338_v56  ;;  %v2339_v9 = vunpack.i.l.bf16 %v2338_v56  ;;  %v2333_v15 = vpop.permute.xlu0 %2332 }
  0xc2   :  { %v2335_v16 = vunpack.i.h.bf16 %v2333_v15  ;;  %v2334_v58 = vunpack.i.l.bf16 %v2333_v15 }
  0xc3   :  { %2007 = vmatmul.mubr.msk.f32.vlgmr.msra.gmra.mrb[0].mxu0 %vm152_vm3, %v64_v55  ;;  %v1553_v59 = vsel %vm1546_vm11, %v2339_v9, %v2329_v1  ;;  %v1554_v32 = vsel %vm1546_vm11, %v2340_v8, %v2330_v0  ;;  %v1549_v3 = vsel %vm1546_vm11, %v2329_v1, %v2339_v9  ;;  %v1550_v52 = vsel %vm1546_vm11, %v2330_v0, %v2340_v8 }
  0xc4   :  { %2012 = vmatmul.mubr.msk.f32.vlgmr.msra.gmra.mrb[0].mxu1 %vm152_vm3, %v64_v55  ;;  %2120 = vmatpush1.bf16.msra.mxu0 %v2119_v13  ;;  %v2132_v25 = vpack.c.bf16 %v1554_v32, %v1553_v59  ;;  %v1547_v60 = vsel %vm1546_vm11, %v2324_v54, %v2334_v58  ;;  %v1548_v61 = vsel %vm1546_vm11, %v2325_v4, %v2335_v16  ;;  %v1786_v13 = vstv %s2029_s9 }
  0xc5   :  { %2125 = vmatpush1.bf16.msra.mxu1 %v2124_v2  ;;  %v1551_v62 = vsel %vm1546_vm11, %v2334_v58, %v2324_v54  ;;  %v1552_v63 = vsel %vm1546_vm11, %v2335_v16, %v2325_v4  ;;  %1448 = vmatprep.mubr.f32.mxu0 %v2397_v12  ;;  %v2129_v10 = vpack.c.bf16 %v1548_v61, %v1547_v60  ;;  %v1816_v54 = vstv %s2034_s30 }
  0xc6   :  { %v2126_v7 = vpack.c.bf16 %v1552_v63, %v1551_v62  ;;  %1521 = vmatprep.mubr.f32.mxu1 %v2397_v12  ;;  %2134 = vmatprep.subr.msk.bf16.mxu1 %vm2127_vm12, %v2132_v25  ;;  %v2135_v29 = vpack.c.bf16 %v1550_v52, %v1549_v3  ;;  %v1791_v2 = vstv %s2030_s12  ;;  %v1821_v4 = vstv %s2035_s13 }
  0xc8   :  { %2128 = vmatprep.subr.msk.bf16.mxu0 %vm2127_vm12, %v2126_v7 }
  0xcb   :  { %2015 = vmatmul.mubr.msk.f32.vlgmr.msra.gmra.mrb[0].mxu0 %vm152_vm3, %v65_v18 }
  0xcc   :  { %2018 = vmatmul.mubr.msk.f32.vlgmr.msra.gmra.mrb[0].mxu1 %vm152_vm3, %v65_v18  ;;  %2131 = vmatpush1.bf16.msk.msra.mxu0 %vm2766_vm8, %v2129_v10 }
  0xcd   :  { %2137 = vmatpush1.bf16.msk.msra.mxu1 %vm2766_vm8, %v2135_v29  ;;  %1636 = vmatprep.mubr.f32.mxu0 %v2397_v12 }
  0xce   :  { %1709 = vmatprep.mubr.f32.mxu1 %v2397_v12  ;;  %v1748_v12 = vld [vmem:[%s3001_s4] sm:$0xff]  ;;  %s1776_s4 = sld [smem:[#allocation2]] }
  0xd3   :  { %2023 = vmatmul.mubr.msk.f32.vlgmr.msra.gmra.mrb[0].mxu0 %vm152_vm3, %v66_v17 }
  0xd4   :  { %2028 = vmatmul.mubr.msk.f32.vlgmr.msra.gmra.mrb[0].mxu1 %vm152_vm3, %v66_v17 }
 0x1a6   :  { %v1638_v19 = vpop.f32.mrb[0].mxu0 }
 0x1a7   :  { %v1711_v20 = vpop.f32.mrb[0].mxu1  ;;  %v1640_v21 = vpop.f32.mrb[1].mxu0 }
 0x1a8   :  { %v1718_v22 = vadd.f32 %v1640_v21, %v1638_v19  ;;  %v1713_v23 = vpop.f32.mrb[1].mxu1 }
 0x1a9   :  { %v1721_v24 = vadd.f32 %v1713_v23, %v1711_v20 }
 0x1aa   :  { %1719 = vadd.xlane.f32.xlu0 %v1718_v22 }
 0x1ab   :  { %1722 = vadd.xlane.f32.xlu1 %v1721_v24 }
 0x1bc   :  { %1752 = vperm.xlu1 %2341, %v1748_v12  }
 0x1c0   :  { %1886 = vperm.xlu1 %2341, %v1768_v26  }
 0x1c4   :  { %1891 = vperm.xlu1 %2341, %v1769_v27  }
 0x1c8   :  { %1922 = vperm.xlu1 %2341, %v1774_v28  }
 0x1cc   :  { %1931 = vperm.xlu1 %2341, %v1775_v30  }
 0x237   :  { %v1720_v31 = vpop.xlane.xlu0 %1719 }
 0x238   :  { %v1723_v33 = vpop.xlane.xlu1 %1722 }
 0x239   :  { %v1724_v35 = vadd.f32 %v1723_v33, %v1720_v31 }
 0x23b   :  { %v1725_v36 = vmul.f32 0.001953125, %v1724_v35 }
 0x23c   :  { %v1753_v55 = vpop.permute.xlu1 %1752 }
 0x23d   :  { %v1726_v37 = vsub.f32 %v1638_v19, %v1725_v36  ;;  %v1727_v38 = vsub.f32 %v1640_v21, %v1725_v36  ;;  %v1728_v39 = vsub.f32 %v1711_v20, %v1725_v36  ;;  %v1729_v50 = vsub.f32 %v1713_v23, %v1725_v36 }
 0x23f   :  { %v1730_v41 = vmul.f32 %v1726_v37, %v1726_v37  ;;  %v1731_v42 = vmul.f32 %v1727_v38, %v1727_v38  ;;  %v1735_v43 = vmul.f32 %v1728_v39, %v1728_v39  ;;  %v1736_v11 = vmul.f32 %v1729_v50, %v1729_v50 }
 0x241   :  { %v1732_v40 = vadd.f32 %v1731_v42, %v1730_v41  ;;  %v1737_v44 = vadd.f32 %v1736_v11, %v1735_v43 }
 0x243   :  { %1733 = vadd.xlane.f32.xlu0 %v1732_v40 }
 0x247   :  { %1738 = vadd.xlane.f32.xlu0 %v1737_v44 }
 0x25d   :  { %1757 = vperm.xlu0 %2342, %v1749_v45  }
 0x2d0   :  { %v1734_v46 = vpop.xlane.xlu0 %1733 }
 0x2d4   :  { %v1739_v48 = vpop.xlane.xlu0 %1738 }
 0x2d5   :  { %v1740_v49 = vadd.f32 %v1739_v48, %v1734_v46 }
 0x2d7   :  { %v1741_v51 = vmul.f32 0.001953125, %v1740_v49 }
 0x2d9   :  { %v1742_v53 = vadd.f32 1e-05, %v1741_v51 }
 0x2db   :  { %2343 = vrsqrt.f32 %v1742_v53  ;;  %v1764_v53 = vld [vmem:[%s3000_s3] sm:$0xff] }
 0x2dc   :  { %v1758_v1 = vpop.permute.xlu0 %1757 }
 0x2e5   :  { %v2344_v5 = vpop.eup %2343 }
 0x2e6   :  { %v1744_v6 = vmul.f32 %v2344_v5, %v1726_v37  ;;  %v1745_v14 = vmul.f32 %v2344_v5, %v1727_v38  ;;  %v1746_v34 = vmul.f32 %v2344_v5, %v1728_v39  ;;  %v1747_v0 = vmul.f32 %v2344_v5, %v1729_v50  ;;  %v1765_v5 = vld [vmem:[%s3000_s3 + $0x8] sm:$0xff] }
 0x2e8   :  { %v2925_v56 = vmul.f32 %v1753_v55, %v1744_v6  ;;  %v2927_v57 = vmul.f32 %v1753_v55, %v1745_v14  ;;  %v2929_v8 = vmul.f32 %v1758_v1, %v1746_v34  ;;  %v2931_v9 = vmul.f32 %v1758_v1, %v1747_v0  ;;  %v1772_v34 = vld [vmem:[%s3004_s7] sm:$0xff]  ;;  %v1887_v0 = vpop.permute.xlu1 %1886  ;;  %v1773_v1 = vld [vmem:[%s3004_s7 + $0x8] sm:$0xff] }
 0x2e9   :  { %v1846_v6 = vstv %s1776_s4  ;;  %v1851_v14 = vstv %s2031_s14  ;;  %v1865_v55 = vstv %s2033_s16 }
 0x2ea   :  { %v1787_v15 = vmul.f32 %v1786_v13, %v2925_v56  ;;  %v1788_v16 = vmul.f32 %v1786_v13, %v2927_v57  ;;  %v1817_v58 = vmul.f32 %v1816_v54, %v2925_v56  ;;  %v1818_v59 = vmul.f32 %v1816_v54, %v2927_v57 }
 0x2eb   :  { %v1789_v62 = vmul.f32 %v1786_v13, %v2929_v8  ;;  %v1790_v63 = vmul.f32 %v1786_v13, %v2931_v9  ;;  %v1819_v3 = vmul.f32 %v1816_v54, %v2929_v8  ;;  %v1820_v52 = vmul.f32 %v1816_v54, %v2931_v9 }
 0x2ec   :  { %v1792_v32 = vadd.f32 %v1791_v2, %v1787_v15  ;;  %v1793_v25 = vadd.f32 %v1791_v2, %v1788_v16  ;;  %v1822_v60 = vadd.f32 %v1821_v4, %v1817_v58  ;;  %v1823_v61 = vadd.f32 %v1821_v4, %v1818_v59 }
 0x2ed   :  { %v1794_v17 = vadd.f32 %v1791_v2, %v1789_v62  ;;  %v1795_v19 = vadd.f32 %v1791_v2, %v1790_v63  ;;  %v1824_v20 = vadd.f32 %v1821_v4, %v1819_v3  ;;  %v1825_v21 = vadd.f32 %v1821_v4, %v1820_v52 }
 0x2ee   :  { %v1796_v7 = vsub.f32 0.0, %v1792_v32  ;;  %v1797_v10 = vsub.f32 0.0, %v1793_v25  ;;  %v1826_v18 = vsub.f32 0.0, %v1822_v60  ;;  %v1827_v29 = vsub.f32 0.0, %v1823_v61 }
 0x2ef   :  { %v1798_v47 = vsub.f32 0.0, %v1794_v17  ;;  %v1799_v26 = vsub.f32 0.0, %v1795_v19  ;;  %v1828_v27 = vsub.f32 0.0, %v1824_v20  ;;  %v1829_v28 = vsub.f32 0.0, %v1825_v21 }
 0x2f0   :  { %v1800_v22 = vmul.f32 1.442695, %v1796_v7  ;;  %v1802_v23 = vmul.f32 1.442695, %v1797_v10  ;;  %v1830_v24 = vmul.f32 1.442695, %v1826_v18  ;;  %v1870_v54 = vstv %s2036_s15 }
 0x2f1   :  { %v1832_v12 = vmul.f32 1.442695, %v1827_v29  ;;  %v1804_v30 = vmul.f32 1.442695, %v1798_v47  ;;  %v1806_v31 = vmul.f32 1.442695, %v1799_v26  ;;  %v1894_v2 = vmul.f32 %v1887_v0, %v1764_v53  ;;  %v1892_v26 = vpop.permute.xlu1 %1891 }
 0x2f2   :  { %2345 = vpow2.f32 %v1800_v22  ;;  %v1834_v33 = vmul.f32 1.442695, %v1828_v27  ;;  %v1836_v35 = vmul.f32 1.442695, %v1829_v28  ;;  %v1895_v4 = vmul.f32 %v1887_v0, %v1765_v5  ;;  %v1771_v5 = vld [vmem:[%s3003_s6 + $0x8] sm:$0xff] }
 0x2f3   :  { %2347 = vpow2.f32 %v1802_v23  ;;  %v1860_v16 = vstv %s2032_s17  ;;  %v1852_v59 = vmul.f32 %v1851_v14, %v2925_v56  ;;  %v1879_v25 = vstv %s2037_s18 }
 0x2f4   :  { %2349 = vpow2.f32 %v1830_v24  ;;  %v1853_v61 = vmul.f32 %v1851_v14, %v2927_v57  ;;  %v1871_v63 = vmul.f32 %v1870_v54, %v2925_v56  ;;  %v1872_v3 = vmul.f32 %v1870_v54, %v2927_v57  ;;  %v1766_v57 = vld [vmem:[%s3000_s3 + $0x10] sm:$0xff] }
 0x2f5   :  { %2351 = vpow2.f32 %v1832_v12  ;;  %v1854_v17 = vmul.f32 %v1851_v14, %v2929_v8  ;;  %v1855_v19 = vmul.f32 %v1851_v14, %v2931_v9  ;;  %v1873_v24 = vmul.f32 %v1870_v54, %v2929_v8 }
 0x2f6   :  { %2353 = vpow2.f32 %v1804_v30  ;;  %v1874_v28 = vmul.f32 %v1870_v54, %v2931_v9 }
 0x2f7   :  { %2355 = vpow2.f32 %v1806_v31 }
 0x2f8   :  { %2357 = vpow2.f32 %v1834_v33 }
 0x2f9   :  { %2359 = vpow2.f32 %v1836_v35  ;;  %v1767_v35 = vld [vmem:[%s3000_s3 + $0x18] sm:$0xff] }
 0x2fc   :  { %v2346_v36 = vpop.eup %2345 }
 0x2fd   :  { %v2348_v37 = vpop.eup %2347  ;;  %v1808_v38 = vadd.f32 1.0, %v2346_v36 }
 0x2fe   :  { %v2350_v39 = vpop.eup %2349  ;;  %v1809_v50 = vadd.f32 1.0, %v2348_v37 }
 0x2ff   :  { %v2352_v41 = vpop.eup %2351  ;;  %2361 = vrcp.f32 %v1808_v38  ;;  %v1838_v42 = vadd.f32 1.0, %v2350_v39 }
 0x300   :  { %v2354_v40 = vpop.eup %2353  ;;  %2363 = vrcp.f32 %v1809_v50  ;;  %v1839_v43 = vadd.f32 1.0, %v2352_v41 }
 0x301   :  { %v2356_v11 = vpop.eup %2355  ;;  %2365 = vrcp.f32 %v1838_v42  ;;  %v1810_v44 = vadd.f32 1.0, %v2354_v40  ;;  %v1896_v42 = vmul.f32 %v1892_v26, %v1766_v57 }
 0x302   :  { %v2358_v45 = vpop.eup %2357  ;;  %2367 = vrcp.f32 %v1839_v43  ;;  %v1811_v46 = vadd.f32 1.0, %v2356_v11 }
 0x303   :  { %v2360_v48 = vpop.eup %2359  ;;  %2369 = vrcp.f32 %v1810_v44  ;;  %v1840_v49 = vadd.f32 1.0, %v2358_v45  ;;  %v1897_v44 = vmul.f32 %v1892_v26, %v1767_v35 }
 0x304   :  { %2371 = vrcp.f32 %v1811_v46  ;;  %v1841_v51 = vadd.f32 1.0, %v2360_v48  ;;  %v1770_v46 = vld [vmem:[%s3003_s6] sm:$0xff] }
 0x305   :  { %2373 = vrcp.f32 %v1840_v49 }
 0x306   :  { %2375 = vrcp.f32 %v1841_v51 }
 0x307   :  { %2377 = vrcp.f32 %v1772_v34 }
 0x308   :  { %2379 = vrcp.f32 %v1773_v1  ;;  %v1923_v1 = vpop.permute.xlu1 %1922 }
 0x309   :  { %v2362_v13 = vpop.eup %2361 }
 0x30a   :  { %v2364_v15 = vpop.eup %2363  ;;  %v1847_v58 = vmul.f32 %v2362_v13, %v1846_v6 }
 0x30b   :  { %v2366_v32 = vpop.eup %2365  ;;  %v1848_v60 = vmul.f32 %v2364_v15, %v1846_v6 }
 0x30c   :  { %v2368_v62 = vpop.eup %2367  ;;  %v1856_v52 = vadd.f32 %v1852_v59, %v1847_v58  ;;  %v1866_v7 = vmul.f32 %v2366_v32, %v1865_v55 }
 0x30d   :  { %v2370_v10 = vpop.eup %2369  ;;  %v1857_v18 = vadd.f32 %v1853_v61, %v1848_v60  ;;  %v1867_v29 = vmul.f32 %v2368_v62, %v1865_v55 }
 0x30e   :  { %v2372_v20 = vpop.eup %2371  ;;  %v1861_v21 = vadd.f32 %v1860_v16, %v1856_v52  ;;  %v1875_v22 = vadd.f32 %v1871_v63, %v1866_v7  ;;  %v1849_v23 = vmul.f32 %v2370_v10, %v1846_v6 }
 0x30f   :  { %v2374_v12 = vpop.eup %2373  ;;  %v1862_v47 = vadd.f32 %v1860_v16, %v1857_v18  ;;  %v1876_v56 = vadd.f32 %v1872_v3, %v1867_v29  ;;  %v1850_v27 = vmul.f32 %v2372_v20, %v1846_v6 }
 0x310   :  { %v2376_v30 = vpop.eup %2375  ;;  %v1880_v31 = vadd.f32 %v1879_v25, %v1875_v22  ;;  %v1898_v33 = vsub.f32 %v1894_v2, %v1861_v21  ;;  %v1858_v36 = vadd.f32 %v1854_v17, %v1849_v23  ;;  %v1868_v8 = vmul.f32 %v2374_v12, %v1865_v55 }
 0x311   :  { %v1881_v37 = vadd.f32 %v1879_v25, %v1876_v56  ;;  %v1899_v38 = vsub.f32 %v1895_v4, %v1862_v47  ;;  %v1859_v39 = vadd.f32 %v1855_v19, %v1850_v27  ;;  %v1869_v50 = vmul.f32 %v2376_v30, %v1865_v55  ;;  %v2378_v48 = vpop.eup %2377 }
 0x312   :  { %v1902_v41 = vmul.f32 %v1898_v33, %v1880_v31  ;;  %v1863_v40 = vadd.f32 %v1860_v16, %v1858_v36  ;;  %v1877_v43 = vadd.f32 %v1873_v24, %v1868_v8  ;;  %v2380_v6 = vpop.eup %2379 }
 0x313   :  { %v1903_v11 = vmul.f32 %v1899_v38, %v1881_v37  ;;  %v1864_v9 = vadd.f32 %v1860_v16, %v1859_v39  ;;  %v1878_v45 = vadd.f32 %v1874_v28, %v1869_v50 }
 0x314   :  { %v1906_v49 = vadd.f32 %v1902_v41, %v1861_v21  ;;  %v1882_v51 = vadd.f32 %v1879_v25, %v1877_v43  ;;  %v1900_v53 = vsub.f32 %v1896_v42, %v1863_v40 }
 0x315   :  { %v1907_v14 = vadd.f32 %v1903_v11, %v1862_v47  ;;  %v1883_v34 = vadd.f32 %v1879_v25, %v1878_v45  ;;  %v1901_v0 = vsub.f32 %v1897_v44, %v1864_v9  ;;  %v1932_v25 = vpop.permute.xlu1 %1931 }
 0x316   :  { %1938 = vst [vmem:[%s3007_s10] sm:$0xff] %v1906_v49  ;;  %v1904_v13 = vmul.f32 %v1900_v53, %v1882_v51  ;;  %v1910_v54 = vsub.f32 %v1906_v49, %v1770_v46 }
 0x317   :  { %1939 = vst [vmem:[%s3007_s10 + $0x8] sm:$0xff] %v1907_v14  ;;  %v1905_v55 = vmul.f32 %v1901_v0, %v1883_v34  ;;  %v1911_v2 = vsub.f32 %v1907_v14, %v1771_v5 }
 0x318   :  { %v1908_v4 = vadd.f32 %v1904_v13, %v1863_v40  ;;  %v1915_v15 = vmul.f32 %v2378_v48, %v1910_v54 }
 0x319   :  { %v1909_v16 = vadd.f32 %v1905_v55, %v1864_v9  ;;  %v1917_v58 = vmul.f32 %v2380_v6, %v1911_v2 }
 0x31a   :  { %v1912_v59 = vsub.f32 %v1908_v4, %v1770_v46  ;;  %v1925_v32 = vmul.f32 %v1923_v1, %v1915_v15  ;;  %1940 = vst [vmem:[%s3007_s10 + $0x10] sm:$0xff] %v1908_v4 }
 0x31b   :  { %v1913_v60 = vsub.f32 %v1909_v16, %v1771_v5  ;;  %v1926_v61 = vmul.f32 %v1923_v1, %v1917_v58  ;;  %1941 = vst [vmem:[%s3007_s10 + $0x18] sm:$0xff] %v1909_v16 }
 0x31c   :  { %v1918_v62 = vmul.f32 %v2378_v48, %v1912_v59  ;;  %v1934_v63 = vadd.f32 %v1932_v25, %v1925_v32 }
 0x31d   :  { %v1919_v3 = vmul.f32 %v2380_v6, %v1913_v60  ;;  %v1935_v52 = vadd.f32 %v1932_v25, %v1926_v61 }
 0x31e   :  { %v1927_v7 = vmul.f32 %v1923_v1, %v1918_v62  ;;  %1942 = vst [vmem:[%s3008_s11] sm:$0xff] %v1934_v63 }
 0x31f   :  { %v1928_v10 = vmul.f32 %v1923_v1, %v1919_v3  ;;  %1943 = vst [vmem:[%s3008_s11 + $0x8] sm:$0xff] %v1935_v52 }
 0x320   :  { %v1936_v18 = vadd.f32 %v1932_v25, %v1927_v7 }
 0x321   :  { %v1937_v29 = vadd.f32 %v1932_v25, %v1928_v10 }
 0x322   :  { %1944 = vst [vmem:[%s3008_s11 + $0x10] sm:$0xff] %v1936_v18 }
 0x323   :  { %1945 = vst [vmem:[%s3008_s11 + $0x18] sm:$0xff] %v1937_v29 }
 0x324   :  { %1954 = vsyncpa [#allocation3], 1 }

// kernel: ladder_forward.14
= control target key start
LH: loop header
LB: loop body
LE: loop exit
PB: predicated region body
PF: predicated region fallthrough
CT: control target
= control target key end

     0   :  { %17 = vsyncpa [#allocation4], 0  ;;  %s2413_s0 = inlined_call_operand.vmem [shape: f32[10], index: 0, kind: input, shape index: {}]   ;;  %s2414_s1 = inlined_call_operand.vmem [shape: f32[2,8,256], index: 1, kind: input, shape index: {}]   ;;  %s2415_s2 = inlined_call_operand.vmem [shape: f32[9,4,8], index: 2, kind: input, shape index: {}]   ;;  %s2416_s3 = inlined_call_operand.vmem [shape: f32[2,4,256], index: 3, kind: input, shape index: {}]   ;;  %s2417_s4 = inlined_call_operand.vmem [shape: f32[2,4,1], index: 4, kind: input, shape index: {}]   ;;  %s2418_s5 = inlined_call_operand.vmem [shape: f32[2,4,1], index: 5, kind: input, shape index: {}]   ;;  %s2419_s6 = inlined_call_operand.vmem [shape: f32[4,256], index: 6, kind: input, shape index: {}]   ;;  %s2420_s7 = inlined_call_operand.vmem [shape: f32[4,256], index: 7, kind: input, shape index: {}]   ;;  %s2421_s8 = inlined_call_operand.vmem [shape: f32[4,1], index: 8, kind: input, shape index: {}]   ;;  %s2422_s9 = inlined_call_operand.vmem [shape: f32[4,1], index: 9, kind: input, shape index: {}]   ;;  %s2423_s10 = inlined_call_operand.vmem [shape: f32[2,4,256], index: 10, kind: output, shape index: {0}]   ;;  %s2424_s11 = inlined_call_operand.hbm [shape: f32[2,4,256], index: 11, kind: output, shape index: {1}]  }
   0x1   :  { %18 = vsyncpa [#allocation3], 0  ;;  %s25_s19 = sshll.u32 %s2413_s0, 4  ;;  %s26_s19 = int_to_ptr.vmem [resolvable:$true] %s25_s19 }
   0x2   :  { %s2010_s20 = scalar_lea.vmem %s26_s19, 16  ;;  %p2015_p1 = scmp.lt.s32.totalorder %s26_s19, %s26_s19 }
   0x3   :  { %p2011_p0 = scmp.ne.s32.totalorder %s26_s19, %s2010_s20  ;;  %p2016_p2 = scmp.lt.s32.totalorder %s2010_s20, %s2010_s20 }
   0x5   :  { %p2017_p3 = por %p2016_p2, %p2015_p1 }
   0x7   :  { %p2018_p4 = pnand %p2017_p3, %p2011_p0 }
   0x9   :  { %2021 = shalt.err (!%p2018_p4)
}
   0xa   :  { %s2048_s21 = smov [#allocation2]  }
   0xb   :  { %28 = dma.vmem_to_smem %s26_s19, 16, %s2048_s21, [#allocation4]  }
   0xc   :  { %2044 = dma.done.wait [#allocation4], 16  }
   0xd   :  { %2045 = vsyncadd [#allocation4], 4294967280 }
   0xe   :  { %50 = sfence }
   0xf   :  { %v2128_v0 = vld [vmem:[%s2414_s1 + $0x8] sm:$0xff]  ;;  %v2133_v1 = vld [vmem:[%s2414_s1] sm:$0xff]  ;;  %s2049_s25 = smov 16   ;;  %v2140_v2 = vld [vmem:[%s2414_s1 + $0x18] sm:$0xff]  ;;  %v2050_v4 = vmov 0.0   ;;  %s2051_s30 = smov 17   ;;  %v64_v5 = vlaneseq }
  0x10   :  { %100 = vrot.lane.b32.xlu1 %v2128_v0, %s2049_s25  ;;  %96 = vrot.lane.b32.xlu0 %v2133_v1, %s2049_s25  ;;  %v2145_v3 = vld [vmem:[%s2414_s1 + $0x10] sm:$0xff]  ;;  %s2052_s1 = smov 15   ;;  %s2053_s12 = smov 1   ;;  %v56_v11 = vld [vmem:[%s2415_s2 + $0x4] sm:$0xf]  ;;  %vm117_vm2 = vcmask 64512  }
  0x11   :  { %185 = vmatprep.mubr.f32.mxu0 %v2050_v4  ;;  %330 = vmatprep.mubr.f32.mxu1 %v2050_v4  ;;  %s2054_s13 = smov 127   ;;  %s2055_s14 = smov 113   ;;  %v2179_v6 = vand.u32 127, %v64_v5  ;;  %v55_v29 = vld [vmem:[%s2415_s2] sm:$0xf] }
  0x12   :  { %s2056_s15 = smov 112   ;;  %s2057_s16 = smov 111   ;;  %v57_v40 = vld [vmem:[%s2415_s2 + $0x8] sm:$0xf]  ;;  %v58_v49 = vld [vmem:[%s2415_s2 + $0xc] sm:$0xf] }
  0x13   :  { %vm104_vm0 = vcmp.lt.s32.totalorder %v2179_v6, 16  ;;  %vm82_vm1 = vcmp.ge.s32.totalorder %v2179_v6, 16  ;;  %v2189_v12 = vadd.s32 128, %v2179_v6  ;;  %v67_v17 = vand.u32 15, %v2179_v6  ;;  %v59_v56 = vld [vmem:[%s2415_s2 + $0x10] sm:$0xf] }
  0x14   :  { %102 = vrot.lane.b32.xlu1 %v2140_v2, %s2049_s25  ;;  %98 = vrot.lane.b32.xlu0 %v2145_v3, %s2049_s25  ;;  %vm77_vm4 = vcmp.lt.s32.totalorder %v2179_v6, 17  ;;  %vm416_vm8 = vcmp.lt.s32.totalorder %v2179_v6, 15  ;;  %vm590_vm11 = vcmp.lt.s32.totalorder %v2179_v6, 1  ;;  %vm909_vm12 = vcmp.lt.s32.totalorder %v2179_v6, 127  ;;  %v62_v22 = vld [vmem:[%s2415_s2 + $0x1c] sm:$0xf] }
  0x15   :  { %v68_v18 = vand.u32 15, %v2189_v12  ;;  %vm2198_vm3 = vcmp.ge.s32.totalorder %v67_v17, 1  ;;  %vm2221_vm7 = vcmp.lt.s32.totalorder %v67_v17, 15  ;;  %vm1085_vm13 = vcmp.lt.s32.totalorder %v2189_v12, 240  ;;  %v1626_v33 = vld [vmem:[%s2417_s4] sm:$0xf] }
  0x16   :  { %vm86_vm6 = vmand %vm82_vm1, %vm2198_vm3  ;;  %vm1079_vm14 = vcmp.lt.s32.totalorder %v2179_v6, 113  ;;  %s1916_s23 = sld [smem:[#allocation2 + $0x6]]  ;;  %s1912_s24 = sld [smem:[#allocation2 + $0x2]] }
  0x17   :  { %vm2204_vm5 = vcmp.ge.s32.totalorder %v68_v18, 1  ;;  %vm2228_vm9 = vcmp.lt.s32.totalorder %v68_v18, 15  ;;  %vm423_vm10 = vmand %vm82_vm1, %vm2221_vm7  ;;  %s1917_s0 = sld [smem:[#allocation2 + $0x7]]  ;;  %s1913_s25 = sld [smem:[#allocation2 + $0x3]] }
  0x18   :  { %71 = vrot.lane.b32.xlu1 %v2145_v3, %s2051_s30  ;;  %69 = vrot.lane.b32.xlu0 %v2133_v1, %s2051_s30  ;;  %vm1087_vm15 = vmand %vm1085_vm13, %vm2204_vm5  ;;  %s1918_s26 = sld [smem:[#allocation2 + $0x8]]  ;;  %s1915_s27 = sld [smem:[#allocation2 + $0x5]] }
  0x19   :  { %s2059_s18 = smov [#allocation5]  }
  0x1a   :  { %s1851_s19 = sshll.u32 %s2059_s18, 4  ;;  %s1852_s19 = int_to_ptr.vmem [resolvable:$true] %s1851_s19 }
  0x1b   :  { %s2022_s20 = scalar_lea.vmem %s1852_s19, 256  ;;  %p2027_p6 = scmp.lt.s32.totalorder %s1852_s19, %s1852_s19 }
  0x1c   :  { %75 = vrot.lane.b32.xlu1 %v2140_v2, %s2051_s30  ;;  %73 = vrot.lane.b32.xlu0 %v2128_v0, %s2051_s30  ;;  %s1914_s30 = sld [smem:[#allocation2 + $0x4]]  ;;  %p2023_p5 = scmp.ne.s32.totalorder %s1852_s19, %s2022_s20 }
  0x1d   :  { %p2028_p7 = scmp.lt.s32.totalorder %s2022_s20, %s2022_s20 }
  0x1f   :  { %p2029_p8 = por %p2028_p7, %p2027_p6 }
  0x20   :  { %410 = vrot.lane.b32.xlu1 %v2145_v3, %s2052_s1  ;;  %408 = vrot.lane.b32.xlu0 %v2133_v1, %s2052_s1 }
  0x21   :  { %p2030_p9 = pnand %p2029_p8, %p2023_p5 }
  0x24   :  { %414 = vrot.lane.b32.xlu1 %v2140_v2, %s2052_s1  ;;  %412 = vrot.lane.b32.xlu0 %v2128_v0, %s2052_s1  ;;  %s1919_s1 = sld [smem:[#allocation2 + $0x9]] }
  0x28   :  { %584 = vrot.lane.b32.xlu1 %v2145_v3, %s2053_s12  ;;  %582 = vrot.lane.b32.xlu0 %v2133_v1, %s2053_s12 }
  0x2c   :  { %588 = vrot.lane.b32.xlu1 %v2140_v2, %s2053_s12  ;;  %586 = vrot.lane.b32.xlu0 %v2128_v0, %s2053_s12 }
  0x30   :  { %903 = vrot.lane.b32.xlu1 %v2145_v3, %s2054_s13  ;;  %901 = vrot.lane.b32.xlu0 %v2133_v1, %s2054_s13 }
  0x34   :  { %907 = vrot.lane.b32.xlu1 %v2140_v2, %s2054_s13  ;;  %905 = vrot.lane.b32.xlu0 %v2128_v0, %s2054_s13 }
  0x38   :  { %1073 = vrot.lane.b32.xlu1 %v2145_v3, %s2055_s14  ;;  %1071 = vrot.lane.b32.xlu0 %v2133_v1, %s2055_s14 }
  0x3c   :  { %1077 = vrot.lane.b32.xlu1 %v2140_v2, %s2055_s14  ;;  %1075 = vrot.lane.b32.xlu0 %v2128_v0, %s2055_s14 }
  0x40   :  { %1247 = vrot.lane.b32.xlu1 %v2145_v3, %s2056_s15  ;;  %1245 = vrot.lane.b32.xlu0 %v2133_v1, %s2056_s15 }
  0x44   :  { %1251 = vrot.lane.b32.xlu1 %v2140_v2, %s2056_s15  ;;  %1249 = vrot.lane.b32.xlu0 %v2128_v0, %s2056_s15 }
  0x48   :  { %1417 = vrot.lane.b32.xlu1 %v2145_v3, %s2057_s16  ;;  %1415 = vrot.lane.b32.xlu0 %v2133_v1, %s2057_s16 }
  0x4c   :  { %1421 = vrot.lane.b32.xlu1 %v2140_v2, %s2057_s16  ;;  %1419 = vrot.lane.b32.xlu0 %v2128_v0, %s2057_s16 }
  0x82   :  { %v101_v7 = vpop.permute.xlu1 %100  ;;  %v97_v8 = vpop.permute.xlu0 %96 }
  0x83   :  { %v105_v9 = vsel %vm104_vm0, %v97_v8, %v101_v7  ;;  %v107_v10 = vsel %vm104_vm0, %v101_v7, %v97_v8 }
  0x84   :  { %121 = vmatprep.subr.mxu0 %v105_v9 }
  0x85   :  { %1865 = vmatpush1.msk.msra.mxu0 %vm82_vm1, %v107_v10 }
  0x86   :  { %v103_v13 = vpop.permute.xlu1 %102  ;;  %v99_v14 = vpop.permute.xlu0 %98  ;;  %1866 = vmatmul.mubr.msk.f32.vlgmr.msra.gmra.mrb[0].mxu0 %vm117_vm2, %v56_v11 }
  0x87   :  { %v106_v15 = vsel %vm104_vm0, %v99_v14, %v103_v13  ;;  %v108_v16 = vsel %vm104_vm0, %v103_v13, %v99_v14  ;;  %259 = vmatprep.mubr.f32.mxu0 %v2050_v4  ;;  %vm1253_vm0 = vcmp.lt.s32.totalorder %v2179_v6, 112  ;;  %v61_v13 = vld [vmem:[%s2415_s2 + $0x18] sm:$0xf] }
  0x88   :  { %266 = vmatprep.subr.mxu1 %v106_v15 }
  0x89   :  { %1870 = vmatpush1.msk.msra.mxu1 %vm82_vm1, %v108_v16  ;;  %vm1423_vm1 = vcmp.lt.s32.totalorder %v2179_v6, 111  ;;  %v63_v6 = vld [vmem:[%s2415_s2 + $0x20] sm:$0xf] }
  0x8a   :  { %v72_v19 = vpop.permute.xlu1 %71  ;;  %1871 = vmatmul.mubr.msk.f32.vlgmr.msra.gmra.mrb[0].mxu1 %vm117_vm2, %v56_v11  ;;  %v70_v20 = vpop.permute.xlu0 %69 }
  0x8b   :  { %401 = vmatprep.mubr.f32.mxu1 %v2050_v4 }
  0x8e   :  { %v76_v23 = vpop.permute.xlu1 %75  ;;  %v74_v24 = vpop.permute.xlu0 %73 }
  0x8f   :  { %v79_v25 = vsel %vm77_vm4, %v72_v19, %v76_v23  ;;  %v81_v26 = vsel %vm77_vm4, %v76_v23, %v72_v19  ;;  %v78_v27 = vsel %vm77_vm4, %v70_v20, %v74_v24  ;;  %v80_v28 = vsel %vm77_vm4, %v74_v24, %v70_v20 }
  0x90   :  { %1867 = vmatprep.subr.msk.mxu0 %vm2204_vm5, %v78_v27  ;;  %1872 = vmatprep.subr.msk.mxu1 %vm2204_vm5, %v79_v25  ;;  %vm1587_vm4 = vcmask 1043456  }
  0x91   :  { %1868 = vmatpush1.msk.msra.mxu0 %vm86_vm6, %v80_v28  ;;  %1873 = vmatpush1.msk.msra.mxu1 %vm86_vm6, %v81_v26 }
  0x92   :  { %v411_v30 = vpop.permute.xlu1 %410  ;;  %1869 = vmatmul.mubr.msk.f32.vlgmr.msra.gmra.mrb[0].mxu0 %vm117_vm2, %v55_v29  ;;  %1874 = vmatmul.mubr.msk.f32.vlgmr.msra.gmra.mrb[0].mxu1 %vm117_vm2, %v55_v29  ;;  %v409_v31 = vpop.permute.xlu0 %408 }
  0x93   :  { %500 = vmatprep.mubr.f32.mxu0 %v2050_v4  ;;  %573 = vmatprep.mubr.f32.mxu1 %v2050_v4 }
  0x96   :  { %v415_v34 = vpop.permute.xlu1 %414  ;;  %v413_v35 = vpop.permute.xlu0 %412 }
  0x97   :  { %v418_v36 = vsel %vm416_vm8, %v411_v30, %v415_v34  ;;  %v420_v37 = vsel %vm416_vm8, %v415_v34, %v411_v30  ;;  %v417_v38 = vsel %vm416_vm8, %v409_v31, %v413_v35  ;;  %v419_v39 = vsel %vm416_vm8, %v413_v35, %v409_v31  ;;  %v1644_v35 = vld [vmem:[%s2418_s5] sm:$0xf] }
  0x98   :  { %1875 = vmatprep.subr.msk.mxu0 %vm2228_vm9, %v417_v38  ;;  %1878 = vmatprep.subr.msk.mxu1 %vm2228_vm9, %v418_v36  ;;  %v2058_v34 = vmov 0   ;;  %v1645_v36 = vld [vmem:[%s2418_s5 + $0x4] sm:$0xf]  ;;  %v1649_v38 = vld [vmem:[%s2422_s9] sm:$0xf]  ;;  %s1911_s9 = sld [smem:[#allocation2 + $0x1]] }
  0x99   :  { %1876 = vmatpush1.msk.msra.mxu0 %vm423_vm10, %v419_v39  ;;  %1879 = vmatpush1.msk.msra.mxu1 %vm423_vm10, %v420_v37  ;;  %v1648_v37 = vld [vmem:[%s2421_s8] sm:$0xf] }
  0x9a   :  { %v585_v41 = vpop.permute.xlu1 %584  ;;  %1877 = vmatmul.mubr.msk.f32.vlgmr.msra.gmra.mrb[0].mxu0 %vm117_vm2, %v57_v40  ;;  %1880 = vmatmul.mubr.msk.f32.vlgmr.msra.gmra.mrb[0].mxu1 %vm117_vm2, %v57_v40  ;;  %v583_v42 = vpop.permute.xlu0 %582 }
  0x9b   :  { %670 = vmatprep.mubr.f32.mxu0 %v2050_v4  ;;  %743 = vmatprep.mubr.f32.mxu1 %v2050_v4 }
  0x9c   :  { %1966 = vset.pattern.permute.xlu1 %v2058_v34  ;;  %1967 = vset.pattern.permute.xlu0 %v2058_v34 }
  0x9e   :  { %v589_v43 = vpop.permute.xlu1 %588  ;;  %v587_v44 = vpop.permute.xlu0 %586 }
  0x9f   :  { %v592_v45 = vsel %vm590_vm11, %v585_v41, %v589_v43  ;;  %v594_v46 = vsel %vm590_vm11, %v589_v43, %v585_v41  ;;  %v591_v47 = vsel %vm590_vm11, %v583_v42, %v587_v44  ;;  %v593_v48 = vsel %vm590_vm11, %v587_v44, %v583_v42 }
  0xa0   :  { %1881 = vmatprep.subr.msk.mxu0 %vm2204_vm5, %v591_v47  ;;  %1884 = vmatprep.subr.msk.mxu1 %vm2204_vm5, %v592_v45 }
  0xa1   :  { %1882 = vmatpush1.msk.msra.mxu0 %vm2198_vm3, %v593_v48  ;;  %1885 = vmatpush1.msk.msra.mxu1 %vm2198_vm3, %v594_v46 }
  0xa2   :  { %1883 = vmatmul.mubr.msk.f32.vlgmr.msra.gmra.mrb[0].mxu0 %vm117_vm2, %v58_v49  ;;  %1886 = vmatmul.mubr.msk.f32.vlgmr.msra.gmra.mrb[0].mxu1 %vm117_vm2, %v58_v49  ;;  %v904_v50 = vpop.permute.xlu1 %903  ;;  %v902_v51 = vpop.permute.xlu0 %901 }
  0xa3   :  { %755 = vmatprep.subr.mxu0 %v2128_v0  ;;  %828 = vmatprep.subr.mxu1 %v2140_v2 }
  0xa4   :  { %756 = vmatpush1.msra.mxu0 %v2133_v1  ;;  %819 = vmatprep.mubr.f32.mxu0 %v2050_v4  ;;  %v60_v1 = vld [vmem:[%s2415_s2 + $0x14] sm:$0xf] }
  0xa5   :  { %829 = vmatpush1.msra.mxu1 %v2145_v3  ;;  %892 = vmatprep.mubr.f32.mxu1 %v2050_v4 }
  0xa6   :  { %v908_v52 = vpop.permute.xlu1 %907  ;;  %v906_v53 = vpop.permute.xlu0 %905 }
  0xa7   :  { %v913_v54 = vsel %vm909_vm12, %v908_v52, %v904_v50  ;;  %v912_v55 = vsel %vm909_vm12, %v906_v53, %v902_v51  ;;  %v911_v57 = vsel %vm909_vm12, %v904_v50, %v908_v52  ;;  %v910_v58 = vsel %vm909_vm12, %v902_v51, %v906_v53 }
  0xa8   :  { %1889 = vmatprep.subr.msk.mxu0 %vm2228_vm9, %v912_v55  ;;  %1892 = vmatprep.subr.msk.mxu1 %vm2228_vm9, %v913_v54 }
  0xaa   :  { %1887 = vmatmul.mubr.msk.f32.vlgmr.msra.gmra.mrb[0].mxu0 %vm117_vm2, %v59_v56  ;;  %1888 = vmatmul.mubr.msk.f32.vlgmr.msra.gmra.mrb[0].mxu1 %vm117_vm2, %v59_v56  ;;  %v1074_v59 = vpop.permute.xlu1 %1073  ;;  %v1072_v60 = vpop.permute.xlu0 %1071 }
  0xab   :  { %1890 = vmatpush1.msk.msra.mxu0 %vm2221_vm7, %v910_v58  ;;  %1893 = vmatpush1.msk.msra.mxu1 %vm2221_vm7, %v911_v57  ;;  %v1627_v57 = vld [vmem:[%s2417_s4 + $0x4] sm:$0xf]  ;;  %s1650_s4 = sld [smem:[#allocation2]] }
  0xac   :  { %989 = vmatprep.mubr.f32.mxu0 %v2050_v4  ;;  %1062 = vmatprep.mubr.f32.mxu1 %v2050_v4 }
  0xae   :  { %v1078_v61 = vpop.permute.xlu1 %1077  ;;  %v1076_v62 = vpop.permute.xlu0 %1075 }
  0xaf   :  { %v1083_v63 = vsel %vm1079_vm14, %v1078_v61, %v1074_v59  ;;  %v1082_v0 = vsel %vm1079_vm14, %v1076_v62, %v1072_v60  ;;  %v1081_v2 = vsel %vm1079_vm14, %v1074_v59, %v1078_v61  ;;  %v1080_v3 = vsel %vm1079_vm14, %v1072_v60, %v1076_v62 }
  0xb0   :  { %1895 = vmatprep.subr.msk.mxu0 %vm1087_vm15, %v1082_v0  ;;  %1898 = vmatprep.subr.msk.mxu1 %vm1087_vm15, %v1083_v63 }
  0xb2   :  { %1891 = vmatmul.mubr.msk.f32.vlgmr.msra.gmra.mrb[0].mxu0 %vm117_vm2, %v60_v1  ;;  %1894 = vmatmul.mubr.msk.f32.vlgmr.msra.gmra.mrb[0].mxu1 %vm117_vm2, %v60_v1  ;;  %v1248_v5 = vpop.permute.xlu1 %1247  ;;  %v1246_v7 = vpop.permute.xlu0 %1245 }
  0xb3   :  { %1896 = vmatpush1.msk.msra.mxu0 %vm2198_vm3, %v1080_v3  ;;  %1899 = vmatpush1.msk.msra.mxu1 %vm2198_vm3, %v1081_v2  ;;  %vm1429_vm3 = vmand %vm1085_vm13, %vm2228_vm9 }
  0xb4   :  { %1163 = vmatprep.mubr.f32.mxu0 %v2050_v4  ;;  %1236 = vmatprep.mubr.f32.mxu1 %v2050_v4 }
  0xb6   :  { %v1252_v8 = vpop.permute.xlu1 %1251  ;;  %v1250_v9 = vpop.permute.xlu0 %1249 }
  0xb7   :  { %v1257_v10 = vsel %vm1253_vm0, %v1252_v8, %v1248_v5  ;;  %v1256_v11 = vsel %vm1253_vm0, %v1250_v9, %v1246_v7  ;;  %v1255_v14 = vsel %vm1253_vm0, %v1248_v5, %v1252_v8  ;;  %v1254_v15 = vsel %vm1253_vm0, %v1246_v7, %v1250_v9 }
  0xb8   :  { %1901 = vmatprep.subr.msk.mxu0 %vm1085_vm13, %v1256_v11  ;;  %1903 = vmatprep.subr.msk.mxu1 %vm1085_vm13, %v1257_v10  ;;  %v1660_v7 = vstv %s1911_s9  ;;  %v1690_v8 = vstv %s1916_s23 }
  0xba   :  { %1897 = vmatmul.mubr.msk.f32.vlgmr.msra.gmra.mrb[0].mxu0 %vm117_vm2, %v61_v13  ;;  %1900 = vmatmul.mubr.msk.f32.vlgmr.msra.gmra.mrb[0].mxu1 %vm117_vm2, %v61_v13  ;;  %v1418_v16 = vpop.permute.xlu1 %1417  ;;  %v1416_v17 = vpop.permute.xlu0 %1415  ;;  %v1665_v13 = vstv %s1912_s24 }
  0xbb   :  { %1270 = vmatpush1.msra.mxu0 %v1254_v15  ;;  %1343 = vmatpush1.msra.mxu1 %v1255_v14  ;;  %v1695_v14 = vstv %s1917_s0 }
  0xbc   :  { %1333 = vmatprep.mubr.f32.mxu0 %v2050_v4  ;;  %1406 = vmatprep.mubr.f32.mxu1 %v2050_v4 }
  0xbe   :  { %v1422_v18 = vpop.permute.xlu1 %1421  ;;  %v1420_v19 = vpop.permute.xlu0 %1419 }
  0xbf   :  { %v1427_v20 = vsel %vm1423_vm1, %v1422_v18, %v1418_v16  ;;  %v1426_v21 = vsel %vm1423_vm1, %v1420_v19, %v1416_v17  ;;  %v1425_v23 = vsel %vm1423_vm1, %v1418_v16, %v1422_v18  ;;  %v1424_v24 = vsel %vm1423_vm1, %v1416_v17, %v1420_v19 }
  0xc0   :  { %1905 = vmatprep.subr.msk.mxu0 %vm1429_vm3, %v1426_v21  ;;  %1908 = vmatprep.subr.msk.mxu1 %vm1429_vm3, %v1427_v20 }
  0xc2   :  { %1902 = vmatmul.mubr.msk.f32.vlgmr.msra.gmra.mrb[0].mxu0 %vm117_vm2, %v62_v22  ;;  %1904 = vmatmul.mubr.msk.f32.vlgmr.msra.gmra.mrb[0].mxu1 %vm117_vm2, %v62_v22 }
  0xc3   :  { %1906 = vmatpush1.msk.msra.mxu0 %vm2221_vm7, %v1424_v24  ;;  %1909 = vmatpush1.msk.msra.mxu1 %vm2221_vm7, %v1425_v23 }
  0xc4   :  { %1505 = vmatprep.mubr.f32.mxu0 %v2050_v4  ;;  %1578 = vmatprep.mubr.f32.mxu1 %v2050_v4 }
  0xca   :  { %1907 = vmatmul.mubr.msk.f32.vlgmr.msra.gmra.mrb[0].mxu0 %vm117_vm2, %v63_v6  ;;  %1910 = vmatmul.mubr.msk.f32.vlgmr.msra.gmra.mrb[0].mxu1 %vm117_vm2, %v63_v6 }
 0x19d   :  { %v1507_v12 = vpop.f32.mrb[0].mxu0  ;;  %v1580_v25 = vpop.f32.mrb[0].mxu1 }
 0x19e   :  { %v1588_v26 = vsel %vm1587_vm4, %v1507_v12, 0.0  ;;  %v1593_v27 = vsel %vm1587_vm4, %v1580_v25, 0.0  ;;  %v1509_v28 = vpop.f32.mrb[1].mxu0  ;;  %v1582_v29 = vpop.f32.mrb[1].mxu1 }
 0x19f   :  { %v1589_v30 = vsel %vm1587_vm4, %v1509_v28, 0.0  ;;  %v1594_v4 = vsel %vm1587_vm4, %v1582_v29, 0.0 }
 0x1a0   :  { %v1595_v31 = vadd.f32 %v1594_v4, %v1593_v27  ;;  %v1590_v32 = vadd.f32 %v1589_v30, %v1588_v26 }
 0x1a2   :  { %1596 = vadd.xlane.f32.xlu1 %v1595_v31  ;;  %1591 = vadd.xlane.f32.xlu0 %v1590_v32 }
 0x1b3   :  { %1630 = vperm.xlu1 %1966, %v1626_v33  }
 0x1b7   :  { %1760 = vperm.xlu1 %1966, %v1644_v35  }
 0x1bb   :  { %1765 = vperm.xlu1 %1966, %v1645_v36  }
 0x1bf   :  { %1808 = vperm.xlu1 %1966, %v1648_v37  }
 0x1c3   :  { %1817 = vperm.xlu1 %1966, %v1649_v38  }
 0x22f   :  { %v1597_v39 = vpop.xlane.xlu1 %1596  ;;  %v1592_v40 = vpop.xlane.xlu0 %1591 }
 0x230   :  { %v1598_v41 = vadd.f32 %v1597_v39, %v1592_v40 }
 0x232   :  { %v1599_v42 = vmul.f32 0.001953125, %v1598_v41 }
 0x233   :  { %v1631_v9 = vpop.permute.xlu1 %1630 }
 0x234   :  { %v1600_v43 = vsub.f32 %v1507_v12, %v1599_v42  ;;  %v1601_v44 = vsub.f32 %v1509_v28, %v1599_v42  ;;  %v1602_v45 = vsub.f32 %v1580_v25, %v1599_v42  ;;  %v1603_v46 = vsub.f32 %v1582_v29, %v1599_v42 }
 0x236   :  { %v1604_v47 = vmul.f32 %v1600_v43, %v1600_v43  ;;  %v1605_v48 = vmul.f32 %v1601_v44, %v1601_v44  ;;  %v1611_v49 = vmul.f32 %v1602_v45, %v1602_v45  ;;  %v1612_v50 = vmul.f32 %v1603_v46, %v1603_v46 }
 0x238   :  { %v1606_v51 = vsel %vm1587_vm4, %v1604_v47, 0.0  ;;  %v1607_v52 = vsel %vm1587_vm4, %v1605_v48, 0.0  ;;  %v1613_v54 = vsel %vm1587_vm4, %v1611_v49, 0.0  ;;  %v1614_v55 = vsel %vm1587_vm4, %v1612_v50, 0.0 }
 0x239   :  { %v1608_v53 = vadd.f32 %v1607_v52, %v1606_v51  ;;  %v1615_v56 = vadd.f32 %v1614_v55, %v1613_v54 }
 0x23b   :  { %1609 = vadd.xlane.f32.xlu0 %v1608_v53 }
 0x23f   :  { %1616 = vadd.xlane.f32.xlu0 %v1615_v56 }
 0x255   :  { %1635 = vperm.xlu0 %1967, %v1627_v57  }
 0x2c8   :  { %v1610_v58 = vpop.xlane.xlu0 %1609 }
 0x2cc   :  { %v1617_v59 = vpop.xlane.xlu0 %1616 }
 0x2cd   :  { %v1618_v60 = vadd.f32 %v1617_v59, %v1610_v58  ;;  %v1642_v58 = vld [vmem:[%s2416_s3] sm:$0xff]  ;;  %v1761_v59 = vpop.permute.xlu1 %1760 }
 0x2cf   :  { %v1619_v61 = vmul.f32 0.001953125, %v1618_v60 }
 0x2d1   :  { %v1620_v62 = vadd.f32 1e-05, %v1619_v61 }
 0x2d3   :  { %1972 = vrsqrt.f32 %v1620_v62 }
 0x2d4   :  { %v1636_v5 = vpop.permute.xlu0 %1635 }
 0x2dd   :  { %v1973_v63 = vpop.eup %1972 }
 0x2de   :  { %v1622_v0 = vmul.f32 %v1973_v63, %v1600_v43  ;;  %v1623_v1 = vmul.f32 %v1973_v63, %v1601_v44  ;;  %v1624_v2 = vmul.f32 %v1973_v63, %v1602_v45  ;;  %v1625_v3 = vmul.f32 %v1973_v63, %v1603_v46 }
 0x2e0   :  { %v2359_v10 = vmul.f32 %v1631_v9, %v1622_v0  ;;  %v2361_v11 = vmul.f32 %v1631_v9, %v1623_v1  ;;  %v2363_v15 = vmul.f32 %v1636_v5, %v1624_v2  ;;  %v2365_v16 = vmul.f32 %v1636_v5, %v1625_v3  ;;  %v1647_v0 = vld [vmem:[%s2420_s7] sm:$0xff]  ;;  %v1643_v2 = vld [vmem:[%s2416_s3 + $0x8] sm:$0xff] }
 0x2e1   :  { %v1770_v1 = vcombine.high %v1642_v58, %v1642_v58  ;;  %v1720_v3 = vstv %s1650_s4  ;;  %v1725_v5 = vstv %s1913_s25  ;;  %v1771_v9 = vcombine.high %v1643_v2, %v1643_v2 }
 0x2e2   :  { %v1661_v17 = vmul.f32 %v1660_v7, %v2359_v10  ;;  %v1662_v18 = vmul.f32 %v1660_v7, %v2361_v11  ;;  %v1691_v19 = vmul.f32 %v1690_v8, %v2359_v10  ;;  %v1692_v20 = vmul.f32 %v1690_v8, %v2361_v11 }
 0x2e3   :  { %v1663_v6 = vmul.f32 %v1660_v7, %v2363_v15  ;;  %v1664_v12 = vmul.f32 %v1660_v7, %v2365_v16  ;;  %v1693_v25 = vmul.f32 %v1690_v8, %v2363_v15  ;;  %v1694_v26 = vmul.f32 %v1690_v8, %v2365_v16 }
 0x2e4   :  { %v1666_v21 = vadd.f32 %v1665_v13, %v1661_v17  ;;  %v1667_v22 = vadd.f32 %v1665_v13, %v1662_v18  ;;  %v1696_v23 = vadd.f32 %v1695_v14, %v1691_v19  ;;  %v1697_v24 = vadd.f32 %v1695_v14, %v1692_v20 }
 0x2e5   :  { %v1668_v4 = vadd.f32 %v1665_v13, %v1663_v6  ;;  %v1669_v31 = vadd.f32 %v1665_v13, %v1664_v12  ;;  %v1698_v32 = vadd.f32 %v1695_v14, %v1693_v25  ;;  %v1699_v33 = vadd.f32 %v1695_v14, %v1694_v26  ;;  %v1766_v13 = vpop.permute.xlu1 %1765 }
 0x2e6   :  { %v1670_v27 = vsub.f32 0.0, %v1666_v21  ;;  %v1671_v28 = vsub.f32 0.0, %v1667_v22  ;;  %v1700_v29 = vsub.f32 0.0, %v1696_v23  ;;  %v1701_v30 = vsub.f32 0.0, %v1697_v24 }
 0x2e7   :  { %v1672_v38 = vsub.f32 0.0, %v1668_v4  ;;  %v1673_v39 = vsub.f32 0.0, %v1669_v31  ;;  %v1702_v40 = vsub.f32 0.0, %v1698_v32  ;;  %v1703_v41 = vsub.f32 0.0, %v1699_v33 }
 0x2e8   :  { %v1674_v34 = vmul.f32 1.442695, %v1670_v27  ;;  %v1676_v35 = vmul.f32 1.442695, %v1671_v28  ;;  %v1704_v36 = vmul.f32 1.442695, %v1700_v29  ;;  %v1798_v7 = vcombine.high %v1647_v0, %v1647_v0 }
 0x2e9   :  { %v1706_v37 = vmul.f32 1.442695, %v1701_v30  ;;  %v1678_v42 = vmul.f32 1.442695, %v1672_v38  ;;  %v1680_v43 = vmul.f32 1.442695, %v1673_v39  ;;  %v1744_v8 = vstv %s1918_s26 }
 0x2ea   :  { %1974 = vpow2.f32 %v1674_v34  ;;  %v1708_v44 = vmul.f32 1.442695, %v1702_v40  ;;  %v1710_v45 = vmul.f32 1.442695, %v1703_v41  ;;  %v1739_v17 = vstv %s1915_s27 }
 0x2eb   :  { %1976 = vpow2.f32 %v1676_v35  ;;  %v1774_v18 = vmul.f32 %v1761_v59, %v1642_v58  ;;  %v1775_v19 = vmul.f32 %v1770_v1, %v1761_v59  ;;  %v1776_v20 = vmul.f32 %v1766_v13, %v1643_v2 }
 0x2ec   :  { %1978 = vpow2.f32 %v1704_v36  ;;  %v1734_v22 = vstv %s1914_s30  ;;  %v1726_v24 = vmul.f32 %v1725_v5, %v2359_v10  ;;  %v1753_v12 = vstv %s1919_s1 }
 0x2ed   :  { %1980 = vpow2.f32 %v1706_v37  ;;  %v1727_v26 = vmul.f32 %v1725_v5, %v2361_v11  ;;  %v1745_v28 = vmul.f32 %v1744_v8, %v2359_v10  ;;  %v1746_v29 = vmul.f32 %v1744_v8, %v2361_v11 }
 0x2ee   :  { %1982 = vpow2.f32 %v1678_v42  ;;  %v1728_v34 = vmul.f32 %v1725_v5, %v2363_v15  ;;  %v1729_v35 = vmul.f32 %v1725_v5, %v2365_v16  ;;  %v1747_v40 = vmul.f32 %v1744_v8, %v2363_v15  ;;  %v1809_v5 = vpop.permute.xlu1 %1808 }
 0x2ef   :  { %1984 = vpow2.f32 %v1680_v43  ;;  %v1748_v11 = vmul.f32 %v1744_v8, %v2365_v16 }
 0x2f0   :  { %1986 = vpow2.f32 %v1708_v44 }
 0x2f1   :  { %1988 = vpow2.f32 %v1710_v45 }
 0x2f4   :  { %v1975_v46 = vpop.eup %1974 }
 0x2f5   :  { %v1977_v47 = vpop.eup %1976  ;;  %v1682_v48 = vadd.f32 1.0, %v1975_v46 }
 0x2f6   :  { %v1979_v49 = vpop.eup %1978  ;;  %v1683_v50 = vadd.f32 1.0, %v1977_v47 }
 0x2f7   :  { %v1981_v51 = vpop.eup %1980  ;;  %1990 = vrcp.f32 %v1682_v48  ;;  %v1712_v52 = vadd.f32 1.0, %v1979_v49  ;;  %v1646_v49 = vld [vmem:[%s2419_s6] sm:$0xff] }
 0x2f8   :  { %v1983_v53 = vpop.eup %1982  ;;  %1992 = vrcp.f32 %v1683_v50  ;;  %v1713_v54 = vadd.f32 1.0, %v1981_v51  ;;  %v1791_v59 = vcombine.high %v1646_v49, %v1646_v49 }
 0x2f9   :  { %v1985_v55 = vpop.eup %1984  ;;  %1994 = vrcp.f32 %v1712_v52  ;;  %v1684_v56 = vadd.f32 1.0, %v1983_v53 }
 0x2fa   :  { %v1987_v57 = vpop.eup %1986  ;;  %1996 = vrcp.f32 %v1713_v54  ;;  %v1685_v60 = vadd.f32 1.0, %v1985_v55  ;;  %v1777_v54 = vmul.f32 %v1771_v9, %v1766_v13 }
 0x2fb   :  { %v1989_v61 = vpop.eup %1988  ;;  %1998 = vrcp.f32 %v1684_v56  ;;  %v1714_v62 = vadd.f32 1.0, %v1987_v57 }
 0x2fc   :  { %2000 = vrcp.f32 %v1685_v60  ;;  %v1715_v63 = vadd.f32 1.0, %v1989_v61 }
 0x2fd   :  { %2002 = vrcp.f32 %v1714_v62 }
 0x2fe   :  { %2004 = vrcp.f32 %v1715_v63 }
 0x2ff   :  { %2006 = vrcp.f32 %v1647_v0 }
 0x300   :  { %2008 = vrcp.f32 %v1798_v7 }
 0x301   :  { %v1991_v14 = vpop.eup %1990 }
 0x302   :  { %v1993_v21 = vpop.eup %1992  ;;  %v1721_v23 = vmul.f32 %v1991_v14, %v1720_v3 }
 0x303   :  { %v1995_v6 = vpop.eup %1994  ;;  %v1722_v25 = vmul.f32 %v1993_v21, %v1720_v3 }
 0x304   :  { %v1997_v27 = vpop.eup %1996  ;;  %v1730_v30 = vadd.f32 %v1726_v24, %v1721_v23  ;;  %v1740_v4 = vmul.f32 %v1995_v6, %v1739_v17  ;;  %v1818_v23 = vpop.permute.xlu1 %1817 }
 0x305   :  { %v1999_v31 = vpop.eup %1998  ;;  %v1731_v32 = vadd.f32 %v1727_v26, %v1722_v25  ;;  %v1741_v33 = vmul.f32 %v1997_v27, %v1739_v17 }
 0x306   :  { %v2001_v36 = vpop.eup %2000  ;;  %v1735_v37 = vadd.f32 %v1734_v22, %v1730_v30  ;;  %v1749_v38 = vadd.f32 %v1745_v28, %v1740_v4  ;;  %v1723_v39 = vmul.f32 %v1999_v31, %v1720_v3 }
 0x307   :  { %v2003_v41 = vpop.eup %2002  ;;  %v1736_v42 = vadd.f32 %v1734_v22, %v1731_v32  ;;  %v1750_v10 = vadd.f32 %v1746_v29, %v1741_v33  ;;  %v1724_v43 = vmul.f32 %v2001_v36, %v1720_v3 }
 0x308   :  { %v2005_v44 = vpop.eup %2004  ;;  %v1754_v45 = vadd.f32 %v1753_v12, %v1749_v38  ;;  %v1778_v46 = vsub.f32 %v1774_v18, %v1735_v37  ;;  %v1732_v47 = vadd.f32 %v1728_v34, %v1723_v39  ;;  %v1742_v48 = vmul.f32 %v2003_v41, %v1739_v17 }
 0x309   :  { %v1755_v50 = vadd.f32 %v1753_v12, %v1750_v10  ;;  %v1779_v51 = vsub.f32 %v1775_v19, %v1736_v42  ;;  %v1733_v52 = vadd.f32 %v1729_v35, %v1724_v43  ;;  %v1743_v53 = vmul.f32 %v2005_v44, %v1739_v17  ;;  %v2007_v60 = vpop.eup %2006 }
 0x30a   :  { %v1782_v15 = vmul.f32 %v1778_v46, %v1754_v45  ;;  %v1737_v55 = vadd.f32 %v1734_v22, %v1732_v47  ;;  %v1751_v56 = vadd.f32 %v1747_v40, %v1742_v48  ;;  %v2009_v0 = vpop.eup %2008 }
 0x30b   :  { %v1783_v57 = vmul.f32 %v1779_v51, %v1755_v50  ;;  %v1738_v58 = vadd.f32 %v1734_v22, %v1733_v52  ;;  %v1752_v16 = vadd.f32 %v1748_v11, %v1743_v53 }
 0x30c   :  { %v1786_v61 = vadd.f32 %v1782_v15, %v1735_v37  ;;  %v1756_v62 = vadd.f32 %v1753_v12, %v1751_v56  ;;  %v1780_v63 = vsub.f32 %v1776_v20, %v1737_v55 }
 0x30d   :  { %v1787_v1 = vadd.f32 %v1783_v57, %v1736_v42  ;;  %v1757_v2 = vadd.f32 %v1753_v12, %v1752_v16  ;;  %v1781_v3 = vsub.f32 %v1777_v54, %v1738_v58 }
 0x30e   :  { %v1784_v7 = vmul.f32 %v1780_v63, %v1756_v62  ;;  %v1793_v8 = vsub.f32 %v1786_v61, %v1646_v49 }
 0x30f   :  { %v1828_v14 = vcombine.low %v1786_v61, %v1787_v1  ;;  %v1785_v17 = vmul.f32 %v1781_v3, %v1757_v2  ;;  %v1794_v9 = vsub.f32 %v1787_v1, %v1791_v59 }
 0x310   :  { %v1788_v13 = vadd.f32 %v1784_v7, %v1737_v55  ;;  %v1801_v18 = vmul.f32 %v2007_v60, %v1793_v8 }
 0x311   :  { %1832 = vst [vmem:[%s2423_s10] sm:$0xff] %v1828_v14  ;;  %v1789_v19 = vadd.f32 %v1785_v17, %v1738_v58  ;;  %v1803_v21 = vmul.f32 %v2009_v0, %v1794_v9 }
 0x312   :  { %v1795_v22 = vsub.f32 %v1788_v13, %v1646_v49  ;;  %v1811_v20 = vmul.f32 %v1809_v5, %v1801_v18 }
 0x313   :  { %v1796_v24 = vsub.f32 %v1789_v19, %v1791_v59  ;;  %v1812_v6 = vmul.f32 %v1809_v5, %v1803_v21  ;;  %v1829_v12 = vcombine.low %v1788_v13, %v1789_v19 }
 0x314   :  { %v1804_v25 = vmul.f32 %v2007_v60, %v1795_v22  ;;  %v1820_v26 = vadd.f32 %v1818_v23, %v1811_v20 }
 0x315   :  { %v1805_v27 = vmul.f32 %v2009_v0, %v1796_v24  ;;  %v1821_v28 = vadd.f32 %v1818_v23, %v1812_v6  ;;  %1833 = vst [vmem:[%s2423_s10 + $0x8] sm:$0xff] %v1829_v12 }
 0x316   :  { %v1813_v29 = vmul.f32 %v1809_v5, %v1804_v25 }
 0x317   :  { %v1814_v30 = vmul.f32 %v1809_v5, %v1805_v27  ;;  %v1838_v4 = vcombine.low %v1820_v26, %v1821_v28 }
 0x318   :  { %v1822_v31 = vadd.f32 %v1818_v23, %v1813_v29 }
 0x319   :  { %v1823_v32 = vadd.f32 %v1818_v23, %v1814_v30  ;;  %1842 = vst [vmem:[#allocation5] sm:$0xff] %v1838_v4 }
 0x31b   :  { %v1839_v33 = vcombine.low %v1822_v31, %v1823_v32 }
 0x31d   :  { %1843 = vst [vmem:[#allocation5 + $0x8] sm:$0xff] %v1839_v33 }
 0x31e   :  { %2033 = shalt.err (!%p2030_p9)
}
 0x31f   :  { %s2034_s22 = scalar_lea.hbm %s2424_s11, 256 }
 0x320   :  { %p2035_p10 = scmp.ne.s32.totalorder %s2424_s11, %s2034_s22  ;;  %p2038_p11 = scmp.lt.u32.totalorder %s2034_s22, %s2424_s11 }
 0x322   :  { %p2040_p12 = pnand %p2038_p11, %p2035_p10 }
 0x324   :  { %2043 = shalt.err (!%p2040_p12)
}
 0x325   :  { %s2060_s24 = smov 128   ;;  %s2061_s0 = smov 8  }
 0x326   :  { %1857 = dma.vmem_to_hbm [thread:$0]  %s1852_s19, 256, %s2424_s11, [#allocation3], %s2060_s24, %s2060_s24, %s2061_s0  }
 0x327   :  { %2046 = dma.done.wait [#allocation3], 256  }
 0x328   :  { %2047 = vsyncadd [#allocation3], 4294967040 }
 0x329   :  { %1863 = vsyncpa [#allocation3], 1 }
 0x32a   :  { %1864 = vsyncpa [#allocation4], 1 }

</bundles_post_ra>
